<compile_context>
chip_gen: v7x
topology: tpu7x:2x2x1
jax: 0.10.0
libtpu: 0.0.40
codegen_flags: <defaults>
</compile_context>

<pallas_src>
import functools

import jax
import jax.numpy as jnp
from jax.experimental import pallas as pl
from jax.experimental.pallas import tpu as pltpu

C = 128            # padded channel count (real = 120)
C_REAL = 120
HALO = 8           # >= max conv halo (6); keeps the center f32-sublane aligned
NUM_LAYERS = 43
EPS = 1e-5

FOLD = 10                  # K=5 layers folded into one grid step
NMID = 40 // FOLD          # 4 middle grid steps
NSTEPS = NMID + 3          # 7 grid steps total: layer0 | 4x(10 K=5 layers) | layer41 | layer42

K9_OFFS = tuple(HALO - 4 + t for t in range(9))       # kernel=9, dil=1, pad=4
K5_OFFS = tuple(HALO - 6 + 3 * t for t in range(5))   # kernel=5, dil=3, pad=6

# (in_channels, out_channels, kernel_size, dilation, padding, activation)
LAYER_CFGS = (
    [(120, 120, 9, 1, 4, "mish")]
    + [(120, 120, 5, 3, 6, "relu")] * 40
    + [(120, 120, 9, 1, 4, "mish"),
       (120, 1, 9, 1, 4, "relu")]
)


def _fcn_kernel(x_ref, w9_ref, w5_ref, g_ref, b_ref, o_ref, buf_ref, sem):
    # x_ref:   (B, L, C) f32, memory_space=ANY (HBM) -- DMA'd into buf at step 0
    # w9_ref:  (1, 9, C, C) bf16   current K=9 layer's weights (steps 0, 5, 6)
    # w5_ref:  (1, FOLD, 5, C, C) bf16  current fold of 10 K=5 layers (steps 1..4)
    # g_ref:   (NUM_LAYERS, C) f32  BN gamma, resident
    # b_ref:   (NUM_LAYERS, C) f32  BN beta,  resident
    # o_ref:   (B, L, C) f32  output, written on the last step only
    # buf_ref: (B, L+2*HALO, C) f32 activation + permanently-zero halo (persists)
    # sem:     DMA semaphore for the step-0 input copy
    s = pl.program_id(0)
    B, L, Cc = o_ref.shape
    rows = B * L
    inv_n = 1.0 / float(rows)

    def conv(get_tap, offs):
        # One (B*L, C) @ (C, C) MXU matmul per tap; f32 accumulation in vregs.
        acc = jnp.zeros((rows, Cc), jnp.float32)
        for t, off in enumerate(offs):                      # static offsets
            sl = buf_ref[:, off:off + L, :].reshape(rows, Cc).astype(jnp.bfloat16)
            acc = acc + jnp.dot(sl, get_tap(t),
                                preferred_element_type=jnp.float32)
        return acc

    def bn(acc, lid):
        # BatchNorm1d training-mode batch stats; centered (two-pass) variance.
        g = g_ref[pl.ds(lid, 1), :]                         # (1, C)
        beta = b_ref[pl.ds(lid, 1), :]                      # (1, C)
        mu = jnp.sum(acc, axis=0, keepdims=True) * inv_n
        var = jnp.sum((acc - mu) * (acc - mu), axis=0, keepdims=True) * inv_n
        scale = g * jax.lax.rsqrt(var + EPS)
        return acc * scale + (beta - mu * scale)

    def mish(y):
        sp = jnp.where(y > 20.0, y, jnp.log1p(jnp.exp(jnp.minimum(y, 20.0))))
        return y * jnp.tanh(sp)

    def writeback(y):                                       # y: (rows, C) f32
        buf_ref[:, HALO:HALO + L, :] = y.reshape(B, L, Cc).astype(buf_ref.dtype)

    # ---- step 0: zero halos, DMA input into buf, run layer 0 (K=9, Mish) ----
    @pl.when(s == 0)
    def _():
        zeros_h = jnp.zeros((B, HALO, Cc), buf_ref.dtype)
        buf_ref[:, :HALO, :] = zeros_h
        buf_ref[:, HALO + L:, :] = zeros_h
        cp = pltpu.make_async_copy(x_ref, buf_ref.at[:, HALO:HALO + L, :], sem)
        cp.start()
        cp.wait()
        writeback(mish(bn(conv(lambda t: w9_ref[0, t], K9_OFFS), 0)))

    # ---- steps 1..NMID: FOLD consecutive K=5/dil=3 layers, ReLU -------------
    @pl.when(jnp.logical_and(s >= 1, s <= NMID))
    def _():
        base = (s - 1) * FOLD + 1                           # first layer id here
        for j in range(FOLD):
            acc = conv(lambda t, j=j: w5_ref[0, j, t], K5_OFFS)
            writeback(jnp.maximum(bn(acc, base + j), 0.0))

    # ---- step NSTEPS-2: layer 41 (K=9, Mish) --------------------------------
    @pl.when(s == NSTEPS - 2)
    def _():
        writeback(mish(bn(conv(lambda t: w9_ref[0, t], K9_OFFS), NUM_LAYERS - 2)))

    # ---- step NSTEPS-1: layer 42 (K=9, ReLU) -> output -----------------------
    @pl.when(s == NSTEPS - 1)
    def _():
        y = jnp.maximum(bn(conv(lambda t: w9_ref[0, t], K9_OFFS),
                           NUM_LAYERS - 1), 0.0)
        o_ref[...] = y.reshape(B, L, Cc).astype(o_ref.dtype)


@functools.lru_cache(maxsize=None)
def _make_fcn(B, L):
    return pl.pallas_call(
        _fcn_kernel,
        grid=(NSTEPS,),
        in_specs=[
            # embedded input stays in HBM; copied into buf once at step 0
            pl.BlockSpec(memory_space=pl.ANY),
            # K=9 weights: block 0 for steps 0..NMID, 1 for layer 41, 2 for 42
            pl.BlockSpec((1, 9, C, C),
                         lambda s: (jnp.maximum(s - NMID, 0), 0, 0, 0)),
            # K=5 weights: one fold of FOLD layers per middle step
            pl.BlockSpec((1, FOLD, 5, C, C),
                         lambda s: (jnp.clip(s - 1, 0, NMID - 1), 0, 0, 0, 0)),
            # gamma / beta: resident for the whole grid
            pl.BlockSpec((NUM_LAYERS, C), lambda s: (0, 0)),
            pl.BlockSpec((NUM_LAYERS, C), lambda s: (0, 0)),
        ],
        out_specs=pl.BlockSpec((B, L, C), lambda s: (0, 0, 0)),   # resident out
        out_shape=jax.ShapeDtypeStruct((B, L, C), jnp.float32),
        scratch_shapes=[
            pltpu.VMEM((B, L + 2 * HALO, C), jnp.float32),  # activation + halo
            pltpu.SemaphoreType.DMA,                        # step-0 input copy
        ],
        compiler_params=pltpu.CompilerParams(
            dimension_semantics=("arbitrary",),             # sequential chain
            vmem_limit_bytes=32 * 1024 * 1024,              # safe on v5e/v6e/v7x
        ),
    )


def init_params(key):
    key, k_emb = jax.random.split(key)
    emb = jax.random.normal(k_emb, (6, C_REAL), jnp.float32)   # nn.Embedding init
    emb = jnp.pad(emb, ((0, 0), (0, C - C_REAL)))              # lane-pad 120->128

    w9s, w5s, gs, bs = [], [], [], []
    for (cin, cout, K, _dil, _pad, _act) in LAYER_CFGS:
        key, kw = jax.random.split(key)
        bound = 1.0 / float(cin * K) ** 0.5                    # Conv1d default init
        w = jax.random.uniform(kw, (K, cin, cout), jnp.float32, -bound, bound)
        w = jnp.pad(w, ((0, 0), (0, C - cin), (0, C - cout))).astype(jnp.bfloat16)
        (w9s if K == 9 else w5s).append(w)
        gs.append(jnp.pad(jnp.ones((cout,), jnp.float32), (0, C - cout)))
        bs.append(jnp.zeros((C,), jnp.float32))

    return {
        "embedding": emb,                                       # (6, 128) f32
        "w9": jnp.stack(w9s),                                   # (3, 9, 128, 128) bf16
        "w5": jnp.stack(w5s).reshape(NMID, FOLD, 5, C, C),      # (4, 10, 5, 128, 128) bf16
        "gamma": jnp.stack(gs),                                 # (43, 128) f32
        "beta": jnp.stack(bs),                                  # (43, 128) f32
    }


def fcn_forward(params, input_ids):
    # Embedding gather (glue); (B, L, C) channels-last makes the PyTorch
    # transpose(1, 2) implicit.
    B, L = input_ids.shape
    x = jnp.take(params["embedding"], input_ids, axis=0)       # (B, L, 128) f32
    out = _make_fcn(B, L)(x, params["w9"], params["w5"],
                          params["gamma"], params["beta"])
    # Last layer has a single real output channel (padded to 128 in-kernel):
    # PyTorch (B, 1, L).view(B, -1) == channel 0 of (B, L, 128).
    return out[:, :, 0]


if __name__ == "__main__":
    key = jax.random.PRNGKey(0)
    key, k_ids = jax.random.split(key)

    B, L = 2, 16
    input_ids = jax.random.randint(k_ids, (B, L), 0, 6, dtype=jnp.int32)

    params = init_params(key)
    fwd = jax.jit(fcn_forward)
    out = fwd(params, input_ids)
    jax.block_until_ready(out)

    assert out.shape == (B, L), out.shape
    assert bool(jnp.all(jnp.isfinite(out)))
    print("KERNEL_OK")
</pallas_src>

<mosaic_0001>
module attributes {stable_mosaic.version = 11 : i64} {
  func.func @_fcn_kernel(%arg0: i32, %arg1: memref<2x16x128xf32, #tpu.memory_space<any>>, %arg2: memref<1x9x128x128xbf16, #tpu.memory_space<vmem>>, %arg3: memref<1x10x5x128x128xbf16, #tpu.memory_space<vmem>>, %arg4: memref<43x128xf32, #tpu.memory_space<vmem>>, %arg5: memref<43x128xf32, #tpu.memory_space<vmem>>, %arg6: memref<2x16x128xf32, #tpu.memory_space<vmem>>, %arg7: memref<2x32x128xf32, #tpu.memory_space<vmem>>, %arg8: memref<!tpu.dma_semaphore, #tpu.memory_space<semaphore_mem>>) attributes {dimension_semantics = [#tpu.dimension_semantics<arbitrary>], iteration_bounds = array<i64: 7>, scalar_prefetch = 0 : i64, scratch_operands = 2 : i64, tpu.core_type = #tpu.core_type<tc>, window_params = [{}, {transform_indices = @transform_1, window_bounds = array<i64: 1, 9, 128, 128>}, {transform_indices = @transform_2, window_bounds = array<i64: 1, 10, 5, 128, 128>}, {pipeline_mode = #tpu.pipeline_mode<synchronous>, transform_indices = @transform_3, window_bounds = array<i64: 43, 128>}, {pipeline_mode = #tpu.pipeline_mode<synchronous>, transform_indices = @transform_4, window_bounds = array<i64: 43, 128>}, {pipeline_mode = #tpu.pipeline_mode<synchronous>, transform_indices = @transform_5, window_bounds = array<i64: 2, 16, 128>}]} {
    %c0_i32 = arith.constant 0 : i32
    %0 = arith.cmpi eq, %arg0, %c0_i32 : i32
    %1 = arith.extui %0 : i1 to i32
    %c0_i32_0 = arith.constant 0 : i32
    %2 = arith.cmpi ne, %1, %c0_i32_0 : i32
    scf.if %2 {
      %cst = arith.constant 0.000000e+00 : f32
      %14 = vector.broadcast %cst : f32 to vector<2x8x128xf32>
      %c0 = arith.constant 0 : index
      %c0_4 = arith.constant 0 : index
      %c0_5 = arith.constant 0 : index
      %15 = vector.load %arg7[%c0, %c0_4, %c0_5] : memref<2x32x128xf32, #tpu.memory_space<vmem>>, vector<2x8x128xf32>
      tpu.vector_store %arg7[%c0, %c0_4, %c0_5], %14 {strides = array<i32>} : memref<2x32x128xf32, #tpu.memory_space<vmem>>, vector<2x8x128xf32>,
      %c0_6 = arith.constant 0 : index
      %c24 = arith.constant 24 : index
      %c0_7 = arith.constant 0 : index
      %16 = vector.load %arg7[%c0_6, %c24, %c0_7] : memref<2x32x128xf32, #tpu.memory_space<vmem>>, vector<2x8x128xf32>
      tpu.vector_store %arg7[%c0_6, %c24, %c0_7], %14 {strides = array<i32>} : memref<2x32x128xf32, #tpu.memory_space<vmem>>, vector<2x8x128xf32>,
      %c0_i32_8 = arith.constant 0 : i32
      %c8_i32 = arith.constant 8 : i32
      %c0_i32_9 = arith.constant 0 : i32
      %17 = tpu.memref_slice %arg7[%c0_i32_8, %c8_i32, %c0_i32_9] : memref<2x32x128xf32, #tpu.memory_space<vmem>> -> memref<2x16x128xf32, #tpu.memory_space<vmem>>
      tpu.enqueue_dma source(%arg1 : memref<2x16x128xf32, #tpu.memory_space<any>>) target(%17 : memref<2x16x128xf32, #tpu.memory_space<vmem>>) target_semaphore(%arg8 : memref<!tpu.dma_semaphore, #tpu.memory_space<semaphore_mem>>)
      %c0_i32_10 = arith.constant 0 : i32
      %c8_i32_11 = arith.constant 8 : i32
      %c0_i32_12 = arith.constant 0 : i32
      %18 = tpu.memref_slice %arg7[%c0_i32_10, %c8_i32_11, %c0_i32_12] : memref<2x32x128xf32, #tpu.memory_space<vmem>> -> memref<2x16x128xf32, #tpu.memory_space<vmem>>
      tpu.wait_dma2 semaphore(%arg8 : memref<!tpu.dma_semaphore, #tpu.memory_space<semaphore_mem>>) src(%arg1 : memref<2x16x128xf32, #tpu.memory_space<any>>) dst(%18 : memref<2x16x128xf32, #tpu.memory_space<vmem>>)
      %cst_13 = arith.constant 0.000000e+00 : f32
      %19 = vector.broadcast %cst_13 : f32 to vector<32x128xf32>
      %c0_14 = arith.constant 0 : index
      %c4 = arith.constant 4 : index
      %c0_15 = arith.constant 0 : index
      %20 = vector.load %arg7[%c0_14, %c4, %c0_15] : memref<2x32x128xf32, #tpu.memory_space<vmem>>, vector<2x16x128xf32>
      %21 = vector.shape_cast %20 : vector<2x16x128xf32> to vector<32x128xf32>
      %22 = arith.truncf %21 : vector<32x128xf32> to vector<32x128xbf16>
      %c0_16 = arith.constant 0 : index
      %c0_17 = arith.constant 0 : index
      %c0_18 = arith.constant 0 : index
      %c0_19 = arith.constant 0 : index
      %23 = vector.load %arg2[%c0_16, %c0_17, %c0_18, %c0_19] : memref<1x9x128x128xbf16, #tpu.memory_space<vmem>>, vector<1x1x128x128xbf16>
      %24 = vector.shape_cast %23 : vector<1x1x128x128xbf16> to vector<128x128xbf16>
      %cst_20 = arith.constant dense<0.000000e+00> : vector<32x128xf32>
      %25 = tpu.matmul %22, %24, %cst_20 {dimension_numbers = #tpu.dot_dimension_numbers<[1], [0], [0], [1], [0, 0, 1, 1], [], []>} : vector<32x128xbf16>, vector<128x128xbf16>, vector<32x128xf32> -> vector<32x128xf32>
      %26 = arith.addf %19, %25 : vector<32x128xf32>
      %c0_21 = arith.constant 0 : index
      %c5 = arith.constant 5 : index
      %c0_22 = arith.constant 0 : index
      %27 = vector.load %arg7[%c0_21, %c5, %c0_22] : memref<2x32x128xf32, #tpu.memory_space<vmem>>, vector<2x16x128xf32>
      %28 = vector.shape_cast %27 : vector<2x16x128xf32> to vector<32x128xf32>
      %29 = arith.truncf %28 : vector<32x128xf32> to vector<32x128xbf16>
      %c0_23 = arith.constant 0 : index
      %c1 = arith.constant 1 : index
      %c0_24 = arith.constant 0 : index
      %c0_25 = arith.constant 0 : index
      %30 = vector.load %arg2[%c0_23, %c1, %c0_24, %c0_25] : memref<1x9x128x128xbf16, #tpu.memory_space<vmem>>, vector<1x1x128x128xbf16>
      %31 = vector.shape_cast %30 : vector<1x1x128x128xbf16> to vector<128x128xbf16>
      %cst_26 = arith.constant dense<0.000000e+00> : vector<32x128xf32>
      %32 = tpu.matmul %29, %31, %cst_26 {dimension_numbers = #tpu.dot_dimension_numbers<[1], [0], [0], [1], [0, 0, 1, 1], [], []>} : vector<32x128xbf16>, vector<128x128xbf16>, vector<32x128xf32> -> vector<32x128xf32>
      %33 = arith.addf %26, %32 : vector<32x128xf32>
      %c0_27 = arith.constant 0 : index
      %c6 = arith.constant 6 : index
      %c0_28 = arith.constant 0 : index
      %34 = vector.load %arg7[%c0_27, %c6, %c0_28] : memref<2x32x128xf32, #tpu.memory_space<vmem>>, vector<2x16x128xf32>
      %35 = vector.shape_cast %34 : vector<2x16x128xf32> to vector<32x128xf32>
      %36 = arith.truncf %35 : vector<32x128xf32> to vector<32x128xbf16>
      %c0_29 = arith.constant 0 : index
      %c2 = arith.constant 2 : index
      %c0_30 = arith.constant 0 : index
      %c0_31 = arith.constant 0 : index
      %37 = vector.load %arg2[%c0_29, %c2, %c0_30, %c0_31] : memref<1x9x128x128xbf16, #tpu.memory_space<vmem>>, vector<1x1x128x128xbf16>
      %38 = vector.shape_cast %37 : vector<1x1x128x128xbf16> to vector<128x128xbf16>
      %cst_32 = arith.constant dense<0.000000e+00> : vector<32x128xf32>
      %39 = tpu.matmul %36, %38, %cst_32 {dimension_numbers = #tpu.dot_dimension_numbers<[1], [0], [0], [1], [0, 0, 1, 1], [], []>} : vector<32x128xbf16>, vector<128x128xbf16>, vector<32x128xf32> -> vector<32x128xf32>
      %40 = arith.addf %33, %39 : vector<32x128xf32>
      %c0_33 = arith.constant 0 : index
      %c7 = arith.constant 7 : index
      %c0_34 = arith.constant 0 : index
      %41 = vector.load %arg7[%c0_33, %c7, %c0_34] : memref<2x32x128xf32, #tpu.memory_space<vmem>>, vector<2x16x128xf32>
      %42 = vector.shape_cast %41 : vector<2x16x128xf32> to vector<32x128xf32>
      %43 = arith.truncf %42 : vector<32x128xf32> to vector<32x128xbf16>
      %c0_35 = arith.constant 0 : index
      %c3 = arith.constant 3 : index
      %c0_36 = arith.constant 0 : index
      %c0_37 = arith.constant 0 : index
      %44 = vector.load %arg2[%c0_35, %c3, %c0_36, %c0_37] : memref<1x9x128x128xbf16, #tpu.memory_space<vmem>>, vector<1x1x128x128xbf16>
      %45 = vector.shape_cast %44 : vector<1x1x128x128xbf16> to vector<128x128xbf16>
      %cst_38 = arith.constant dense<0.000000e+00> : vector<32x128xf32>
      %46 = tpu.matmul %43, %45, %cst_38 {dimension_numbers = #tpu.dot_dimension_numbers<[1], [0], [0], [1], [0, 0, 1, 1], [], []>} : vector<32x128xbf16>, vector<128x128xbf16>, vector<32x128xf32> -> vector<32x128xf32>
      %47 = arith.addf %40, %46 : vector<32x128xf32>
      %c0_39 = arith.constant 0 : index
      %c8 = arith.constant 8 : index
      %c0_40 = arith.constant 0 : index
      %48 = vector.load %arg7[%c0_39, %c8, %c0_40] : memref<2x32x128xf32, #tpu.memory_space<vmem>>, vector<2x16x128xf32>
      %49 = vector.shape_cast %48 : vector<2x16x128xf32> to vector<32x128xf32>
      %50 = arith.truncf %49 : vector<32x128xf32> to vector<32x128xbf16>
      %c0_41 = arith.constant 0 : index
      %c4_42 = arith.constant 4 : index
      %c0_43 = arith.constant 0 : index
      %c0_44 = arith.constant 0 : index
      %51 = vector.load %arg2[%c0_41, %c4_42, %c0_43, %c0_44] : memref<1x9x128x128xbf16, #tpu.memory_space<vmem>>, vector<1x1x128x128xbf16>
      %52 = vector.shape_cast %51 : vector<1x1x128x128xbf16> to vector<128x128xbf16>
      %cst_45 = arith.constant dense<0.000000e+00> : vector<32x128xf32>
      %53 = tpu.matmul %50, %52, %cst_45 {dimension_numbers = #tpu.dot_dimension_numbers<[1], [0], [0], [1], [0, 0, 1, 1], [], []>} : vector<32x128xbf16>, vector<128x128xbf16>, vector<32x128xf32> -> vector<32x128xf32>
      %54 = arith.addf %47, %53 : vector<32x128xf32>
      %c0_46 = arith.constant 0 : index
      %c9 = arith.constant 9 : index
      %c0_47 = arith.constant 0 : index
      %55 = vector.load %arg7[%c0_46, %c9, %c0_47] : memref<2x32x128xf32, #tpu.memory_space<vmem>>, vector<2x16x128xf32>
      %56 = vector.shape_cast %55 : vector<2x16x128xf32> to vector<32x128xf32>
      %57 = arith.truncf %56 : vector<32x128xf32> to vector<32x128xbf16>
      %c0_48 = arith.constant 0 : index
      %c5_49 = arith.constant 5 : index
      %c0_50 = arith.constant 0 : index
      %c0_51 = arith.constant 0 : index
      %58 = vector.load %arg2[%c0_48, %c5_49, %c0_50, %c0_51] : memref<1x9x128x128xbf16, #tpu.memory_space<vmem>>, vector<1x1x128x128xbf16>
      %59 = vector.shape_cast %58 : vector<1x1x128x128xbf16> to vector<128x128xbf16>
      %cst_52 = arith.constant dense<0.000000e+00> : vector<32x128xf32>
      %60 = tpu.matmul %57, %59, %cst_52 {dimension_numbers = #tpu.dot_dimension_numbers<[1], [0], [0], [1], [0, 0, 1, 1], [], []>} : vector<32x128xbf16>, vector<128x128xbf16>, vector<32x128xf32> -> vector<32x128xf32>
      %61 = arith.addf %54, %60 : vector<32x128xf32>
      %c0_53 = arith.constant 0 : index
      %c10 = arith.constant 10 : index
      %c0_54 = arith.constant 0 : index
      %62 = vector.load %arg7[%c0_53, %c10, %c0_54] : memref<2x32x128xf32, #tpu.memory_space<vmem>>, vector<2x16x128xf32>
      %63 = vector.shape_cast %62 : vector<2x16x128xf32> to vector<32x128xf32>
      %64 = arith.truncf %63 : vector<32x128xf32> to vector<32x128xbf16>
      %c0_55 = arith.constant 0 : index
      %c6_56 = arith.constant 6 : index
      %c0_57 = arith.constant 0 : index
      %c0_58 = arith.constant 0 : index
      %65 = vector.load %arg2[%c0_55, %c6_56, %c0_57, %c0_58] : memref<1x9x128x128xbf16, #tpu.memory_space<vmem>>, vector<1x1x128x128xbf16>
      %66 = vector.shape_cast %65 : vector<1x1x128x128xbf16> to vector<128x128xbf16>
      %cst_59 = arith.constant dense<0.000000e+00> : vector<32x128xf32>
      %67 = tpu.matmul %64, %66, %cst_59 {dimension_numbers = #tpu.dot_dimension_numbers<[1], [0], [0], [1], [0, 0, 1, 1], [], []>} : vector<32x128xbf16>, vector<128x128xbf16>, vector<32x128xf32> -> vector<32x128xf32>
      %68 = arith.addf %61, %67 : vector<32x128xf32>
      %c0_60 = arith.constant 0 : index
      %c11 = arith.constant 11 : index
      %c0_61 = arith.constant 0 : index
      %69 = vector.load %arg7[%c0_60, %c11, %c0_61] : memref<2x32x128xf32, #tpu.memory_space<vmem>>, vector<2x16x128xf32>
      %70 = vector.shape_cast %69 : vector<2x16x128xf32> to vector<32x128xf32>
      %71 = arith.truncf %70 : vector<32x128xf32> to vector<32x128xbf16>
      %c0_62 = arith.constant 0 : index
      %c7_63 = arith.constant 7 : index
      %c0_64 = arith.constant 0 : index
      %c0_65 = arith.constant 0 : index
      %72 = vector.load %arg2[%c0_62, %c7_63, %c0_64, %c0_65] : memref<1x9x128x128xbf16, #tpu.memory_space<vmem>>, vector<1x1x128x128xbf16>
      %73 = vector.shape_cast %72 : vector<1x1x128x128xbf16> to vector<128x128xbf16>
      %cst_66 = arith.constant dense<0.000000e+00> : vector<32x128xf32>
      %74 = tpu.matmul %71, %73, %cst_66 {dimension_numbers = #tpu.dot_dimension_numbers<[1], [0], [0], [1], [0, 0, 1, 1], [], []>} : vector<32x128xbf16>, vector<128x128xbf16>, vector<32x128xf32> -> vector<32x128xf32>
      %75 = arith.addf %68, %74 : vector<32x128xf32>
      %c0_67 = arith.constant 0 : index
      %c12 = arith.constant 12 : index
      %c0_68 = arith.constant 0 : index
      %76 = vector.load %arg7[%c0_67, %c12, %c0_68] : memref<2x32x128xf32, #tpu.memory_space<vmem>>, vector<2x16x128xf32>
      %77 = vector.shape_cast %76 : vector<2x16x128xf32> to vector<32x128xf32>
      %78 = arith.truncf %77 : vector<32x128xf32> to vector<32x128xbf16>
      %c0_69 = arith.constant 0 : index
      %c8_70 = arith.constant 8 : index
      %c0_71 = arith.constant 0 : index
      %c0_72 = arith.constant 0 : index
      %79 = vector.load %arg2[%c0_69, %c8_70, %c0_71, %c0_72] : memref<1x9x128x128xbf16, #tpu.memory_space<vmem>>, vector<1x1x128x128xbf16>
      %80 = vector.shape_cast %79 : vector<1x1x128x128xbf16> to vector<128x128xbf16>
      %cst_73 = arith.constant dense<0.000000e+00> : vector<32x128xf32>
      %81 = tpu.matmul %78, %80, %cst_73 {dimension_numbers = #tpu.dot_dimension_numbers<[1], [0], [0], [1], [0, 0, 1, 1], [], []>} : vector<32x128xbf16>, vector<128x128xbf16>, vector<32x128xf32> -> vector<32x128xf32>
      %82 = arith.addf %75, %81 : vector<32x128xf32>
      %c0_74 = arith.constant 0 : index
      %c0_75 = arith.constant 0 : index
      %83 = vector.load %arg4[%c0_74, %c0_75] : memref<43x128xf32, #tpu.memory_space<vmem>>, vector<1x128xf32>
      %c0_76 = arith.constant 0 : index
      %c0_77 = arith.constant 0 : index
      %84 = vector.load %arg5[%c0_76, %c0_77] : memref<43x128xf32, #tpu.memory_space<vmem>>, vector<1x128xf32>
      %cst_78 = arith.constant dense<0.000000e+00> : vector<128xf32>
      %85 = vector.multi_reduction <add>, %82, %cst_78 [0] : vector<32x128xf32> to vector<128xf32>
      %86 = vector.shape_cast %85 : vector<128xf32> to vector<1x128xf32>
      %cst_79 = arith.constant 3.125000e-02 : f32
      %87 = vector.broadcast %cst_79 : f32 to vector<1x128xf32>
      %88 = arith.mulf %86, %87 : vector<1x128xf32>
      %89 = vector.broadcast %88 : vector<1x128xf32> to vector<32x128xf32>
      %90 = arith.subf %82, %89 : vector<32x128xf32>
      %91 = vector.broadcast %88 : vector<1x128xf32> to vector<32x128xf32>
      %92 = arith.subf %82, %91 : vector<32x128xf32>
      %93 = arith.mulf %90, %92 : vector<32x128xf32>
      %cst_80 = arith.constant dense<0.000000e+00> : vector<128xf32>
      %94 = vector.multi_reduction <add>, %93, %cst_80 [0] : vector<32x128xf32> to vector<128xf32>
      %95 = vector.shape_cast %94 : vector<128xf32> to vector<1x128xf32>
      %cst_81 = arith.constant 3.125000e-02 : f32
      %96 = vector.broadcast %cst_81 : f32 to vector<1x128xf32>
      %97 = arith.mulf %95, %96 : vector<1x128xf32>
      %cst_82 = arith.constant 9.99999974E-6 : f32
      %98 = vector.broadcast %cst_82 : f32 to vector<1x128xf32>
      %99 = arith.addf %97, %98 : vector<1x128xf32>
      %100 = math.rsqrt %99 : vector<1x128xf32>
      %101 = arith.mulf %83, %100 : vector<1x128xf32>
      %102 = vector.broadcast %101 : vector<1x128xf32> to vector<32x128xf32>
      %103 = arith.mulf %82, %102 : vector<32x128xf32>
      %104 = arith.mulf %88, %101 : vector<1x128xf32>
      %105 = arith.subf %84, %104 : vector<1x128xf32>
      %106 = vector.broadcast %105 : vector<1x128xf32> to vector<32x128xf32>
      %107 = arith.addf %103, %106 : vector<32x128xf32>
      %cst_83 = arith.constant 2.000000e+01 : f32
      %108 = vector.broadcast %cst_83 : f32 to vector<32x128xf32>
      %109 = arith.cmpf ogt, %107, %108 : vector<32x128xf32>
      %cst_84 = arith.constant 2.000000e+01 : f32
      %110 = vector.broadcast %cst_84 : f32 to vector<32x128xf32>
      %111 = arith.minimumf %107, %110 : vector<32x128xf32>
      %112 = math.exp %111 : vector<32x128xf32>
      %113 = math.log1p %112 : vector<32x128xf32>
      %114 = arith.select %109, %107, %113 : vector<32x128xi1>, vector<32x128xf32>
      %115 = math.tanh %114 : vector<32x128xf32>
      %116 = arith.mulf %107, %115 : vector<32x128xf32>
      %117 = vector.shape_cast %116 : vector<32x128xf32> to vector<2x16x128xf32>
      %c0_85 = arith.constant 0 : index
      %c8_86 = arith.constant 8 : index
      %c0_87 = arith.constant 0 : index
      %118 = vector.load %arg7[%c0_85, %c8_86, %c0_87] : memref<2x32x128xf32, #tpu.memory_space<vmem>>, vector<2x16x128xf32>
      tpu.vector_store %arg7[%c0_85, %c8_86, %c0_87], %117 {strides = array<i32>} : memref<2x32x128xf32, #tpu.memory_space<vmem>>, vector<2x16x128xf32>,
    } else {
    }
    %c1_i32 = arith.constant 1 : i32
    %3 = arith.cmpi sge, %arg0, %c1_i32 : i32
    %c4_i32 = arith.constant 4 : i32
    %4 = arith.cmpi sle, %arg0, %c4_i32 : i32
    %5 = arith.andi %3, %4 : i1
    %6 = arith.extui %5 : i1 to i32
    %c0_i32_1 = arith.constant 0 : i32
    %7 = arith.cmpi ne, %6, %c0_i32_1 : i32
    scf.if %7 {
      %c1_i32_4 = arith.constant 1 : i32
      %14 = arith.subi %arg0, %c1_i32_4 : i32
      %c10_i32 = arith.constant 10 : i32
      %15 = arith.muli %14, %c10_i32 : i32
      %c1_i32_5 = arith.constant 1 : i32
      %16 = arith.addi %15, %c1_i32_5 : i32
      %cst = arith.constant 0.000000e+00 : f32
      %17 = vector.broadcast %cst : f32 to vector<32x128xf32>
      %c0 = arith.constant 0 : index
      %c2 = arith.constant 2 : index
      %c0_6 = arith.constant 0 : index
      %18 = vector.load %arg7[%c0, %c2, %c0_6] : memref<2x32x128xf32, #tpu.memory_space<vmem>>, vector<2x16x128xf32>
      %19 = vector.shape_cast %18 : vector<2x16x128xf32> to vector<32x128xf32>
      %20 = arith.truncf %19 : vector<32x128xf32> to vector<32x128xbf16>
      %c0_7 = arith.constant 0 : index
      %c0_8 = arith.constant 0 : index
      %c0_9 = arith.constant 0 : index
      %c0_10 = arith.constant 0 : index
      %c0_11 = arith.constant 0 : index
      %21 = vector.load %arg3[%c0_7, %c0_8, %c0_9, %c0_10, %c0_11] : memref<1x10x5x128x128xbf16, #tpu.memory_space<vmem>>, vector<1x1x1x128x128xbf16>
      %22 = vector.shape_cast %21 : vector<1x1x1x128x128xbf16> to vector<128x128xbf16>
      %cst_12 = arith.constant dense<0.000000e+00> : vector<32x128xf32>
      %23 = tpu.matmul %20, %22, %cst_12 {dimension_numbers = #tpu.dot_dimension_numbers<[1], [0], [0], [1], [0, 0, 1, 1], [], []>} : vector<32x128xbf16>, vector<128x128xbf16>, vector<32x128xf32> -> vector<32x128xf32>
      %24 = arith.addf %17, %23 : vector<32x128xf32>
      %c0_13 = arith.constant 0 : index
      %c5 = arith.constant 5 : index
      %c0_14 = arith.constant 0 : index
      %25 = vector.load %arg7[%c0_13, %c5, %c0_14] : memref<2x32x128xf32, #tpu.memory_space<vmem>>, vector<2x16x128xf32>
      %26 = vector.shape_cast %25 : vector<2x16x128xf32> to vector<32x128xf32>
      %27 = arith.truncf %26 : vector<32x128xf32> to vector<32x128xbf16>
      %c0_15 = arith.constant 0 : index
      %c0_16 = arith.constant 0 : index
      %c1 = arith.constant 1 : index
      %c0_17 = arith.constant 0 : index
      %c0_18 = arith.constant 0 : index
      %28 = vector.load %arg3[%c0_15, %c0_16, %c1, %c0_17, %c0_18] : memref<1x10x5x128x128xbf16, #tpu.memory_space<vmem>>, vector<1x1x1x128x128xbf16>
      %29 = vector.shape_cast %28 : vector<1x1x1x128x128xbf16> to vector<128x128xbf16>
      %cst_19 = arith.constant dense<0.000000e+00> : vector<32x128xf32>
      %30 = tpu.matmul %27, %29, %cst_19 {dimension_numbers = #tpu.dot_dimension_numbers<[1], [0], [0], [1], [0, 0, 1, 1], [], []>} : vector<32x128xbf16>, vector<128x128xbf16>, vector<32x128xf32> -> vector<32x128xf32>
      %31 = arith.addf %24, %30 : vector<32x128xf32>
      %c0_20 = arith.constant 0 : index
      %c8 = arith.constant 8 : index
      %c0_21 = arith.constant 0 : index
      %32 = vector.load %arg7[%c0_20, %c8, %c0_21] : memref<2x32x128xf32, #tpu.memory_space<vmem>>, vector<2x16x128xf32>
      %33 = vector.shape_cast %32 : vector<2x16x128xf32> to vector<32x128xf32>
      %34 = arith.truncf %33 : vector<32x128xf32> to vector<32x128xbf16>
      %c0_22 = arith.constant 0 : index
      %c0_23 = arith.constant 0 : index
      %c2_24 = arith.constant 2 : index
      %c0_25 = arith.constant 0 : index
      %c0_26 = arith.constant 0 : index
      %35 = vector.load %arg3[%c0_22, %c0_23, %c2_24, %c0_25, %c0_26] : memref<1x10x5x128x128xbf16, #tpu.memory_space<vmem>>, vector<1x1x1x128x128xbf16>
      %36 = vector.shape_cast %35 : vector<1x1x1x128x128xbf16> to vector<128x128xbf16>
      %cst_27 = arith.constant dense<0.000000e+00> : vector<32x128xf32>
      %37 = tpu.matmul %34, %36, %cst_27 {dimension_numbers = #tpu.dot_dimension_numbers<[1], [0], [0], [1], [0, 0, 1, 1], [], []>} : vector<32x128xbf16>, vector<128x128xbf16>, vector<32x128xf32> -> vector<32x128xf32>
      %38 = arith.addf %31, %37 : vector<32x128xf32>
      %c0_28 = arith.constant 0 : index
      %c11 = arith.constant 11 : index
      %c0_29 = arith.constant 0 : index
      %39 = vector.load %arg7[%c0_28, %c11, %c0_29] : memref<2x32x128xf32, #tpu.memory_space<vmem>>, vector<2x16x128xf32>
      %40 = vector.shape_cast %39 : vector<2x16x128xf32> to vector<32x128xf32>
      %41 = arith.truncf %40 : vector<32x128xf32> to vector<32x128xbf16>
      %c0_30 = arith.constant 0 : index
      %c0_31 = arith.constant 0 : index
      %c3 = arith.constant 3 : index
      %c0_32 = arith.constant 0 : index
      %c0_33 = arith.constant 0 : index
      %42 = vector.load %arg3[%c0_30, %c0_31, %c3, %c0_32, %c0_33] : memref<1x10x5x128x128xbf16, #tpu.memory_space<vmem>>, vector<1x1x1x128x128xbf16>
      %43 = vector.shape_cast %42 : vector<1x1x1x128x128xbf16> to vector<128x128xbf16>
      %cst_34 = arith.constant dense<0.000000e+00> : vector<32x128xf32>
      %44 = tpu.matmul %41, %43, %cst_34 {dimension_numbers = #tpu.dot_dimension_numbers<[1], [0], [0], [1], [0, 0, 1, 1], [], []>} : vector<32x128xbf16>, vector<128x128xbf16>, vector<32x128xf32> -> vector<32x128xf32>
      %45 = arith.addf %38, %44 : vector<32x128xf32>
      %c0_35 = arith.constant 0 : index
      %c14 = arith.constant 14 : index
      %c0_36 = arith.constant 0 : index
      %46 = vector.load %arg7[%c0_35, %c14, %c0_36] : memref<2x32x128xf32, #tpu.memory_space<vmem>>, vector<2x16x128xf32>
      %47 = vector.shape_cast %46 : vector<2x16x128xf32> to vector<32x128xf32>
      %48 = arith.truncf %47 : vector<32x128xf32> to vector<32x128xbf16>
      %c0_37 = arith.constant 0 : index
      %c0_38 = arith.constant 0 : index
      %c4 = arith.constant 4 : index
      %c0_39 = arith.constant 0 : index
      %c0_40 = arith.constant 0 : index
      %49 = vector.load %arg3[%c0_37, %c0_38, %c4, %c0_39, %c0_40] : memref<1x10x5x128x128xbf16, #tpu.memory_space<vmem>>, vector<1x1x1x128x128xbf16>
      %50 = vector.shape_cast %49 : vector<1x1x1x128x128xbf16> to vector<128x128xbf16>
      %cst_41 = arith.constant dense<0.000000e+00> : vector<32x128xf32>
      %51 = tpu.matmul %48, %50, %cst_41 {dimension_numbers = #tpu.dot_dimension_numbers<[1], [0], [0], [1], [0, 0, 1, 1], [], []>} : vector<32x128xbf16>, vector<128x128xbf16>, vector<32x128xf32> -> vector<32x128xf32>
      %52 = arith.addf %45, %51 : vector<32x128xf32>
      %c0_i32_42 = arith.constant 0 : i32
      %53 = arith.addi %16, %c0_i32_42 : i32
      %54 = arith.index_cast %53 : i32 to index
      %c0_43 = arith.constant 0 : index
      %55 = vector.load %arg4[%54, %c0_43] : memref<43x128xf32, #tpu.memory_space<vmem>>, vector<1x128xf32>
      %56 = arith.index_cast %53 : i32 to index
      %c0_44 = arith.constant 0 : index
      %57 = vector.load %arg5[%56, %c0_44] : memref<43x128xf32, #tpu.memory_space<vmem>>, vector<1x128xf32>
      %cst_45 = arith.constant dense<0.000000e+00> : vector<128xf32>
      %58 = vector.multi_reduction <add>, %52, %cst_45 [0] : vector<32x128xf32> to vector<128xf32>
      %59 = vector.shape_cast %58 : vector<128xf32> to vector<1x128xf32>
      %cst_46 = arith.constant 3.125000e-02 : f32
      %60 = vector.broadcast %cst_46 : f32 to vector<1x128xf32>
      %61 = arith.mulf %59, %60 : vector<1x128xf32>
      %62 = vector.broadcast %61 : vector<1x128xf32> to vector<32x128xf32>
      %63 = arith.subf %52, %62 : vector<32x128xf32>
      %64 = vector.broadcast %61 : vector<1x128xf32> to vector<32x128xf32>
      %65 = arith.subf %52, %64 : vector<32x128xf32>
      %66 = arith.mulf %63, %65 : vector<32x128xf32>
      %cst_47 = arith.constant dense<0.000000e+00> : vector<128xf32>
      %67 = vector.multi_reduction <add>, %66, %cst_47 [0] : vector<32x128xf32> to vector<128xf32>
      %68 = vector.shape_cast %67 : vector<128xf32> to vector<1x128xf32>
      %cst_48 = arith.constant 3.125000e-02 : f32
      %69 = vector.broadcast %cst_48 : f32 to vector<1x128xf32>
      %70 = arith.mulf %68, %69 : vector<1x128xf32>
      %cst_49 = arith.constant 9.99999974E-6 : f32
      %71 = vector.broadcast %cst_49 : f32 to vector<1x128xf32>
      %72 = arith.addf %70, %71 : vector<1x128xf32>
      %73 = math.rsqrt %72 : vector<1x128xf32>
      %74 = arith.mulf %55, %73 : vector<1x128xf32>
      %75 = vector.broadcast %74 : vector<1x128xf32> to vector<32x128xf32>
      %76 = arith.mulf %52, %75 : vector<32x128xf32>
      %77 = arith.mulf %61, %74 : vector<1x128xf32>
      %78 = arith.subf %57, %77 : vector<1x128xf32>
      %79 = vector.broadcast %78 : vector<1x128xf32> to vector<32x128xf32>
      %80 = arith.addf %76, %79 : vector<32x128xf32>
      %cst_50 = arith.constant 0.000000e+00 : f32
      %81 = vector.broadcast %cst_50 : f32 to vector<32x128xf32>
      %82 = arith.maximumf %80, %81 : vector<32x128xf32>
      %83 = vector.shape_cast %82 : vector<32x128xf32> to vector<2x16x128xf32>
      %c0_51 = arith.constant 0 : index
      %c8_52 = arith.constant 8 : index
      %c0_53 = arith.constant 0 : index
      %84 = vector.load %arg7[%c0_51, %c8_52, %c0_53] : memref<2x32x128xf32, #tpu.memory_space<vmem>>, vector<2x16x128xf32>
      tpu.vector_store %arg7[%c0_51, %c8_52, %c0_53], %83 {strides = array<i32>} : memref<2x32x128xf32, #tpu.memory_space<vmem>>, vector<2x16x128xf32>,
      %cst_54 = arith.constant 0.000000e+00 : f32
      %85 = vector.broadcast %cst_54 : f32 to vector<32x128xf32>
      %c0_55 = arith.constant 0 : index
      %c2_56 = arith.constant 2 : index
      %c0_57 = arith.constant 0 : index
      %86 = vector.load %arg7[%c0_55, %c2_56, %c0_57] : memref<2x32x128xf32, #tpu.memory_space<vmem>>, vector<2x16x128xf32>
      %87 = vector.shape_cast %86 : vector<2x16x128xf32> to vector<32x128xf32>
      %88 = arith.truncf %87 : vector<32x128xf32> to vector<32x128xbf16>
      %c0_58 = arith.constant 0 : index
      %c1_59 = arith.constant 1 : index
      %c0_60 = arith.constant 0 : index
      %c0_61 = arith.constant 0 : index
      %c0_62 = arith.constant 0 : index
      %89 = vector.load %arg3[%c0_58, %c1_59, %c0_60, %c0_61, %c0_62] : memref<1x10x5x128x128xbf16, #tpu.memory_space<vmem>>, vector<1x1x1x128x128xbf16>
      %90 = vector.shape_cast %89 : vector<1x1x1x128x128xbf16> to vector<128x128xbf16>
      %cst_63 = arith.constant dense<0.000000e+00> : vector<32x128xf32>
      %91 = tpu.matmul %88, %90, %cst_63 {dimension_numbers = #tpu.dot_dimension_numbers<[1], [0], [0], [1], [0, 0, 1, 1], [], []>} : vector<32x128xbf16>, vector<128x128xbf16>, vector<32x128xf32> -> vector<32x128xf32>
      %92 = arith.addf %85, %91 : vector<32x128xf32>
      %c0_64 = arith.constant 0 : index
      %c5_65 = arith.constant 5 : index
      %c0_66 = arith.constant 0 : index
      %93 = vector.load %arg7[%c0_64, %c5_65, %c0_66] : memref<2x32x128xf32, #tpu.memory_space<vmem>>, vector<2x16x128xf32>
      %94 = vector.shape_cast %93 : vector<2x16x128xf32> to vector<32x128xf32>
      %95 = arith.truncf %94 : vector<32x128xf32> to vector<32x128xbf16>
      %c0_67 = arith.constant 0 : index
      %c1_68 = arith.constant 1 : index
      %c1_69 = arith.constant 1 : index
      %c0_70 = arith.constant 0 : index
      %c0_71 = arith.constant 0 : index
      %96 = vector.load %arg3[%c0_67, %c1_68, %c1_69, %c0_70, %c0_71] : memref<1x10x5x128x128xbf16, #tpu.memory_space<vmem>>, vector<1x1x1x128x128xbf16>
      %97 = vector.shape_cast %96 : vector<1x1x1x128x128xbf16> to vector<128x128xbf16>
      %cst_72 = arith.constant dense<0.000000e+00> : vector<32x128xf32>
      %98 = tpu.matmul %95, %97, %cst_72 {dimension_numbers = #tpu.dot_dimension_numbers<[1], [0], [0], [1], [0, 0, 1, 1], [], []>} : vector<32x128xbf16>, vector<128x128xbf16>, vector<32x128xf32> -> vector<32x128xf32>
      %99 = arith.addf %92, %98 : vector<32x128xf32>
      %c0_73 = arith.constant 0 : index
      %c8_74 = arith.constant 8 : index
      %c0_75 = arith.constant 0 : index
      %100 = vector.load %arg7[%c0_73, %c8_74, %c0_75] : memref<2x32x128xf32, #tpu.memory_space<vmem>>, vector<2x16x128xf32>
      %101 = vector.shape_cast %100 : vector<2x16x128xf32> to vector<32x128xf32>
      %102 = arith.truncf %101 : vector<32x128xf32> to vector<32x128xbf16>
      %c0_76 = arith.constant 0 : index
      %c1_77 = arith.constant 1 : index
      %c2_78 = arith.constant 2 : index
      %c0_79 = arith.constant 0 : index
      %c0_80 = arith.constant 0 : index
      %103 = vector.load %arg3[%c0_76, %c1_77, %c2_78, %c0_79, %c0_80] : memref<1x10x5x128x128xbf16, #tpu.memory_space<vmem>>, vector<1x1x1x128x128xbf16>
      %104 = vector.shape_cast %103 : vector<1x1x1x128x128xbf16> to vector<128x128xbf16>
      %cst_81 = arith.constant dense<0.000000e+00> : vector<32x128xf32>
      %105 = tpu.matmul %102, %104, %cst_81 {dimension_numbers = #tpu.dot_dimension_numbers<[1], [0], [0], [1], [0, 0, 1, 1], [], []>} : vector<32x128xbf16>, vector<128x128xbf16>, vector<32x128xf32> -> vector<32x128xf32>
      %106 = arith.addf %99, %105 : vector<32x128xf32>
      %c0_82 = arith.constant 0 : index
      %c11_83 = arith.constant 11 : index
      %c0_84 = arith.constant 0 : index
      %107 = vector.load %arg7[%c0_82, %c11_83, %c0_84] : memref<2x32x128xf32, #tpu.memory_space<vmem>>, vector<2x16x128xf32>
      %108 = vector.shape_cast %107 : vector<2x16x128xf32> to vector<32x128xf32>
      %109 = arith.truncf %108 : vector<32x128xf32> to vector<32x128xbf16>
      %c0_85 = arith.constant 0 : index
      %c1_86 = arith.constant 1 : index
      %c3_87 = arith.constant 3 : index
      %c0_88 = arith.constant 0 : index
      %c0_89 = arith.constant 0 : index
      %110 = vector.load %arg3[%c0_85, %c1_86, %c3_87, %c0_88, %c0_89] : memref<1x10x5x128x128xbf16, #tpu.memory_space<vmem>>, vector<1x1x1x128x128xbf16>
      %111 = vector.shape_cast %110 : vector<1x1x1x128x128xbf16> to vector<128x128xbf16>
      %cst_90 = arith.constant dense<0.000000e+00> : vector<32x128xf32>
      %112 = tpu.matmul %109, %111, %cst_90 {dimension_numbers = #tpu.dot_dimension_numbers<[1], [0], [0], [1], [0, 0, 1, 1], [], []>} : vector<32x128xbf16>, vector<128x128xbf16>, vector<32x128xf32> -> vector<32x128xf32>
      %113 = arith.addf %106, %112 : vector<32x128xf32>
      %c0_91 = arith.constant 0 : index
      %c14_92 = arith.constant 14 : index
      %c0_93 = arith.constant 0 : index
      %114 = vector.load %arg7[%c0_91, %c14_92, %c0_93] : memref<2x32x128xf32, #tpu.memory_space<vmem>>, vector<2x16x128xf32>
      %115 = vector.shape_cast %114 : vector<2x16x128xf32> to vector<32x128xf32>
      %116 = arith.truncf %115 : vector<32x128xf32> to vector<32x128xbf16>
      %c0_94 = arith.constant 0 : index
      %c1_95 = arith.constant 1 : index
      %c4_96 = arith.constant 4 : index
      %c0_97 = arith.constant 0 : index
      %c0_98 = arith.constant 0 : index
      %117 = vector.load %arg3[%c0_94, %c1_95, %c4_96, %c0_97, %c0_98] : memref<1x10x5x128x128xbf16, #tpu.memory_space<vmem>>, vector<1x1x1x128x128xbf16>
      %118 = vector.shape_cast %117 : vector<1x1x1x128x128xbf16> to vector<128x128xbf16>
      %cst_99 = arith.constant dense<0.000000e+00> : vector<32x128xf32>
      %119 = tpu.matmul %116, %118, %cst_99 {dimension_numbers = #tpu.dot_dimension_numbers<[1], [0], [0], [1], [0, 0, 1, 1], [], []>} : vector<32x128xbf16>, vector<128x128xbf16>, vector<32x128xf32> -> vector<32x128xf32>
      %120 = arith.addf %113, %119 : vector<32x128xf32>
      %c1_i32_100 = arith.constant 1 : i32
      %121 = arith.addi %16, %c1_i32_100 : i32
      %122 = arith.index_cast %121 : i32 to index
      %c0_101 = arith.constant 0 : index
      %123 = vector.load %arg4[%122, %c0_101] : memref<43x128xf32, #tpu.memory_space<vmem>>, vector<1x128xf32>
      %124 = arith.index_cast %121 : i32 to index
      %c0_102 = arith.constant 0 : index
      %125 = vector.load %arg5[%124, %c0_102] : memref<43x128xf32, #tpu.memory_space<vmem>>, vector<1x128xf32>
      %cst_103 = arith.constant dense<0.000000e+00> : vector<128xf32>
      %126 = vector.multi_reduction <add>, %120, %cst_103 [0] : vector<32x128xf32> to vector<128xf32>
      %127 = vector.shape_cast %126 : vector<128xf32> to vector<1x128xf32>
      %cst_104 = arith.constant 3.125000e-02 : f32
      %128 = vector.broadcast %cst_104 : f32 to vector<1x128xf32>
      %129 = arith.mulf %127, %128 : vector<1x128xf32>
      %130 = vector.broadcast %129 : vector<1x128xf32> to vector<32x128xf32>
      %131 = arith.subf %120, %130 : vector<32x128xf32>
      %132 = vector.broadcast %129 : vector<1x128xf32> to vector<32x128xf32>
      %133 = arith.subf %120, %132 : vector<32x128xf32>
      %134 = arith.mulf %131, %133 : vector<32x128xf32>
      %cst_105 = arith.constant dense<0.000000e+00> : vector<128xf32>
      %135 = vector.multi_reduction <add>, %134, %cst_105 [0] : vector<32x128xf32> to vector<128xf32>
      %136 = vector.shape_cast %135 : vector<128xf32> to vector<1x128xf32>
      %cst_106 = arith.constant 3.125000e-02 : f32
      %137 = vector.broadcast %cst_106 : f32 to vector<1x128xf32>
      %138 = arith.mulf %136, %137 : vector<1x128xf32>
      %cst_107 = arith.constant 9.99999974E-6 : f32
      %139 = vector.broadcast %cst_107 : f32 to vector<1x128xf32>
      %140 = arith.addf %138, %139 : vector<1x128xf32>
      %141 = math.rsqrt %140 : vector<1x128xf32>
      %142 = arith.mulf %123, %141 : vector<1x128xf32>
      %143 = vector.broadcast %142 : vector<1x128xf32> to vector<32x128xf32>
      %144 = arith.mulf %120, %143 : vector<32x128xf32>
      %145 = arith.mulf %129, %142 : vector<1x128xf32>
      %146 = arith.subf %125, %145 : vector<1x128xf32>
      %147 = vector.broadcast %146 : vector<1x128xf32> to vector<32x128xf32>
      %148 = arith.addf %144, %147 : vector<32x128xf32>
      %cst_108 = arith.constant 0.000000e+00 : f32
      %149 = vector.broadcast %cst_108 : f32 to vector<32x128xf32>
      %150 = arith.maximumf %148, %149 : vector<32x128xf32>
      %151 = vector.shape_cast %150 : vector<32x128xf32> to vector<2x16x128xf32>
      %c0_109 = arith.constant 0 : index
      %c8_110 = arith.constant 8 : index
      %c0_111 = arith.constant 0 : index
      %152 = vector.load %arg7[%c0_109, %c8_110, %c0_111] : memref<2x32x128xf32, #tpu.memory_space<vmem>>, vector<2x16x128xf32>
      tpu.vector_store %arg7[%c0_109, %c8_110, %c0_111], %151 {strides = array<i32>} : memref<2x32x128xf32, #tpu.memory_space<vmem>>, vector<2x16x128xf32>,
      %cst_112 = arith.constant 0.000000e+00 : f32
      %153 = vector.broadcast %cst_112 : f32 to vector<32x128xf32>
      %c0_113 = arith.constant 0 : index
      %c2_114 = arith.constant 2 : index
      %c0_115 = arith.constant 0 : index
      %154 = vector.load %arg7[%c0_113, %c2_114, %c0_115] : memref<2x32x128xf32, #tpu.memory_space<vmem>>, vector<2x16x128xf32>
      %155 = vector.shape_cast %154 : vector<2x16x128xf32> to vector<32x128xf32>
      %156 = arith.truncf %155 : vector<32x128xf32> to vector<32x128xbf16>
      %c0_116 = arith.constant 0 : index
      %c2_117 = arith.constant 2 : index
      %c0_118 = arith.constant 0 : index
      %c0_119 = arith.constant 0 : index
      %c0_120 = arith.constant 0 : index
      %157 = vector.load %arg3[%c0_116, %c2_117, %c0_118, %c0_119, %c0_120] : memref<1x10x5x128x128xbf16, #tpu.memory_space<vmem>>, vector<1x1x1x128x128xbf16>
      %158 = vector.shape_cast %157 : vector<1x1x1x128x128xbf16> to vector<128x128xbf16>
      %cst_121 = arith.constant dense<0.000000e+00> : vector<32x128xf32>
      %159 = tpu.matmul %156, %158, %cst_121 {dimension_numbers = #tpu.dot_dimension_numbers<[1], [0], [0], [1], [0, 0, 1, 1], [], []>} : vector<32x128xbf16>, vector<128x128xbf16>, vector<32x128xf32> -> vector<32x128xf32>
      %160 = arith.addf %153, %159 : vector<32x128xf32>
      %c0_122 = arith.constant 0 : index
      %c5_123 = arith.constant 5 : index
      %c0_124 = arith.constant 0 : index
      %161 = vector.load %arg7[%c0_122, %c5_123, %c0_124] : memref<2x32x128xf32, #tpu.memory_space<vmem>>, vector<2x16x128xf32>
      %162 = vector.shape_cast %161 : vector<2x16x128xf32> to vector<32x128xf32>
      %163 = arith.truncf %162 : vector<32x128xf32> to vector<32x128xbf16>
      %c0_125 = arith.constant 0 : index
      %c2_126 = arith.constant 2 : index
      %c1_127 = arith.constant 1 : index
      %c0_128 = arith.constant 0 : index
      %c0_129 = arith.constant 0 : index
      %164 = vector.load %arg3[%c0_125, %c2_126, %c1_127, %c0_128, %c0_129] : memref<1x10x5x128x128xbf16, #tpu.memory_space<vmem>>, vector<1x1x1x128x128xbf16>
      %165 = vector.shape_cast %164 : vector<1x1x1x128x128xbf16> to vector<128x128xbf16>
      %cst_130 = arith.constant dense<0.000000e+00> : vector<32x128xf32>
      %166 = tpu.matmul %163, %165, %cst_130 {dimension_numbers = #tpu.dot_dimension_numbers<[1], [0], [0], [1], [0, 0, 1, 1], [], []>} : vector<32x128xbf16>, vector<128x128xbf16>, vector<32x128xf32> -> vector<32x128xf32>
      %167 = arith.addf %160, %166 : vector<32x128xf32>
      %c0_131 = arith.constant 0 : index
      %c8_132 = arith.constant 8 : index
      %c0_133 = arith.constant 0 : index
      %168 = vector.load %arg7[%c0_131, %c8_132, %c0_133] : memref<2x32x128xf32, #tpu.memory_space<vmem>>, vector<2x16x128xf32>
      %169 = vector.shape_cast %168 : vector<2x16x128xf32> to vector<32x128xf32>
      %170 = arith.truncf %169 : vector<32x128xf32> to vector<32x128xbf16>
      %c0_134 = arith.constant 0 : index
      %c2_135 = arith.constant 2 : index
      %c2_136 = arith.constant 2 : index
      %c0_137 = arith.constant 0 : index
      %c0_138 = arith.constant 0 : index
      %171 = vector.load %arg3[%c0_134, %c2_135, %c2_136, %c0_137, %c0_138] : memref<1x10x5x128x128xbf16, #tpu.memory_space<vmem>>, vector<1x1x1x128x128xbf16>
      %172 = vector.shape_cast %171 : vector<1x1x1x128x128xbf16> to vector<128x128xbf16>
      %cst_139 = arith.constant dense<0.000000e+00> : vector<32x128xf32>
      %173 = tpu.matmul %170, %172, %cst_139 {dimension_numbers = #tpu.dot_dimension_numbers<[1], [0], [0], [1], [0, 0, 1, 1], [], []>} : vector<32x128xbf16>, vector<128x128xbf16>, vector<32x128xf32> -> vector<32x128xf32>
      %174 = arith.addf %167, %173 : vector<32x128xf32>
      %c0_140 = arith.constant 0 : index
      %c11_141 = arith.constant 11 : index
      %c0_142 = arith.constant 0 : index
      %175 = vector.load %arg7[%c0_140, %c11_141, %c0_142] : memref<2x32x128xf32, #tpu.memory_space<vmem>>, vector<2x16x128xf32>
      %176 = vector.shape_cast %175 : vector<2x16x128xf32> to vector<32x128xf32>
      %177 = arith.truncf %176 : vector<32x128xf32> to vector<32x128xbf16>
      %c0_143 = arith.constant 0 : index
      %c2_144 = arith.constant 2 : index
      %c3_145 = arith.constant 3 : index
      %c0_146 = arith.constant 0 : index
      %c0_147 = arith.constant 0 : index
      %178 = vector.load %arg3[%c0_143, %c2_144, %c3_145, %c0_146, %c0_147] : memref<1x10x5x128x128xbf16, #tpu.memory_space<vmem>>, vector<1x1x1x128x128xbf16>
      %179 = vector.shape_cast %178 : vector<1x1x1x128x128xbf16> to vector<128x128xbf16>
      %cst_148 = arith.constant dense<0.000000e+00> : vector<32x128xf32>
      %180 = tpu.matmul %177, %179, %cst_148 {dimension_numbers = #tpu.dot_dimension_numbers<[1], [0], [0], [1], [0, 0, 1, 1], [], []>} : vector<32x128xbf16>, vector<128x128xbf16>, vector<32x128xf32> -> vector<32x128xf32>
      %181 = arith.addf %174, %180 : vector<32x128xf32>
      %c0_149 = arith.constant 0 : index
      %c14_150 = arith.constant 14 : index
      %c0_151 = arith.constant 0 : index
      %182 = vector.load %arg7[%c0_149, %c14_150, %c0_151] : memref<2x32x128xf32, #tpu.memory_space<vmem>>, vector<2x16x128xf32>
      %183 = vector.shape_cast %182 : vector<2x16x128xf32> to vector<32x128xf32>
      %184 = arith.truncf %183 : vector<32x128xf32> to vector<32x128xbf16>
      %c0_152 = arith.constant 0 : index
      %c2_153 = arith.constant 2 : index
      %c4_154 = arith.constant 4 : index
      %c0_155 = arith.constant 0 : index
      %c0_156 = arith.constant 0 : index
      %185 = vector.load %arg3[%c0_152, %c2_153, %c4_154, %c0_155, %c0_156] : memref<1x10x5x128x128xbf16, #tpu.memory_space<vmem>>, vector<1x1x1x128x128xbf16>
      %186 = vector.shape_cast %185 : vector<1x1x1x128x128xbf16> to vector<128x128xbf16>
      %cst_157 = arith.constant dense<0.000000e+00> : vector<32x128xf32>
      %187 = tpu.matmul %184, %186, %cst_157 {dimension_numbers = #tpu.dot_dimension_numbers<[1], [0], [0], [1], [0, 0, 1, 1], [], []>} : vector<32x128xbf16>, vector<128x128xbf16>, vector<32x128xf32> -> vector<32x128xf32>
      %188 = arith.addf %181, %187 : vector<32x128xf32>
      %c2_i32 = arith.constant 2 : i32
      %189 = arith.addi %16, %c2_i32 : i32
      %190 = arith.index_cast %189 : i32 to index
      %c0_158 = arith.constant 0 : index
      %191 = vector.load %arg4[%190, %c0_158] : memref<43x128xf32, #tpu.memory_space<vmem>>, vector<1x128xf32>
      %192 = arith.index_cast %189 : i32 to index
      %c0_159 = arith.constant 0 : index
      %193 = vector.load %arg5[%192, %c0_159] : memref<43x128xf32, #tpu.memory_space<vmem>>, vector<1x128xf32>
      %cst_160 = arith.constant dense<0.000000e+00> : vector<128xf32>
      %194 = vector.multi_reduction <add>, %188, %cst_160 [0] : vector<32x128xf32> to vector<128xf32>
      %195 = vector.shape_cast %194 : vector<128xf32> to vector<1x128xf32>
      %cst_161 = arith.constant 3.125000e-02 : f32
      %196 = vector.broadcast %cst_161 : f32 to vector<1x128xf32>
      %197 = arith.mulf %195, %196 : vector<1x128xf32>
      %198 = vector.broadcast %197 : vector<1x128xf32> to vector<32x128xf32>
      %199 = arith.subf %188, %198 : vector<32x128xf32>
      %200 = vector.broadcast %197 : vector<1x128xf32> to vector<32x128xf32>
      %201 = arith.subf %188, %200 : vector<32x128xf32>
      %202 = arith.mulf %199, %201 : vector<32x128xf32>
      %cst_162 = arith.constant dense<0.000000e+00> : vector<128xf32>
      %203 = vector.multi_reduction <add>, %202, %cst_162 [0] : vector<32x128xf32> to vector<128xf32>
      %204 = vector.shape_cast %203 : vector<128xf32> to vector<1x128xf32>
      %cst_163 = arith.constant 3.125000e-02 : f32
      %205 = vector.broadcast %cst_163 : f32 to vector<1x128xf32>
      %206 = arith.mulf %204, %205 : vector<1x128xf32>
      %cst_164 = arith.constant 9.99999974E-6 : f32
      %207 = vector.broadcast %cst_164 : f32 to vector<1x128xf32>
      %208 = arith.addf %206, %207 : vector<1x128xf32>
      %209 = math.rsqrt %208 : vector<1x128xf32>
      %210 = arith.mulf %191, %209 : vector<1x128xf32>
      %211 = vector.broadcast %210 : vector<1x128xf32> to vector<32x128xf32>
      %212 = arith.mulf %188, %211 : vector<32x128xf32>
      %213 = arith.mulf %197, %210 : vector<1x128xf32>
      %214 = arith.subf %193, %213 : vector<1x128xf32>
      %215 = vector.broadcast %214 : vector<1x128xf32> to vector<32x128xf32>
      %216 = arith.addf %212, %215 : vector<32x128xf32>
      %cst_165 = arith.constant 0.000000e+00 : f32
      %217 = vector.broadcast %cst_165 : f32 to vector<32x128xf32>
      %218 = arith.maximumf %216, %217 : vector<32x128xf32>
      %219 = vector.shape_cast %218 : vector<32x128xf32> to vector<2x16x128xf32>
      %c0_166 = arith.constant 0 : index
      %c8_167 = arith.constant 8 : index
      %c0_168 = arith.constant 0 : index
      %220 = vector.load %arg7[%c0_166, %c8_167, %c0_168] : memref<2x32x128xf32, #tpu.memory_space<vmem>>, vector<2x16x128xf32>
      tpu.vector_store %arg7[%c0_166, %c8_167, %c0_168], %219 {strides = array<i32>} : memref<2x32x128xf32, #tpu.memory_space<vmem>>, vector<2x16x128xf32>,
      %cst_169 = arith.constant 0.000000e+00 : f32
      %221 = vector.broadcast %cst_169 : f32 to vector<32x128xf32>
      %c0_170 = arith.constant 0 : index
      %c2_171 = arith.constant 2 : index
      %c0_172 = arith.constant 0 : index
      %222 = vector.load %arg7[%c0_170, %c2_171, %c0_172] : memref<2x32x128xf32, #tpu.memory_space<vmem>>, vector<2x16x128xf32>
      %223 = vector.shape_cast %222 : vector<2x16x128xf32> to vector<32x128xf32>
      %224 = arith.truncf %223 : vector<32x128xf32> to vector<32x128xbf16>
      %c0_173 = arith.constant 0 : index
      %c3_174 = arith.constant 3 : index
      %c0_175 = arith.constant 0 : index
      %c0_176 = arith.constant 0 : index
      %c0_177 = arith.constant 0 : index
      %225 = vector.load %arg3[%c0_173, %c3_174, %c0_175, %c0_176, %c0_177] : memref<1x10x5x128x128xbf16, #tpu.memory_space<vmem>>, vector<1x1x1x128x128xbf16>
      %226 = vector.shape_cast %225 : vector<1x1x1x128x128xbf16> to vector<128x128xbf16>
      %cst_178 = arith.constant dense<0.000000e+00> : vector<32x128xf32>
      %227 = tpu.matmul %224, %226, %cst_178 {dimension_numbers = #tpu.dot_dimension_numbers<[1], [0], [0], [1], [0, 0, 1, 1], [], []>} : vector<32x128xbf16>, vector<128x128xbf16>, vector<32x128xf32> -> vector<32x128xf32>
      %228 = arith.addf %221, %227 : vector<32x128xf32>
      %c0_179 = arith.constant 0 : index
      %c5_180 = arith.constant 5 : index
      %c0_181 = arith.constant 0 : index
      %229 = vector.load %arg7[%c0_179, %c5_180, %c0_181] : memref<2x32x128xf32, #tpu.memory_space<vmem>>, vector<2x16x128xf32>
      %230 = vector.shape_cast %229 : vector<2x16x128xf32> to vector<32x128xf32>
      %231 = arith.truncf %230 : vector<32x128xf32> to vector<32x128xbf16>
      %c0_182 = arith.constant 0 : index
      %c3_183 = arith.constant 3 : index
      %c1_184 = arith.constant 1 : index
      %c0_185 = arith.constant 0 : index
      %c0_186 = arith.constant 0 : index
      %232 = vector.load %arg3[%c0_182, %c3_183, %c1_184, %c0_185, %c0_186] : memref<1x10x5x128x128xbf16, #tpu.memory_space<vmem>>, vector<1x1x1x128x128xbf16>
      %233 = vector.shape_cast %232 : vector<1x1x1x128x128xbf16> to vector<128x128xbf16>
      %cst_187 = arith.constant dense<0.000000e+00> : vector<32x128xf32>
      %234 = tpu.matmul %231, %233, %cst_187 {dimension_numbers = #tpu.dot_dimension_numbers<[1], [0], [0], [1], [0, 0, 1, 1], [], []>} : vector<32x128xbf16>, vector<128x128xbf16>, vector<32x128xf32> -> vector<32x128xf32>
      %235 = arith.addf %228, %234 : vector<32x128xf32>
      %c0_188 = arith.constant 0 : index
      %c8_189 = arith.constant 8 : index
      %c0_190 = arith.constant 0 : index
      %236 = vector.load %arg7[%c0_188, %c8_189, %c0_190] : memref<2x32x128xf32, #tpu.memory_space<vmem>>, vector<2x16x128xf32>
      %237 = vector.shape_cast %236 : vector<2x16x128xf32> to vector<32x128xf32>
      %238 = arith.truncf %237 : vector<32x128xf32> to vector<32x128xbf16>
      %c0_191 = arith.constant 0 : index
      %c3_192 = arith.constant 3 : index
      %c2_193 = arith.constant 2 : index
      %c0_194 = arith.constant 0 : index
      %c0_195 = arith.constant 0 : index
      %239 = vector.load %arg3[%c0_191, %c3_192, %c2_193, %c0_194, %c0_195] : memref<1x10x5x128x128xbf16, #tpu.memory_space<vmem>>, vector<1x1x1x128x128xbf16>
      %240 = vector.shape_cast %239 : vector<1x1x1x128x128xbf16> to vector<128x128xbf16>
      %cst_196 = arith.constant dense<0.000000e+00> : vector<32x128xf32>
      %241 = tpu.matmul %238, %240, %cst_196 {dimension_numbers = #tpu.dot_dimension_numbers<[1], [0], [0], [1], [0, 0, 1, 1], [], []>} : vector<32x128xbf16>, vector<128x128xbf16>, vector<32x128xf32> -> vector<32x128xf32>
      %242 = arith.addf %235, %241 : vector<32x128xf32>
      %c0_197 = arith.constant 0 : index
      %c11_198 = arith.constant 11 : index
      %c0_199 = arith.constant 0 : index
      %243 = vector.load %arg7[%c0_197, %c11_198, %c0_199] : memref<2x32x128xf32, #tpu.memory_space<vmem>>, vector<2x16x128xf32>
      %244 = vector.shape_cast %243 : vector<2x16x128xf32> to vector<32x128xf32>
      %245 = arith.truncf %244 : vector<32x128xf32> to vector<32x128xbf16>
      %c0_200 = arith.constant 0 : index
      %c3_201 = arith.constant 3 : index
      %c3_202 = arith.constant 3 : index
      %c0_203 = arith.constant 0 : index
      %c0_204 = arith.constant 0 : index
      %246 = vector.load %arg3[%c0_200, %c3_201, %c3_202, %c0_203, %c0_204] : memref<1x10x5x128x128xbf16, #tpu.memory_space<vmem>>, vector<1x1x1x128x128xbf16>
      %247 = vector.shape_cast %246 : vector<1x1x1x128x128xbf16> to vector<128x128xbf16>
      %cst_205 = arith.constant dense<0.000000e+00> : vector<32x128xf32>
      %248 = tpu.matmul %245, %247, %cst_205 {dimension_numbers = #tpu.dot_dimension_numbers<[1], [0], [0], [1], [0, 0, 1, 1], [], []>} : vector<32x128xbf16>, vector<128x128xbf16>, vector<32x128xf32> -> vector<32x128xf32>
      %249 = arith.addf %242, %248 : vector<32x128xf32>
      %c0_206 = arith.constant 0 : index
      %c14_207 = arith.constant 14 : index
      %c0_208 = arith.constant 0 : index
      %250 = vector.load %arg7[%c0_206, %c14_207, %c0_208] : memref<2x32x128xf32, #tpu.memory_space<vmem>>, vector<2x16x128xf32>
      %251 = vector.shape_cast %250 : vector<2x16x128xf32> to vector<32x128xf32>
      %252 = arith.truncf %251 : vector<32x128xf32> to vector<32x128xbf16>
      %c0_209 = arith.constant 0 : index
      %c3_210 = arith.constant 3 : index
      %c4_211 = arith.constant 4 : index
      %c0_212 = arith.constant 0 : index
      %c0_213 = arith.constant 0 : index
      %253 = vector.load %arg3[%c0_209, %c3_210, %c4_211, %c0_212, %c0_213] : memref<1x10x5x128x128xbf16, #tpu.memory_space<vmem>>, vector<1x1x1x128x128xbf16>
      %254 = vector.shape_cast %253 : vector<1x1x1x128x128xbf16> to vector<128x128xbf16>
      %cst_214 = arith.constant dense<0.000000e+00> : vector<32x128xf32>
      %255 = tpu.matmul %252, %254, %cst_214 {dimension_numbers = #tpu.dot_dimension_numbers<[1], [0], [0], [1], [0, 0, 1, 1], [], []>} : vector<32x128xbf16>, vector<128x128xbf16>, vector<32x128xf32> -> vector<32x128xf32>
      %256 = arith.addf %249, %255 : vector<32x128xf32>
      %c3_i32 = arith.constant 3 : i32
      %257 = arith.addi %16, %c3_i32 : i32
      %258 = arith.index_cast %257 : i32 to index
      %c0_215 = arith.constant 0 : index
      %259 = vector.load %arg4[%258, %c0_215] : memref<43x128xf32, #tpu.memory_space<vmem>>, vector<1x128xf32>
      %260 = arith.index_cast %257 : i32 to index
      %c0_216 = arith.constant 0 : index
      %261 = vector.load %arg5[%260, %c0_216] : memref<43x128xf32, #tpu.memory_space<vmem>>, vector<1x128xf32>
      %cst_217 = arith.constant dense<0.000000e+00> : vector<128xf32>
      %262 = vector.multi_reduction <add>, %256, %cst_217 [0] : vector<32x128xf32> to vector<128xf32>
      %263 = vector.shape_cast %262 : vector<128xf32> to vector<1x128xf32>
      %cst_218 = arith.constant 3.125000e-02 : f32
      %264 = vector.broadcast %cst_218 : f32 to vector<1x128xf32>
      %265 = arith.mulf %263, %264 : vector<1x128xf32>
      %266 = vector.broadcast %265 : vector<1x128xf32> to vector<32x128xf32>
      %267 = arith.subf %256, %266 : vector<32x128xf32>
      %268 = vector.broadcast %265 : vector<1x128xf32> to vector<32x128xf32>
      %269 = arith.subf %256, %268 : vector<32x128xf32>
      %270 = arith.mulf %267, %269 : vector<32x128xf32>
      %cst_219 = arith.constant dense<0.000000e+00> : vector<128xf32>
      %271 = vector.multi_reduction <add>, %270, %cst_219 [0] : vector<32x128xf32> to vector<128xf32>
      %272 = vector.shape_cast %271 : vector<128xf32> to vector<1x128xf32>
      %cst_220 = arith.constant 3.125000e-02 : f32
      %273 = vector.broadcast %cst_220 : f32 to vector<1x128xf32>
      %274 = arith.mulf %272, %273 : vector<1x128xf32>
      %cst_221 = arith.constant 9.99999974E-6 : f32
      %275 = vector.broadcast %cst_221 : f32 to vector<1x128xf32>
      %276 = arith.addf %274, %275 : vector<1x128xf32>
      %277 = math.rsqrt %276 : vector<1x128xf32>
      %278 = arith.mulf %259, %277 : vector<1x128xf32>
      %279 = vector.broadcast %278 : vector<1x128xf32> to vector<32x128xf32>
      %280 = arith.mulf %256, %279 : vector<32x128xf32>
      %281 = arith.mulf %265, %278 : vector<1x128xf32>
      %282 = arith.subf %261, %281 : vector<1x128xf32>
      %283 = vector.broadcast %282 : vector<1x128xf32> to vector<32x128xf32>
      %284 = arith.addf %280, %283 : vector<32x128xf32>
      %cst_222 = arith.constant 0.000000e+00 : f32
      %285 = vector.broadcast %cst_222 : f32 to vector<32x128xf32>
      %286 = arith.maximumf %284, %285 : vector<32x128xf32>
      %287 = vector.shape_cast %286 : vector<32x128xf32> to vector<2x16x128xf32>
      %c0_223 = arith.constant 0 : index
      %c8_224 = arith.constant 8 : index
      %c0_225 = arith.constant 0 : index
      %288 = vector.load %arg7[%c0_223, %c8_224, %c0_225] : memref<2x32x128xf32, #tpu.memory_space<vmem>>, vector<2x16x128xf32>
      tpu.vector_store %arg7[%c0_223, %c8_224, %c0_225], %287 {strides = array<i32>} : memref<2x32x128xf32, #tpu.memory_space<vmem>>, vector<2x16x128xf32>,
      %cst_226 = arith.constant 0.000000e+00 : f32
      %289 = vector.broadcast %cst_226 : f32 to vector<32x128xf32>
      %c0_227 = arith.constant 0 : index
      %c2_228 = arith.constant 2 : index
      %c0_229 = arith.constant 0 : index
      %290 = vector.load %arg7[%c0_227, %c2_228, %c0_229] : memref<2x32x128xf32, #tpu.memory_space<vmem>>, vector<2x16x128xf32>
      %291 = vector.shape_cast %290 : vector<2x16x128xf32> to vector<32x128xf32>
      %292 = arith.truncf %291 : vector<32x128xf32> to vector<32x128xbf16>
      %c0_230 = arith.constant 0 : index
      %c4_231 = arith.constant 4 : index
      %c0_232 = arith.constant 0 : index
      %c0_233 = arith.constant 0 : index
      %c0_234 = arith.constant 0 : index
      %293 = vector.load %arg3[%c0_230, %c4_231, %c0_232, %c0_233, %c0_234] : memref<1x10x5x128x128xbf16, #tpu.memory_space<vmem>>, vector<1x1x1x128x128xbf16>
      %294 = vector.shape_cast %293 : vector<1x1x1x128x128xbf16> to vector<128x128xbf16>
      %cst_235 = arith.constant dense<0.000000e+00> : vector<32x128xf32>
      %295 = tpu.matmul %292, %294, %cst_235 {dimension_numbers = #tpu.dot_dimension_numbers<[1], [0], [0], [1], [0, 0, 1, 1], [], []>} : vector<32x128xbf16>, vector<128x128xbf16>, vector<32x128xf32> -> vector<32x128xf32>
      %296 = arith.addf %289, %295 : vector<32x128xf32>
      %c0_236 = arith.constant 0 : index
      %c5_237 = arith.constant 5 : index
      %c0_238 = arith.constant 0 : index
      %297 = vector.load %arg7[%c0_236, %c5_237, %c0_238] : memref<2x32x128xf32, #tpu.memory_space<vmem>>, vector<2x16x128xf32>
      %298 = vector.shape_cast %297 : vector<2x16x128xf32> to vector<32x128xf32>
      %299 = arith.truncf %298 : vector<32x128xf32> to vector<32x128xbf16>
      %c0_239 = arith.constant 0 : index
      %c4_240 = arith.constant 4 : index
      %c1_241 = arith.constant 1 : index
      %c0_242 = arith.constant 0 : index
      %c0_243 = arith.constant 0 : index
      %300 = vector.load %arg3[%c0_239, %c4_240, %c1_241, %c0_242, %c0_243] : memref<1x10x5x128x128xbf16, #tpu.memory_space<vmem>>, vector<1x1x1x128x128xbf16>
      %301 = vector.shape_cast %300 : vector<1x1x1x128x128xbf16> to vector<128x128xbf16>
      %cst_244 = arith.constant dense<0.000000e+00> : vector<32x128xf32>
      %302 = tpu.matmul %299, %301, %cst_244 {dimension_numbers = #tpu.dot_dimension_numbers<[1], [0], [0], [1], [0, 0, 1, 1], [], []>} : vector<32x128xbf16>, vector<128x128xbf16>, vector<32x128xf32> -> vector<32x128xf32>
      %303 = arith.addf %296, %302 : vector<32x128xf32>
      %c0_245 = arith.constant 0 : index
      %c8_246 = arith.constant 8 : index
      %c0_247 = arith.constant 0 : index
      %304 = vector.load %arg7[%c0_245, %c8_246, %c0_247] : memref<2x32x128xf32, #tpu.memory_space<vmem>>, vector<2x16x128xf32>
      %305 = vector.shape_cast %304 : vector<2x16x128xf32> to vector<32x128xf32>
      %306 = arith.truncf %305 : vector<32x128xf32> to vector<32x128xbf16>
      %c0_248 = arith.constant 0 : index
      %c4_249 = arith.constant 4 : index
      %c2_250 = arith.constant 2 : index
      %c0_251 = arith.constant 0 : index
      %c0_252 = arith.constant 0 : index
      %307 = vector.load %arg3[%c0_248, %c4_249, %c2_250, %c0_251, %c0_252] : memref<1x10x5x128x128xbf16, #tpu.memory_space<vmem>>, vector<1x1x1x128x128xbf16>
      %308 = vector.shape_cast %307 : vector<1x1x1x128x128xbf16> to vector<128x128xbf16>
      %cst_253 = arith.constant dense<0.000000e+00> : vector<32x128xf32>
      %309 = tpu.matmul %306, %308, %cst_253 {dimension_numbers = #tpu.dot_dimension_numbers<[1], [0], [0], [1], [0, 0, 1, 1], [], []>} : vector<32x128xbf16>, vector<128x128xbf16>, vector<32x128xf32> -> vector<32x128xf32>
      %310 = arith.addf %303, %309 : vector<32x128xf32>
      %c0_254 = arith.constant 0 : index
      %c11_255 = arith.constant 11 : index
      %c0_256 = arith.constant 0 : index
      %311 = vector.load %arg7[%c0_254, %c11_255, %c0_256] : memref<2x32x128xf32, #tpu.memory_space<vmem>>, vector<2x16x128xf32>
      %312 = vector.shape_cast %311 : vector<2x16x128xf32> to vector<32x128xf32>
      %313 = arith.truncf %312 : vector<32x128xf32> to vector<32x128xbf16>
      %c0_257 = arith.constant 0 : index
      %c4_258 = arith.constant 4 : index
      %c3_259 = arith.constant 3 : index
      %c0_260 = arith.constant 0 : index
      %c0_261 = arith.constant 0 : index
      %314 = vector.load %arg3[%c0_257, %c4_258, %c3_259, %c0_260, %c0_261] : memref<1x10x5x128x128xbf16, #tpu.memory_space<vmem>>, vector<1x1x1x128x128xbf16>
      %315 = vector.shape_cast %314 : vector<1x1x1x128x128xbf16> to vector<128x128xbf16>
      %cst_262 = arith.constant dense<0.000000e+00> : vector<32x128xf32>
      %316 = tpu.matmul %313, %315, %cst_262 {dimension_numbers = #tpu.dot_dimension_numbers<[1], [0], [0], [1], [0, 0, 1, 1], [], []>} : vector<32x128xbf16>, vector<128x128xbf16>, vector<32x128xf32> -> vector<32x128xf32>
      %317 = arith.addf %310, %316 : vector<32x128xf32>
      %c0_263 = arith.constant 0 : index
      %c14_264 = arith.constant 14 : index
      %c0_265 = arith.constant 0 : index
      %318 = vector.load %arg7[%c0_263, %c14_264, %c0_265] : memref<2x32x128xf32, #tpu.memory_space<vmem>>, vector<2x16x128xf32>
      %319 = vector.shape_cast %318 : vector<2x16x128xf32> to vector<32x128xf32>
      %320 = arith.truncf %319 : vector<32x128xf32> to vector<32x128xbf16>
      %c0_266 = arith.constant 0 : index
      %c4_267 = arith.constant 4 : index
      %c4_268 = arith.constant 4 : index
      %c0_269 = arith.constant 0 : index
      %c0_270 = arith.constant 0 : index
      %321 = vector.load %arg3[%c0_266, %c4_267, %c4_268, %c0_269, %c0_270] : memref<1x10x5x128x128xbf16, #tpu.memory_space<vmem>>, vector<1x1x1x128x128xbf16>
      %322 = vector.shape_cast %321 : vector<1x1x1x128x128xbf16> to vector<128x128xbf16>
      %cst_271 = arith.constant dense<0.000000e+00> : vector<32x128xf32>
      %323 = tpu.matmul %320, %322, %cst_271 {dimension_numbers = #tpu.dot_dimension_numbers<[1], [0], [0], [1], [0, 0, 1, 1], [], []>} : vector<32x128xbf16>, vector<128x128xbf16>, vector<32x128xf32> -> vector<32x128xf32>
      %324 = arith.addf %317, %323 : vector<32x128xf32>
      %c4_i32_272 = arith.constant 4 : i32
      %325 = arith.addi %16, %c4_i32_272 : i32
      %326 = arith.index_cast %325 : i32 to index
      %c0_273 = arith.constant 0 : index
      %327 = vector.load %arg4[%326, %c0_273] : memref<43x128xf32, #tpu.memory_space<vmem>>, vector<1x128xf32>
      %328 = arith.index_cast %325 : i32 to index
      %c0_274 = arith.constant 0 : index
      %329 = vector.load %arg5[%328, %c0_274] : memref<43x128xf32, #tpu.memory_space<vmem>>, vector<1x128xf32>
      %cst_275 = arith.constant dense<0.000000e+00> : vector<128xf32>
      %330 = vector.multi_reduction <add>, %324, %cst_275 [0] : vector<32x128xf32> to vector<128xf32>
      %331 = vector.shape_cast %330 : vector<128xf32> to vector<1x128xf32>
      %cst_276 = arith.constant 3.125000e-02 : f32
      %332 = vector.broadcast %cst_276 : f32 to vector<1x128xf32>
      %333 = arith.mulf %331, %332 : vector<1x128xf32>
      %334 = vector.broadcast %333 : vector<1x128xf32> to vector<32x128xf32>
      %335 = arith.subf %324, %334 : vector<32x128xf32>
      %336 = vector.broadcast %333 : vector<1x128xf32> to vector<32x128xf32>
      %337 = arith.subf %324, %336 : vector<32x128xf32>
      %338 = arith.mulf %335, %337 : vector<32x128xf32>
      %cst_277 = arith.constant dense<0.000000e+00> : vector<128xf32>
      %339 = vector.multi_reduction <add>, %338, %cst_277 [0] : vector<32x128xf32> to vector<128xf32>
      %340 = vector.shape_cast %339 : vector<128xf32> to vector<1x128xf32>
      %cst_278 = arith.constant 3.125000e-02 : f32
      %341 = vector.broadcast %cst_278 : f32 to vector<1x128xf32>
      %342 = arith.mulf %340, %341 : vector<1x128xf32>
      %cst_279 = arith.constant 9.99999974E-6 : f32
      %343 = vector.broadcast %cst_279 : f32 to vector<1x128xf32>
      %344 = arith.addf %342, %343 : vector<1x128xf32>
      %345 = math.rsqrt %344 : vector<1x128xf32>
      %346 = arith.mulf %327, %345 : vector<1x128xf32>
      %347 = vector.broadcast %346 : vector<1x128xf32> to vector<32x128xf32>
      %348 = arith.mulf %324, %347 : vector<32x128xf32>
      %349 = arith.mulf %333, %346 : vector<1x128xf32>
      %350 = arith.subf %329, %349 : vector<1x128xf32>
      %351 = vector.broadcast %350 : vector<1x128xf32> to vector<32x128xf32>
      %352 = arith.addf %348, %351 : vector<32x128xf32>
      %cst_280 = arith.constant 0.000000e+00 : f32
      %353 = vector.broadcast %cst_280 : f32 to vector<32x128xf32>
      %354 = arith.maximumf %352, %353 : vector<32x128xf32>
      %355 = vector.shape_cast %354 : vector<32x128xf32> to vector<2x16x128xf32>
      %c0_281 = arith.constant 0 : index
      %c8_282 = arith.constant 8 : index
      %c0_283 = arith.constant 0 : index
      %356 = vector.load %arg7[%c0_281, %c8_282, %c0_283] : memref<2x32x128xf32, #tpu.memory_space<vmem>>, vector<2x16x128xf32>
      tpu.vector_store %arg7[%c0_281, %c8_282, %c0_283], %355 {strides = array<i32>} : memref<2x32x128xf32, #tpu.memory_space<vmem>>, vector<2x16x128xf32>,
      %cst_284 = arith.constant 0.000000e+00 : f32
      %357 = vector.broadcast %cst_284 : f32 to vector<32x128xf32>
      %c0_285 = arith.constant 0 : index
      %c2_286 = arith.constant 2 : index
      %c0_287 = arith.constant 0 : index
      %358 = vector.load %arg7[%c0_285, %c2_286, %c0_287] : memref<2x32x128xf32, #tpu.memory_space<vmem>>, vector<2x16x128xf32>
      %359 = vector.shape_cast %358 : vector<2x16x128xf32> to vector<32x128xf32>
      %360 = arith.truncf %359 : vector<32x128xf32> to vector<32x128xbf16>
      %c0_288 = arith.constant 0 : index
      %c5_289 = arith.constant 5 : index
      %c0_290 = arith.constant 0 : index
      %c0_291 = arith.constant 0 : index
      %c0_292 = arith.constant 0 : index
      %361 = vector.load %arg3[%c0_288, %c5_289, %c0_290, %c0_291, %c0_292] : memref<1x10x5x128x128xbf16, #tpu.memory_space<vmem>>, vector<1x1x1x128x128xbf16>
      %362 = vector.shape_cast %361 : vector<1x1x1x128x128xbf16> to vector<128x128xbf16>
      %cst_293 = arith.constant dense<0.000000e+00> : vector<32x128xf32>
      %363 = tpu.matmul %360, %362, %cst_293 {dimension_numbers = #tpu.dot_dimension_numbers<[1], [0], [0], [1], [0, 0, 1, 1], [], []>} : vector<32x128xbf16>, vector<128x128xbf16>, vector<32x128xf32> -> vector<32x128xf32>
      %364 = arith.addf %357, %363 : vector<32x128xf32>
      %c0_294 = arith.constant 0 : index
      %c5_295 = arith.constant 5 : index
      %c0_296 = arith.constant 0 : index
      %365 = vector.load %arg7[%c0_294, %c5_295, %c0_296] : memref<2x32x128xf32, #tpu.memory_space<vmem>>, vector<2x16x128xf32>
      %366 = vector.shape_cast %365 : vector<2x16x128xf32> to vector<32x128xf32>
      %367 = arith.truncf %366 : vector<32x128xf32> to vector<32x128xbf16>
      %c0_297 = arith.constant 0 : index
      %c5_298 = arith.constant 5 : index
      %c1_299 = arith.constant 1 : index
      %c0_300 = arith.constant 0 : index
      %c0_301 = arith.constant 0 : index
      %368 = vector.load %arg3[%c0_297, %c5_298, %c1_299, %c0_300, %c0_301] : memref<1x10x5x128x128xbf16, #tpu.memory_space<vmem>>, vector<1x1x1x128x128xbf16>
      %369 = vector.shape_cast %368 : vector<1x1x1x128x128xbf16> to vector<128x128xbf16>
      %cst_302 = arith.constant dense<0.000000e+00> : vector<32x128xf32>
      %370 = tpu.matmul %367, %369, %cst_302 {dimension_numbers = #tpu.dot_dimension_numbers<[1], [0], [0], [1], [0, 0, 1, 1], [], []>} : vector<32x128xbf16>, vector<128x128xbf16>, vector<32x128xf32> -> vector<32x128xf32>
      %371 = arith.addf %364, %370 : vector<32x128xf32>
      %c0_303 = arith.constant 0 : index
      %c8_304 = arith.constant 8 : index
      %c0_305 = arith.constant 0 : index
      %372 = vector.load %arg7[%c0_303, %c8_304, %c0_305] : memref<2x32x128xf32, #tpu.memory_space<vmem>>, vector<2x16x128xf32>
      %373 = vector.shape_cast %372 : vector<2x16x128xf32> to vector<32x128xf32>
      %374 = arith.truncf %373 : vector<32x128xf32> to vector<32x128xbf16>
      %c0_306 = arith.constant 0 : index
      %c5_307 = arith.constant 5 : index
      %c2_308 = arith.constant 2 : index
      %c0_309 = arith.constant 0 : index
      %c0_310 = arith.constant 0 : index
      %375 = vector.load %arg3[%c0_306, %c5_307, %c2_308, %c0_309, %c0_310] : memref<1x10x5x128x128xbf16, #tpu.memory_space<vmem>>, vector<1x1x1x128x128xbf16>
      %376 = vector.shape_cast %375 : vector<1x1x1x128x128xbf16> to vector<128x128xbf16>
      %cst_311 = arith.constant dense<0.000000e+00> : vector<32x128xf32>
      %377 = tpu.matmul %374, %376, %cst_311 {dimension_numbers = #tpu.dot_dimension_numbers<[1], [0], [0], [1], [0, 0, 1, 1], [], []>} : vector<32x128xbf16>, vector<128x128xbf16>, vector<32x128xf32> -> vector<32x128xf32>
      %378 = arith.addf %371, %377 : vector<32x128xf32>
      %c0_312 = arith.constant 0 : index
      %c11_313 = arith.constant 11 : index
      %c0_314 = arith.constant 0 : index
      %379 = vector.load %arg7[%c0_312, %c11_313, %c0_314] : memref<2x32x128xf32, #tpu.memory_space<vmem>>, vector<2x16x128xf32>
      %380 = vector.shape_cast %379 : vector<2x16x128xf32> to vector<32x128xf32>
      %381 = arith.truncf %380 : vector<32x128xf32> to vector<32x128xbf16>
      %c0_315 = arith.constant 0 : index
      %c5_316 = arith.constant 5 : index
      %c3_317 = arith.constant 3 : index
      %c0_318 = arith.constant 0 : index
      %c0_319 = arith.constant 0 : index
      %382 = vector.load %arg3[%c0_315, %c5_316, %c3_317, %c0_318, %c0_319] : memref<1x10x5x128x128xbf16, #tpu.memory_space<vmem>>, vector<1x1x1x128x128xbf16>
      %383 = vector.shape_cast %382 : vector<1x1x1x128x128xbf16> to vector<128x128xbf16>
      %cst_320 = arith.constant dense<0.000000e+00> : vector<32x128xf32>
      %384 = tpu.matmul %381, %383, %cst_320 {dimension_numbers = #tpu.dot_dimension_numbers<[1], [0], [0], [1], [0, 0, 1, 1], [], []>} : vector<32x128xbf16>, vector<128x128xbf16>, vector<32x128xf32> -> vector<32x128xf32>
      %385 = arith.addf %378, %384 : vector<32x128xf32>
      %c0_321 = arith.constant 0 : index
      %c14_322 = arith.constant 14 : index
      %c0_323 = arith.constant 0 : index
      %386 = vector.load %arg7[%c0_321, %c14_322, %c0_323] : memref<2x32x128xf32, #tpu.memory_space<vmem>>, vector<2x16x128xf32>
      %387 = vector.shape_cast %386 : vector<2x16x128xf32> to vector<32x128xf32>
      %388 = arith.truncf %387 : vector<32x128xf32> to vector<32x128xbf16>
      %c0_324 = arith.constant 0 : index
      %c5_325 = arith.constant 5 : index
      %c4_326 = arith.constant 4 : index
      %c0_327 = arith.constant 0 : index
      %c0_328 = arith.constant 0 : index
      %389 = vector.load %arg3[%c0_324, %c5_325, %c4_326, %c0_327, %c0_328] : memref<1x10x5x128x128xbf16, #tpu.memory_space<vmem>>, vector<1x1x1x128x128xbf16>
      %390 = vector.shape_cast %389 : vector<1x1x1x128x128xbf16> to vector<128x128xbf16>
      %cst_329 = arith.constant dense<0.000000e+00> : vector<32x128xf32>
      %391 = tpu.matmul %388, %390, %cst_329 {dimension_numbers = #tpu.dot_dimension_numbers<[1], [0], [0], [1], [0, 0, 1, 1], [], []>} : vector<32x128xbf16>, vector<128x128xbf16>, vector<32x128xf32> -> vector<32x128xf32>
      %392 = arith.addf %385, %391 : vector<32x128xf32>
      %c5_i32_330 = arith.constant 5 : i32
      %393 = arith.addi %16, %c5_i32_330 : i32
      %394 = arith.index_cast %393 : i32 to index
      %c0_331 = arith.constant 0 : index
      %395 = vector.load %arg4[%394, %c0_331] : memref<43x128xf32, #tpu.memory_space<vmem>>, vector<1x128xf32>
      %396 = arith.index_cast %393 : i32 to index
      %c0_332 = arith.constant 0 : index
      %397 = vector.load %arg5[%396, %c0_332] : memref<43x128xf32, #tpu.memory_space<vmem>>, vector<1x128xf32>
      %cst_333 = arith.constant dense<0.000000e+00> : vector<128xf32>
      %398 = vector.multi_reduction <add>, %392, %cst_333 [0] : vector<32x128xf32> to vector<128xf32>
      %399 = vector.shape_cast %398 : vector<128xf32> to vector<1x128xf32>
      %cst_334 = arith.constant 3.125000e-02 : f32
      %400 = vector.broadcast %cst_334 : f32 to vector<1x128xf32>
      %401 = arith.mulf %399, %400 : vector<1x128xf32>
      %402 = vector.broadcast %401 : vector<1x128xf32> to vector<32x128xf32>
      %403 = arith.subf %392, %402 : vector<32x128xf32>
      %404 = vector.broadcast %401 : vector<1x128xf32> to vector<32x128xf32>
      %405 = arith.subf %392, %404 : vector<32x128xf32>
      %406 = arith.mulf %403, %405 : vector<32x128xf32>
      %cst_335 = arith.constant dense<0.000000e+00> : vector<128xf32>
      %407 = vector.multi_reduction <add>, %406, %cst_335 [0] : vector<32x128xf32> to vector<128xf32>
      %408 = vector.shape_cast %407 : vector<128xf32> to vector<1x128xf32>
      %cst_336 = arith.constant 3.125000e-02 : f32
      %409 = vector.broadcast %cst_336 : f32 to vector<1x128xf32>
      %410 = arith.mulf %408, %409 : vector<1x128xf32>
      %cst_337 = arith.constant 9.99999974E-6 : f32
      %411 = vector.broadcast %cst_337 : f32 to vector<1x128xf32>
      %412 = arith.addf %410, %411 : vector<1x128xf32>
      %413 = math.rsqrt %412 : vector<1x128xf32>
      %414 = arith.mulf %395, %413 : vector<1x128xf32>
      %415 = vector.broadcast %414 : vector<1x128xf32> to vector<32x128xf32>
      %416 = arith.mulf %392, %415 : vector<32x128xf32>
      %417 = arith.mulf %401, %414 : vector<1x128xf32>
      %418 = arith.subf %397, %417 : vector<1x128xf32>
      %419 = vector.broadcast %418 : vector<1x128xf32> to vector<32x128xf32>
      %420 = arith.addf %416, %419 : vector<32x128xf32>
      %cst_338 = arith.constant 0.000000e+00 : f32
      %421 = vector.broadcast %cst_338 : f32 to vector<32x128xf32>
      %422 = arith.maximumf %420, %421 : vector<32x128xf32>
      %423 = vector.shape_cast %422 : vector<32x128xf32> to vector<2x16x128xf32>
      %c0_339 = arith.constant 0 : index
      %c8_340 = arith.constant 8 : index
      %c0_341 = arith.constant 0 : index
      %424 = vector.load %arg7[%c0_339, %c8_340, %c0_341] : memref<2x32x128xf32, #tpu.memory_space<vmem>>, vector<2x16x128xf32>
      tpu.vector_store %arg7[%c0_339, %c8_340, %c0_341], %423 {strides = array<i32>} : memref<2x32x128xf32, #tpu.memory_space<vmem>>, vector<2x16x128xf32>,
      %cst_342 = arith.constant 0.000000e+00 : f32
      %425 = vector.broadcast %cst_342 : f32 to vector<32x128xf32>
      %c0_343 = arith.constant 0 : index
      %c2_344 = arith.constant 2 : index
      %c0_345 = arith.constant 0 : index
      %426 = vector.load %arg7[%c0_343, %c2_344, %c0_345] : memref<2x32x128xf32, #tpu.memory_space<vmem>>, vector<2x16x128xf32>
      %427 = vector.shape_cast %426 : vector<2x16x128xf32> to vector<32x128xf32>
      %428 = arith.truncf %427 : vector<32x128xf32> to vector<32x128xbf16>
      %c0_346 = arith.constant 0 : index
      %c6 = arith.constant 6 : index
      %c0_347 = arith.constant 0 : index
      %c0_348 = arith.constant 0 : index
      %c0_349 = arith.constant 0 : index
      %429 = vector.load %arg3[%c0_346, %c6, %c0_347, %c0_348, %c0_349] : memref<1x10x5x128x128xbf16, #tpu.memory_space<vmem>>, vector<1x1x1x128x128xbf16>
      %430 = vector.shape_cast %429 : vector<1x1x1x128x128xbf16> to vector<128x128xbf16>
      %cst_350 = arith.constant dense<0.000000e+00> : vector<32x128xf32>
      %431 = tpu.matmul %428, %430, %cst_350 {dimension_numbers = #tpu.dot_dimension_numbers<[1], [0], [0], [1], [0, 0, 1, 1], [], []>} : vector<32x128xbf16>, vector<128x128xbf16>, vector<32x128xf32> -> vector<32x128xf32>
      %432 = arith.addf %425, %431 : vector<32x128xf32>
      %c0_351 = arith.constant 0 : index
      %c5_352 = arith.constant 5 : index
      %c0_353 = arith.constant 0 : index
      %433 = vector.load %arg7[%c0_351, %c5_352, %c0_353] : memref<2x32x128xf32, #tpu.memory_space<vmem>>, vector<2x16x128xf32>
      %434 = vector.shape_cast %433 : vector<2x16x128xf32> to vector<32x128xf32>
      %435 = arith.truncf %434 : vector<32x128xf32> to vector<32x128xbf16>
      %c0_354 = arith.constant 0 : index
      %c6_355 = arith.constant 6 : index
      %c1_356 = arith.constant 1 : index
      %c0_357 = arith.constant 0 : index
      %c0_358 = arith.constant 0 : index
      %436 = vector.load %arg3[%c0_354, %c6_355, %c1_356, %c0_357, %c0_358] : memref<1x10x5x128x128xbf16, #tpu.memory_space<vmem>>, vector<1x1x1x128x128xbf16>
      %437 = vector.shape_cast %436 : vector<1x1x1x128x128xbf16> to vector<128x128xbf16>
      %cst_359 = arith.constant dense<0.000000e+00> : vector<32x128xf32>
      %438 = tpu.matmul %435, %437, %cst_359 {dimension_numbers = #tpu.dot_dimension_numbers<[1], [0], [0], [1], [0, 0, 1, 1], [], []>} : vector<32x128xbf16>, vector<128x128xbf16>, vector<32x128xf32> -> vector<32x128xf32>
      %439 = arith.addf %432, %438 : vector<32x128xf32>
      %c0_360 = arith.constant 0 : index
      %c8_361 = arith.constant 8 : index
      %c0_362 = arith.constant 0 : index
      %440 = vector.load %arg7[%c0_360, %c8_361, %c0_362] : memref<2x32x128xf32, #tpu.memory_space<vmem>>, vector<2x16x128xf32>
      %441 = vector.shape_cast %440 : vector<2x16x128xf32> to vector<32x128xf32>
      %442 = arith.truncf %441 : vector<32x128xf32> to vector<32x128xbf16>
      %c0_363 = arith.constant 0 : index
      %c6_364 = arith.constant 6 : index
      %c2_365 = arith.constant 2 : index
      %c0_366 = arith.constant 0 : index
      %c0_367 = arith.constant 0 : index
      %443 = vector.load %arg3[%c0_363, %c6_364, %c2_365, %c0_366, %c0_367] : memref<1x10x5x128x128xbf16, #tpu.memory_space<vmem>>, vector<1x1x1x128x128xbf16>
      %444 = vector.shape_cast %443 : vector<1x1x1x128x128xbf16> to vector<128x128xbf16>
      %cst_368 = arith.constant dense<0.000000e+00> : vector<32x128xf32>
      %445 = tpu.matmul %442, %444, %cst_368 {dimension_numbers = #tpu.dot_dimension_numbers<[1], [0], [0], [1], [0, 0, 1, 1], [], []>} : vector<32x128xbf16>, vector<128x128xbf16>, vector<32x128xf32> -> vector<32x128xf32>
      %446 = arith.addf %439, %445 : vector<32x128xf32>
      %c0_369 = arith.constant 0 : index
      %c11_370 = arith.constant 11 : index
      %c0_371 = arith.constant 0 : index
      %447 = vector.load %arg7[%c0_369, %c11_370, %c0_371] : memref<2x32x128xf32, #tpu.memory_space<vmem>>, vector<2x16x128xf32>
      %448 = vector.shape_cast %447 : vector<2x16x128xf32> to vector<32x128xf32>
      %449 = arith.truncf %448 : vector<32x128xf32> to vector<32x128xbf16>
      %c0_372 = arith.constant 0 : index
      %c6_373 = arith.constant 6 : index
      %c3_374 = arith.constant 3 : index
      %c0_375 = arith.constant 0 : index
      %c0_376 = arith.constant 0 : index
      %450 = vector.load %arg3[%c0_372, %c6_373, %c3_374, %c0_375, %c0_376] : memref<1x10x5x128x128xbf16, #tpu.memory_space<vmem>>, vector<1x1x1x128x128xbf16>
      %451 = vector.shape_cast %450 : vector<1x1x1x128x128xbf16> to vector<128x128xbf16>
      %cst_377 = arith.constant dense<0.000000e+00> : vector<32x128xf32>
      %452 = tpu.matmul %449, %451, %cst_377 {dimension_numbers = #tpu.dot_dimension_numbers<[1], [0], [0], [1], [0, 0, 1, 1], [], []>} : vector<32x128xbf16>, vector<128x128xbf16>, vector<32x128xf32> -> vector<32x128xf32>
      %453 = arith.addf %446, %452 : vector<32x128xf32>
      %c0_378 = arith.constant 0 : index
      %c14_379 = arith.constant 14 : index
      %c0_380 = arith.constant 0 : index
      %454 = vector.load %arg7[%c0_378, %c14_379, %c0_380] : memref<2x32x128xf32, #tpu.memory_space<vmem>>, vector<2x16x128xf32>
      %455 = vector.shape_cast %454 : vector<2x16x128xf32> to vector<32x128xf32>
      %456 = arith.truncf %455 : vector<32x128xf32> to vector<32x128xbf16>
      %c0_381 = arith.constant 0 : index
      %c6_382 = arith.constant 6 : index
      %c4_383 = arith.constant 4 : index
      %c0_384 = arith.constant 0 : index
      %c0_385 = arith.constant 0 : index
      %457 = vector.load %arg3[%c0_381, %c6_382, %c4_383, %c0_384, %c0_385] : memref<1x10x5x128x128xbf16, #tpu.memory_space<vmem>>, vector<1x1x1x128x128xbf16>
      %458 = vector.shape_cast %457 : vector<1x1x1x128x128xbf16> to vector<128x128xbf16>
      %cst_386 = arith.constant dense<0.000000e+00> : vector<32x128xf32>
      %459 = tpu.matmul %456, %458, %cst_386 {dimension_numbers = #tpu.dot_dimension_numbers<[1], [0], [0], [1], [0, 0, 1, 1], [], []>} : vector<32x128xbf16>, vector<128x128xbf16>, vector<32x128xf32> -> vector<32x128xf32>
      %460 = arith.addf %453, %459 : vector<32x128xf32>
      %c6_i32_387 = arith.constant 6 : i32
      %461 = arith.addi %16, %c6_i32_387 : i32
      %462 = arith.index_cast %461 : i32 to index
      %c0_388 = arith.constant 0 : index
      %463 = vector.load %arg4[%462, %c0_388] : memref<43x128xf32, #tpu.memory_space<vmem>>, vector<1x128xf32>
      %464 = arith.index_cast %461 : i32 to index
      %c0_389 = arith.constant 0 : index
      %465 = vector.load %arg5[%464, %c0_389] : memref<43x128xf32, #tpu.memory_space<vmem>>, vector<1x128xf32>
      %cst_390 = arith.constant dense<0.000000e+00> : vector<128xf32>
      %466 = vector.multi_reduction <add>, %460, %cst_390 [0] : vector<32x128xf32> to vector<128xf32>
      %467 = vector.shape_cast %466 : vector<128xf32> to vector<1x128xf32>
      %cst_391 = arith.constant 3.125000e-02 : f32
      %468 = vector.broadcast %cst_391 : f32 to vector<1x128xf32>
      %469 = arith.mulf %467, %468 : vector<1x128xf32>
      %470 = vector.broadcast %469 : vector<1x128xf32> to vector<32x128xf32>
      %471 = arith.subf %460, %470 : vector<32x128xf32>
      %472 = vector.broadcast %469 : vector<1x128xf32> to vector<32x128xf32>
      %473 = arith.subf %460, %472 : vector<32x128xf32>
      %474 = arith.mulf %471, %473 : vector<32x128xf32>
      %cst_392 = arith.constant dense<0.000000e+00> : vector<128xf32>
      %475 = vector.multi_reduction <add>, %474, %cst_392 [0] : vector<32x128xf32> to vector<128xf32>
      %476 = vector.shape_cast %475 : vector<128xf32> to vector<1x128xf32>
      %cst_393 = arith.constant 3.125000e-02 : f32
      %477 = vector.broadcast %cst_393 : f32 to vector<1x128xf32>
      %478 = arith.mulf %476, %477 : vector<1x128xf32>
      %cst_394 = arith.constant 9.99999974E-6 : f32
      %479 = vector.broadcast %cst_394 : f32 to vector<1x128xf32>
      %480 = arith.addf %478, %479 : vector<1x128xf32>
      %481 = math.rsqrt %480 : vector<1x128xf32>
      %482 = arith.mulf %463, %481 : vector<1x128xf32>
      %483 = vector.broadcast %482 : vector<1x128xf32> to vector<32x128xf32>
      %484 = arith.mulf %460, %483 : vector<32x128xf32>
      %485 = arith.mulf %469, %482 : vector<1x128xf32>
      %486 = arith.subf %465, %485 : vector<1x128xf32>
      %487 = vector.broadcast %486 : vector<1x128xf32> to vector<32x128xf32>
      %488 = arith.addf %484, %487 : vector<32x128xf32>
      %cst_395 = arith.constant 0.000000e+00 : f32
      %489 = vector.broadcast %cst_395 : f32 to vector<32x128xf32>
      %490 = arith.maximumf %488, %489 : vector<32x128xf32>
      %491 = vector.shape_cast %490 : vector<32x128xf32> to vector<2x16x128xf32>
      %c0_396 = arith.constant 0 : index
      %c8_397 = arith.constant 8 : index
      %c0_398 = arith.constant 0 : index
      %492 = vector.load %arg7[%c0_396, %c8_397, %c0_398] : memref<2x32x128xf32, #tpu.memory_space<vmem>>, vector<2x16x128xf32>
      tpu.vector_store %arg7[%c0_396, %c8_397, %c0_398], %491 {strides = array<i32>} : memref<2x32x128xf32, #tpu.memory_space<vmem>>, vector<2x16x128xf32>,
      %cst_399 = arith.constant 0.000000e+00 : f32
      %493 = vector.broadcast %cst_399 : f32 to vector<32x128xf32>
      %c0_400 = arith.constant 0 : index
      %c2_401 = arith.constant 2 : index
      %c0_402 = arith.constant 0 : index
      %494 = vector.load %arg7[%c0_400, %c2_401, %c0_402] : memref<2x32x128xf32, #tpu.memory_space<vmem>>, vector<2x16x128xf32>
      %495 = vector.shape_cast %494 : vector<2x16x128xf32> to vector<32x128xf32>
      %496 = arith.truncf %495 : vector<32x128xf32> to vector<32x128xbf16>
      %c0_403 = arith.constant 0 : index
      %c7 = arith.constant 7 : index
      %c0_404 = arith.constant 0 : index
      %c0_405 = arith.constant 0 : index
      %c0_406 = arith.constant 0 : index
      %497 = vector.load %arg3[%c0_403, %c7, %c0_404, %c0_405, %c0_406] : memref<1x10x5x128x128xbf16, #tpu.memory_space<vmem>>, vector<1x1x1x128x128xbf16>
      %498 = vector.shape_cast %497 : vector<1x1x1x128x128xbf16> to vector<128x128xbf16>
      %cst_407 = arith.constant dense<0.000000e+00> : vector<32x128xf32>
      %499 = tpu.matmul %496, %498, %cst_407 {dimension_numbers = #tpu.dot_dimension_numbers<[1], [0], [0], [1], [0, 0, 1, 1], [], []>} : vector<32x128xbf16>, vector<128x128xbf16>, vector<32x128xf32> -> vector<32x128xf32>
      %500 = arith.addf %493, %499 : vector<32x128xf32>
      %c0_408 = arith.constant 0 : index
      %c5_409 = arith.constant 5 : index
      %c0_410 = arith.constant 0 : index
      %501 = vector.load %arg7[%c0_408, %c5_409, %c0_410] : memref<2x32x128xf32, #tpu.memory_space<vmem>>, vector<2x16x128xf32>
      %502 = vector.shape_cast %501 : vector<2x16x128xf32> to vector<32x128xf32>
      %503 = arith.truncf %502 : vector<32x128xf32> to vector<32x128xbf16>
      %c0_411 = arith.constant 0 : index
      %c7_412 = arith.constant 7 : index
      %c1_413 = arith.constant 1 : index
      %c0_414 = arith.constant 0 : index
      %c0_415 = arith.constant 0 : index
      %504 = vector.load %arg3[%c0_411, %c7_412, %c1_413, %c0_414, %c0_415] : memref<1x10x5x128x128xbf16, #tpu.memory_space<vmem>>, vector<1x1x1x128x128xbf16>
      %505 = vector.shape_cast %504 : vector<1x1x1x128x128xbf16> to vector<128x128xbf16>
      %cst_416 = arith.constant dense<0.000000e+00> : vector<32x128xf32>
      %506 = tpu.matmul %503, %505, %cst_416 {dimension_numbers = #tpu.dot_dimension_numbers<[1], [0], [0], [1], [0, 0, 1, 1], [], []>} : vector<32x128xbf16>, vector<128x128xbf16>, vector<32x128xf32> -> vector<32x128xf32>
      %507 = arith.addf %500, %506 : vector<32x128xf32>
      %c0_417 = arith.constant 0 : index
      %c8_418 = arith.constant 8 : index
      %c0_419 = arith.constant 0 : index
      %508 = vector.load %arg7[%c0_417, %c8_418, %c0_419] : memref<2x32x128xf32, #tpu.memory_space<vmem>>, vector<2x16x128xf32>
      %509 = vector.shape_cast %508 : vector<2x16x128xf32> to vector<32x128xf32>
      %510 = arith.truncf %509 : vector<32x128xf32> to vector<32x128xbf16>
      %c0_420 = arith.constant 0 : index
      %c7_421 = arith.constant 7 : index
      %c2_422 = arith.constant 2 : index
      %c0_423 = arith.constant 0 : index
      %c0_424 = arith.constant 0 : index
      %511 = vector.load %arg3[%c0_420, %c7_421, %c2_422, %c0_423, %c0_424] : memref<1x10x5x128x128xbf16, #tpu.memory_space<vmem>>, vector<1x1x1x128x128xbf16>
      %512 = vector.shape_cast %511 : vector<1x1x1x128x128xbf16> to vector<128x128xbf16>
      %cst_425 = arith.constant dense<0.000000e+00> : vector<32x128xf32>
      %513 = tpu.matmul %510, %512, %cst_425 {dimension_numbers = #tpu.dot_dimension_numbers<[1], [0], [0], [1], [0, 0, 1, 1], [], []>} : vector<32x128xbf16>, vector<128x128xbf16>, vector<32x128xf32> -> vector<32x128xf32>
      %514 = arith.addf %507, %513 : vector<32x128xf32>
      %c0_426 = arith.constant 0 : index
      %c11_427 = arith.constant 11 : index
      %c0_428 = arith.constant 0 : index
      %515 = vector.load %arg7[%c0_426, %c11_427, %c0_428] : memref<2x32x128xf32, #tpu.memory_space<vmem>>, vector<2x16x128xf32>
      %516 = vector.shape_cast %515 : vector<2x16x128xf32> to vector<32x128xf32>
      %517 = arith.truncf %516 : vector<32x128xf32> to vector<32x128xbf16>
      %c0_429 = arith.constant 0 : index
      %c7_430 = arith.constant 7 : index
      %c3_431 = arith.constant 3 : index
      %c0_432 = arith.constant 0 : index
      %c0_433 = arith.constant 0 : index
      %518 = vector.load %arg3[%c0_429, %c7_430, %c3_431, %c0_432, %c0_433] : memref<1x10x5x128x128xbf16, #tpu.memory_space<vmem>>, vector<1x1x1x128x128xbf16>
      %519 = vector.shape_cast %518 : vector<1x1x1x128x128xbf16> to vector<128x128xbf16>
      %cst_434 = arith.constant dense<0.000000e+00> : vector<32x128xf32>
      %520 = tpu.matmul %517, %519, %cst_434 {dimension_numbers = #tpu.dot_dimension_numbers<[1], [0], [0], [1], [0, 0, 1, 1], [], []>} : vector<32x128xbf16>, vector<128x128xbf16>, vector<32x128xf32> -> vector<32x128xf32>
      %521 = arith.addf %514, %520 : vector<32x128xf32>
      %c0_435 = arith.constant 0 : index
      %c14_436 = arith.constant 14 : index
      %c0_437 = arith.constant 0 : index
      %522 = vector.load %arg7[%c0_435, %c14_436, %c0_437] : memref<2x32x128xf32, #tpu.memory_space<vmem>>, vector<2x16x128xf32>
      %523 = vector.shape_cast %522 : vector<2x16x128xf32> to vector<32x128xf32>
      %524 = arith.truncf %523 : vector<32x128xf32> to vector<32x128xbf16>
      %c0_438 = arith.constant 0 : index
      %c7_439 = arith.constant 7 : index
      %c4_440 = arith.constant 4 : index
      %c0_441 = arith.constant 0 : index
      %c0_442 = arith.constant 0 : index
      %525 = vector.load %arg3[%c0_438, %c7_439, %c4_440, %c0_441, %c0_442] : memref<1x10x5x128x128xbf16, #tpu.memory_space<vmem>>, vector<1x1x1x128x128xbf16>
      %526 = vector.shape_cast %525 : vector<1x1x1x128x128xbf16> to vector<128x128xbf16>
      %cst_443 = arith.constant dense<0.000000e+00> : vector<32x128xf32>
      %527 = tpu.matmul %524, %526, %cst_443 {dimension_numbers = #tpu.dot_dimension_numbers<[1], [0], [0], [1], [0, 0, 1, 1], [], []>} : vector<32x128xbf16>, vector<128x128xbf16>, vector<32x128xf32> -> vector<32x128xf32>
      %528 = arith.addf %521, %527 : vector<32x128xf32>
      %c7_i32 = arith.constant 7 : i32
      %529 = arith.addi %16, %c7_i32 : i32
      %530 = arith.index_cast %529 : i32 to index
      %c0_444 = arith.constant 0 : index
      %531 = vector.load %arg4[%530, %c0_444] : memref<43x128xf32, #tpu.memory_space<vmem>>, vector<1x128xf32>
      %532 = arith.index_cast %529 : i32 to index
      %c0_445 = arith.constant 0 : index
      %533 = vector.load %arg5[%532, %c0_445] : memref<43x128xf32, #tpu.memory_space<vmem>>, vector<1x128xf32>
      %cst_446 = arith.constant dense<0.000000e+00> : vector<128xf32>
      %534 = vector.multi_reduction <add>, %528, %cst_446 [0] : vector<32x128xf32> to vector<128xf32>
      %535 = vector.shape_cast %534 : vector<128xf32> to vector<1x128xf32>
      %cst_447 = arith.constant 3.125000e-02 : f32
      %536 = vector.broadcast %cst_447 : f32 to vector<1x128xf32>
      %537 = arith.mulf %535, %536 : vector<1x128xf32>
      %538 = vector.broadcast %537 : vector<1x128xf32> to vector<32x128xf32>
      %539 = arith.subf %528, %538 : vector<32x128xf32>
      %540 = vector.broadcast %537 : vector<1x128xf32> to vector<32x128xf32>
      %541 = arith.subf %528, %540 : vector<32x128xf32>
      %542 = arith.mulf %539, %541 : vector<32x128xf32>
      %cst_448 = arith.constant dense<0.000000e+00> : vector<128xf32>
      %543 = vector.multi_reduction <add>, %542, %cst_448 [0] : vector<32x128xf32> to vector<128xf32>
      %544 = vector.shape_cast %543 : vector<128xf32> to vector<1x128xf32>
      %cst_449 = arith.constant 3.125000e-02 : f32
      %545 = vector.broadcast %cst_449 : f32 to vector<1x128xf32>
      %546 = arith.mulf %544, %545 : vector<1x128xf32>
      %cst_450 = arith.constant 9.99999974E-6 : f32
      %547 = vector.broadcast %cst_450 : f32 to vector<1x128xf32>
      %548 = arith.addf %546, %547 : vector<1x128xf32>
      %549 = math.rsqrt %548 : vector<1x128xf32>
      %550 = arith.mulf %531, %549 : vector<1x128xf32>
      %551 = vector.broadcast %550 : vector<1x128xf32> to vector<32x128xf32>
      %552 = arith.mulf %528, %551 : vector<32x128xf32>
      %553 = arith.mulf %537, %550 : vector<1x128xf32>
      %554 = arith.subf %533, %553 : vector<1x128xf32>
      %555 = vector.broadcast %554 : vector<1x128xf32> to vector<32x128xf32>
      %556 = arith.addf %552, %555 : vector<32x128xf32>
      %cst_451 = arith.constant 0.000000e+00 : f32
      %557 = vector.broadcast %cst_451 : f32 to vector<32x128xf32>
      %558 = arith.maximumf %556, %557 : vector<32x128xf32>
      %559 = vector.shape_cast %558 : vector<32x128xf32> to vector<2x16x128xf32>
      %c0_452 = arith.constant 0 : index
      %c8_453 = arith.constant 8 : index
      %c0_454 = arith.constant 0 : index
      %560 = vector.load %arg7[%c0_452, %c8_453, %c0_454] : memref<2x32x128xf32, #tpu.memory_space<vmem>>, vector<2x16x128xf32>
      tpu.vector_store %arg7[%c0_452, %c8_453, %c0_454], %559 {strides = array<i32>} : memref<2x32x128xf32, #tpu.memory_space<vmem>>, vector<2x16x128xf32>,
      %cst_455 = arith.constant 0.000000e+00 : f32
      %561 = vector.broadcast %cst_455 : f32 to vector<32x128xf32>
      %c0_456 = arith.constant 0 : index
      %c2_457 = arith.constant 2 : index
      %c0_458 = arith.constant 0 : index
      %562 = vector.load %arg7[%c0_456, %c2_457, %c0_458] : memref<2x32x128xf32, #tpu.memory_space<vmem>>, vector<2x16x128xf32>
      %563 = vector.shape_cast %562 : vector<2x16x128xf32> to vector<32x128xf32>
      %564 = arith.truncf %563 : vector<32x128xf32> to vector<32x128xbf16>
      %c0_459 = arith.constant 0 : index
      %c8_460 = arith.constant 8 : index
      %c0_461 = arith.constant 0 : index
      %c0_462 = arith.constant 0 : index
      %c0_463 = arith.constant 0 : index
      %565 = vector.load %arg3[%c0_459, %c8_460, %c0_461, %c0_462, %c0_463] : memref<1x10x5x128x128xbf16, #tpu.memory_space<vmem>>, vector<1x1x1x128x128xbf16>
      %566 = vector.shape_cast %565 : vector<1x1x1x128x128xbf16> to vector<128x128xbf16>
      %cst_464 = arith.constant dense<0.000000e+00> : vector<32x128xf32>
      %567 = tpu.matmul %564, %566, %cst_464 {dimension_numbers = #tpu.dot_dimension_numbers<[1], [0], [0], [1], [0, 0, 1, 1], [], []>} : vector<32x128xbf16>, vector<128x128xbf16>, vector<32x128xf32> -> vector<32x128xf32>
      %568 = arith.addf %561, %567 : vector<32x128xf32>
      %c0_465 = arith.constant 0 : index
      %c5_466 = arith.constant 5 : index
      %c0_467 = arith.constant 0 : index
      %569 = vector.load %arg7[%c0_465, %c5_466, %c0_467] : memref<2x32x128xf32, #tpu.memory_space<vmem>>, vector<2x16x128xf32>
      %570 = vector.shape_cast %569 : vector<2x16x128xf32> to vector<32x128xf32>
      %571 = arith.truncf %570 : vector<32x128xf32> to vector<32x128xbf16>
      %c0_468 = arith.constant 0 : index
      %c8_469 = arith.constant 8 : index
      %c1_470 = arith.constant 1 : index
      %c0_471 = arith.constant 0 : index
      %c0_472 = arith.constant 0 : index
      %572 = vector.load %arg3[%c0_468, %c8_469, %c1_470, %c0_471, %c0_472] : memref<1x10x5x128x128xbf16, #tpu.memory_space<vmem>>, vector<1x1x1x128x128xbf16>
      %573 = vector.shape_cast %572 : vector<1x1x1x128x128xbf16> to vector<128x128xbf16>
      %cst_473 = arith.constant dense<0.000000e+00> : vector<32x128xf32>
      %574 = tpu.matmul %571, %573, %cst_473 {dimension_numbers = #tpu.dot_dimension_numbers<[1], [0], [0], [1], [0, 0, 1, 1], [], []>} : vector<32x128xbf16>, vector<128x128xbf16>, vector<32x128xf32> -> vector<32x128xf32>
      %575 = arith.addf %568, %574 : vector<32x128xf32>
      %c0_474 = arith.constant 0 : index
      %c8_475 = arith.constant 8 : index
      %c0_476 = arith.constant 0 : index
      %576 = vector.load %arg7[%c0_474, %c8_475, %c0_476] : memref<2x32x128xf32, #tpu.memory_space<vmem>>, vector<2x16x128xf32>
      %577 = vector.shape_cast %576 : vector<2x16x128xf32> to vector<32x128xf32>
      %578 = arith.truncf %577 : vector<32x128xf32> to vector<32x128xbf16>
      %c0_477 = arith.constant 0 : index
      %c8_478 = arith.constant 8 : index
      %c2_479 = arith.constant 2 : index
      %c0_480 = arith.constant 0 : index
      %c0_481 = arith.constant 0 : index
      %579 = vector.load %arg3[%c0_477, %c8_478, %c2_479, %c0_480, %c0_481] : memref<1x10x5x128x128xbf16, #tpu.memory_space<vmem>>, vector<1x1x1x128x128xbf16>
      %580 = vector.shape_cast %579 : vector<1x1x1x128x128xbf16> to vector<128x128xbf16>
      %cst_482 = arith.constant dense<0.000000e+00> : vector<32x128xf32>
      %581 = tpu.matmul %578, %580, %cst_482 {dimension_numbers = #tpu.dot_dimension_numbers<[1], [0], [0], [1], [0, 0, 1, 1], [], []>} : vector<32x128xbf16>, vector<128x128xbf16>, vector<32x128xf32> -> vector<32x128xf32>
      %582 = arith.addf %575, %581 : vector<32x128xf32>
      %c0_483 = arith.constant 0 : index
      %c11_484 = arith.constant 11 : index
      %c0_485 = arith.constant 0 : index
      %583 = vector.load %arg7[%c0_483, %c11_484, %c0_485] : memref<2x32x128xf32, #tpu.memory_space<vmem>>, vector<2x16x128xf32>
      %584 = vector.shape_cast %583 : vector<2x16x128xf32> to vector<32x128xf32>
      %585 = arith.truncf %584 : vector<32x128xf32> to vector<32x128xbf16>
      %c0_486 = arith.constant 0 : index
      %c8_487 = arith.constant 8 : index
      %c3_488 = arith.constant 3 : index
      %c0_489 = arith.constant 0 : index
      %c0_490 = arith.constant 0 : index
      %586 = vector.load %arg3[%c0_486, %c8_487, %c3_488, %c0_489, %c0_490] : memref<1x10x5x128x128xbf16, #tpu.memory_space<vmem>>, vector<1x1x1x128x128xbf16>
      %587 = vector.shape_cast %586 : vector<1x1x1x128x128xbf16> to vector<128x128xbf16>
      %cst_491 = arith.constant dense<0.000000e+00> : vector<32x128xf32>
      %588 = tpu.matmul %585, %587, %cst_491 {dimension_numbers = #tpu.dot_dimension_numbers<[1], [0], [0], [1], [0, 0, 1, 1], [], []>} : vector<32x128xbf16>, vector<128x128xbf16>, vector<32x128xf32> -> vector<32x128xf32>
      %589 = arith.addf %582, %588 : vector<32x128xf32>
      %c0_492 = arith.constant 0 : index
      %c14_493 = arith.constant 14 : index
      %c0_494 = arith.constant 0 : index
      %590 = vector.load %arg7[%c0_492, %c14_493, %c0_494] : memref<2x32x128xf32, #tpu.memory_space<vmem>>, vector<2x16x128xf32>
      %591 = vector.shape_cast %590 : vector<2x16x128xf32> to vector<32x128xf32>
      %592 = arith.truncf %591 : vector<32x128xf32> to vector<32x128xbf16>
      %c0_495 = arith.constant 0 : index
      %c8_496 = arith.constant 8 : index
      %c4_497 = arith.constant 4 : index
      %c0_498 = arith.constant 0 : index
      %c0_499 = arith.constant 0 : index
      %593 = vector.load %arg3[%c0_495, %c8_496, %c4_497, %c0_498, %c0_499] : memref<1x10x5x128x128xbf16, #tpu.memory_space<vmem>>, vector<1x1x1x128x128xbf16>
      %594 = vector.shape_cast %593 : vector<1x1x1x128x128xbf16> to vector<128x128xbf16>
      %cst_500 = arith.constant dense<0.000000e+00> : vector<32x128xf32>
      %595 = tpu.matmul %592, %594, %cst_500 {dimension_numbers = #tpu.dot_dimension_numbers<[1], [0], [0], [1], [0, 0, 1, 1], [], []>} : vector<32x128xbf16>, vector<128x128xbf16>, vector<32x128xf32> -> vector<32x128xf32>
      %596 = arith.addf %589, %595 : vector<32x128xf32>
      %c8_i32 = arith.constant 8 : i32
      %597 = arith.addi %16, %c8_i32 : i32
      %598 = arith.index_cast %597 : i32 to index
      %c0_501 = arith.constant 0 : index
      %599 = vector.load %arg4[%598, %c0_501] : memref<43x128xf32, #tpu.memory_space<vmem>>, vector<1x128xf32>
      %600 = arith.index_cast %597 : i32 to index
      %c0_502 = arith.constant 0 : index
      %601 = vector.load %arg5[%600, %c0_502] : memref<43x128xf32, #tpu.memory_space<vmem>>, vector<1x128xf32>
      %cst_503 = arith.constant dense<0.000000e+00> : vector<128xf32>
      %602 = vector.multi_reduction <add>, %596, %cst_503 [0] : vector<32x128xf32> to vector<128xf32>
      %603 = vector.shape_cast %602 : vector<128xf32> to vector<1x128xf32>
      %cst_504 = arith.constant 3.125000e-02 : f32
      %604 = vector.broadcast %cst_504 : f32 to vector<1x128xf32>
      %605 = arith.mulf %603, %604 : vector<1x128xf32>
      %606 = vector.broadcast %605 : vector<1x128xf32> to vector<32x128xf32>
      %607 = arith.subf %596, %606 : vector<32x128xf32>
      %608 = vector.broadcast %605 : vector<1x128xf32> to vector<32x128xf32>
      %609 = arith.subf %596, %608 : vector<32x128xf32>
      %610 = arith.mulf %607, %609 : vector<32x128xf32>
      %cst_505 = arith.constant dense<0.000000e+00> : vector<128xf32>
      %611 = vector.multi_reduction <add>, %610, %cst_505 [0] : vector<32x128xf32> to vector<128xf32>
      %612 = vector.shape_cast %611 : vector<128xf32> to vector<1x128xf32>
      %cst_506 = arith.constant 3.125000e-02 : f32
      %613 = vector.broadcast %cst_506 : f32 to vector<1x128xf32>
      %614 = arith.mulf %612, %613 : vector<1x128xf32>
      %cst_507 = arith.constant 9.99999974E-6 : f32
      %615 = vector.broadcast %cst_507 : f32 to vector<1x128xf32>
      %616 = arith.addf %614, %615 : vector<1x128xf32>
      %617 = math.rsqrt %616 : vector<1x128xf32>
      %618 = arith.mulf %599, %617 : vector<1x128xf32>
      %619 = vector.broadcast %618 : vector<1x128xf32> to vector<32x128xf32>
      %620 = arith.mulf %596, %619 : vector<32x128xf32>
      %621 = arith.mulf %605, %618 : vector<1x128xf32>
      %622 = arith.subf %601, %621 : vector<1x128xf32>
      %623 = vector.broadcast %622 : vector<1x128xf32> to vector<32x128xf32>
      %624 = arith.addf %620, %623 : vector<32x128xf32>
      %cst_508 = arith.constant 0.000000e+00 : f32
      %625 = vector.broadcast %cst_508 : f32 to vector<32x128xf32>
      %626 = arith.maximumf %624, %625 : vector<32x128xf32>
      %627 = vector.shape_cast %626 : vector<32x128xf32> to vector<2x16x128xf32>
      %c0_509 = arith.constant 0 : index
      %c8_510 = arith.constant 8 : index
      %c0_511 = arith.constant 0 : index
      %628 = vector.load %arg7[%c0_509, %c8_510, %c0_511] : memref<2x32x128xf32, #tpu.memory_space<vmem>>, vector<2x16x128xf32>
      tpu.vector_store %arg7[%c0_509, %c8_510, %c0_511], %627 {strides = array<i32>} : memref<2x32x128xf32, #tpu.memory_space<vmem>>, vector<2x16x128xf32>,
      %cst_512 = arith.constant 0.000000e+00 : f32
      %629 = vector.broadcast %cst_512 : f32 to vector<32x128xf32>
      %c0_513 = arith.constant 0 : index
      %c2_514 = arith.constant 2 : index
      %c0_515 = arith.constant 0 : index
      %630 = vector.load %arg7[%c0_513, %c2_514, %c0_515] : memref<2x32x128xf32, #tpu.memory_space<vmem>>, vector<2x16x128xf32>
      %631 = vector.shape_cast %630 : vector<2x16x128xf32> to vector<32x128xf32>
      %632 = arith.truncf %631 : vector<32x128xf32> to vector<32x128xbf16>
      %c0_516 = arith.constant 0 : index
      %c9 = arith.constant 9 : index
      %c0_517 = arith.constant 0 : index
      %c0_518 = arith.constant 0 : index
      %c0_519 = arith.constant 0 : index
      %633 = vector.load %arg3[%c0_516, %c9, %c0_517, %c0_518, %c0_519] : memref<1x10x5x128x128xbf16, #tpu.memory_space<vmem>>, vector<1x1x1x128x128xbf16>
      %634 = vector.shape_cast %633 : vector<1x1x1x128x128xbf16> to vector<128x128xbf16>
      %cst_520 = arith.constant dense<0.000000e+00> : vector<32x128xf32>
      %635 = tpu.matmul %632, %634, %cst_520 {dimension_numbers = #tpu.dot_dimension_numbers<[1], [0], [0], [1], [0, 0, 1, 1], [], []>} : vector<32x128xbf16>, vector<128x128xbf16>, vector<32x128xf32> -> vector<32x128xf32>
      %636 = arith.addf %629, %635 : vector<32x128xf32>
      %c0_521 = arith.constant 0 : index
      %c5_522 = arith.constant 5 : index
      %c0_523 = arith.constant 0 : index
      %637 = vector.load %arg7[%c0_521, %c5_522, %c0_523] : memref<2x32x128xf32, #tpu.memory_space<vmem>>, vector<2x16x128xf32>
      %638 = vector.shape_cast %637 : vector<2x16x128xf32> to vector<32x128xf32>
      %639 = arith.truncf %638 : vector<32x128xf32> to vector<32x128xbf16>
      %c0_524 = arith.constant 0 : index
      %c9_525 = arith.constant 9 : index
      %c1_526 = arith.constant 1 : index
      %c0_527 = arith.constant 0 : index
      %c0_528 = arith.constant 0 : index
      %640 = vector.load %arg3[%c0_524, %c9_525, %c1_526, %c0_527, %c0_528] : memref<1x10x5x128x128xbf16, #tpu.memory_space<vmem>>, vector<1x1x1x128x128xbf16>
      %641 = vector.shape_cast %640 : vector<1x1x1x128x128xbf16> to vector<128x128xbf16>
      %cst_529 = arith.constant dense<0.000000e+00> : vector<32x128xf32>
      %642 = tpu.matmul %639, %641, %cst_529 {dimension_numbers = #tpu.dot_dimension_numbers<[1], [0], [0], [1], [0, 0, 1, 1], [], []>} : vector<32x128xbf16>, vector<128x128xbf16>, vector<32x128xf32> -> vector<32x128xf32>
      %643 = arith.addf %636, %642 : vector<32x128xf32>
      %c0_530 = arith.constant 0 : index
      %c8_531 = arith.constant 8 : index
      %c0_532 = arith.constant 0 : index
      %644 = vector.load %arg7[%c0_530, %c8_531, %c0_532] : memref<2x32x128xf32, #tpu.memory_space<vmem>>, vector<2x16x128xf32>
      %645 = vector.shape_cast %644 : vector<2x16x128xf32> to vector<32x128xf32>
      %646 = arith.truncf %645 : vector<32x128xf32> to vector<32x128xbf16>
      %c0_533 = arith.constant 0 : index
      %c9_534 = arith.constant 9 : index
      %c2_535 = arith.constant 2 : index
      %c0_536 = arith.constant 0 : index
      %c0_537 = arith.constant 0 : index
      %647 = vector.load %arg3[%c0_533, %c9_534, %c2_535, %c0_536, %c0_537] : memref<1x10x5x128x128xbf16, #tpu.memory_space<vmem>>, vector<1x1x1x128x128xbf16>
      %648 = vector.shape_cast %647 : vector<1x1x1x128x128xbf16> to vector<128x128xbf16>
      %cst_538 = arith.constant dense<0.000000e+00> : vector<32x128xf32>
      %649 = tpu.matmul %646, %648, %cst_538 {dimension_numbers = #tpu.dot_dimension_numbers<[1], [0], [0], [1], [0, 0, 1, 1], [], []>} : vector<32x128xbf16>, vector<128x128xbf16>, vector<32x128xf32> -> vector<32x128xf32>
      %650 = arith.addf %643, %649 : vector<32x128xf32>
      %c0_539 = arith.constant 0 : index
      %c11_540 = arith.constant 11 : index
      %c0_541 = arith.constant 0 : index
      %651 = vector.load %arg7[%c0_539, %c11_540, %c0_541] : memref<2x32x128xf32, #tpu.memory_space<vmem>>, vector<2x16x128xf32>
      %652 = vector.shape_cast %651 : vector<2x16x128xf32> to vector<32x128xf32>
      %653 = arith.truncf %652 : vector<32x128xf32> to vector<32x128xbf16>
      %c0_542 = arith.constant 0 : index
      %c9_543 = arith.constant 9 : index
      %c3_544 = arith.constant 3 : index
      %c0_545 = arith.constant 0 : index
      %c0_546 = arith.constant 0 : index
      %654 = vector.load %arg3[%c0_542, %c9_543, %c3_544, %c0_545, %c0_546] : memref<1x10x5x128x128xbf16, #tpu.memory_space<vmem>>, vector<1x1x1x128x128xbf16>
      %655 = vector.shape_cast %654 : vector<1x1x1x128x128xbf16> to vector<128x128xbf16>
      %cst_547 = arith.constant dense<0.000000e+00> : vector<32x128xf32>
      %656 = tpu.matmul %653, %655, %cst_547 {dimension_numbers = #tpu.dot_dimension_numbers<[1], [0], [0], [1], [0, 0, 1, 1], [], []>} : vector<32x128xbf16>, vector<128x128xbf16>, vector<32x128xf32> -> vector<32x128xf32>
      %657 = arith.addf %650, %656 : vector<32x128xf32>
      %c0_548 = arith.constant 0 : index
      %c14_549 = arith.constant 14 : index
      %c0_550 = arith.constant 0 : index
      %658 = vector.load %arg7[%c0_548, %c14_549, %c0_550] : memref<2x32x128xf32, #tpu.memory_space<vmem>>, vector<2x16x128xf32>
      %659 = vector.shape_cast %658 : vector<2x16x128xf32> to vector<32x128xf32>
      %660 = arith.truncf %659 : vector<32x128xf32> to vector<32x128xbf16>
      %c0_551 = arith.constant 0 : index
      %c9_552 = arith.constant 9 : index
      %c4_553 = arith.constant 4 : index
      %c0_554 = arith.constant 0 : index
      %c0_555 = arith.constant 0 : index
      %661 = vector.load %arg3[%c0_551, %c9_552, %c4_553, %c0_554, %c0_555] : memref<1x10x5x128x128xbf16, #tpu.memory_space<vmem>>, vector<1x1x1x128x128xbf16>
      %662 = vector.shape_cast %661 : vector<1x1x1x128x128xbf16> to vector<128x128xbf16>
      %cst_556 = arith.constant dense<0.000000e+00> : vector<32x128xf32>
      %663 = tpu.matmul %660, %662, %cst_556 {dimension_numbers = #tpu.dot_dimension_numbers<[1], [0], [0], [1], [0, 0, 1, 1], [], []>} : vector<32x128xbf16>, vector<128x128xbf16>, vector<32x128xf32> -> vector<32x128xf32>
      %664 = arith.addf %657, %663 : vector<32x128xf32>
      %c9_i32 = arith.constant 9 : i32
      %665 = arith.addi %16, %c9_i32 : i32
      %666 = arith.index_cast %665 : i32 to index
      %c0_557 = arith.constant 0 : index
      %667 = vector.load %arg4[%666, %c0_557] : memref<43x128xf32, #tpu.memory_space<vmem>>, vector<1x128xf32>
      %668 = arith.index_cast %665 : i32 to index
      %c0_558 = arith.constant 0 : index
      %669 = vector.load %arg5[%668, %c0_558] : memref<43x128xf32, #tpu.memory_space<vmem>>, vector<1x128xf32>
      %cst_559 = arith.constant dense<0.000000e+00> : vector<128xf32>
      %670 = vector.multi_reduction <add>, %664, %cst_559 [0] : vector<32x128xf32> to vector<128xf32>
      %671 = vector.shape_cast %670 : vector<128xf32> to vector<1x128xf32>
      %cst_560 = arith.constant 3.125000e-02 : f32
      %672 = vector.broadcast %cst_560 : f32 to vector<1x128xf32>
      %673 = arith.mulf %671, %672 : vector<1x128xf32>
      %674 = vector.broadcast %673 : vector<1x128xf32> to vector<32x128xf32>
      %675 = arith.subf %664, %674 : vector<32x128xf32>
      %676 = vector.broadcast %673 : vector<1x128xf32> to vector<32x128xf32>
      %677 = arith.subf %664, %676 : vector<32x128xf32>
      %678 = arith.mulf %675, %677 : vector<32x128xf32>
      %cst_561 = arith.constant dense<0.000000e+00> : vector<128xf32>
      %679 = vector.multi_reduction <add>, %678, %cst_561 [0] : vector<32x128xf32> to vector<128xf32>
      %680 = vector.shape_cast %679 : vector<128xf32> to vector<1x128xf32>
      %cst_562 = arith.constant 3.125000e-02 : f32
      %681 = vector.broadcast %cst_562 : f32 to vector<1x128xf32>
      %682 = arith.mulf %680, %681 : vector<1x128xf32>
      %cst_563 = arith.constant 9.99999974E-6 : f32
      %683 = vector.broadcast %cst_563 : f32 to vector<1x128xf32>
      %684 = arith.addf %682, %683 : vector<1x128xf32>
      %685 = math.rsqrt %684 : vector<1x128xf32>
      %686 = arith.mulf %667, %685 : vector<1x128xf32>
      %687 = vector.broadcast %686 : vector<1x128xf32> to vector<32x128xf32>
      %688 = arith.mulf %664, %687 : vector<32x128xf32>
      %689 = arith.mulf %673, %686 : vector<1x128xf32>
      %690 = arith.subf %669, %689 : vector<1x128xf32>
      %691 = vector.broadcast %690 : vector<1x128xf32> to vector<32x128xf32>
      %692 = arith.addf %688, %691 : vector<32x128xf32>
      %cst_564 = arith.constant 0.000000e+00 : f32
      %693 = vector.broadcast %cst_564 : f32 to vector<32x128xf32>
      %694 = arith.maximumf %692, %693 : vector<32x128xf32>
      %695 = vector.shape_cast %694 : vector<32x128xf32> to vector<2x16x128xf32>
      %c0_565 = arith.constant 0 : index
      %c8_566 = arith.constant 8 : index
      %c0_567 = arith.constant 0 : index
      %696 = vector.load %arg7[%c0_565, %c8_566, %c0_567] : memref<2x32x128xf32, #tpu.memory_space<vmem>>, vector<2x16x128xf32>
      tpu.vector_store %arg7[%c0_565, %c8_566, %c0_567], %695 {strides = array<i32>} : memref<2x32x128xf32, #tpu.memory_space<vmem>>, vector<2x16x128xf32>,
    } else {
    }
    %c5_i32 = arith.constant 5 : i32
    %8 = arith.cmpi eq, %arg0, %c5_i32 : i32
    %9 = arith.extui %8 : i1 to i32
    %c0_i32_2 = arith.constant 0 : i32
    %10 = arith.cmpi ne, %9, %c0_i32_2 : i32
    scf.if %10 {
      %cst = arith.constant 0.000000e+00 : f32
      %14 = vector.broadcast %cst : f32 to vector<32x128xf32>
      %c0 = arith.constant 0 : index
      %c4 = arith.constant 4 : index
      %c0_4 = arith.constant 0 : index
      %15 = vector.load %arg7[%c0, %c4, %c0_4] : memref<2x32x128xf32, #tpu.memory_space<vmem>>, vector<2x16x128xf32>
      %16 = vector.shape_cast %15 : vector<2x16x128xf32> to vector<32x128xf32>
      %17 = arith.truncf %16 : vector<32x128xf32> to vector<32x128xbf16>
      %c0_5 = arith.constant 0 : index
      %c0_6 = arith.constant 0 : index
      %c0_7 = arith.constant 0 : index
      %c0_8 = arith.constant 0 : index
      %18 = vector.load %arg2[%c0_5, %c0_6, %c0_7, %c0_8] : memref<1x9x128x128xbf16, #tpu.memory_space<vmem>>, vector<1x1x128x128xbf16>
      %19 = vector.shape_cast %18 : vector<1x1x128x128xbf16> to vector<128x128xbf16>
      %cst_9 = arith.constant dense<0.000000e+00> : vector<32x128xf32>
      %20 = tpu.matmul %17, %19, %cst_9 {dimension_numbers = #tpu.dot_dimension_numbers<[1], [0], [0], [1], [0, 0, 1, 1], [], []>} : vector<32x128xbf16>, vector<128x128xbf16>, vector<32x128xf32> -> vector<32x128xf32>
      %21 = arith.addf %14, %20 : vector<32x128xf32>
      %c0_10 = arith.constant 0 : index
      %c5 = arith.constant 5 : index
      %c0_11 = arith.constant 0 : index
      %22 = vector.load %arg7[%c0_10, %c5, %c0_11] : memref<2x32x128xf32, #tpu.memory_space<vmem>>, vector<2x16x128xf32>
      %23 = vector.shape_cast %22 : vector<2x16x128xf32> to vector<32x128xf32>
      %24 = arith.truncf %23 : vector<32x128xf32> to vector<32x128xbf16>
      %c0_12 = arith.constant 0 : index
      %c1 = arith.constant 1 : index
      %c0_13 = arith.constant 0 : index
      %c0_14 = arith.constant 0 : index
      %25 = vector.load %arg2[%c0_12, %c1, %c0_13, %c0_14] : memref<1x9x128x128xbf16, #tpu.memory_space<vmem>>, vector<1x1x128x128xbf16>
      %26 = vector.shape_cast %25 : vector<1x1x128x128xbf16> to vector<128x128xbf16>
      %cst_15 = arith.constant dense<0.000000e+00> : vector<32x128xf32>
      %27 = tpu.matmul %24, %26, %cst_15 {dimension_numbers = #tpu.dot_dimension_numbers<[1], [0], [0], [1], [0, 0, 1, 1], [], []>} : vector<32x128xbf16>, vector<128x128xbf16>, vector<32x128xf32> -> vector<32x128xf32>
      %28 = arith.addf %21, %27 : vector<32x128xf32>
      %c0_16 = arith.constant 0 : index
      %c6 = arith.constant 6 : index
      %c0_17 = arith.constant 0 : index
      %29 = vector.load %arg7[%c0_16, %c6, %c0_17] : memref<2x32x128xf32, #tpu.memory_space<vmem>>, vector<2x16x128xf32>
      %30 = vector.shape_cast %29 : vector<2x16x128xf32> to vector<32x128xf32>
      %31 = arith.truncf %30 : vector<32x128xf32> to vector<32x128xbf16>
      %c0_18 = arith.constant 0 : index
      %c2 = arith.constant 2 : index
      %c0_19 = arith.constant 0 : index
      %c0_20 = arith.constant 0 : index
      %32 = vector.load %arg2[%c0_18, %c2, %c0_19, %c0_20] : memref<1x9x128x128xbf16, #tpu.memory_space<vmem>>, vector<1x1x128x128xbf16>
      %33 = vector.shape_cast %32 : vector<1x1x128x128xbf16> to vector<128x128xbf16>
      %cst_21 = arith.constant dense<0.000000e+00> : vector<32x128xf32>
      %34 = tpu.matmul %31, %33, %cst_21 {dimension_numbers = #tpu.dot_dimension_numbers<[1], [0], [0], [1], [0, 0, 1, 1], [], []>} : vector<32x128xbf16>, vector<128x128xbf16>, vector<32x128xf32> -> vector<32x128xf32>
      %35 = arith.addf %28, %34 : vector<32x128xf32>
      %c0_22 = arith.constant 0 : index
      %c7 = arith.constant 7 : index
      %c0_23 = arith.constant 0 : index
      %36 = vector.load %arg7[%c0_22, %c7, %c0_23] : memref<2x32x128xf32, #tpu.memory_space<vmem>>, vector<2x16x128xf32>
      %37 = vector.shape_cast %36 : vector<2x16x128xf32> to vector<32x128xf32>
      %38 = arith.truncf %37 : vector<32x128xf32> to vector<32x128xbf16>
      %c0_24 = arith.constant 0 : index
      %c3 = arith.constant 3 : index
      %c0_25 = arith.constant 0 : index
      %c0_26 = arith.constant 0 : index
      %39 = vector.load %arg2[%c0_24, %c3, %c0_25, %c0_26] : memref<1x9x128x128xbf16, #tpu.memory_space<vmem>>, vector<1x1x128x128xbf16>
      %40 = vector.shape_cast %39 : vector<1x1x128x128xbf16> to vector<128x128xbf16>
      %cst_27 = arith.constant dense<0.000000e+00> : vector<32x128xf32>
      %41 = tpu.matmul %38, %40, %cst_27 {dimension_numbers = #tpu.dot_dimension_numbers<[1], [0], [0], [1], [0, 0, 1, 1], [], []>} : vector<32x128xbf16>, vector<128x128xbf16>, vector<32x128xf32> -> vector<32x128xf32>
      %42 = arith.addf %35, %41 : vector<32x128xf32>
      %c0_28 = arith.constant 0 : index
      %c8 = arith.constant 8 : index
      %c0_29 = arith.constant 0 : index
      %43 = vector.load %arg7[%c0_28, %c8, %c0_29] : memref<2x32x128xf32, #tpu.memory_space<vmem>>, vector<2x16x128xf32>
      %44 = vector.shape_cast %43 : vector<2x16x128xf32> to vector<32x128xf32>
      %45 = arith.truncf %44 : vector<32x128xf32> to vector<32x128xbf16>
      %c0_30 = arith.constant 0 : index
      %c4_31 = arith.constant 4 : index
      %c0_32 = arith.constant 0 : index
      %c0_33 = arith.constant 0 : index
      %46 = vector.load %arg2[%c0_30, %c4_31, %c0_32, %c0_33] : memref<1x9x128x128xbf16, #tpu.memory_space<vmem>>, vector<1x1x128x128xbf16>
      %47 = vector.shape_cast %46 : vector<1x1x128x128xbf16> to vector<128x128xbf16>
      %cst_34 = arith.constant dense<0.000000e+00> : vector<32x128xf32>
      %48 = tpu.matmul %45, %47, %cst_34 {dimension_numbers = #tpu.dot_dimension_numbers<[1], [0], [0], [1], [0, 0, 1, 1], [], []>} : vector<32x128xbf16>, vector<128x128xbf16>, vector<32x128xf32> -> vector<32x128xf32>
      %49 = arith.addf %42, %48 : vector<32x128xf32>
      %c0_35 = arith.constant 0 : index
      %c9 = arith.constant 9 : index
      %c0_36 = arith.constant 0 : index
      %50 = vector.load %arg7[%c0_35, %c9, %c0_36] : memref<2x32x128xf32, #tpu.memory_space<vmem>>, vector<2x16x128xf32>
      %51 = vector.shape_cast %50 : vector<2x16x128xf32> to vector<32x128xf32>
      %52 = arith.truncf %51 : vector<32x128xf32> to vector<32x128xbf16>
      %c0_37 = arith.constant 0 : index
      %c5_38 = arith.constant 5 : index
      %c0_39 = arith.constant 0 : index
      %c0_40 = arith.constant 0 : index
      %53 = vector.load %arg2[%c0_37, %c5_38, %c0_39, %c0_40] : memref<1x9x128x128xbf16, #tpu.memory_space<vmem>>, vector<1x1x128x128xbf16>
      %54 = vector.shape_cast %53 : vector<1x1x128x128xbf16> to vector<128x128xbf16>
      %cst_41 = arith.constant dense<0.000000e+00> : vector<32x128xf32>
      %55 = tpu.matmul %52, %54, %cst_41 {dimension_numbers = #tpu.dot_dimension_numbers<[1], [0], [0], [1], [0, 0, 1, 1], [], []>} : vector<32x128xbf16>, vector<128x128xbf16>, vector<32x128xf32> -> vector<32x128xf32>
      %56 = arith.addf %49, %55 : vector<32x128xf32>
      %c0_42 = arith.constant 0 : index
      %c10 = arith.constant 10 : index
      %c0_43 = arith.constant 0 : index
      %57 = vector.load %arg7[%c0_42, %c10, %c0_43] : memref<2x32x128xf32, #tpu.memory_space<vmem>>, vector<2x16x128xf32>
      %58 = vector.shape_cast %57 : vector<2x16x128xf32> to vector<32x128xf32>
      %59 = arith.truncf %58 : vector<32x128xf32> to vector<32x128xbf16>
      %c0_44 = arith.constant 0 : index
      %c6_45 = arith.constant 6 : index
      %c0_46 = arith.constant 0 : index
      %c0_47 = arith.constant 0 : index
      %60 = vector.load %arg2[%c0_44, %c6_45, %c0_46, %c0_47] : memref<1x9x128x128xbf16, #tpu.memory_space<vmem>>, vector<1x1x128x128xbf16>
      %61 = vector.shape_cast %60 : vector<1x1x128x128xbf16> to vector<128x128xbf16>
      %cst_48 = arith.constant dense<0.000000e+00> : vector<32x128xf32>
      %62 = tpu.matmul %59, %61, %cst_48 {dimension_numbers = #tpu.dot_dimension_numbers<[1], [0], [0], [1], [0, 0, 1, 1], [], []>} : vector<32x128xbf16>, vector<128x128xbf16>, vector<32x128xf32> -> vector<32x128xf32>
      %63 = arith.addf %56, %62 : vector<32x128xf32>
      %c0_49 = arith.constant 0 : index
      %c11 = arith.constant 11 : index
      %c0_50 = arith.constant 0 : index
      %64 = vector.load %arg7[%c0_49, %c11, %c0_50] : memref<2x32x128xf32, #tpu.memory_space<vmem>>, vector<2x16x128xf32>
      %65 = vector.shape_cast %64 : vector<2x16x128xf32> to vector<32x128xf32>
      %66 = arith.truncf %65 : vector<32x128xf32> to vector<32x128xbf16>
      %c0_51 = arith.constant 0 : index
      %c7_52 = arith.constant 7 : index
      %c0_53 = arith.constant 0 : index
      %c0_54 = arith.constant 0 : index
      %67 = vector.load %arg2[%c0_51, %c7_52, %c0_53, %c0_54] : memref<1x9x128x128xbf16, #tpu.memory_space<vmem>>, vector<1x1x128x128xbf16>
      %68 = vector.shape_cast %67 : vector<1x1x128x128xbf16> to vector<128x128xbf16>
      %cst_55 = arith.constant dense<0.000000e+00> : vector<32x128xf32>
      %69 = tpu.matmul %66, %68, %cst_55 {dimension_numbers = #tpu.dot_dimension_numbers<[1], [0], [0], [1], [0, 0, 1, 1], [], []>} : vector<32x128xbf16>, vector<128x128xbf16>, vector<32x128xf32> -> vector<32x128xf32>
      %70 = arith.addf %63, %69 : vector<32x128xf32>
      %c0_56 = arith.constant 0 : index
      %c12 = arith.constant 12 : index
      %c0_57 = arith.constant 0 : index
      %71 = vector.load %arg7[%c0_56, %c12, %c0_57] : memref<2x32x128xf32, #tpu.memory_space<vmem>>, vector<2x16x128xf32>
      %72 = vector.shape_cast %71 : vector<2x16x128xf32> to vector<32x128xf32>
      %73 = arith.truncf %72 : vector<32x128xf32> to vector<32x128xbf16>
      %c0_58 = arith.constant 0 : index
      %c8_59 = arith.constant 8 : index
      %c0_60 = arith.constant 0 : index
      %c0_61 = arith.constant 0 : index
      %74 = vector.load %arg2[%c0_58, %c8_59, %c0_60, %c0_61] : memref<1x9x128x128xbf16, #tpu.memory_space<vmem>>, vector<1x1x128x128xbf16>
      %75 = vector.shape_cast %74 : vector<1x1x128x128xbf16> to vector<128x128xbf16>
      %cst_62 = arith.constant dense<0.000000e+00> : vector<32x128xf32>
      %76 = tpu.matmul %73, %75, %cst_62 {dimension_numbers = #tpu.dot_dimension_numbers<[1], [0], [0], [1], [0, 0, 1, 1], [], []>} : vector<32x128xbf16>, vector<128x128xbf16>, vector<32x128xf32> -> vector<32x128xf32>
      %77 = arith.addf %70, %76 : vector<32x128xf32>
      %c41 = arith.constant 41 : index
      %c0_63 = arith.constant 0 : index
      %78 = vector.load %arg4[%c41, %c0_63] : memref<43x128xf32, #tpu.memory_space<vmem>>, vector<1x128xf32>
      %c41_64 = arith.constant 41 : index
      %c0_65 = arith.constant 0 : index
      %79 = vector.load %arg5[%c41_64, %c0_65] : memref<43x128xf32, #tpu.memory_space<vmem>>, vector<1x128xf32>
      %cst_66 = arith.constant dense<0.000000e+00> : vector<128xf32>
      %80 = vector.multi_reduction <add>, %77, %cst_66 [0] : vector<32x128xf32> to vector<128xf32>
      %81 = vector.shape_cast %80 : vector<128xf32> to vector<1x128xf32>
      %cst_67 = arith.constant 3.125000e-02 : f32
      %82 = vector.broadcast %cst_67 : f32 to vector<1x128xf32>
      %83 = arith.mulf %81, %82 : vector<1x128xf32>
      %84 = vector.broadcast %83 : vector<1x128xf32> to vector<32x128xf32>
      %85 = arith.subf %77, %84 : vector<32x128xf32>
      %86 = vector.broadcast %83 : vector<1x128xf32> to vector<32x128xf32>
      %87 = arith.subf %77, %86 : vector<32x128xf32>
      %88 = arith.mulf %85, %87 : vector<32x128xf32>
      %cst_68 = arith.constant dense<0.000000e+00> : vector<128xf32>
      %89 = vector.multi_reduction <add>, %88, %cst_68 [0] : vector<32x128xf32> to vector<128xf32>
      %90 = vector.shape_cast %89 : vector<128xf32> to vector<1x128xf32>
      %cst_69 = arith.constant 3.125000e-02 : f32
      %91 = vector.broadcast %cst_69 : f32 to vector<1x128xf32>
      %92 = arith.mulf %90, %91 : vector<1x128xf32>
      %cst_70 = arith.constant 9.99999974E-6 : f32
      %93 = vector.broadcast %cst_70 : f32 to vector<1x128xf32>
      %94 = arith.addf %92, %93 : vector<1x128xf32>
      %95 = math.rsqrt %94 : vector<1x128xf32>
      %96 = arith.mulf %78, %95 : vector<1x128xf32>
      %97 = vector.broadcast %96 : vector<1x128xf32> to vector<32x128xf32>
      %98 = arith.mulf %77, %97 : vector<32x128xf32>
      %99 = arith.mulf %83, %96 : vector<1x128xf32>
      %100 = arith.subf %79, %99 : vector<1x128xf32>
      %101 = vector.broadcast %100 : vector<1x128xf32> to vector<32x128xf32>
      %102 = arith.addf %98, %101 : vector<32x128xf32>
      %cst_71 = arith.constant 2.000000e+01 : f32
      %103 = vector.broadcast %cst_71 : f32 to vector<32x128xf32>
      %104 = arith.cmpf ogt, %102, %103 : vector<32x128xf32>
      %cst_72 = arith.constant 2.000000e+01 : f32
      %105 = vector.broadcast %cst_72 : f32 to vector<32x128xf32>
      %106 = arith.minimumf %102, %105 : vector<32x128xf32>
      %107 = math.exp %106 : vector<32x128xf32>
      %108 = math.log1p %107 : vector<32x128xf32>
      %109 = arith.select %104, %102, %108 : vector<32x128xi1>, vector<32x128xf32>
      %110 = math.tanh %109 : vector<32x128xf32>
      %111 = arith.mulf %102, %110 : vector<32x128xf32>
      %112 = vector.shape_cast %111 : vector<32x128xf32> to vector<2x16x128xf32>
      %c0_73 = arith.constant 0 : index
      %c8_74 = arith.constant 8 : index
      %c0_75 = arith.constant 0 : index
      %113 = vector.load %arg7[%c0_73, %c8_74, %c0_75] : memref<2x32x128xf32, #tpu.memory_space<vmem>>, vector<2x16x128xf32>
      tpu.vector_store %arg7[%c0_73, %c8_74, %c0_75], %112 {strides = array<i32>} : memref<2x32x128xf32, #tpu.memory_space<vmem>>, vector<2x16x128xf32>,
    } else {
    }
    %c6_i32 = arith.constant 6 : i32
    %11 = arith.cmpi eq, %arg0, %c6_i32 : i32
    %12 = arith.extui %11 : i1 to i32
    %c0_i32_3 = arith.constant 0 : i32
    %13 = arith.cmpi ne, %12, %c0_i32_3 : i32
    scf.if %13 {
      %cst = arith.constant 0.000000e+00 : f32
      %14 = vector.broadcast %cst : f32 to vector<32x128xf32>
      %c0 = arith.constant 0 : index
      %c4 = arith.constant 4 : index
      %c0_4 = arith.constant 0 : index
      %15 = vector.load %arg7[%c0, %c4, %c0_4] : memref<2x32x128xf32, #tpu.memory_space<vmem>>, vector<2x16x128xf32>
      %16 = vector.shape_cast %15 : vector<2x16x128xf32> to vector<32x128xf32>
      %17 = arith.truncf %16 : vector<32x128xf32> to vector<32x128xbf16>
      %c0_5 = arith.constant 0 : index
      %c0_6 = arith.constant 0 : index
      %c0_7 = arith.constant 0 : index
      %c0_8 = arith.constant 0 : index
      %18 = vector.load %arg2[%c0_5, %c0_6, %c0_7, %c0_8] : memref<1x9x128x128xbf16, #tpu.memory_space<vmem>>, vector<1x1x128x128xbf16>
      %19 = vector.shape_cast %18 : vector<1x1x128x128xbf16> to vector<128x128xbf16>
      %cst_9 = arith.constant dense<0.000000e+00> : vector<32x128xf32>
      %20 = tpu.matmul %17, %19, %cst_9 {dimension_numbers = #tpu.dot_dimension_numbers<[1], [0], [0], [1], [0, 0, 1, 1], [], []>} : vector<32x128xbf16>, vector<128x128xbf16>, vector<32x128xf32> -> vector<32x128xf32>
      %21 = arith.addf %14, %20 : vector<32x128xf32>
      %c0_10 = arith.constant 0 : index
      %c5 = arith.constant 5 : index
      %c0_11 = arith.constant 0 : index
      %22 = vector.load %arg7[%c0_10, %c5, %c0_11] : memref<2x32x128xf32, #tpu.memory_space<vmem>>, vector<2x16x128xf32>
      %23 = vector.shape_cast %22 : vector<2x16x128xf32> to vector<32x128xf32>
      %24 = arith.truncf %23 : vector<32x128xf32> to vector<32x128xbf16>
      %c0_12 = arith.constant 0 : index
      %c1 = arith.constant 1 : index
      %c0_13 = arith.constant 0 : index
      %c0_14 = arith.constant 0 : index
      %25 = vector.load %arg2[%c0_12, %c1, %c0_13, %c0_14] : memref<1x9x128x128xbf16, #tpu.memory_space<vmem>>, vector<1x1x128x128xbf16>
      %26 = vector.shape_cast %25 : vector<1x1x128x128xbf16> to vector<128x128xbf16>
      %cst_15 = arith.constant dense<0.000000e+00> : vector<32x128xf32>
      %27 = tpu.matmul %24, %26, %cst_15 {dimension_numbers = #tpu.dot_dimension_numbers<[1], [0], [0], [1], [0, 0, 1, 1], [], []>} : vector<32x128xbf16>, vector<128x128xbf16>, vector<32x128xf32> -> vector<32x128xf32>
      %28 = arith.addf %21, %27 : vector<32x128xf32>
      %c0_16 = arith.constant 0 : index
      %c6 = arith.constant 6 : index
      %c0_17 = arith.constant 0 : index
      %29 = vector.load %arg7[%c0_16, %c6, %c0_17] : memref<2x32x128xf32, #tpu.memory_space<vmem>>, vector<2x16x128xf32>
      %30 = vector.shape_cast %29 : vector<2x16x128xf32> to vector<32x128xf32>
      %31 = arith.truncf %30 : vector<32x128xf32> to vector<32x128xbf16>
      %c0_18 = arith.constant 0 : index
      %c2 = arith.constant 2 : index
      %c0_19 = arith.constant 0 : index
      %c0_20 = arith.constant 0 : index
      %32 = vector.load %arg2[%c0_18, %c2, %c0_19, %c0_20] : memref<1x9x128x128xbf16, #tpu.memory_space<vmem>>, vector<1x1x128x128xbf16>
      %33 = vector.shape_cast %32 : vector<1x1x128x128xbf16> to vector<128x128xbf16>
      %cst_21 = arith.constant dense<0.000000e+00> : vector<32x128xf32>
      %34 = tpu.matmul %31, %33, %cst_21 {dimension_numbers = #tpu.dot_dimension_numbers<[1], [0], [0], [1], [0, 0, 1, 1], [], []>} : vector<32x128xbf16>, vector<128x128xbf16>, vector<32x128xf32> -> vector<32x128xf32>
      %35 = arith.addf %28, %34 : vector<32x128xf32>
      %c0_22 = arith.constant 0 : index
      %c7 = arith.constant 7 : index
      %c0_23 = arith.constant 0 : index
      %36 = vector.load %arg7[%c0_22, %c7, %c0_23] : memref<2x32x128xf32, #tpu.memory_space<vmem>>, vector<2x16x128xf32>
      %37 = vector.shape_cast %36 : vector<2x16x128xf32> to vector<32x128xf32>
      %38 = arith.truncf %37 : vector<32x128xf32> to vector<32x128xbf16>
      %c0_24 = arith.constant 0 : index
      %c3 = arith.constant 3 : index
      %c0_25 = arith.constant 0 : index
      %c0_26 = arith.constant 0 : index
      %39 = vector.load %arg2[%c0_24, %c3, %c0_25, %c0_26] : memref<1x9x128x128xbf16, #tpu.memory_space<vmem>>, vector<1x1x128x128xbf16>
      %40 = vector.shape_cast %39 : vector<1x1x128x128xbf16> to vector<128x128xbf16>
      %cst_27 = arith.constant dense<0.000000e+00> : vector<32x128xf32>
      %41 = tpu.matmul %38, %40, %cst_27 {dimension_numbers = #tpu.dot_dimension_numbers<[1], [0], [0], [1], [0, 0, 1, 1], [], []>} : vector<32x128xbf16>, vector<128x128xbf16>, vector<32x128xf32> -> vector<32x128xf32>
      %42 = arith.addf %35, %41 : vector<32x128xf32>
      %c0_28 = arith.constant 0 : index
      %c8 = arith.constant 8 : index
      %c0_29 = arith.constant 0 : index
      %43 = vector.load %arg7[%c0_28, %c8, %c0_29] : memref<2x32x128xf32, #tpu.memory_space<vmem>>, vector<2x16x128xf32>
      %44 = vector.shape_cast %43 : vector<2x16x128xf32> to vector<32x128xf32>
      %45 = arith.truncf %44 : vector<32x128xf32> to vector<32x128xbf16>
      %c0_30 = arith.constant 0 : index
      %c4_31 = arith.constant 4 : index
      %c0_32 = arith.constant 0 : index
      %c0_33 = arith.constant 0 : index
      %46 = vector.load %arg2[%c0_30, %c4_31, %c0_32, %c0_33] : memref<1x9x128x128xbf16, #tpu.memory_space<vmem>>, vector<1x1x128x128xbf16>
      %47 = vector.shape_cast %46 : vector<1x1x128x128xbf16> to vector<128x128xbf16>
      %cst_34 = arith.constant dense<0.000000e+00> : vector<32x128xf32>
      %48 = tpu.matmul %45, %47, %cst_34 {dimension_numbers = #tpu.dot_dimension_numbers<[1], [0], [0], [1], [0, 0, 1, 1], [], []>} : vector<32x128xbf16>, vector<128x128xbf16>, vector<32x128xf32> -> vector<32x128xf32>
      %49 = arith.addf %42, %48 : vector<32x128xf32>
      %c0_35 = arith.constant 0 : index
      %c9 = arith.constant 9 : index
      %c0_36 = arith.constant 0 : index
      %50 = vector.load %arg7[%c0_35, %c9, %c0_36] : memref<2x32x128xf32, #tpu.memory_space<vmem>>, vector<2x16x128xf32>
      %51 = vector.shape_cast %50 : vector<2x16x128xf32> to vector<32x128xf32>
      %52 = arith.truncf %51 : vector<32x128xf32> to vector<32x128xbf16>
      %c0_37 = arith.constant 0 : index
      %c5_38 = arith.constant 5 : index
      %c0_39 = arith.constant 0 : index
      %c0_40 = arith.constant 0 : index
      %53 = vector.load %arg2[%c0_37, %c5_38, %c0_39, %c0_40] : memref<1x9x128x128xbf16, #tpu.memory_space<vmem>>, vector<1x1x128x128xbf16>
      %54 = vector.shape_cast %53 : vector<1x1x128x128xbf16> to vector<128x128xbf16>
      %cst_41 = arith.constant dense<0.000000e+00> : vector<32x128xf32>
      %55 = tpu.matmul %52, %54, %cst_41 {dimension_numbers = #tpu.dot_dimension_numbers<[1], [0], [0], [1], [0, 0, 1, 1], [], []>} : vector<32x128xbf16>, vector<128x128xbf16>, vector<32x128xf32> -> vector<32x128xf32>
      %56 = arith.addf %49, %55 : vector<32x128xf32>
      %c0_42 = arith.constant 0 : index
      %c10 = arith.constant 10 : index
      %c0_43 = arith.constant 0 : index
      %57 = vector.load %arg7[%c0_42, %c10, %c0_43] : memref<2x32x128xf32, #tpu.memory_space<vmem>>, vector<2x16x128xf32>
      %58 = vector.shape_cast %57 : vector<2x16x128xf32> to vector<32x128xf32>
      %59 = arith.truncf %58 : vector<32x128xf32> to vector<32x128xbf16>
      %c0_44 = arith.constant 0 : index
      %c6_45 = arith.constant 6 : index
      %c0_46 = arith.constant 0 : index
      %c0_47 = arith.constant 0 : index
      %60 = vector.load %arg2[%c0_44, %c6_45, %c0_46, %c0_47] : memref<1x9x128x128xbf16, #tpu.memory_space<vmem>>, vector<1x1x128x128xbf16>
      %61 = vector.shape_cast %60 : vector<1x1x128x128xbf16> to vector<128x128xbf16>
      %cst_48 = arith.constant dense<0.000000e+00> : vector<32x128xf32>
      %62 = tpu.matmul %59, %61, %cst_48 {dimension_numbers = #tpu.dot_dimension_numbers<[1], [0], [0], [1], [0, 0, 1, 1], [], []>} : vector<32x128xbf16>, vector<128x128xbf16>, vector<32x128xf32> -> vector<32x128xf32>
      %63 = arith.addf %56, %62 : vector<32x128xf32>
      %c0_49 = arith.constant 0 : index
      %c11 = arith.constant 11 : index
      %c0_50 = arith.constant 0 : index
      %64 = vector.load %arg7[%c0_49, %c11, %c0_50] : memref<2x32x128xf32, #tpu.memory_space<vmem>>, vector<2x16x128xf32>
      %65 = vector.shape_cast %64 : vector<2x16x128xf32> to vector<32x128xf32>
      %66 = arith.truncf %65 : vector<32x128xf32> to vector<32x128xbf16>
      %c0_51 = arith.constant 0 : index
      %c7_52 = arith.constant 7 : index
      %c0_53 = arith.constant 0 : index
      %c0_54 = arith.constant 0 : index
      %67 = vector.load %arg2[%c0_51, %c7_52, %c0_53, %c0_54] : memref<1x9x128x128xbf16, #tpu.memory_space<vmem>>, vector<1x1x128x128xbf16>
      %68 = vector.shape_cast %67 : vector<1x1x128x128xbf16> to vector<128x128xbf16>
      %cst_55 = arith.constant dense<0.000000e+00> : vector<32x128xf32>
      %69 = tpu.matmul %66, %68, %cst_55 {dimension_numbers = #tpu.dot_dimension_numbers<[1], [0], [0], [1], [0, 0, 1, 1], [], []>} : vector<32x128xbf16>, vector<128x128xbf16>, vector<32x128xf32> -> vector<32x128xf32>
      %70 = arith.addf %63, %69 : vector<32x128xf32>
      %c0_56 = arith.constant 0 : index
      %c12 = arith.constant 12 : index
      %c0_57 = arith.constant 0 : index
      %71 = vector.load %arg7[%c0_56, %c12, %c0_57] : memref<2x32x128xf32, #tpu.memory_space<vmem>>, vector<2x16x128xf32>
      %72 = vector.shape_cast %71 : vector<2x16x128xf32> to vector<32x128xf32>
      %73 = arith.truncf %72 : vector<32x128xf32> to vector<32x128xbf16>
      %c0_58 = arith.constant 0 : index
      %c8_59 = arith.constant 8 : index
      %c0_60 = arith.constant 0 : index
      %c0_61 = arith.constant 0 : index
      %74 = vector.load %arg2[%c0_58, %c8_59, %c0_60, %c0_61] : memref<1x9x128x128xbf16, #tpu.memory_space<vmem>>, vector<1x1x128x128xbf16>
      %75 = vector.shape_cast %74 : vector<1x1x128x128xbf16> to vector<128x128xbf16>
      %cst_62 = arith.constant dense<0.000000e+00> : vector<32x128xf32>
      %76 = tpu.matmul %73, %75, %cst_62 {dimension_numbers = #tpu.dot_dimension_numbers<[1], [0], [0], [1], [0, 0, 1, 1], [], []>} : vector<32x128xbf16>, vector<128x128xbf16>, vector<32x128xf32> -> vector<32x128xf32>
      %77 = arith.addf %70, %76 : vector<32x128xf32>
      %c42 = arith.constant 42 : index
      %c0_63 = arith.constant 0 : index
      %78 = vector.load %arg4[%c42, %c0_63] : memref<43x128xf32, #tpu.memory_space<vmem>>, vector<1x128xf32>
      %c42_64 = arith.constant 42 : index
      %c0_65 = arith.constant 0 : index
      %79 = vector.load %arg5[%c42_64, %c0_65] : memref<43x128xf32, #tpu.memory_space<vmem>>, vector<1x128xf32>
      %cst_66 = arith.constant dense<0.000000e+00> : vector<128xf32>
      %80 = vector.multi_reduction <add>, %77, %cst_66 [0] : vector<32x128xf32> to vector<128xf32>
      %81 = vector.shape_cast %80 : vector<128xf32> to vector<1x128xf32>
      %cst_67 = arith.constant 3.125000e-02 : f32
      %82 = vector.broadcast %cst_67 : f32 to vector<1x128xf32>
      %83 = arith.mulf %81, %82 : vector<1x128xf32>
      %84 = vector.broadcast %83 : vector<1x128xf32> to vector<32x128xf32>
      %85 = arith.subf %77, %84 : vector<32x128xf32>
      %86 = vector.broadcast %83 : vector<1x128xf32> to vector<32x128xf32>
      %87 = arith.subf %77, %86 : vector<32x128xf32>
      %88 = arith.mulf %85, %87 : vector<32x128xf32>
      %cst_68 = arith.constant dense<0.000000e+00> : vector<128xf32>
      %89 = vector.multi_reduction <add>, %88, %cst_68 [0] : vector<32x128xf32> to vector<128xf32>
      %90 = vector.shape_cast %89 : vector<128xf32> to vector<1x128xf32>
      %cst_69 = arith.constant 3.125000e-02 : f32
      %91 = vector.broadcast %cst_69 : f32 to vector<1x128xf32>
      %92 = arith.mulf %90, %91 : vector<1x128xf32>
      %cst_70 = arith.constant 9.99999974E-6 : f32
      %93 = vector.broadcast %cst_70 : f32 to vector<1x128xf32>
      %94 = arith.addf %92, %93 : vector<1x128xf32>
      %95 = math.rsqrt %94 : vector<1x128xf32>
      %96 = arith.mulf %78, %95 : vector<1x128xf32>
      %97 = vector.broadcast %96 : vector<1x128xf32> to vector<32x128xf32>
      %98 = arith.mulf %77, %97 : vector<32x128xf32>
      %99 = arith.mulf %83, %96 : vector<1x128xf32>
      %100 = arith.subf %79, %99 : vector<1x128xf32>
      %101 = vector.broadcast %100 : vector<1x128xf32> to vector<32x128xf32>
      %102 = arith.addf %98, %101 : vector<32x128xf32>
      %cst_71 = arith.constant 0.000000e+00 : f32
      %103 = vector.broadcast %cst_71 : f32 to vector<32x128xf32>
      %104 = arith.maximumf %102, %103 : vector<32x128xf32>
      %105 = vector.shape_cast %104 : vector<32x128xf32> to vector<2x16x128xf32>
      %c0_72 = arith.constant 0 : index
      %c0_73 = arith.constant 0 : index
      %c0_74 = arith.constant 0 : index
      %106 = vector.load %arg6[%c0_72, %c0_73, %c0_74] : memref<2x16x128xf32, #tpu.memory_space<vmem>>, vector<2x16x128xf32>
      tpu.vector_store %arg6[%c0_72, %c0_73, %c0_74], %105 {strides = array<i32>} : memref<2x16x128xf32, #tpu.memory_space<vmem>>, vector<2x16x128xf32>,
    } else {
    }
    return
  }
  func.func @transform_1(%arg0: i32) -> (i32, i32, i32, i32) {
    %c4_i32 = arith.constant 4 : i32
    %0 = arith.subi %arg0, %c4_i32 : i32
    %c0_i32 = arith.constant 0 : i32
    %1 = arith.maxsi %0, %c0_i32 : i32
    %c0_i32_0 = arith.constant 0 : i32
    %c0_i32_1 = arith.constant 0 : i32
    %c0_i32_2 = arith.constant 0 : i32
    %c0_i32_3 = arith.constant 0 : i32
    return %1, %c0_i32_0, %c0_i32_1, %c0_i32_2 : i32, i32, i32, i32
  }
  func.func @transform_2(%arg0: i32) -> (i32, i32, i32, i32, i32) {
    %c1_i32 = arith.constant 1 : i32
    %0 = arith.subi %arg0, %c1_i32 : i32
    %c0_i32 = arith.constant 0 : i32
    %c3_i32 = arith.constant 3 : i32
    %1 = arith.maxsi %c0_i32, %0 : i32
    %2 = arith.minsi %c3_i32, %1 : i32
    %c0_i32_0 = arith.constant 0 : i32
    %c0_i32_1 = arith.constant 0 : i32
    %c0_i32_2 = arith.constant 0 : i32
    %c0_i32_3 = arith.constant 0 : i32
    %c0_i32_4 = arith.constant 0 : i32
    return %2, %c0_i32_0, %c0_i32_1, %c0_i32_2, %c0_i32_3 : i32, i32, i32, i32, i32
  }
  func.func @transform_3(%arg0: i32) -> (i32, i32) {
    %c0_i32 = arith.constant 0 : i32
    %c0_i32_0 = arith.constant 0 : i32
    %c0_i32_1 = arith.constant 0 : i32
    return %c0_i32, %c0_i32_0 : i32, i32
  }
  func.func @transform_4(%arg0: i32) -> (i32, i32) {
    %c0_i32 = arith.constant 0 : i32
    %c0_i32_0 = arith.constant 0 : i32
    %c0_i32_1 = arith.constant 0 : i32
    return %c0_i32, %c0_i32_0 : i32, i32
  }
  func.func @transform_5(%arg0: i32) -> (i32, i32, i32) {
    %c0_i32 = arith.constant 0 : i32
    %c0_i32_0 = arith.constant 0 : i32
    %c0_i32_1 = arith.constant 0 : i32
    %c0_i32_2 = arith.constant 0 : i32
    return %c0_i32, %c0_i32_0, %c0_i32_1 : i32, i32, i32
  }
}

</mosaic_0001>

<bundles_post_ra>
// kernel: fcn_forward.1
= control target key start
LH: loop header
LB: loop body
LE: loop exit
PB: predicated region body
PF: predicated region fallthrough
CT: control target
= control target key end

     0   :  { %10 = vsyncpa [#allocation5], 0  ;;  %s17448_s0 = inlined_call_operand.vmem [shape: f32[2,16,128], index: 0, kind: input, shape index: {}]   ;;  %s17449_s1 = inlined_call_operand.hbm [shape: bf16[3,9,128,128], index: 1, kind: input, shape index: {}]   ;;  %s17450_s2 = inlined_call_operand.hbm [shape: bf16[4,10,5,128,128], index: 2, kind: input, shape index: {}]   ;;  %s17451_s3 = inlined_call_operand.hbm [shape: f32[43,128], index: 3, kind: input, shape index: {}]   ;;  %s17452_s4 = inlined_call_operand.hbm [shape: f32[43,128], index: 4, kind: input, shape index: {}]   ;;  %s17453_s5 = inlined_call_operand.vmem [shape: f32[2,16,128], index: 5, kind: output, shape index: {}]  }
   0x1   :  { %12 = vsyncpa [#allocation5 + $0x1], 0 }
   0x2   :  { %13 = vsyncpa [#allocation7], 0 }
   0x3   :  { %15 = vsyncpa [#allocation7 + $0x1], 0 }
   0x4   :  { %16 = vsyncpa [#allocation10], 0  ;;  %s16330_s18 = smov 0   ;;  %s16332_s19 = smov 0  }
   0x5   :  { %s16334_s20 = smov 0   ;;  %s16336_s21 = smov 0  }
   0x6   :  { %s16338_s22 = smov 0   ;;  %s16340_s23 = smov 0  }
   0x7   :  { %s16342_s24 = smov 0  }
   0x8 LB: > { %s16362_s25 = sadd.s32 4294967295, %s16289_s24   ;;  %p48_p0 = scmp.ne.s32.totalorder %s16281_s22, %s16277_s21  ;;  %s16289_s24 = sphi %s16342_s24, %s17485_s24   ;;  %s16285_s23 = sphi %s16340_s23, %s17484_s23   ;;  %s16281_s22 = sphi %s16338_s22, %s17483_s22   ;;  %s16277_s21 = sphi %s16336_s21, %s17482_s21   ;;  %s16273_s20 = sphi %s16334_s20, %s17481_s20   ;;  %s16269_s19 = sphi %s16332_s19, %s17480_s19   ;;  %s16265_s18 = sphi %s16330_s18, %s17479_s18  }
   0x9   : > { %p17454_p1 = scmp.eq.s32.totalorder %s16362_s25, 0  ;;  %p84_p2 = scmp.ne.s32.totalorder %s16269_s19, %s16265_s18 }
   0xa   : > { %p10912_p3 = scmp.ge.s32.totalorder %s16289_s24, 1  ;;  %p158_p4 = scmp.lt.s32.totalorder %s16289_s24, 8 }
   0xb   : > { %p16371_p5 = por %p17454_p1, %p48_p0  ;;  %p16377_p6 = por %p84_p2, %p17454_p1 }
   0xc   : > { %p16381_p7 = pnand %p10912_p3, %p158_p4  ;;  %s16291_s29 = smov [#allocation8]  }
   0xd   : > { %s17461_s26 = scalar_select %p16371_p5, 1, 0 }
   0xe   : > { %s17462_s27 = scalar_select %p16377_p6, 1, 0 }
   0xf   : > { %s17463_s28 = scalar_select %p16381_p7, 1, 0 }
  0x10   : > { %p15329_p9 = pneg %p16381_p7  ;;  %s170_s30 = sshll.u32 %s16291_s29, 4  ;;  %s171_s30 = int_to_ptr.vmem [resolvable:$true] %s170_s30 }
  0x11   : > { %s16292_s7 = smov [#allocation9]   ;;  %s16101_s11 = scalar_lea.hbm %s17451_s3, 768 }
  0x12   : > { %p16390_p10 = pnand %p15329_p9, %p17454_p1  ;;  %s183_s8 = sshll.u32 %s16292_s7, 4  ;;  %s184_s8 = int_to_ptr.vmem [resolvable:$true] %s183_s8 }
  0x13   : > { %p16102_p11 = scmp.ne.s32.totalorder %s17451_s3, %s16101_s11  ;;  %p16108_p2 = scmp.lt.u32.totalorder %s16101_s11, %s17451_s3 }
  0x14   : > { %p16103_p12 = pneg %p16390_p10 }
  0x16   : > { %p16104_p13 = pnand %p16103_p12, %p16102_p11 }
  0x18   : > { %p16105_p0 = pneg %p16104_p13 }
  0x1a   : > { %p16110_p3 = pnand %p16108_p2, %p16105_p0 }
  0x1c   : > { %16113 = shalt.err (!%p16110_p3)
}
  0x1d   : > { %s16114_s16 = scalar_lea.vmem %s171_s30, 768  ;;  %p16122_p1 = scmp.lt.s32.totalorder %s171_s30, %s171_s30 }
  0x1e   : > { %p16115_p4 = scmp.ne.s32.totalorder %s171_s30, %s16114_s16  ;;  %p16123_p6 = scmp.lt.s32.totalorder %s16114_s16, %s16114_s16 }
  0x20   : > { %p16117_p9 = pnand %p16115_p4, %p16103_p12  ;;  %p16124_p5 = por %p16123_p6, %p16122_p1 }
  0x22   : > { %p16118_p8 = pneg %p16117_p9 }
  0x24   : > { %p16125_p7 = pnand %p16124_p5, %p16118_p8 }
  0x26   : > { %16128 = shalt.err (!%p16125_p7)
}
  0x27   : > { %s16293_s17 = smov 128   ;;  %s16294_s18 = smov 8  }
  0x28   : > { %15332 = dma.hbm_to_vmem [thread:$0]  (!%p16390_p10), %s17451_s3, 768, %s171_s30, [#allocation7], %s16293_s17, %s16293_s17, %s16294_s18  }
  0x29   : > { %s16129_s10 = scalar_lea.hbm %s17452_s4, 768 }
  0x2a   : > { %p16130_p1 = scmp.ne.s32.totalorder %s17452_s4, %s16129_s10  ;;  %p16136_p7 = scmp.lt.u32.totalorder %s16129_s10, %s17452_s4 }
  0x2c   : > { %p16132_p5 = pnand %p16130_p1, %p16103_p12 }
  0x2e   : > { %p16133_p6 = pneg %p16132_p5 }
  0x30   : > { %p16138_p8 = pnand %p16136_p7, %p16133_p6 }
  0x32   : > { %16141 = shalt.err (!%p16138_p8)
}
  0x33   : > { %s16142_s30 = scalar_lea.vmem %s184_s8, 768  ;;  %p16150_p2 = scmp.lt.s32.totalorder %s184_s8, %s184_s8 }
  0x34   : > { %p16143_p11 = scmp.ne.s32.totalorder %s184_s8, %s16142_s30  ;;  %p16151_p3 = scmp.lt.s32.totalorder %s16142_s30, %s16142_s30 }
  0x36   : > { %p16145_p13 = pnand %p16143_p11, %p16103_p12  ;;  %p16152_p4 = por %p16151_p3, %p16150_p2 }
  0x38   : > { %p16146_p0 = pneg %p16145_p13 }
  0x3a   : > { %p16153_p9 = pnand %p16152_p4, %p16146_p0 }
  0x3c   : > { %16156 = shalt.err (!%p16153_p9)
}
  0x3d   : > { %15335 = dma.hbm_to_vmem [thread:$0]  (!%p16390_p10), %s17452_s4, 768, %s184_s8, [#allocation10], %s16293_s17, %s16293_s17, %s16294_s18  }
  0x3e   : > { %s16437_s21 = sadd.s32 1, %s16289_s24   ;;  %s10898_s29 = sadd.s32 4294967292, %s16289_s24 }
  0x3f   : > { %p27_p12 = scmp.gt.s32.totalorder %s10898_s29, 0  ;;  %s10899_s6 = sadd.s32 4294967292, %s16437_s21 }
  0x40   : > { %p30_p1 = scmp.gt.s32.totalorder %s10899_s6, 0  ;;  %s35_s7 = sadd.s32 1, %s16285_s23 }
  0x41   : > { %s17487_s29 = smov (!%p27_p12, %s10898_s29), 0  ;;  %p42_p5 = scmp.ne.s32.totalorder %s16285_s23, %s16281_s22 }
  0x42   : > { %s17489_s6 = smov (!%p30_p1, %s10899_s6), 0  ;;  %p17459_p6 = scmp.eq.s32.totalorder %s16289_s24, 0 }
  0x43   : > { %s32_s9 = ssub.s32 %s17487_s29, %s17489_s6  ;;  %s16446_s10 = sadd.s32 4294967295, %s16437_s21 }
  0x44   : > { %p33_p10 = scmp.eq.s32.totalorder %s32_s9, 0  ;;  %p44_p7 = por %p17459_p6, %p42_p5 }
  0x45   : > { %p64_p8 = scmp.gt.s32.totalorder %s16446_s10, 0  ;;  %p17458_p11 = scmp.lt.s32.totalorder %s16289_s24, 7 }
  0x46   : > { %s16453_s8 = scalar_select %p33_p10, %s16285_s23, %s35_s7  }
  0x47   : > { %s197_s17 = sand.u32 1, %s16285_s23   ;;  %s15312_s18 = smul.u32 9216, %s17487_s29 }
  0x48   : > { %s15311_s11 = smul.u32 576, %s197_s17  ;;  %p16463_p13 = pnand %p17458_p11, %p44_p7 }
  0x49   : > { %s16459_s14 = scalar_lea.hbm %s17449_s1, %s15312_s18  ;;  %s16469_s29 = scalar_lea.sflag [#allocation5], %s197_s17 }
  0x4a   : > { %s201_s15 = scalar_lea.vmem [#allocation4], %s15311_s11  ;;  %s16157_s6 = scalar_lea.hbm %s16459_s14, 9216 }
  0x4b   : > { %s211_s16 = sshll.u32 %s201_s15, 4  ;;  %p16158_p0 = scmp.ne.s32.totalorder %s16459_s14, %s16157_s6  ;;  %s16467_s16 = int_to_ptr.vmem [resolvable:$true] %s211_s16 }
  0x4c   : > { %p16159_p2 = pneg %p16463_p13  ;;  %s16162_s18 = scalar_lea.hbm %s17449_s1, 27648 }
  0x4d   : > { %p16163_p9 = scmp.lt.u32.totalorder %s16459_s14, %s17449_s1  ;;  %p16164_p12 = scmp.lt.u32.totalorder %s16162_s18, %s16157_s6 }
  0x4e   : > { %p16160_p3 = pnand %p16159_p2, %p16158_p0  ;;  %p16166_p5 = scmp.lt.u32.totalorder %s16157_s6, %s16459_s14 }
  0x4f   : > { %p16165_p1 = por %p16164_p12, %p16163_p9 }
  0x50   : > { %p16161_p4 = pneg %p16160_p3 }
  0x51   : > { %p16167_p10 = por %p16166_p5, %p16165_p1 }
  0x53   : > { %p16168_p7 = pnand %p16167_p10, %p16161_p4 }
  0x55   : > { %16171 = shalt.err (!%p16168_p7)
}
  0x56   : > { %s16172_s17 = scalar_lea.vmem %s16467_s16, 9216  ;;  %s16295_s11 = smov [#allocation4]  }
  0x57   : > { %p16173_p0 = scmp.ne.s32.totalorder %s16467_s16, %s16172_s17  ;;  %s16177_s15 = sshll.u32 %s16295_s11, 4  ;;  %s16178_s15 = int_to_ptr.vmem [resolvable:$false] %s16177_s15 }
  0x58   : > { %s16179_s7 = scalar_lea.vmem %s16178_s15, 18432  ;;  %p16180_p6 = scmp.lt.s32.totalorder %s16467_s16, %s16178_s15 }
  0x59   : > { %p16175_p3 = pnand %p16173_p0, %p16159_p2  ;;  %p16181_p9 = scmp.lt.s32.totalorder %s16179_s7, %s16172_s17 }
  0x5b   : > { %p16176_p11 = pneg %p16175_p3  ;;  %p16182_p12 = por %p16181_p9, %p16180_p6 }
  0x5d   : > { %p16183_p1 = pnand %p16182_p12, %p16176_p11 }
  0x5f   : > { %16186 = shalt.err (!%p16183_p1)
}
  0x60   : > { %s17460_s6 = smov 64   ;;  %s16297_s9 = smov 4  }
  0x61   : > { %15339 = dma.hbm_to_vmem [thread:$0]  (!%p16463_p13), %s16459_s14, 9216, %s16467_s16, %s16469_s29, %s17460_s6, %s17460_s6, %s16297_s9  }
  0x62   : > { %p59_p6 = scmp.gt.s32.totalorder %s16362_s25, 0  ;;  %p10901_p11 = scmp.lt.s32.totalorder %s16362_s25, 3 }
  0x63   : > { %s65_s12 = scalar_select %p64_p8, %s16446_s10, 0 }
  0x64   : > { %s60_s18 = scalar_select %p59_p6, %s16362_s25, 0 }
  0x65   : > { %p10907_p2 = scmp.lt.s32.totalorder %s16446_s10, 3  ;;  %s71_s13 = sadd.s32 1, %s16273_s20 }
  0x66   : > { %s17491_s18 = smov (!%p10901_p11, %s60_s18), 3  ;;  %p78_p4 = scmp.ne.s32.totalorder %s16273_s20, %s16269_s19 }
  0x67   : > { %s221_s17 = sand.u32 1, %s16289_s24   ;;  %s17493_s12 = smov (!%p10907_p2, %s65_s12), 3 }
  0x68   : > { %p17466_p5 = scmp.eq.s32.totalorder %s16289_s24, 0  ;;  %s68_s30 = ssub.s32 %s17491_s18, %s17493_s12 }
  0x69   : > { %s223_s11 = sand.u32 1, %s16273_s20   ;;  %p69_p7 = scmp.eq.s32.totalorder %s68_s30, 0 }
  0x6a   : > { %p80_p10 = por %p78_p4, %p17466_p5  ;;  %s15313_s15 = smul.u32 3200, %s223_s11 }
  0x6b   : > { %s15314_s14 = smul.u32 51200, %s17491_s18  ;;  %p17467_p13 = scmp.lt.s32.totalorder %s16289_s24, 7 }
  0x6c   : > { %s16521_s29 = scalar_select %p69_p7, %s16273_s20, %s71_s13  }
  0x6d   : > { %p16516_p0 = pnand %p17467_p13, %p80_p10  ;;  %s16526_s6 = scalar_lea.hbm %s17450_s2, %s15314_s14 }
  0x6e   : > { %s225_s12 = scalar_lea.vmem [#allocation6], %s15313_s15  ;;  %s16530_s24 = scalar_lea.sflag [#allocation7], %s221_s17 }
  0x6f   : > { %s237_s18 = sshll.u32 %s225_s12, 4  ;;  %s16187_s30 = scalar_lea.hbm %s16526_s6, 51200  ;;  %s16528_s18 = int_to_ptr.vmem [resolvable:$true] %s237_s18 }
  0x70   : > { %p16188_p8 = scmp.ne.s32.totalorder %s16526_s6, %s16187_s30  ;;  %p16189_p3 = pneg %p16516_p0 }
  0x71   : > { %s16192_s14 = scalar_lea.hbm %s17450_s2, 204800  ;;  %p16193_p1 = scmp.lt.u32.totalorder %s16526_s6, %s17450_s2 }
  0x72   : > { %p16190_p9 = pnand %p16189_p3, %p16188_p8  ;;  %p16194_p6 = scmp.lt.u32.totalorder %s16192_s14, %s16187_s30 }
  0x73   : > { %p16196_p2 = scmp.lt.u32.totalorder %s16187_s30, %s16526_s6 }
  0x74   : > { %p16191_p12 = pneg %p16190_p9  ;;  %p16195_p11 = por %p16194_p6, %p16193_p1 }
  0x76   : > { %p16197_p4 = por %p16196_p2, %p16195_p11 }
  0x78   : > { %p16198_p5 = pnand %p16197_p4, %p16191_p12 }
  0x7a   : > { %16201 = shalt.err (!%p16198_p5)
}
  0x7b   : > { %s16202_s17 = scalar_lea.vmem %s16528_s18, 51200  ;;  %s16298_s15 = smov [#allocation6]  }
  0x7c   : > { %p16203_p10 = scmp.ne.s32.totalorder %s16528_s18, %s16202_s17  ;;  %s16207_s12 = sshll.u32 %s16298_s15, 4  ;;  %s16208_s12 = int_to_ptr.vmem [resolvable:$false] %s16207_s12 }
  0x7d   : > { %s16209_s13 = scalar_lea.vmem %s16208_s12, 102400  ;;  %p16210_p8 = scmp.lt.s32.totalorder %s16528_s18, %s16208_s12 }
  0x7e   : > { %p16205_p7 = pnand %p16203_p10, %p16189_p3  ;;  %p16211_p9 = scmp.lt.s32.totalorder %s16209_s13, %s16202_s17 }
  0x80   : > { %p16206_p13 = pneg %p16205_p7  ;;  %p16212_p1 = por %p16211_p9, %p16210_p8 }
  0x82   : > { %p16213_p6 = pnand %p16212_p1, %p16206_p13 }
  0x84   : > { %16216 = shalt.err (!%p16213_p6)
}
  0x85   : > { %s17469_s30 = smov 64   ;;  %p17470_p3 = scmp.ne.s32.totalorder %s17463_s28, 0 }
  0x86   : > { %15342 = dma.hbm_to_vmem [thread:$0]  (!%p16516_p0), %s16526_s6, 51200, %s16528_s18, %s16530_s24, %s17469_s30, %s17469_s30, %s16297_s9  }
  0x87   : > { %249 = sbr.rel (%p17470_p3) target bundleno = 5878 (0x16f6), region = 36  ;;  %s251_s11 = sand.u32 (!%p17470_p3), 1, %s16281_s22  }
  0x88   : > { %s15315_s14 = smul.u32 (!%p17470_p3), 576, %s251_s11  ;;  %s252_s10 = scalar_lea.sflag (!%p17470_p3), [#allocation5], %s251_s11 }
  0x89   : > { %p17471_p12 = scmp.ne.s32.totalorder (!%p17470_p3), %s17461_s26, 0 }
  0x8a   : > { %s16564_s7 = scalar_lea.vmem (!%p17470_p3), [#allocation4], %s15315_s14 }
  0x8e   : > { %16246 = dma.done.wait (%p17471_p12), %s252_s10, 9216  }
  0x8f   : > { %16248 = vsyncadd (%p17471_p12), %s252_s10, 4294958080  ;;  %s260_s16 = sand.u32 1, %s16362_s25   ;;  %s262_s6 = sand.u32 1, %s16269_s19  }
  0x90   : > { %s15316_s9 = smul.u32 3200, %s262_s6  ;;  %s261_s28 = scalar_lea.sflag [#allocation7], %s260_s16 }
  0x91   : > { %p17472_p0 = scmp.ne.s32.totalorder %s17462_s27, 0 }
  0x92   : > { %s16572_s18 = scalar_lea.vmem [#allocation6], %s15316_s9 }
  0x93   : > { %16250 = dma.done.wait (%p17472_p0), %s261_s28, 51200  }
  0x94   : > { %16252 = vsyncadd (%p17472_p0), %s261_s28, 4294916096  ;;  %p17473_p11 = scmp.eq.s32.totalorder %s16362_s25, 0 }
  0x96   : > { %16254 = dma.done.wait (%p17473_p11), [#allocation7], 768   ;;  %p17474_p2 = pmov %p17473_p11 }
  0x98   : > { %16256 = vsyncadd (%p17474_p2), [#allocation7], 4294966528  ;;  %p17475_p4 = pmov %p17474_p2 }
  0x99   : > { %p17476_p5 = pmov %p17474_p2 }
  0x9a   : > { %16258 = dma.done.wait (%p17475_p4), [#allocation10], 768  }
  0x9b   : > { %16260 = vsyncadd (%p17476_p5), [#allocation10], 4294966528  ;;  %p17477_p10 = scmp.ne.s32.totalorder %s16362_s25, 0 }
  0x9c   : > { %v349_v0 = vld [vmem:[%s17448_s0] sm:$0xff] (!%p17477_p10)  ;;  %v351_v1 = vld [vmem:[%s17448_s0 + $0x8] sm:$0xff] (!%p17477_p10)  ;;  %v353_v2 = vld [vmem:[%s17448_s0 + $0x10] sm:$0xff] (!%p17477_p10)  ;;  %v16299_v3 = vmov (!%p17477_p10), 0.0  }
  0x9d   : > { %309 = sbr.rel (%p17477_p10) target bundleno = 662 (0x296), region = 56  ;;  %310 = vst [vmem:[#allocation2] sm:$0xff] (!%p17477_p10), %v16299_v3  ;;  %311 = vst [vmem:[#allocation2 + $0x20] sm:$0xff] (!%p17477_p10), %v16299_v3  ;;  %v355_v4 = vld [vmem:[%s17448_s0 + $0x18] sm:$0xff] (!%p17477_p10) }
  0x9e   : > { %312 = vst [vmem:[#allocation2 + $0x18] sm:$0xff] (!%p17477_p10), %v16299_v3  ;;  %313 = vst [vmem:[#allocation2 + $0x38] sm:$0xff] (!%p17477_p10), %v16299_v3 }
  0x9f   : > { %350 = vst [vmem:[#allocation2 + $0x8] sm:$0xff] (!%p17477_p10), %v349_v0  ;;  %352 = vst [vmem:[#allocation2 + $0x10] sm:$0xff] (!%p17477_p10), %v351_v1 }
  0xa0   : > { %354 = vst [vmem:[#allocation2 + $0x28] sm:$0xff] (!%p17477_p10), %v353_v2  ;;  %356 = vst [vmem:[#allocation2 + $0x30] sm:$0xff] (!%p17477_p10), %v355_v4 }
  0xa4   : > { %364 = vsyncadd [#allocation3], 512 }
  0xa5   : > { %16261 = dma.done.wait [#allocation3], 512 }
  0xa6   : > { %16262 = vsyncadd [#allocation3], 4294966784  ;;  %v15411_v5 = vld [vmem:[%s16564_s7 + $0x40] sm:$0xff]   ;;  %v15413_v7 = vld [vmem:[%s16564_s7 + $0x48] sm:$0xff]  }
  0xa7   : > { %v15412_v6 = vld [vmem:[%s16564_s7 + $0x100] sm:$0xff]   ;;  %13515 = vmatprep.subr.bf16.mxu1 %v15411_v5  ;;  %v15414_v8 = vld [vmem:[%s16564_s7 + $0x108] sm:$0xff]   ;;  %v15415_v9 = vld [vmem:[%s16564_s7 + $0x50] sm:$0xff]  }
  0xa8   : > { %13595 = vmatprep.subr.bf16.mxu0 %v15412_v6  ;;  %13516 = vmatpush3.bf16.msra.mxu1 %v15411_v5  ;;  %v15416_v10 = vld [vmem:[%s16564_s7 + $0x110] sm:$0xff]   ;;  %v15417_v11 = vld [vmem:[%s16564_s7 + $0x58] sm:$0xff]   ;;  %v15419_v13 = vld [vmem:[%s16564_s7 + $0x60] sm:$0xff]  }
  0xa9   : > { %13596 = vmatpush3.bf16.msra.mxu0 %v15412_v6  ;;  %13517 = vmatprep.subr.bf16.mxu1 %v15413_v7  ;;  %v15418_v12 = vld [vmem:[%s16564_s7 + $0x118] sm:$0xff]   ;;  %v15420_v14 = vld [vmem:[%s16564_s7 + $0x120] sm:$0xff]   ;;  %v15421_v15 = vld [vmem:[%s16564_s7 + $0x68] sm:$0xff]  }
  0xaa   : > { %13597 = vmatprep.subr.bf16.mxu0 %v15414_v8  ;;  %v391_v16 = vld [vmem:[#allocation2 + $0x5] sm:$0xff]  ;;  %v392_v17 = vld [vmem:[#allocation2 + $0xd] sm:$0xff]  ;;  %v15425_v25 = vld [vmem:[%s16564_s7 + $0x78] sm:$0xff]  }
  0xab   : > { %v15422_v18 = vld [vmem:[%s16564_s7 + $0x128] sm:$0xff]   ;;  %v395_v19 = vpack.c.bf16 %v392_v17, %v391_v16  ;;  %v857_v21 = vld [vmem:[#allocation2 + $0x10] sm:$0xff]  ;;  %v15426_v26 = vld [vmem:[%s16564_s7 + $0x138] sm:$0xff]  }
  0xac   : > { %13518 = vmatpush3.bf16.msra.mxu1 %v15413_v7  ;;  %v856_v20 = vld [vmem:[#allocation2 + $0x8] sm:$0xff]  ;;  %v15423_v23 = vld [vmem:[%s16564_s7 + $0x70] sm:$0xff]   ;;  %v15427_v28 = vld [vmem:[%s16564_s7] sm:$0xff]  }
  0xad   : > { %13598 = vmatpush3.bf16.msra.mxu0 %v15414_v8  ;;  %13519 = vmatprep.subr.bf16.mxu1 %v15415_v9  ;;  %v860_v22 = vpack.c.bf16 %v857_v21, %v856_v20  ;;  %v15424_v24 = vld [vmem:[%s16564_s7 + $0x130] sm:$0xff]   ;;  %v393_v27 = vld [vmem:[#allocation2 + $0x25] sm:$0xff]  ;;  %v15433_v45 = vld [vmem:[%s16564_s7 + $0x18] sm:$0xff]  }
  0xae   : > { %13599 = vmatprep.subr.bf16.mxu0 %v15416_v10  ;;  %13531 = vmatprep.mubr.bf16.mxu1 %v395_v19  ;;  %v394_v29 = vld [vmem:[#allocation2 + $0x2d] sm:$0xff]  ;;  %v15428_v32 = vld [vmem:[%s16564_s7 + $0x140] sm:$0xff]   ;;  %v15434_v46 = vld [vmem:[%s16564_s7 + $0x158] sm:$0xff]  }
  0xaf   : > { %13611 = vmatprep.mubr.bf16.mxu0 %v860_v22  ;;  %v858_v30 = vld [vmem:[#allocation2 + $0x28] sm:$0xff]  ;;  %v859_v31 = vld [vmem:[#allocation2 + $0x30] sm:$0xff]  ;;  %v396_v33 = vpack.c.bf16 %v394_v29, %v393_v27  ;;  %v15435_v47 = vld [vmem:[%s16564_s7 + $0x20] sm:$0xff]  }
  0xb0   : > { %13520 = vmatpush3.bf16.msra.mxu1 %v15415_v9  ;;  %v861_v34 = vpack.c.bf16 %v859_v31, %v858_v30  ;;  %v15429_v35 = vld [vmem:[%s16564_s7 + $0x8] sm:$0xff]   ;;  %v15431_v39 = vld [vmem:[%s16564_s7 + $0x10] sm:$0xff]   ;;  %v15436_v48 = vld [vmem:[%s16564_s7 + $0x160] sm:$0xff]  }
  0xb1   : > { %13600 = vmatpush3.bf16.msra.mxu0 %v15416_v10  ;;  %13521 = vmatprep.subr.bf16.mxu1 %v15417_v11  ;;  %v15430_v36 = vld [vmem:[%s16564_s7 + $0x148] sm:$0xff]   ;;  %v981_v42 = vld [vmem:[#allocation2 + $0x11] sm:$0xff]  ;;  %v15443_v57 = vld [vmem:[%s16564_s7 + $0x80] sm:$0xff]  }
  0xb2   : > { %13601 = vmatprep.subr.bf16.mxu0 %v15418_v12  ;;  %v369_v37 = vld [vmem:[#allocation2 + $0x4] sm:$0xff]  ;;  %v16620_v38 = vld [vmem:[#allocation2 + $0xc] sm:$0xff]  ;;  %v15441_v53 = vld [vmem:[%s16564_s7 + $0x38] sm:$0xff]  }
  0xb3   : > { %v373_v40 = vpack.c.bf16 %v16620_v38, %v369_v37  ;;  %v980_v41 = vld [vmem:[#allocation2 + $0x9] sm:$0xff]  ;;  %v15442_v54 = vld [vmem:[%s16564_s7 + $0x178] sm:$0xff]   ;;  %v15444_v59 = vld [vmem:[%s16564_s7 + $0x180] sm:$0xff]  }
  0xb4   : > { %13522 = vmatpush3.bf16.msra.mxu1 %v15417_v11  ;;  %v15432_v43 = vld [vmem:[%s16564_s7 + $0x150] sm:$0xff]   ;;  %v984_v44 = vpack.c.bf16 %v981_v42, %v980_v41  ;;  %v15437_v49 = vld [vmem:[%s16564_s7 + $0x28] sm:$0xff]   ;;  %v15449_v9 = vld [vmem:[%s16564_s7 + $0x98] sm:$0xff]  }
  0xb5   : > { %13602 = vmatpush3.bf16.msra.mxu0 %v15418_v12  ;;  %13523 = vmatprep.subr.bf16.mxu1 %v15419_v13  ;;  %v15438_v50 = vld [vmem:[%s16564_s7 + $0x168] sm:$0xff]   ;;  %v15439_v51 = vld [vmem:[%s16564_s7 + $0x30] sm:$0xff]   ;;  %v15450_v10 = vld [vmem:[%s16564_s7 + $0x198] sm:$0xff]  }
  0xb6   : > { %13603 = vmatprep.subr.bf16.mxu0 %v15420_v14  ;;  %v15440_v52 = vld [vmem:[%s16564_s7 + $0x170] sm:$0xff]   ;;  %v371_v55 = vld [vmem:[#allocation2 + $0x24] sm:$0xff]  ;;  %v15457_v17 = vld [vmem:[%s16564_s7 + $0xb8] sm:$0xff]  }
  0xb7   : > { %v16635_v56 = vld [vmem:[#allocation2 + $0x2c] sm:$0xff]  ;;  %v15451_v11 = vld [vmem:[%s16564_s7 + $0xa0] sm:$0xff]   ;;  %v15465_v37 = vld [vmem:[%s16564_s7 + $0xd8] sm:$0xff]  }
  0xb8   : > { %13524 = vmatpush3.bf16.msra.mxu1 %v15419_v13  ;;  %v982_v58 = vld [vmem:[#allocation2 + $0x29] sm:$0xff]  ;;  %v983_v60 = vld [vmem:[#allocation2 + $0x31] sm:$0xff]  ;;  %v374_v63 = vpack.c.bf16 %v16635_v56, %v371_v55  ;;  %v15452_v12 = vld [vmem:[%s16564_s7 + $0x1a0] sm:$0xff]  }
  0xb9   : > { %13604 = vmatpush3.bf16.msra.mxu0 %v15420_v14  ;;  %13525 = vmatprep.subr.bf16.mxu1 %v15421_v15  ;;  %v608_v61 = vld [vmem:[#allocation2 + $0x6] sm:$0xff]  ;;  %v609_v62 = vld [vmem:[#allocation2 + $0xe] sm:$0xff]  ;;  %v985_v1 = vpack.c.bf16 %v983_v60, %v982_v58  ;;  %v15478_v60 = vld [vmem:[%s16564_s7 + $0x218] sm:$0xff]  }
  0xba   : > { %13605 = vmatprep.subr.bf16.mxu0 %v15422_v18  ;;  %v1104_v0 = vld [vmem:[#allocation2 + $0xa] sm:$0xff]  ;;  %v1105_v2 = vld [vmem:[#allocation2 + $0x12] sm:$0xff]  ;;  %v612_v5 = vpack.c.bf16 %v609_v62, %v608_v61  ;;  %v15459_v21 = vld [vmem:[%s16564_s7 + $0xc0] sm:$0xff]  }
  0xbb   : > { %v15445_v3 = vld [vmem:[%s16564_s7 + $0x88] sm:$0xff]   ;;  %v1108_v6 = vpack.c.bf16 %v1105_v2, %v1104_v0  ;;  %v15447_v7 = vld [vmem:[%s16564_s7 + $0x90] sm:$0xff]   ;;  %v15468_v41 = vld [vmem:[%s16564_s7 + $0x1e0] sm:$0xff]  }
  0xbc   : > { %13526 = vmatpush3.bf16.msra.mxu1 %v15421_v15  ;;  %v15446_v4 = vld [vmem:[%s16564_s7 + $0x188] sm:$0xff]   ;;  %v15448_v8 = vld [vmem:[%s16564_s7 + $0x190] sm:$0xff]   ;;  %v15479_v61 = vld [vmem:[%s16564_s7 + $0x220] sm:$0xff]  }
  0xbd   : > { %13606 = vmatpush3.bf16.msra.mxu0 %v15422_v18  ;;  %13527 = vmatprep.subr.bf16.mxu1 %v15423_v23  ;;  %v15453_v13 = vld [vmem:[%s16564_s7 + $0xa8] sm:$0xff]   ;;  %v15455_v15 = vld [vmem:[%s16564_s7 + $0xb0] sm:$0xff]   ;;  %v15458_v18 = vld [vmem:[%s16564_s7 + $0x1b8] sm:$0xff]  }
  0xbe   : > { %13607 = vmatprep.subr.bf16.mxu0 %v15424_v24  ;;  %v15454_v14 = vld [vmem:[%s16564_s7 + $0x1a8] sm:$0xff]   ;;  %v15456_v16 = vld [vmem:[%s16564_s7 + $0x1b0] sm:$0xff]  }
  0xbf   : > { %v610_v19 = vld [vmem:[#allocation2 + $0x26] sm:$0xff]  ;;  %v611_v20 = vld [vmem:[#allocation2 + $0x2e] sm:$0xff] }
  0xc0   : > { %13528 = vmatpush3.bf16.msra.mxu1 %v15423_v23  ;;  %v1106_v22 = vld [vmem:[#allocation2 + $0x2a] sm:$0xff]  ;;  %v1107_v23 = vld [vmem:[#allocation2 + $0x32] sm:$0xff] }
  0xc1   : > { %13608 = vmatpush3.bf16.msra.mxu0 %v15424_v24  ;;  %13529 = vmatprep.subr.bf16.mxu1 %v15425_v25  ;;  %v15460_v24 = vld [vmem:[%s16564_s7 + $0x1c0] sm:$0xff]   ;;  %v733_v27 = vld [vmem:[#allocation2 + $0xf] sm:$0xff] }
  0xc2   : > { %13609 = vmatprep.subr.bf16.mxu0 %v15426_v26  ;;  %v1228_v29 = vld [vmem:[#allocation2 + $0xb] sm:$0xff]  ;;  %v1229_v30 = vld [vmem:[#allocation2 + $0x13] sm:$0xff] }
  0xc3   : > { %v15461_v31 = vld [vmem:[%s16564_s7 + $0xc8] sm:$0xff]   ;;  %v15481_v62 = vld [vmem:[%s16564_s7 + $0x230] sm:$0xff]  }
  0xc4   : > { %13530 = vmatpush3.bf16.msra.mxu1 %v15425_v25  ;;  %v613_v25 = vpack.c.bf16 %v611_v20, %v610_v19  ;;  %v15469_v42 = vld [vmem:[%s16564_s7 + $0xe8] sm:$0xff]   ;;  %v1355_v0 = vld [vmem:[#allocation2 + $0x34] sm:$0xff] }
  0xc5   : > { %13610 = vmatpush3.bf16.msra.mxu0 %v15426_v26  ;;  %13535 = vmatprep.subr.bf16.mxu1 %v15427_v28  ;;  %v732_v26 = vld [vmem:[#allocation2 + $0x7] sm:$0xff] }
  0xc6   : > { %13615 = vmatprep.subr.bf16.mxu0 %v15428_v32  ;;  %v15476_v58 = vld [vmem:[%s16564_s7 + $0x208] sm:$0xff]  }
  0xc7   : > { %13532 = vmatmul.mubr.bf16.vlgmr.msra.gmra.mrb[0].mxu1 %v396_v33  ;;  %v736_v33 = vpack.c.bf16 %v733_v27, %v732_v26 }
  0xc8   : > { %13536 = vmatpush3.bf16.msra.mxu1 %v15427_v28  ;;  %13612 = vmatmul.mubr.bf16.vlgmr.msra.gmra.mrb[0].mxu0 %v861_v34  ;;  %v1109_v28 = vpack.c.bf16 %v1107_v23, %v1106_v22  ;;  %v1232_v34 = vpack.c.bf16 %v1229_v30, %v1228_v29 }
  0xc9   : > { %13616 = vmatpush3.bf16.msra.mxu0 %v15428_v32  ;;  %13537 = vmatprep.subr.bf16.mxu1 %v15429_v35  ;;  %v15462_v32 = vld [vmem:[%s16564_s7 + $0x1c8] sm:$0xff]  }
  0xca   : > { %13617 = vmatprep.subr.bf16.mxu0 %v15430_v36  ;;  %13551 = vmatprep.mubr.bf16.mxu1 %v373_v40  ;;  %v15467_v40 = vld [vmem:[%s16564_s7 + $0xe0] sm:$0xff]  }
  0xcb   : > { %13631 = vmatprep.mubr.bf16.mxu0 %v984_v44  ;;  %v15471_v44 = vld [vmem:[%s16564_s7 + $0xf0] sm:$0xff]  }
  0xcc   : > { %13538 = vmatpush3.bf16.msra.mxu1 %v15429_v35  ;;  %v15463_v35 = vld [vmem:[%s16564_s7 + $0xd0] sm:$0xff]  }
  0xcd   : > { %13618 = vmatpush3.bf16.msra.mxu0 %v15430_v36  ;;  %13539 = vmatprep.subr.bf16.mxu1 %v15431_v39  ;;  %v15464_v36 = vld [vmem:[%s16564_s7 + $0x1d0] sm:$0xff]  }
  0xce   : > { %13619 = vmatprep.subr.bf16.mxu0 %v15432_v43 }
  0xd0   : > { %13540 = vmatpush3.bf16.msra.mxu1 %v15431_v39  ;;  %v15466_v39 = vld [vmem:[%s16564_s7 + $0x1d8] sm:$0xff]  }
  0xd1   : > { %13620 = vmatpush3.bf16.msra.mxu0 %v15432_v43  ;;  %13541 = vmatprep.subr.bf16.mxu1 %v15433_v45  ;;  %v15470_v43 = vld [vmem:[%s16564_s7 + $0x1e8] sm:$0xff]  }
  0xd2   : > { %13621 = vmatprep.subr.bf16.mxu0 %v15434_v46 }
  0xd4   : > { %13542 = vmatpush3.bf16.msra.mxu1 %v15433_v45  ;;  %v15472_v45 = vld [vmem:[%s16564_s7 + $0x1f0] sm:$0xff]  }
  0xd5   : > { %13622 = vmatpush3.bf16.msra.mxu0 %v15434_v46  ;;  %13543 = vmatprep.subr.bf16.mxu1 %v15435_v47  ;;  %v15473_v46 = vld [vmem:[%s16564_s7 + $0xf8] sm:$0xff]  }
  0xd6   : > { %13623 = vmatprep.subr.bf16.mxu0 %v15436_v48 }
  0xd8   : > { %13544 = vmatpush3.bf16.msra.mxu1 %v15435_v47  ;;  %v15474_v47 = vld [vmem:[%s16564_s7 + $0x1f8] sm:$0xff]  }
  0xd9   : > { %13624 = vmatpush3.bf16.msra.mxu0 %v15436_v48  ;;  %13545 = vmatprep.subr.bf16.mxu1 %v15437_v49  ;;  %v734_v48 = vld [vmem:[#allocation2 + $0x27] sm:$0xff] }
  0xda   : > { %13625 = vmatprep.subr.bf16.mxu0 %v15438_v50 }
  0xdc   : > { %13546 = vmatpush3.bf16.msra.mxu1 %v15437_v49  ;;  %v735_v49 = vld [vmem:[#allocation2 + $0x2f] sm:$0xff] }
  0xdd   : > { %13626 = vmatpush3.bf16.msra.mxu0 %v15438_v50  ;;  %13547 = vmatprep.subr.bf16.mxu1 %v15439_v51  ;;  %v1230_v50 = vld [vmem:[#allocation2 + $0x2b] sm:$0xff] }
  0xde   : > { %13627 = vmatprep.subr.bf16.mxu0 %v15440_v52 }
  0xe0   : > { %13548 = vmatpush3.bf16.msra.mxu1 %v15439_v51  ;;  %v1231_v51 = vld [vmem:[#allocation2 + $0x33] sm:$0xff] }
  0xe1   : > { %13628 = vmatpush3.bf16.msra.mxu0 %v15440_v52  ;;  %13549 = vmatprep.subr.bf16.mxu1 %v15441_v53  ;;  %v15475_v52 = vld [vmem:[%s16564_s7 + $0x200] sm:$0xff]   ;;  %v1233_v55 = vpack.c.bf16 %v1231_v51, %v1230_v50 }
  0xe2   : > { %13629 = vmatprep.subr.bf16.mxu0 %v15442_v54 }
  0xe4   : > { %13550 = vmatpush3.bf16.msra.mxu1 %v15441_v53  ;;  %v1353_v53 = vld [vmem:[#allocation2 + $0x14] sm:$0xff] }
  0xe5   : > { %13630 = vmatpush3.bf16.msra.mxu0 %v15442_v54  ;;  %13555 = vmatprep.subr.bf16.mxu1 %v15443_v57  ;;  %v737_v54 = vpack.c.bf16 %v735_v49, %v734_v48  ;;  %v1477_v49 = vld [vmem:[#allocation9] sm:$0x1] }
  0xe6   : > { %13635 = vmatprep.subr.bf16.mxu0 %v15444_v59 }
  0xe7   : > { %13552 = vmatmul.mubr.bf16.vlgmr.msra.gmra.mrb[0].mxu1 %v374_v63  ;;  %v15482_v63 = vld [vmem:[%s16564_s7 + $0x238] sm:$0xff]  }
  0xe8   : > { %13556 = vmatpush3.bf16.msra.mxu1 %v15443_v57  ;;  %13632 = vmatmul.mubr.bf16.vlgmr.msra.gmra.mrb[0].mxu0 %v985_v1  ;;  %v1356_v57 = vpack.c.bf16 %v1353_v53, %v16620_v38  ;;  %v15480_v38 = vld [vmem:[%s16564_s7 + $0x228] sm:$0xff]   ;;  %v1357_v1 = vpack.c.bf16 %v1355_v0, %v16635_v56 }
  0xe9   : > { %13636 = vmatpush3.bf16.msra.mxu0 %v15444_v59  ;;  %13557 = vmatprep.subr.bf16.mxu1 %v15445_v3  ;;  %v15477_v59 = vld [vmem:[%s16564_s7 + $0x210] sm:$0xff]  }
  0xea   : > { %13637 = vmatprep.subr.bf16.mxu0 %v15446_v4  ;;  %13571 = vmatprep.mubr.bf16.mxu1 %v612_v5 }
  0xeb   : > { %13651 = vmatprep.mubr.bf16.mxu0 %v1108_v6 }
  0xec   : > { %13558 = vmatpush3.bf16.msra.mxu1 %v15445_v3 }
  0xed   : > { %13638 = vmatpush3.bf16.msra.mxu0 %v15446_v4  ;;  %13559 = vmatprep.subr.bf16.mxu1 %v15447_v7 }
  0xee   : > { %13639 = vmatprep.subr.bf16.mxu0 %v15448_v8 }
  0xf0   : > { %13560 = vmatpush3.bf16.msra.mxu1 %v15447_v7 }
  0xf1   : > { %13640 = vmatpush3.bf16.msra.mxu0 %v15448_v8  ;;  %13561 = vmatprep.subr.bf16.mxu1 %v15449_v9 }
  0xf2   : > { %13641 = vmatprep.subr.bf16.mxu0 %v15450_v10 }
  0xf4   : > { %13562 = vmatpush3.bf16.msra.mxu1 %v15449_v9 }
  0xf5   : > { %13642 = vmatpush3.bf16.msra.mxu0 %v15450_v10  ;;  %13563 = vmatprep.subr.bf16.mxu1 %v15451_v11 }
  0xf6   : > { %13643 = vmatprep.subr.bf16.mxu0 %v15452_v12 }
  0xf8   : > { %13564 = vmatpush3.bf16.msra.mxu1 %v15451_v11 }
  0xf9   : > { %13644 = vmatpush3.bf16.msra.mxu0 %v15452_v12  ;;  %13565 = vmatprep.subr.bf16.mxu1 %v15453_v13 }
  0xfa   : > { %13645 = vmatprep.subr.bf16.mxu0 %v15454_v14 }
  0xfc   : > { %13566 = vmatpush3.bf16.msra.mxu1 %v15453_v13 }
  0xfd   : > { %13646 = vmatpush3.bf16.msra.mxu0 %v15454_v14  ;;  %13567 = vmatprep.subr.bf16.mxu1 %v15455_v15 }
  0xfe   : > { %13647 = vmatprep.subr.bf16.mxu0 %v15456_v16 }
 0x100   : > { %13568 = vmatpush3.bf16.msra.mxu1 %v15455_v15 }
 0x101   : > { %13648 = vmatpush3.bf16.msra.mxu0 %v15456_v16  ;;  %13569 = vmatprep.subr.bf16.mxu1 %v15457_v17 }
 0x102   : > { %13649 = vmatprep.subr.bf16.mxu0 %v15458_v18 }
 0x104   : > { %13570 = vmatpush3.bf16.msra.mxu1 %v15457_v17 }
 0x105   : > { %13650 = vmatpush3.bf16.msra.mxu0 %v15458_v18  ;;  %13575 = vmatprep.subr.bf16.mxu1 %v15459_v21 }
 0x106   : > { %13655 = vmatprep.subr.bf16.mxu0 %v15460_v24 }
 0x107   : > { %13572 = vmatmul.mubr.bf16.vlgmr.msra.gmra.mrb[0].mxu1 %v613_v25 }
 0x108   : > { %13576 = vmatpush3.bf16.msra.mxu1 %v15459_v21  ;;  %13652 = vmatmul.mubr.bf16.vlgmr.msra.gmra.mrb[0].mxu0 %v1109_v28 }
 0x109   : > { %13656 = vmatpush3.bf16.msra.mxu0 %v15460_v24  ;;  %13577 = vmatprep.subr.bf16.mxu1 %v15461_v31 }
 0x10a   : > { %13657 = vmatprep.subr.bf16.mxu0 %v15462_v32  ;;  %13591 = vmatprep.mubr.bf16.mxu1 %v736_v33 }
 0x10b   : > { %13671 = vmatprep.mubr.bf16.mxu0 %v1232_v34 }
 0x10c   : > { %13578 = vmatpush3.bf16.msra.mxu1 %v15461_v31 }
 0x10d   : > { %13658 = vmatpush3.bf16.msra.mxu0 %v15462_v32  ;;  %13579 = vmatprep.subr.bf16.mxu1 %v15463_v35 }
 0x10e   : > { %13659 = vmatprep.subr.bf16.mxu0 %v15464_v36 }
 0x110   : > { %13580 = vmatpush3.bf16.msra.mxu1 %v15463_v35 }
 0x111   : > { %13660 = vmatpush3.bf16.msra.mxu0 %v15464_v36  ;;  %13581 = vmatprep.subr.bf16.mxu1 %v15465_v37 }
 0x112   : > { %13661 = vmatprep.subr.bf16.mxu0 %v15466_v39 }
 0x114   : > { %13582 = vmatpush3.bf16.msra.mxu1 %v15465_v37 }
 0x115   : > { %13662 = vmatpush3.bf16.msra.mxu0 %v15466_v39  ;;  %13583 = vmatprep.subr.bf16.mxu1 %v15467_v40 }
 0x116   : > { %13663 = vmatprep.subr.bf16.mxu0 %v15468_v41 }
 0x118   : > { %13584 = vmatpush3.bf16.msra.mxu1 %v15467_v40 }
 0x119   : > { %13664 = vmatpush3.bf16.msra.mxu0 %v15468_v41  ;;  %13585 = vmatprep.subr.bf16.mxu1 %v15469_v42 }
 0x11a   : > { %13665 = vmatprep.subr.bf16.mxu0 %v15470_v43 }
 0x11c   : > { %13586 = vmatpush3.bf16.msra.mxu1 %v15469_v42 }
 0x11d   : > { %13666 = vmatpush3.bf16.msra.mxu0 %v15470_v43  ;;  %13587 = vmatprep.subr.bf16.mxu1 %v15471_v44  ;;  %v1509_v43 = vlaneseq }
 0x11e   : > { %13667 = vmatprep.subr.bf16.mxu0 %v15472_v45 }
 0x120   : > { %13588 = vmatpush3.bf16.msra.mxu1 %v15471_v44  ;;  %v1510_v44 = vshrl.u32 %v1509_v43, 7 }
 0x121   : > { %13668 = vmatpush3.bf16.msra.mxu0 %v15472_v45  ;;  %13589 = vmatprep.subr.bf16.mxu1 %v15473_v46  ;;  %v1476_v45 = vld [vmem:[#allocation8] sm:$0x1] }
 0x122   : > { %13669 = vmatprep.subr.bf16.mxu0 %v15474_v47 }
 0x124   : > { %13590 = vmatpush3.bf16.msra.mxu1 %v15473_v46  ;;  %v1511_v46 = vsub.s32 0, %v1510_v44 }
 0x125   : > { %13670 = vmatpush3.bf16.msra.mxu0 %v15474_v47 }
 0x126   : > { %13675 = vmatprep.subr.bf16.mxu0 %v15475_v52 }
 0x127   : > { %13592 = vmatmul.mubr.bf16.vlgmr.msra.gmra.mrb[0].mxu1 %v737_v54 }
 0x128   : > { %13672 = vmatmul.mubr.bf16.vlgmr.msra.gmra.mrb[0].mxu0 %v1233_v55 }
 0x129   : > { %13676 = vmatpush3.bf16.msra.mxu0 %v15475_v52  ;;  %13691 = vmatprep.mubr.bf16.mxu0 %v1356_v57 }
 0x12a   : > { %13677 = vmatprep.subr.bf16.mxu0 %v15476_v58 }
 0x12d   : > { %13678 = vmatpush3.bf16.msra.mxu0 %v15476_v58 }
 0x12e   : > { %13679 = vmatprep.subr.bf16.mxu0 %v15477_v59 }
 0x131   : > { %13680 = vmatpush3.bf16.msra.mxu0 %v15477_v59 }
 0x132   : > { %13681 = vmatprep.subr.bf16.mxu0 %v15478_v60 }
 0x135   : > { %13682 = vmatpush3.bf16.msra.mxu0 %v15478_v60 }
 0x136   : > { %13683 = vmatprep.subr.bf16.mxu0 %v15479_v61 }
 0x139   : > { %13684 = vmatpush3.bf16.msra.mxu0 %v15479_v61 }
 0x13a   : > { %13685 = vmatprep.subr.bf16.mxu0 %v15480_v38 }
 0x13d   : > { %13686 = vmatpush3.bf16.msra.mxu0 %v15480_v38 }
 0x13e   : > { %13687 = vmatprep.subr.bf16.mxu0 %v15481_v62 }
 0x141   : > { %13688 = vmatpush3.bf16.msra.mxu0 %v15481_v62 }
 0x142   : > { %13689 = vmatprep.subr.bf16.mxu0 %v15482_v63 }
 0x145   : > { %13690 = vmatpush3.bf16.msra.mxu0 %v15482_v63 }
 0x148   : > { %13692 = vmatmul.mubr.bf16.vlgmr.msra.gmra.mrb[0].mxu0 %v1357_v1 }
 0x1fa   : > { %v13593_v2 = vpop.f32.mrb[0].mxu1 }
 0x1fb   : > { %v837_v3 = vpop.f32.mrb[1].mxu1 }
 0x1fc   : > { %v13594_v4 = vpop.f32.mrb[2].mxu1 }
 0x1fd   : > { %v840_v5 = vpop.f32.mrb[3].mxu1 }
 0x21b   : > { %v13693_v6 = vpop.f32.mrb[0].mxu0 }
 0x21c   : > { %v15055_v7 = vadd.f32 %v13693_v6, %v13593_v2  ;;  %v1457_v8 = vpop.f32.mrb[1].mxu0 }
 0x21d   : > { %v15056_v9 = vadd.f32 %v1457_v8, %v837_v3  ;;  %v13694_v10 = vpop.f32.mrb[2].mxu0 }
 0x21e   : > { %v15057_v11 = vadd.f32 %v13694_v10, %v13594_v4  ;;  %v1460_v12 = vpop.f32.mrb[3].mxu0 }
 0x21f   : > { %v15058_v13 = vadd.f32 %v1460_v12, %v840_v5 }
 0x221   : > { %v1478_v14 = vadd.f32 %v15058_v13, %v15056_v9 }
 0x223   : > { %v1479_v15 = vadd.f32 %v15055_v7, %v1478_v14 }
 0x225   : > { %v1480_v16 = vadd.f32 %v15057_v11, %v1479_v15 }
 0x227   : > { %v1481_v17 = vrot.slane %v1480_v16, 4 }
 0x229   : > { %v1482_v18 = vadd.f32 %v1481_v17, %v1480_v16 }
 0x22b   : > { %v1483_v56 = vrot.slane %v1482_v18, 2 }
 0x22d   : > { %v1484_v19 = vadd.f32 %v1483_v56, %v1482_v18 }
 0x22f   : > { %v1485_v20 = vrot.slane %v1484_v19, 1 }
 0x231   : > { %v1486_v21 = vadd.f32 %v1485_v20, %v1484_v19 }
 0x233   : > { %v1487_v22 = vmul.f32 0.03125, %v1486_v21 }
 0x235   : > { %v1488_v23 = vsub.f32 %v15056_v9, %v1487_v22  ;;  %v1489_v24 = vsub.f32 %v15058_v13, %v1487_v22  ;;  %v1490_v25 = vsub.f32 %v15055_v7, %v1487_v22  ;;  %v1491_v26 = vsub.f32 %v15057_v11, %v1487_v22 }
 0x237   : > { %v1492_v27 = vmul.f32 %v1488_v23, %v1488_v23  ;;  %v1493_v28 = vmul.f32 %v1489_v24, %v1489_v24  ;;  %v1494_v29 = vmul.f32 %v1490_v25, %v1490_v25  ;;  %v1495_v31 = vmul.f32 %v1491_v26, %v1491_v26 }
 0x239   : > { %v1496_v30 = vadd.f32 %v1493_v28, %v1492_v27 }
 0x23b   : > { %v1497_v32 = vadd.f32 %v1496_v30, %v1494_v29 }
 0x23d   : > { %v1498_v33 = vadd.f32 %v1497_v32, %v1495_v31 }
 0x23f   : > { %v1499_v34 = vrot.slane %v1498_v33, 4 }
 0x241   : > { %v1500_v35 = vadd.f32 %v1499_v34, %v1498_v33 }
 0x243   : > { %v1501_v36 = vrot.slane %v1500_v35, 2 }
 0x245   : > { %v1502_v37 = vadd.f32 %v1501_v36, %v1500_v35 }
 0x247   : > { %v1503_v39 = vrot.slane %v1502_v37, 1 }
 0x249   : > { %v1504_v40 = vadd.f32 %v1503_v39, %v1502_v37 }
 0x24b   : > { %v1505_v41 = vmul.f32 0.03125, %v1504_v40 }
 0x24d   : > { %v1506_v42 = vadd.f32 1e-05, %v1505_v41 }
 0x24f   : > { %15483 = vrsqrt.f32 %v1506_v42 }
 0x259   : > { %v15484_v47 = vpop.eup %15483 }
 0x25a   : > { %v1508_v48 = vmul.f32 %v15484_v47, %v1476_v45 }
 0x25c   : > { %v1512_v50 = vrot.slane %v1508_v48, %v1511_v46  ;;  %v1517_v51 = vmul.f32 %v1508_v48, %v1487_v22 }
 0x25e   : > { %v1513_v52 = vmul.f32 %v15056_v9, %v1512_v50  ;;  %v1514_v53 = vmul.f32 %v15058_v13, %v1512_v50  ;;  %v1515_v54 = vmul.f32 %v15055_v7, %v1512_v50  ;;  %v1516_v55 = vmul.f32 %v15057_v11, %v1512_v50 }
 0x25f   : > { %v1518_v57 = vsub.f32 %v1477_v49, %v1517_v51 }
 0x261   : > { %v1522_v58 = vrot.slane %v1518_v57, %v1511_v46 }
 0x263   : > { %v16680_v59 = vadd.f32 %v1522_v58, %v1513_v52  ;;  %v16682_v60 = vadd.f32 %v1522_v58, %v1514_v53  ;;  %v16684_v61 = vadd.f32 %v1522_v58, %v1515_v54  ;;  %v16686_v38 = vadd.f32 %v1522_v58, %v1516_v55 }
 0x265   : > { %v1531_v62 = vmin.f32 %v16680_v59, 20.0  ;;  %v1532_v63 = vmin.f32 %v16682_v60, 20.0  ;;  %v1533_v0 = vmin.f32 %v16684_v61, 20.0  ;;  %v1534_v1 = vmin.f32 %v16686_v38, 20.0 }
 0x266   : > { %vm1527_vm0 = vcmp.gt.f32.partialorder %v16680_v59, 20.0  ;;  %vm1528_vm1 = vcmp.gt.f32.partialorder %v16682_v60, 20.0  ;;  %vm1529_vm2 = vcmp.gt.f32.partialorder %v16684_v61, 20.0  ;;  %vm1530_vm7 = vcmp.gt.f32.partialorder %v16686_v38, 20.0 }
 0x267   : > { %v1535_v2 = vmul.f32 1.442695, %v1531_v62  ;;  %v1537_v3 = vmul.f32 1.442695, %v1532_v63  ;;  %v1539_v4 = vmul.f32 1.442695, %v1533_v0 }
 0x268   : > { %v1541_v5 = vmul.f32 1.442695, %v1534_v1 }
 0x269   : > { %15485 = vpow2.f32 %v1535_v2 }
 0x26a   : > { %15487 = vpow2.f32 %v1537_v3 }
 0x26b   : > { %15489 = vpow2.f32 %v1539_v4 }
 0x26c   : > { %15491 = vpow2.f32 %v1541_v5 }
 0x273   : > { %v15486_v6 = vpop.eup %15485 }
 0x274   : > { %v15488_v7 = vpop.eup %15487  ;;  %v1543_v8 = vadd.f32 1.0, %v15486_v6  ;;  %v1546_v14 = vmul.f32 -0.5, %v15486_v6  ;;  %v1549_v56 = vand.u32 2147483647, %v15486_v6 }
 0x275   : > { %v15490_v9 = vpop.eup %15489  ;;  %v1552_v10 = vadd.f32 1.0, %v15488_v7  ;;  %v1555_v15 = vmul.f32 -0.5, %v15488_v7  ;;  %v1558_v20 = vand.u32 2147483647, %v15488_v7 }
 0x276   : > { %v15492_v11 = vpop.eup %15491  ;;  %15493 = vlog2.f32 %v1543_v8  ;;  %v1561_v12 = vadd.f32 1.0, %v15490_v9  ;;  %v1564_v16 = vmul.f32 -0.5, %v15490_v9  ;;  %v1547_v18 = vadd.f32 1.0, %v1546_v14 }
 0x277   : > { %15495 = vlog2.f32 %v1552_v10  ;;  %v1570_v13 = vadd.f32 1.0, %v15492_v11  ;;  %v1573_v17 = vmul.f32 -0.5, %v15492_v11  ;;  %v1556_v19 = vadd.f32 1.0, %v1555_v15 }
 0x278   : > { %15497 = vlog2.f32 %v1561_v12  ;;  %v1565_v21 = vadd.f32 1.0, %v1564_v16  ;;  %v1567_v23 = vand.u32 2147483647, %v15490_v9  ;;  %v1548_v27 = vmul.f32 %v15486_v6, %v1547_v18 }
 0x279   : > { %15499 = vlog2.f32 %v1570_v13  ;;  %v1574_v24 = vadd.f32 1.0, %v1573_v17  ;;  %vm1550_vm3 = vcmp.lt.f32.partialorder %v1549_v56, 0.0004427343  ;;  %v1557_v30 = vmul.f32 %v15488_v7, %v1556_v19 }
 0x27a   : > { %v1576_v31 = vand.u32 2147483647, %v15492_v11  ;;  %vm1559_vm4 = vcmp.lt.f32.partialorder %v1558_v20, 0.0004427343  ;;  %v1566_v34 = vmul.f32 %v15490_v9, %v1565_v21  ;;  %vm1568_vm5 = vcmp.lt.f32.partialorder %v1567_v23, 0.0004427343 }
 0x27b   : > { %v1575_v37 = vmul.f32 %v15492_v11, %v1574_v24 }
 0x27c   : > { %vm1577_vm6 = vcmp.lt.f32.partialorder %v1576_v31, 0.0004427343 }
 0x280   : > { %v15494_v22 = vpop.eup %15493 }
 0x281   : > { %v15496_v25 = vpop.eup %15495  ;;  %v1545_v26 = vmul.f32 0.6931472, %v15494_v22 }
 0x282   : > { %v15498_v28 = vpop.eup %15497  ;;  %v1554_v29 = vmul.f32 0.6931472, %v15496_v25 }
 0x283   : > { %v1551_v32 = vsel %vm1550_vm3, %v1548_v27, %v1545_v26  ;;  %v1563_v33 = vmul.f32 0.6931472, %v15498_v28  ;;  %v15500_v35 = vpop.eup %15499 }
 0x284   : > { %v1560_v36 = vsel %vm1559_vm4, %v1557_v30, %v1554_v29  ;;  %v1579_v39 = vsel %vm1527_vm0, %v16680_v59, %v1551_v32  ;;  %v1572_v41 = vmul.f32 0.6931472, %v15500_v35 }
 0x285   : > { %v1569_v40 = vsel %vm1568_vm5, %v1566_v34, %v1563_v33  ;;  %v1580_v42 = vsel %vm1528_vm1, %v16682_v60, %v1560_v36  ;;  %15501 = vtanh.f32 %v1579_v39 }
 0x286   : > { %v1581_v43 = vsel %vm1529_vm2, %v16684_v61, %v1569_v40  ;;  %15503 = vtanh.f32 %v1580_v42  ;;  %v1578_v44 = vsel %vm1577_vm6, %v1575_v37, %v1572_v41 }
 0x287   : > { %15505 = vtanh.f32 %v1581_v43  ;;  %v1582_v45 = vsel %vm1530_vm7, %v16686_v38, %v1578_v44 }
 0x288   : > { %15507 = vtanh.f32 %v1582_v45 }
 0x28f   : > { %v15502_v46 = vpop.eup %15501 }
 0x290   : > { %v15504_v47 = vpop.eup %15503  ;;  %v1587_v48 = vmul.f32 %v15502_v46, %v16680_v59 }
 0x291   : > { %v15506_v49 = vpop.eup %15505  ;;  %v1588_v50 = vmul.f32 %v15504_v47, %v16682_v60 }
 0x292   : > { %v1589_v51 = vmul.f32 %v15506_v49, %v16684_v61  ;;  %1591 = vst [vmem:[#allocation2 + $0x8] sm:$0xff] %v1587_v48  ;;  %v15508_v52 = vpop.eup %15507 }
 0x293   : > { %1592 = vst [vmem:[#allocation2 + $0x10] sm:$0xff] %v1588_v50  ;;  %v1590_v53 = vmul.f32 %v15508_v52, %v16686_v38 }
 0x294   : > { %1593 = vst [vmem:[#allocation2 + $0x28] sm:$0xff] %v1589_v51 }
 0x295   : > { %1594 = vst [vmem:[#allocation2 + $0x30] sm:$0xff] %v1590_v53 }
 0x296 PF: > { %p1595_p7 = scmp.ge.s32.totalorder %s16362_s25, 1  ;;  %p1596_p13 = scmp.le.s32.totalorder %s16362_s25, 4 }
 0x298   : > { %p1597_p8 = pnand %p1596_p13, %p1595_p7 }
 0x299   : > { %v15509_v54 = vld [vmem:[%s16572_s18 + $0x40] sm:$0xff] (!%p1597_p8)   ;;  %v15510_v55 = vld [vmem:[%s16572_s18 + $0x48] sm:$0xff] (!%p1597_p8)   ;;  %v15511_v57 = vld [vmem:[%s16572_s18 + $0x50] sm:$0xff] (!%p1597_p8)   ;;  %s11129_s11 = sadd.s32 (!%p1597_p8), 4294967295, %s16362_s25 }
 0x29a   : > { %1600 = sbr.rel (%p1597_p8) target bundleno = 4929 (0x1341), region = 94  ;;  %13695 = vmatprep.subr.bf16.mxu0 (!%p1597_p8), %v15509_v54  ;;  %v15512_v58 = vld [vmem:[%s16572_s18 + $0x58] sm:$0xff] (!%p1597_p8)   ;;  %v1626_v59 = vld [vmem:[#allocation2 + $0x5] sm:$0xff] (!%p1597_p8)  ;;  %v1627_v60 = vld [vmem:[#allocation2 + $0xd] sm:$0xff] (!%p1597_p8) }
 0x29b   : > { %13696 = vmatpush3.bf16.msra.mxu0 (!%p1597_p8), %v15509_v54  ;;  %v1630_v61 = vpack.c.bf16 (!%p1597_p8), %v1627_v60, %v1626_v59  ;;  %v15513_v38 = vld [vmem:[%s16572_s18 + $0x60] sm:$0xff] (!%p1597_p8)   ;;  %v15514_v62 = vld [vmem:[%s16572_s18 + $0x68] sm:$0xff] (!%p1597_p8)   ;;  %v15515_v63 = vld [vmem:[%s16572_s18 + $0x70] sm:$0xff] (!%p1597_p8)   ;;  %s10788_s14 = smul.u32 (!%p1597_p8), 10, %s11129_s11 }
 0x29c   : > { %13697 = vmatprep.subr.bf16.mxu0 (!%p1597_p8), %v15510_v55  ;;  %v15516_v0 = vld [vmem:[%s16572_s18 + $0x78] sm:$0xff] (!%p1597_p8)   ;;  %v1628_v1 = vld [vmem:[#allocation2 + $0x25] sm:$0xff] (!%p1597_p8)  ;;  %v1629_v2 = vld [vmem:[#allocation2 + $0x2d] sm:$0xff] (!%p1597_p8) }
 0x29d   : > { %13711 = vmatprep.mubr.bf16.mxu0 (!%p1597_p8), %v1630_v61  ;;  %v15517_v3 = vld [vmem:[%s16572_s18] sm:$0xff] (!%p1597_p8)   ;;  %v1605_v5 = vld [vmem:[#allocation2 + $0xa] sm:$0xff] (!%p1597_p8)  ;;  %v1631_v6 = vpack.c.bf16 (!%p1597_p8), %v1629_v2, %v1628_v1  ;;  %v15520_v10 = vld [vmem:[%s16572_s18 + $0x18] sm:$0xff] (!%p1597_p8)   ;;  %s16765_s10 = scalar_lea.vmem (!%p1597_p8), [#allocation8], %s10788_s14  ;;  %s16770_s16 = scalar_lea.vmem (!%p1597_p8), [#allocation9], %s10788_s14 }
 0x29e   : > { %v1604_v4 = vld [vmem:[#allocation2 + $0x2] sm:$0xff] (!%p1597_p8)  ;;  %v15519_v9 = vld [vmem:[%s16572_s18 + $0x10] sm:$0xff] (!%p1597_p8)   ;;  %v15524_v14 = vld [vmem:[%s16572_s18 + $0x38] sm:$0xff] (!%p1597_p8)  }
 0x29f   : > { %13698 = vmatpush3.bf16.msra.mxu0 (!%p1597_p8), %v15510_v55  ;;  %v1608_v7 = vpack.c.bf16 (!%p1597_p8), %v1605_v5, %v1604_v4  ;;  %v15518_v8 = vld [vmem:[%s16572_s18 + $0x8] sm:$0xff] (!%p1597_p8)   ;;  %v15521_v11 = vld [vmem:[%s16572_s18 + $0x20] sm:$0xff] (!%p1597_p8)   ;;  %v15523_v13 = vld [vmem:[%s16572_s18 + $0x30] sm:$0xff] (!%p1597_p8)  }
 0x2a0   : > { %13699 = vmatprep.subr.bf16.mxu0 (!%p1597_p8), %v15511_v57  ;;  %v15522_v12 = vld [vmem:[%s16572_s18 + $0x28] sm:$0xff] (!%p1597_p8)   ;;  %v15525_v17 = vld [vmem:[%s16572_s18 + $0x80] sm:$0xff] (!%p1597_p8)   ;;  %v1844_v56 = vld [vmem:[#allocation2 + $0x10] sm:$0xff] (!%p1597_p8) }
 0x2a1   : > { %v1606_v15 = vld [vmem:[#allocation2 + $0x22] sm:$0xff]  ;;  %v1607_v16 = vld [vmem:[#allocation2 + $0x2a] sm:$0xff]  ;;  %v15528_v23 = vld [vmem:[%s16572_s18 + $0x98] sm:$0xff]  }
 0x2a2   : > { %v1843_v18 = vld [vmem:[#allocation2 + $0x8] sm:$0xff]  ;;  %v1609_v19 = vpack.c.bf16 %v1607_v16, %v1606_v15  ;;  %v15527_v22 = vld [vmem:[%s16572_s18 + $0x90] sm:$0xff]   ;;  %v15529_v24 = vld [vmem:[%s16572_s18 + $0xa0] sm:$0xff]  }
 0x2a3   : > { %13700 = vmatpush3.bf16.msra.mxu0 %v15511_v57  ;;  %v15526_v20 = vld [vmem:[%s16572_s18 + $0x88] sm:$0xff]   ;;  %v1847_v21 = vpack.c.bf16 %v1844_v56, %v1843_v18  ;;  %v15531_v26 = vld [vmem:[%s16572_s18 + $0xb0] sm:$0xff]   ;;  %v15532_v27 = vld [vmem:[%s16572_s18 + $0xb8] sm:$0xff]  }
 0x2a4   : > { %13701 = vmatprep.subr.bf16.mxu0 %v15512_v58  ;;  %v15530_v25 = vld [vmem:[%s16572_s18 + $0xa8] sm:$0xff]   ;;  %v1846_v29 = vld [vmem:[#allocation2 + $0x30] sm:$0xff]  ;;  %v15533_v30 = vld [vmem:[%s16572_s18 + $0xc0] sm:$0xff]  }
 0x2a5   : > { %v1845_v28 = vld [vmem:[#allocation2 + $0x28] sm:$0xff]  ;;  %v1968_v32 = vld [vmem:[#allocation2 + $0x13] sm:$0xff]  ;;  %v15537_v39 = vld [vmem:[%s16572_s18 + $0xe0] sm:$0xff]  }
 0x2a6   : > { %v1967_v31 = vld [vmem:[#allocation2 + $0xb] sm:$0xff]  ;;  %v1848_v33 = vpack.c.bf16 %v1846_v29, %v1845_v28  ;;  %v15536_v37 = vld [vmem:[%s16572_s18 + $0xd8] sm:$0xff]   ;;  %v15541_v45 = vld [vmem:[%s16572_s18 + $0x100] sm:$0xff]  }
 0x2a7   : > { %13702 = vmatpush3.bf16.msra.mxu0 %v15512_v58  ;;  %v15534_v34 = vld [vmem:[%s16572_s18 + $0xc8] sm:$0xff]   ;;  %v1971_v35 = vpack.c.bf16 %v1968_v32, %v1967_v31  ;;  %v15535_v36 = vld [vmem:[%s16572_s18 + $0xd0] sm:$0xff]   ;;  %v15540_v42 = vld [vmem:[%s16572_s18 + $0xf8] sm:$0xff]  }
 0x2a8   : > { %13703 = vmatprep.subr.bf16.mxu0 %v15513_v38  ;;  %v15538_v40 = vld [vmem:[%s16572_s18 + $0xe8] sm:$0xff]   ;;  %v15539_v41 = vld [vmem:[%s16572_s18 + $0xf0] sm:$0xff]   ;;  %v15544_v52 = vld [vmem:[%s16572_s18 + $0x118] sm:$0xff]  }
 0x2a9   : > { %v1969_v43 = vld [vmem:[#allocation2 + $0x2b] sm:$0xff]  ;;  %v1970_v44 = vld [vmem:[#allocation2 + $0x33] sm:$0xff]  ;;  %v15545_v53 = vld [vmem:[%s16572_s18 + $0x120] sm:$0xff]  }
 0x2aa   : > { %v2091_v46 = vld [vmem:[#allocation2 + $0xe] sm:$0xff]  ;;  %v2092_v47 = vld [vmem:[#allocation2 + $0x16] sm:$0xff]  ;;  %v1972_v48 = vpack.c.bf16 %v1970_v44, %v1969_v43  ;;  %v15549_v61 = vld [vmem:[%s16572_s18 + $0x180] sm:$0xff]  }
 0x2ab   : > { %13704 = vmatpush3.bf16.msra.mxu0 %v15513_v38  ;;  %v15542_v49 = vld [vmem:[%s16572_s18 + $0x108] sm:$0xff]   ;;  %v2095_v50 = vpack.c.bf16 %v2092_v47, %v2091_v46  ;;  %v15543_v51 = vld [vmem:[%s16572_s18 + $0x110] sm:$0xff]   ;;  %v15548_v57 = vld [vmem:[%s16572_s18 + $0x138] sm:$0xff]   ;;  %13795 = vmatprep.subr.bf16.mxu1 %v15549_v61 }
 0x2ac   : > { %13705 = vmatprep.subr.bf16.mxu0 %v15514_v62  ;;  %v15546_v54 = vld [vmem:[%s16572_s18 + $0x128] sm:$0xff]   ;;  %v15547_v55 = vld [vmem:[%s16572_s18 + $0x130] sm:$0xff]   ;;  %13796 = vmatpush3.bf16.msra.mxu1 %v15549_v61  ;;  %v16761_v4 = vld [vmem:[%s16572_s18 + $0x140] sm:$0xff]  }
 0x2ad   : > { %v2093_v58 = vld [vmem:[#allocation2 + $0x2e] sm:$0xff]  ;;  %v2094_v59 = vld [vmem:[#allocation2 + $0x36] sm:$0xff]  ;;  %v11235_v44 = vld [vmem:[%s16770_s16 + $0x1] sm:$0x1] }
 0x2ae   : > { %v2096_v60 = vpack.c.bf16 %v2094_v59, %v2093_v58  ;;  %v15550_v38 = vld [vmem:[%s16572_s18 + $0x188] sm:$0xff]   ;;  %v15555_v2 = vld [vmem:[%s16572_s18 + $0x1b0] sm:$0xff]  }
 0x2af   : > { %13706 = vmatpush3.bf16.msra.mxu0 %v15514_v62  ;;  %13797 = vmatprep.subr.bf16.mxu1 %v15550_v38  ;;  %v15551_v62 = vld [vmem:[%s16572_s18 + $0x190] sm:$0xff]   ;;  %v15554_v1 = vld [vmem:[%s16572_s18 + $0x1a8] sm:$0xff]  }
 0x2b0   : > { %13707 = vmatprep.subr.bf16.mxu0 %v15515_v63  ;;  %13798 = vmatpush3.bf16.msra.mxu1 %v15550_v38 }
 0x2b1   : > { %13799 = vmatprep.subr.bf16.mxu1 %v15551_v62 }
 0x2b3   : > { %13708 = vmatpush3.bf16.msra.mxu0 %v15515_v63  ;;  %v15552_v63 = vld [vmem:[%s16572_s18 + $0x198] sm:$0xff]  }
 0x2b4   : > { %13709 = vmatprep.subr.bf16.mxu0 %v15516_v0  ;;  %13800 = vmatpush3.bf16.msra.mxu1 %v15551_v62 }
 0x2b5   : > { %13801 = vmatprep.subr.bf16.mxu1 %v15552_v63 }
 0x2b7   : > { %13710 = vmatpush3.bf16.msra.mxu0 %v15516_v0  ;;  %v15553_v0 = vld [vmem:[%s16572_s18 + $0x1a0] sm:$0xff]  }
 0x2b8   : > { %13715 = vmatprep.subr.bf16.mxu0 %v15517_v3  ;;  %13802 = vmatpush3.bf16.msra.mxu1 %v15552_v63 }
 0x2b9   : > { %13803 = vmatprep.subr.bf16.mxu1 %v15553_v0 }
 0x2ba   : > { %13712 = vmatmul.mubr.bf16.vlgmr.msra.gmra.mrb[0].mxu0 %v1631_v6 }
 0x2bb   : > { %13716 = vmatpush3.bf16.msra.mxu0 %v15517_v3  ;;  %13731 = vmatprep.mubr.bf16.mxu0 %v1608_v7  ;;  %v15556_v3 = vld [vmem:[%s16572_s18 + $0x1b8] sm:$0xff]  }
 0x2bc   : > { %13717 = vmatprep.subr.bf16.mxu0 %v15518_v8  ;;  %13804 = vmatpush3.bf16.msra.mxu1 %v15553_v0 }
 0x2bd   : > { %13805 = vmatprep.subr.bf16.mxu1 %v15554_v1 }
 0x2bf   : > { %13718 = vmatpush3.bf16.msra.mxu0 %v15518_v8 }
 0x2c0   : > { %13719 = vmatprep.subr.bf16.mxu0 %v15519_v9  ;;  %13806 = vmatpush3.bf16.msra.mxu1 %v15554_v1 }
 0x2c1   : > { %13807 = vmatprep.subr.bf16.mxu1 %v15555_v2 }
 0x2c3   : > { %13720 = vmatpush3.bf16.msra.mxu0 %v15519_v9 }
 0x2c4   : > { %13721 = vmatprep.subr.bf16.mxu0 %v15520_v10  ;;  %13808 = vmatpush3.bf16.msra.mxu1 %v15555_v2 }
 0x2c5   : > { %13809 = vmatprep.subr.bf16.mxu1 %v15556_v3 }
 0x2c7   : > { %13722 = vmatpush3.bf16.msra.mxu0 %v15520_v10 }
 0x2c8   : > { %13723 = vmatprep.subr.bf16.mxu0 %v15521_v11  ;;  %13810 = vmatpush3.bf16.msra.mxu1 %v15556_v3 }
 0x2c9   : > { %13815 = vmatprep.subr.bf16.mxu1 %v16761_v4 }
 0x2cb   : > { %13724 = vmatpush3.bf16.msra.mxu0 %v15521_v11 }
 0x2cc   : > { %13725 = vmatprep.subr.bf16.mxu0 %v15522_v12 }
 0x2cf   : > { %13726 = vmatpush3.bf16.msra.mxu0 %v15522_v12 }
 0x2d0   : > { %13727 = vmatprep.subr.bf16.mxu0 %v15523_v13 }
 0x2d3   : > { %13728 = vmatpush3.bf16.msra.mxu0 %v15523_v13 }
 0x2d4   : > { %13729 = vmatprep.subr.bf16.mxu0 %v15524_v14 }
 0x2d7   : > { %13730 = vmatpush3.bf16.msra.mxu0 %v15524_v14 }
 0x2d8   : > { %13735 = vmatprep.subr.bf16.mxu0 %v15525_v17 }
 0x2da   : > { %13732 = vmatmul.mubr.bf16.vlgmr.msra.gmra.mrb[0].mxu0 %v1609_v19 }
 0x2db   : > { %13736 = vmatpush3.bf16.msra.mxu0 %v15525_v17  ;;  %13751 = vmatprep.mubr.bf16.mxu0 %v1847_v21 }
 0x2dc   : > { %13737 = vmatprep.subr.bf16.mxu0 %v15526_v20 }
 0x2df   : > { %13738 = vmatpush3.bf16.msra.mxu0 %v15526_v20 }
 0x2e0   : > { %13739 = vmatprep.subr.bf16.mxu0 %v15527_v22 }
 0x2e3   : > { %13740 = vmatpush3.bf16.msra.mxu0 %v15527_v22 }
 0x2e4   : > { %13741 = vmatprep.subr.bf16.mxu0 %v15528_v23 }
 0x2e7   : > { %13742 = vmatpush3.bf16.msra.mxu0 %v15528_v23 }
 0x2e8   : > { %13743 = vmatprep.subr.bf16.mxu0 %v15529_v24 }
 0x2eb   : > { %13744 = vmatpush3.bf16.msra.mxu0 %v15529_v24 }
 0x2ec   : > { %13745 = vmatprep.subr.bf16.mxu0 %v15530_v25 }
 0x2ef   : > { %13746 = vmatpush3.bf16.msra.mxu0 %v15530_v25 }
 0x2f0   : > { %13747 = vmatprep.subr.bf16.mxu0 %v15531_v26 }
 0x2f3   : > { %13748 = vmatpush3.bf16.msra.mxu0 %v15531_v26 }
 0x2f4   : > { %13749 = vmatprep.subr.bf16.mxu0 %v15532_v27 }
 0x2f7   : > { %13750 = vmatpush3.bf16.msra.mxu0 %v15532_v27 }
 0x2f8   : > { %13755 = vmatprep.subr.bf16.mxu0 %v15533_v30 }
 0x2fa   : > { %13752 = vmatmul.mubr.bf16.vlgmr.msra.gmra.mrb[0].mxu0 %v1848_v33 }
 0x2fb   : > { %13756 = vmatpush3.bf16.msra.mxu0 %v15533_v30  ;;  %13771 = vmatprep.mubr.bf16.mxu0 %v1971_v35 }
 0x2fc   : > { %13757 = vmatprep.subr.bf16.mxu0 %v15534_v34 }
 0x2ff   : > { %13758 = vmatpush3.bf16.msra.mxu0 %v15534_v34 }
 0x300   : > { %13759 = vmatprep.subr.bf16.mxu0 %v15535_v36 }
 0x303   : > { %13760 = vmatpush3.bf16.msra.mxu0 %v15535_v36 }
 0x304   : > { %13761 = vmatprep.subr.bf16.mxu0 %v15536_v37 }
 0x307   : > { %13762 = vmatpush3.bf16.msra.mxu0 %v15536_v37  ;;  %v2250_v37 = vlaneseq }
 0x308   : > { %13763 = vmatprep.subr.bf16.mxu0 %v15537_v39 }
 0x30b   : > { %13764 = vmatpush3.bf16.msra.mxu0 %v15537_v39  ;;  %v2251_v39 = vshrl.u32 %v2250_v37, 7 }
 0x30c   : > { %13765 = vmatprep.subr.bf16.mxu0 %v15538_v40 }
 0x30f   : > { %13766 = vmatpush3.bf16.msra.mxu0 %v15538_v40  ;;  %v11234_v40 = vld [vmem:[%s16765_s10 + $0x1] sm:$0x1] }
 0x310   : > { %13767 = vmatprep.subr.bf16.mxu0 %v15539_v41 }
 0x313   : > { %13768 = vmatpush3.bf16.msra.mxu0 %v15539_v41  ;;  %v16768_v41 = vsub.s32 0, %v2251_v39 }
 0x314   : > { %13769 = vmatprep.subr.bf16.mxu0 %v15540_v42 }
 0x317   : > { %13770 = vmatpush3.bf16.msra.mxu0 %v15540_v42 }
 0x318   : > { %13775 = vmatprep.subr.bf16.mxu0 %v15541_v45 }
 0x31a   : > { %13772 = vmatmul.mubr.bf16.vlgmr.msra.gmra.mrb[0].mxu0 %v1972_v48 }
 0x31b   : > { %13776 = vmatpush3.bf16.msra.mxu0 %v15541_v45  ;;  %13791 = vmatprep.mubr.bf16.mxu0 %v2095_v50 }
 0x31c   : > { %13777 = vmatprep.subr.bf16.mxu0 %v15542_v49 }
 0x31f   : > { %13778 = vmatpush3.bf16.msra.mxu0 %v15542_v49 }
 0x320   : > { %13779 = vmatprep.subr.bf16.mxu0 %v15543_v51 }
 0x323   : > { %13780 = vmatpush3.bf16.msra.mxu0 %v15543_v51 }
 0x324   : > { %13781 = vmatprep.subr.bf16.mxu0 %v15544_v52 }
 0x327   : > { %13782 = vmatpush3.bf16.msra.mxu0 %v15544_v52 }
 0x328   : > { %13783 = vmatprep.subr.bf16.mxu0 %v15545_v53 }
 0x32b   : > { %13784 = vmatpush3.bf16.msra.mxu0 %v15545_v53 }
 0x32c   : > { %13785 = vmatprep.subr.bf16.mxu0 %v15546_v54 }
 0x32f   : > { %13786 = vmatpush3.bf16.msra.mxu0 %v15546_v54 }
 0x330   : > { %13787 = vmatprep.subr.bf16.mxu0 %v15547_v55 }
 0x333   : > { %13788 = vmatpush3.bf16.msra.mxu0 %v15547_v55 }
 0x334   : > { %13789 = vmatprep.subr.bf16.mxu0 %v15548_v57 }
 0x337   : > { %13790 = vmatpush3.bf16.msra.mxu0 %v15548_v57 }
 0x33a   : > { %13792 = vmatmul.mubr.bf16.vlgmr.msra.gmra.mrb[0].mxu0 %v2096_v60 }
 0x40d   : > { %v13793_v5 = vpop.f32.mrb[0].mxu0 }
 0x40e   : > { %v2196_v6 = vpop.f32.mrb[1].mxu0 }
 0x40f   : > { %v13794_v7 = vpop.f32.mrb[2].mxu0 }
 0x410   : > { %v2199_v8 = vpop.f32.mrb[3].mxu0 }
 0x411   : > { %v2219_v9 = vadd.f32 %v2199_v8, %v2196_v6 }
 0x413   : > { %v2220_v10 = vadd.f32 %v13793_v5, %v2219_v9 }
 0x415   : > { %v2221_v11 = vadd.f32 %v13794_v7, %v2220_v10  ;;  %v15559_v10 = vld [vmem:[%s16572_s18 + $0x150] sm:$0xff]  }
 0x417   : > { %v2222_v12 = vrot.slane %v2221_v11, 4 }
 0x419   : > { %v2223_v13 = vadd.f32 %v2222_v12, %v2221_v11  ;;  %v15560_v11 = vld [vmem:[%s16572_s18 + $0x158] sm:$0xff]   ;;  %v15561_v12 = vld [vmem:[%s16572_s18 + $0x160] sm:$0xff]  }
 0x41b   : > { %v2224_v14 = vrot.slane %v2223_v13, 2 }
 0x41d   : > { %v2225_v15 = vadd.f32 %v2224_v14, %v2223_v13  ;;  %v15562_v13 = vld [vmem:[%s16572_s18 + $0x168] sm:$0xff]   ;;  %v15563_v14 = vld [vmem:[%s16572_s18 + $0x170] sm:$0xff]  }
 0x41f   : > { %v2226_v16 = vrot.slane %v2225_v15, 1 }
 0x421   : > { %v2227_v17 = vadd.f32 %v2226_v16, %v2225_v15  ;;  %v15565_v15 = vld [vmem:[%s16572_s18 + $0x1c0] sm:$0xff]  }
 0x423   : > { %v2228_v18 = vmul.f32 0.03125, %v2227_v17 }
 0x425   : > { %v2229_v56 = vsub.f32 %v2196_v6, %v2228_v18  ;;  %v2230_v19 = vsub.f32 %v2199_v8, %v2228_v18  ;;  %v2231_v20 = vsub.f32 %v13793_v5, %v2228_v18  ;;  %v2232_v21 = vsub.f32 %v13794_v7, %v2228_v18 }
 0x427   : > { %v2233_v22 = vmul.f32 %v2229_v56, %v2229_v56  ;;  %v2234_v23 = vmul.f32 %v2230_v19, %v2230_v19  ;;  %v2235_v24 = vmul.f32 %v2231_v20, %v2231_v20  ;;  %v2236_v26 = vmul.f32 %v2232_v21, %v2232_v21  ;;  %v15566_v56 = vld [vmem:[%s16572_s18 + $0x1c8] sm:$0xff]   ;;  %v15567_v19 = vld [vmem:[%s16572_s18 + $0x1d0] sm:$0xff]   ;;  %v15568_v20 = vld [vmem:[%s16572_s18 + $0x1d8] sm:$0xff]  }
 0x428   : > { %v15569_v21 = vld [vmem:[%s16572_s18 + $0x1e0] sm:$0xff]  }
 0x429   : > { %v2237_v25 = vadd.f32 %v2234_v23, %v2233_v22  ;;  %v15570_v22 = vld [vmem:[%s16572_s18 + $0x1e8] sm:$0xff]   ;;  %v15571_v23 = vld [vmem:[%s16572_s18 + $0x1f0] sm:$0xff]  }
 0x42b   : > { %v2238_v27 = vadd.f32 %v2237_v25, %v2235_v24  ;;  %v15572_v24 = vld [vmem:[%s16572_s18 + $0x1f8] sm:$0xff]   ;;  %v15573_v25 = vld [vmem:[%s16572_s18 + $0x200] sm:$0xff]  }
 0x42d   : > { %v2239_v28 = vadd.f32 %v2238_v27, %v2236_v26 }
 0x42f   : > { %v2240_v29 = vrot.slane %v2239_v28, 4 }
 0x431   : > { %v2241_v30 = vadd.f32 %v2240_v29, %v2239_v28  ;;  %v15574_v28 = vld [vmem:[%s16572_s18 + $0x208] sm:$0xff]  }
 0x433   : > { %v2242_v31 = vrot.slane %v2241_v30, 2 }
 0x435   : > { %v2243_v32 = vadd.f32 %v2242_v31, %v2241_v30  ;;  %v15575_v30 = vld [vmem:[%s16572_s18 + $0x210] sm:$0xff]   ;;  %v15576_v31 = vld [vmem:[%s16572_s18 + $0x218] sm:$0xff]  }
 0x437   : > { %v2244_v33 = vrot.slane %v2243_v32, 1 }
 0x439   : > { %v2245_v34 = vadd.f32 %v2244_v33, %v2243_v32  ;;  %v15577_v32 = vld [vmem:[%s16572_s18 + $0x220] sm:$0xff]   ;;  %v15578_v33 = vld [vmem:[%s16572_s18 + $0x228] sm:$0xff]  }
 0x43b   : > { %v2246_v35 = vmul.f32 0.03125, %v2245_v34  ;;  %v15579_v34 = vld [vmem:[%s16572_s18 + $0x230] sm:$0xff]  }
 0x43d   : > { %v2247_v36 = vadd.f32 1e-05, %v2246_v35  ;;  %v15580_v35 = vld [vmem:[%s16572_s18 + $0x238] sm:$0xff]  }
 0x43f   : > { %15909 = vrsqrt.f32 %v2247_v36  ;;  %v15581_v36 = vld [vmem:[%s16572_s18 + $0x240] sm:$0xff]  }
 0x449   : > { %v15910_v42 = vpop.eup %15909 }
 0x44a   : > { %v2249_v43 = vmul.f32 %v15910_v42, %v11234_v40 }
 0x44c   : > { %v2253_v45 = vrot.slane %v2249_v43, %v16768_v41  ;;  %v2258_v46 = vmul.f32 %v2249_v43, %v2228_v18 }
 0x44e   : > { %v2254_v47 = vmul.f32 %v2253_v45, %v2196_v6  ;;  %v2255_v48 = vmul.f32 %v2253_v45, %v2199_v8  ;;  %v2256_v49 = vmul.f32 %v13793_v5, %v2253_v45  ;;  %v2257_v50 = vmul.f32 %v13794_v7, %v2253_v45  ;;  %v15558_v8 = vld [vmem:[%s16572_s18 + $0x148] sm:$0xff]  }
 0x44f   : > { %v2259_v51 = vsub.f32 %v11235_v44, %v2258_v46  ;;  %v15582_v44 = vld [vmem:[%s16572_s18 + $0x248] sm:$0xff]   ;;  %v15583_v46 = vld [vmem:[%s16572_s18 + $0x250] sm:$0xff]  }
 0x451   : > { %v2263_v52 = vrot.slane %v2259_v51, %v16768_v41  ;;  %v15588_v51 = vld [vmem:[%s16572_s18 + $0x278] sm:$0xff]  }
 0x453   : > { %v2264_v53 = vadd.f32 %v2263_v52, %v2254_v47  ;;  %v2265_v54 = vadd.f32 %v2263_v52, %v2255_v48  ;;  %v2266_v55 = vadd.f32 %v2263_v52, %v2256_v49  ;;  %v2267_v57 = vadd.f32 %v2263_v52, %v2257_v50  ;;  %v15584_v47 = vld [vmem:[%s16572_s18 + $0x258] sm:$0xff]   ;;  %v15585_v48 = vld [vmem:[%s16572_s18 + $0x260] sm:$0xff]   ;;  %v15586_v49 = vld [vmem:[%s16572_s18 + $0x268] sm:$0xff]  }
 0x454   : > { %v15587_v50 = vld [vmem:[%s16572_s18 + $0x270] sm:$0xff]  }
 0x455   : > { %v2268_v58 = vmax.f32 %v2264_v53, 0.0  ;;  %v2269_v59 = vmax.f32 %v2265_v54, 0.0  ;;  %v2270_v60 = vmax.f32 %v2266_v55, 0.0  ;;  %v2271_v61 = vmax.f32 %v2267_v57, 0.0  ;;  %v15589_v55 = vld [vmem:[%s16572_s18 + $0x2c0] sm:$0xff]   ;;  %v15590_v57 = vld [vmem:[%s16572_s18 + $0x2c8] sm:$0xff]  }
 0x456   : > { %13895 = vmatprep.subr.bf16.mxu0 %v15589_v55 }
 0x457   : > { %2272 = vst [vmem:[#allocation2 + $0x8] sm:$0xff] %v2268_v58  ;;  %2273 = vst [vmem:[#allocation2 + $0x10] sm:$0xff] %v2269_v59  ;;  %v2520_v38 = vpack.c.bf16 %v2269_v59, %v2268_v58  ;;  %v16775_v62 = vpack.c.bf16 %v2271_v61, %v2270_v60  ;;  %13896 = vmatpush3.bf16.msra.mxu0 %v15589_v55  ;;  %v15591_v58 = vld [vmem:[%s16572_s18 + $0x2d0] sm:$0xff]   ;;  %v15592_v59 = vld [vmem:[%s16572_s18 + $0x2d8] sm:$0xff]  }
 0x458   : > { %2274 = vst [vmem:[#allocation2 + $0x28] sm:$0xff] %v2270_v60  ;;  %2275 = vst [vmem:[#allocation2 + $0x30] sm:$0xff] %v2271_v61  ;;  %13897 = vmatprep.subr.bf16.mxu0 %v15590_v57  ;;  %v15593_v60 = vld [vmem:[%s16572_s18 + $0x2e0] sm:$0xff]   ;;  %v15594_v61 = vld [vmem:[%s16572_s18 + $0x2e8] sm:$0xff]  }
 0x45b   : > { %13898 = vmatpush3.bf16.msra.mxu0 %v15590_v57 }
 0x45c   : > { %13899 = vmatprep.subr.bf16.mxu0 %v15591_v58 }
 0x45e   : > { %v2300_v63 = vld [vmem:[#allocation2 + $0xd] sm:$0xff]  ;;  %v2299_v2 = vld [vmem:[#allocation2 + $0x5] sm:$0xff]  ;;  %v2765_v42 = vld [vmem:[#allocation2 + $0x16] sm:$0xff] }
 0x45f   : > { %v2302_v0 = vld [vmem:[#allocation2 + $0x2d] sm:$0xff]  ;;  %v2303_v3 = vpack.c.bf16 %v2300_v63, %v2299_v2  ;;  %v2301_v5 = vld [vmem:[#allocation2 + $0x25] sm:$0xff]  ;;  %v2767_v53 = vld [vmem:[#allocation2 + $0x36] sm:$0xff]  ;;  %13900 = vmatpush3.bf16.msra.mxu0 %v15591_v58 }
 0x460   : > { %v2277_v1 = vld [vmem:[#allocation2 + $0xa] sm:$0xff]  ;;  %v2276_v6 = vld [vmem:[#allocation2 + $0x2] sm:$0xff]  ;;  %v2304_v7 = vpack.c.bf16 %v2302_v0, %v2301_v5  ;;  %v2641_v27 = vld [vmem:[#allocation2 + $0x13] sm:$0xff]  ;;  %13901 = vmatprep.subr.bf16.mxu0 %v15592_v59 }
 0x461   : > { %13811 = vmatprep.mubr.bf16.mxu1 %v2303_v3  ;;  %v2280_v9 = vpack.c.bf16 %v2277_v1, %v2276_v6  ;;  %v2279_v16 = vld [vmem:[#allocation2 + $0x2a] sm:$0xff]  ;;  %v2278_v17 = vld [vmem:[#allocation2 + $0x22] sm:$0xff]  ;;  %v2643_v39 = vld [vmem:[#allocation2 + $0x33] sm:$0xff] }
 0x462   : > { %13812 = vmatmul.mubr.bf16.vlgmr.msra.gmra.mrb[0].mxu1 %v2304_v7  ;;  %v2281_v18 = vpack.c.bf16 %v2279_v16, %v2278_v17  ;;  %v2640_v26 = vld [vmem:[#allocation2 + $0xb] sm:$0xff]  ;;  %v16819_v63 = vld [vmem:[%s16572_s18 + $0x280] sm:$0xff]  }
 0x463   : > { %13816 = vmatpush3.bf16.msra.mxu1 %v16761_v4  ;;  %13831 = vmatprep.mubr.bf16.mxu1 %v2280_v9  ;;  %v15564_v4 = vld [vmem:[%s16572_s18 + $0x178] sm:$0xff]   ;;  %v2644_v29 = vpack.c.bf16 %v2641_v27, %v2640_v26  ;;  %v2642_v37 = vld [vmem:[#allocation2 + $0x2b] sm:$0xff] }
 0x464   : > { %13817 = vmatprep.subr.bf16.mxu1 %v15558_v8  ;;  %v2764_v40 = vld [vmem:[#allocation2 + $0xe] sm:$0xff]  ;;  %v2645_v43 = vpack.c.bf16 %v2643_v39, %v2642_v37  ;;  %13902 = vmatpush3.bf16.msra.mxu0 %v15592_v59 }
 0x465   : > { %v2768_v45 = vpack.c.bf16 %v2765_v42, %v2764_v40  ;;  %v2766_v52 = vld [vmem:[#allocation2 + $0x2e] sm:$0xff]  ;;  %13903 = vmatprep.subr.bf16.mxu0 %v15593_v60 }
 0x466   : > { %v2769_v54 = vpack.c.bf16 %v2767_v53, %v2766_v52 }
 0x467   : > { %13818 = vmatpush3.bf16.msra.mxu1 %v15558_v8 }
 0x468   : > { %13819 = vmatprep.subr.bf16.mxu1 %v15559_v10  ;;  %13904 = vmatpush3.bf16.msra.mxu0 %v15593_v60 }
 0x469   : > { %13905 = vmatprep.subr.bf16.mxu0 %v15594_v61 }
 0x46b   : > { %13820 = vmatpush3.bf16.msra.mxu1 %v15559_v10 }
 0x46c   : > { %13821 = vmatprep.subr.bf16.mxu1 %v15560_v11  ;;  %13906 = vmatpush3.bf16.msra.mxu0 %v15594_v61 }
 0x46f   : > { %13822 = vmatpush3.bf16.msra.mxu1 %v15560_v11 }
 0x470   : > { %13823 = vmatprep.subr.bf16.mxu1 %v15561_v12 }
 0x473   : > { %13824 = vmatpush3.bf16.msra.mxu1 %v15561_v12 }
 0x474   : > { %13825 = vmatprep.subr.bf16.mxu1 %v15562_v13 }
 0x477   : > { %13826 = vmatpush3.bf16.msra.mxu1 %v15562_v13 }
 0x478   : > { %13827 = vmatprep.subr.bf16.mxu1 %v15563_v14 }
 0x47b   : > { %13828 = vmatpush3.bf16.msra.mxu1 %v15563_v14 }
 0x47c   : > { %13829 = vmatprep.subr.bf16.mxu1 %v15564_v4 }
 0x47f   : > { %13830 = vmatpush3.bf16.msra.mxu1 %v15564_v4 }
 0x480   : > { %13835 = vmatprep.subr.bf16.mxu1 %v15565_v15 }
 0x482   : > { %13832 = vmatmul.mubr.bf16.vlgmr.msra.gmra.mrb[0].mxu1 %v2281_v18 }
 0x483   : > { %13836 = vmatpush3.bf16.msra.mxu1 %v15565_v15  ;;  %13851 = vmatprep.mubr.bf16.mxu1 %v2520_v38  ;;  %v15595_v38 = vld [vmem:[%s16572_s18 + $0x2f0] sm:$0xff]  }
 0x484   : > { %13837 = vmatprep.subr.bf16.mxu1 %v15566_v56  ;;  %13907 = vmatprep.subr.bf16.mxu0 %v15595_v38 }
 0x485   : > { %13908 = vmatpush3.bf16.msra.mxu0 %v15595_v38 }
 0x487   : > { %13838 = vmatpush3.bf16.msra.mxu1 %v15566_v56 }
 0x488   : > { %13839 = vmatprep.subr.bf16.mxu1 %v15567_v19 }
 0x48b   : > { %13840 = vmatpush3.bf16.msra.mxu1 %v15567_v19 }
 0x48c   : > { %13841 = vmatprep.subr.bf16.mxu1 %v15568_v20 }
 0x48f   : > { %13842 = vmatpush3.bf16.msra.mxu1 %v15568_v20 }
 0x490   : > { %13843 = vmatprep.subr.bf16.mxu1 %v15569_v21 }
 0x493   : > { %13844 = vmatpush3.bf16.msra.mxu1 %v15569_v21 }
 0x494   : > { %13845 = vmatprep.subr.bf16.mxu1 %v15570_v22 }
 0x497   : > { %13846 = vmatpush3.bf16.msra.mxu1 %v15570_v22 }
 0x498   : > { %13847 = vmatprep.subr.bf16.mxu1 %v15571_v23 }
 0x49b   : > { %13848 = vmatpush3.bf16.msra.mxu1 %v15571_v23 }
 0x49c   : > { %13849 = vmatprep.subr.bf16.mxu1 %v15572_v24 }
 0x49f   : > { %13850 = vmatpush3.bf16.msra.mxu1 %v15572_v24 }
 0x4a0   : > { %13855 = vmatprep.subr.bf16.mxu1 %v15573_v25 }
 0x4a2   : > { %13852 = vmatmul.mubr.bf16.vlgmr.msra.gmra.mrb[0].mxu1 %v16775_v62  ;;  %v15596_v62 = vld [vmem:[%s16572_s18 + $0x2f8] sm:$0xff]  }
 0x4a3   : > { %13856 = vmatpush3.bf16.msra.mxu1 %v15573_v25  ;;  %13871 = vmatprep.mubr.bf16.mxu1 %v2644_v29 }
 0x4a4   : > { %13857 = vmatprep.subr.bf16.mxu1 %v15574_v28  ;;  %13909 = vmatprep.subr.bf16.mxu0 %v15596_v62 }
 0x4a5   : > { %13910 = vmatpush3.bf16.msra.mxu0 %v15596_v62 }
 0x4a6   : > { %13915 = vmatprep.subr.bf16.mxu0 %v16819_v63 }
 0x4a7   : > { %13858 = vmatpush3.bf16.msra.mxu1 %v15574_v28 }
 0x4a8   : > { %13859 = vmatprep.subr.bf16.mxu1 %v15575_v30 }
 0x4ab   : > { %13860 = vmatpush3.bf16.msra.mxu1 %v15575_v30 }
 0x4ac   : > { %13861 = vmatprep.subr.bf16.mxu1 %v15576_v31 }
 0x4af   : > { %13862 = vmatpush3.bf16.msra.mxu1 %v15576_v31 }
 0x4b0   : > { %13863 = vmatprep.subr.bf16.mxu1 %v15577_v32 }
 0x4b3   : > { %13864 = vmatpush3.bf16.msra.mxu1 %v15577_v32  ;;  %v11356_v32 = vld [vmem:[%s16765_s10 + $0x2] sm:$0x1] }
 0x4b4   : > { %13865 = vmatprep.subr.bf16.mxu1 %v15578_v33 }
 0x4b7   : > { %13866 = vmatpush3.bf16.msra.mxu1 %v15578_v33 }
 0x4b8   : > { %13867 = vmatprep.subr.bf16.mxu1 %v15579_v34 }
 0x4bb   : > { %13868 = vmatpush3.bf16.msra.mxu1 %v15579_v34 }
 0x4bc   : > { %13869 = vmatprep.subr.bf16.mxu1 %v15580_v35 }
 0x4bf   : > { %13870 = vmatpush3.bf16.msra.mxu1 %v15580_v35  ;;  %v11357_v35 = vld [vmem:[%s16770_s16 + $0x2] sm:$0x1] }
 0x4c0   : > { %13875 = vmatprep.subr.bf16.mxu1 %v15581_v36 }
 0x4c2   : > { %13872 = vmatmul.mubr.bf16.vlgmr.msra.gmra.mrb[0].mxu1 %v2645_v43 }
 0x4c3   : > { %13876 = vmatpush3.bf16.msra.mxu1 %v15581_v36  ;;  %13891 = vmatprep.mubr.bf16.mxu1 %v2768_v45 }
 0x4c4   : > { %13877 = vmatprep.subr.bf16.mxu1 %v15582_v44 }
 0x4c7   : > { %13878 = vmatpush3.bf16.msra.mxu1 %v15582_v44 }
 0x4c8   : > { %13879 = vmatprep.subr.bf16.mxu1 %v15583_v46 }
 0x4cb   : > { %13880 = vmatpush3.bf16.msra.mxu1 %v15583_v46 }
 0x4cc   : > { %13881 = vmatprep.subr.bf16.mxu1 %v15584_v47 }
 0x4cf   : > { %13882 = vmatpush3.bf16.msra.mxu1 %v15584_v47 }
 0x4d0   : > { %13883 = vmatprep.subr.bf16.mxu1 %v15585_v48 }
 0x4d3   : > { %13884 = vmatpush3.bf16.msra.mxu1 %v15585_v48 }
 0x4d4   : > { %13885 = vmatprep.subr.bf16.mxu1 %v15586_v49 }
 0x4d7   : > { %13886 = vmatpush3.bf16.msra.mxu1 %v15586_v49 }
 0x4d8   : > { %13887 = vmatprep.subr.bf16.mxu1 %v15587_v50 }
 0x4db   : > { %13888 = vmatpush3.bf16.msra.mxu1 %v15587_v50 }
 0x4dc   : > { %13889 = vmatprep.subr.bf16.mxu1 %v15588_v51 }
 0x4df   : > { %13890 = vmatpush3.bf16.msra.mxu1 %v15588_v51 }
 0x4e2   : > { %13892 = vmatmul.mubr.bf16.vlgmr.msra.gmra.mrb[0].mxu1 %v2769_v54 }
 0x5b5   : > { %v13893_v0 = vpop.f32.mrb[0].mxu1 }
 0x5b6   : > { %v2869_v1 = vpop.f32.mrb[1].mxu1 }
 0x5b7   : > { %v13894_v2 = vpop.f32.mrb[2].mxu1 }
 0x5b8   : > { %v2872_v3 = vpop.f32.mrb[3].mxu1 }
 0x5b9   : > { %v2893_v5 = vadd.f32 %v2872_v3, %v2869_v1 }
 0x5bb   : > { %v2894_v6 = vadd.f32 %v13893_v0, %v2893_v5  ;;  %v15600_v5 = vld [vmem:[%s16572_s18 + $0x298] sm:$0xff]  }
 0x5bd   : > { %v2895_v7 = vadd.f32 %v13894_v2, %v2894_v6  ;;  %v15601_v6 = vld [vmem:[%s16572_s18 + $0x2a0] sm:$0xff]  }
 0x5bf   : > { %v2896_v8 = vrot.slane %v2895_v7, 4 }
 0x5c1   : > { %v2897_v9 = vadd.f32 %v2896_v8, %v2895_v7  ;;  %v15602_v7 = vld [vmem:[%s16572_s18 + $0x2a8] sm:$0xff]   ;;  %v15603_v8 = vld [vmem:[%s16572_s18 + $0x2b0] sm:$0xff]  }
 0x5c3   : > { %v2898_v10 = vrot.slane %v2897_v9, 2 }
 0x5c5   : > { %v2899_v11 = vadd.f32 %v2898_v10, %v2897_v9  ;;  %v15605_v9 = vld [vmem:[%s16572_s18 + $0x300] sm:$0xff]  }
 0x5c7   : > { %v2900_v12 = vrot.slane %v2899_v11, 1 }
 0x5c9   : > { %v2901_v13 = vadd.f32 %v2900_v12, %v2899_v11 }
 0x5cb   : > { %v2902_v14 = vmul.f32 0.03125, %v2901_v13  ;;  %v15606_v13 = vld [vmem:[%s16572_s18 + $0x308] sm:$0xff]  }
 0x5cd   : > { %v2903_v4 = vsub.f32 %v2869_v1, %v2902_v14  ;;  %v2904_v15 = vsub.f32 %v2872_v3, %v2902_v14  ;;  %v2905_v16 = vsub.f32 %v13893_v0, %v2902_v14  ;;  %v2906_v17 = vsub.f32 %v13894_v2, %v2902_v14 }
 0x5cf   : > { %v2907_v18 = vmul.f32 %v2903_v4, %v2903_v4  ;;  %v2908_v56 = vmul.f32 %v2904_v15, %v2904_v15  ;;  %v2909_v19 = vmul.f32 %v2905_v16, %v2905_v16  ;;  %v2910_v21 = vmul.f32 %v2906_v17, %v2906_v17  ;;  %v15608_v4 = vld [vmem:[%s16572_s18 + $0x318] sm:$0xff]   ;;  %v15609_v15 = vld [vmem:[%s16572_s18 + $0x320] sm:$0xff]   ;;  %v15610_v16 = vld [vmem:[%s16572_s18 + $0x328] sm:$0xff]  }
 0x5d0   : > { %v15611_v17 = vld [vmem:[%s16572_s18 + $0x330] sm:$0xff]  }
 0x5d1   : > { %v2911_v20 = vadd.f32 %v2908_v56, %v2907_v18  ;;  %v15612_v18 = vld [vmem:[%s16572_s18 + $0x338] sm:$0xff]   ;;  %v15613_v56 = vld [vmem:[%s16572_s18 + $0x340] sm:$0xff]  }
 0x5d3   : > { %v2912_v22 = vadd.f32 %v2911_v20, %v2909_v19 }
 0x5d5   : > { %v2913_v23 = vadd.f32 %v2912_v22, %v2910_v21  ;;  %v15614_v21 = vld [vmem:[%s16572_s18 + $0x348] sm:$0xff]  }
 0x5d7   : > { %v2914_v24 = vrot.slane %v2913_v23, 4 }
 0x5d9   : > { %v2915_v25 = vadd.f32 %v2914_v24, %v2913_v23  ;;  %v15615_v23 = vld [vmem:[%s16572_s18 + $0x350] sm:$0xff]   ;;  %v15616_v24 = vld [vmem:[%s16572_s18 + $0x358] sm:$0xff]  }
 0x5db   : > { %v2916_v26 = vrot.slane %v2915_v25, 2 }
 0x5dd   : > { %v2917_v27 = vadd.f32 %v2916_v26, %v2915_v25  ;;  %v15617_v25 = vld [vmem:[%s16572_s18 + $0x360] sm:$0xff]   ;;  %v15618_v26 = vld [vmem:[%s16572_s18 + $0x368] sm:$0xff]  }
 0x5df   : > { %v2918_v28 = vrot.slane %v2917_v27, 1 }
 0x5e1   : > { %v2919_v29 = vadd.f32 %v2918_v28, %v2917_v27  ;;  %v15619_v27 = vld [vmem:[%s16572_s18 + $0x370] sm:$0xff]   ;;  %v15620_v28 = vld [vmem:[%s16572_s18 + $0x378] sm:$0xff]  }
 0x5e3   : > { %v2920_v30 = vmul.f32 0.03125, %v2919_v29  ;;  %v15621_v29 = vld [vmem:[%s16572_s18 + $0x380] sm:$0xff]  }
 0x5e5   : > { %v2921_v31 = vadd.f32 1e-05, %v2920_v30 }
 0x5e7   : > { %15911 = vrsqrt.f32 %v2921_v31 }
 0x5f1   : > { %v15912_v33 = vpop.eup %15911 }
 0x5f2   : > { %v2923_v34 = vmul.f32 %v15912_v33, %v11356_v32 }
 0x5f4   : > { %v2927_v36 = vrot.slane %v2923_v34, %v16768_v41  ;;  %v2932_v37 = vmul.f32 %v2923_v34, %v2902_v14  ;;  %v15607_v14 = vld [vmem:[%s16572_s18 + $0x310] sm:$0xff]  }
 0x5f6   : > { %v2928_v39 = vmul.f32 %v2927_v36, %v2869_v1  ;;  %v2929_v40 = vmul.f32 %v2927_v36, %v2872_v3  ;;  %v2930_v42 = vmul.f32 %v13893_v0, %v2927_v36  ;;  %v2931_v43 = vmul.f32 %v13894_v2, %v2927_v36  ;;  %v15598_v1 = vld [vmem:[%s16572_s18 + $0x288] sm:$0xff]   ;;  %v15599_v3 = vld [vmem:[%s16572_s18 + $0x290] sm:$0xff]  }
 0x5f7   : > { %v2933_v44 = vsub.f32 %v11357_v35, %v2932_v37  ;;  %v15622_v35 = vld [vmem:[%s16572_s18 + $0x388] sm:$0xff]   ;;  %v15623_v37 = vld [vmem:[%s16572_s18 + $0x390] sm:$0xff]  }
 0x5f9   : > { %v2937_v45 = vrot.slane %v2933_v44, %v16768_v41  ;;  %v15628_v44 = vld [vmem:[%s16572_s18 + $0x3b8] sm:$0xff]  }
 0x5fb   : > { %v2938_v46 = vadd.f32 %v2937_v45, %v2928_v39  ;;  %v2939_v47 = vadd.f32 %v2937_v45, %v2929_v40  ;;  %v2940_v48 = vadd.f32 %v2937_v45, %v2930_v42  ;;  %v2941_v49 = vadd.f32 %v2937_v45, %v2931_v43  ;;  %v15624_v39 = vld [vmem:[%s16572_s18 + $0x398] sm:$0xff]   ;;  %v15625_v40 = vld [vmem:[%s16572_s18 + $0x3a0] sm:$0xff]   ;;  %v15626_v42 = vld [vmem:[%s16572_s18 + $0x3a8] sm:$0xff]  }
 0x5fc   : > { %v15627_v43 = vld [vmem:[%s16572_s18 + $0x3b0] sm:$0xff]  }
 0x5fd   : > { %v2942_v50 = vmax.f32 %v2938_v46, 0.0  ;;  %v2943_v51 = vmax.f32 %v2939_v47, 0.0  ;;  %v2944_v52 = vmax.f32 %v2940_v48, 0.0  ;;  %v2945_v53 = vmax.f32 %v2941_v49, 0.0  ;;  %v15629_v48 = vld [vmem:[%s16572_s18 + $0x400] sm:$0xff]   ;;  %v15630_v49 = vld [vmem:[%s16572_s18 + $0x408] sm:$0xff]  }
 0x5fe   : > { %13995 = vmatprep.subr.bf16.mxu1 %v15629_v48 }
 0x5ff   : > { %2946 = vst [vmem:[#allocation2 + $0x8] sm:$0xff] %v2942_v50  ;;  %2947 = vst [vmem:[#allocation2 + $0x10] sm:$0xff] %v2943_v51  ;;  %v3194_v54 = vpack.c.bf16 %v2943_v51, %v2942_v50  ;;  %v16826_v55 = vpack.c.bf16 %v2945_v53, %v2944_v52  ;;  %13996 = vmatpush3.bf16.msra.mxu1 %v15629_v48  ;;  %v15631_v50 = vld [vmem:[%s16572_s18 + $0x410] sm:$0xff]   ;;  %v15632_v51 = vld [vmem:[%s16572_s18 + $0x418] sm:$0xff]  }
 0x600   : > { %2948 = vst [vmem:[#allocation2 + $0x28] sm:$0xff] %v2944_v52  ;;  %2949 = vst [vmem:[#allocation2 + $0x30] sm:$0xff] %v2945_v53  ;;  %13997 = vmatprep.subr.bf16.mxu1 %v15630_v49  ;;  %v15633_v52 = vld [vmem:[%s16572_s18 + $0x420] sm:$0xff]   ;;  %v15634_v53 = vld [vmem:[%s16572_s18 + $0x428] sm:$0xff]  }
 0x603   : > { %13998 = vmatpush3.bf16.msra.mxu1 %v15630_v49 }
 0x604   : > { %13999 = vmatprep.subr.bf16.mxu1 %v15631_v50 }
 0x606   : > { %v2973_v57 = vld [vmem:[#allocation2 + $0x5] sm:$0xff]  ;;  %v2974_v58 = vld [vmem:[#allocation2 + $0xd] sm:$0xff]  ;;  %v3439_v33 = vld [vmem:[#allocation2 + $0x16] sm:$0xff] }
 0x607   : > { %v2975_v59 = vld [vmem:[#allocation2 + $0x25] sm:$0xff]  ;;  %v2977_v60 = vpack.c.bf16 %v2974_v58, %v2973_v57  ;;  %v2976_v61 = vld [vmem:[#allocation2 + $0x2d] sm:$0xff]  ;;  %v3441_v46 = vld [vmem:[#allocation2 + $0x36] sm:$0xff]  ;;  %14000 = vmatpush3.bf16.msra.mxu1 %v15631_v50 }
 0x608   : > { %v2950_v38 = vld [vmem:[#allocation2 + $0x2] sm:$0xff]  ;;  %v2951_v62 = vld [vmem:[#allocation2 + $0xa] sm:$0xff]  ;;  %v2978_v0 = vpack.c.bf16 %v2976_v61, %v2975_v59  ;;  %v3315_v20 = vld [vmem:[#allocation2 + $0x13] sm:$0xff]  ;;  %14001 = vmatprep.subr.bf16.mxu1 %v15632_v51 }
 0x609   : > { %13911 = vmatprep.mubr.bf16.mxu0 %v2977_v60  ;;  %v2954_v2 = vpack.c.bf16 %v2951_v62, %v2950_v38  ;;  %v2952_v10 = vld [vmem:[#allocation2 + $0x22] sm:$0xff]  ;;  %v2953_v11 = vld [vmem:[#allocation2 + $0x2a] sm:$0xff]  ;;  %v3317_v31 = vld [vmem:[#allocation2 + $0x33] sm:$0xff] }
 0x60a   : > { %13912 = vmatmul.mubr.bf16.vlgmr.msra.gmra.mrb[4].mxu0 %v2978_v0  ;;  %v2955_v12 = vpack.c.bf16 %v2953_v11, %v2952_v10  ;;  %v3314_v19 = vld [vmem:[#allocation2 + $0xb] sm:$0xff]  ;;  %v16870_v57 = vld [vmem:[%s16572_s18 + $0x3c0] sm:$0xff]  }
 0x60b   : > { %13916 = vmatpush3.bf16.msra.mxu0 %v16819_v63  ;;  %13931 = vmatprep.mubr.bf16.mxu0 %v2954_v2  ;;  %v15604_v63 = vld [vmem:[%s16572_s18 + $0x2b8] sm:$0xff]   ;;  %v3318_v22 = vpack.c.bf16 %v3315_v20, %v3314_v19  ;;  %v3316_v30 = vld [vmem:[#allocation2 + $0x2b] sm:$0xff] }
 0x60c   : > { %13917 = vmatprep.subr.bf16.mxu0 %v15598_v1  ;;  %v3438_v32 = vld [vmem:[#allocation2 + $0xe] sm:$0xff]  ;;  %v3319_v34 = vpack.c.bf16 %v3317_v31, %v3316_v30  ;;  %14002 = vmatpush3.bf16.msra.mxu1 %v15632_v51 }
 0x60d   : > { %v3442_v36 = vpack.c.bf16 %v3439_v33, %v3438_v32  ;;  %v3440_v45 = vld [vmem:[#allocation2 + $0x2e] sm:$0xff]  ;;  %14003 = vmatprep.subr.bf16.mxu1 %v15633_v52 }
 0x60e   : > { %v3443_v47 = vpack.c.bf16 %v3441_v46, %v3440_v45 }
 0x60f   : > { %13918 = vmatpush3.bf16.msra.mxu0 %v15598_v1 }
 0x610   : > { %13919 = vmatprep.subr.bf16.mxu0 %v15599_v3  ;;  %14004 = vmatpush3.bf16.msra.mxu1 %v15633_v52 }
 0x611   : > { %14005 = vmatprep.subr.bf16.mxu1 %v15634_v53 }
 0x613   : > { %13920 = vmatpush3.bf16.msra.mxu0 %v15599_v3 }
 0x614   : > { %13921 = vmatprep.subr.bf16.mxu0 %v15600_v5  ;;  %14006 = vmatpush3.bf16.msra.mxu1 %v15634_v53 }
 0x617   : > { %13922 = vmatpush3.bf16.msra.mxu0 %v15600_v5 }
 0x618   : > { %13923 = vmatprep.subr.bf16.mxu0 %v15601_v6 }
 0x61b   : > { %13924 = vmatpush3.bf16.msra.mxu0 %v15601_v6 }
 0x61c   : > { %13925 = vmatprep.subr.bf16.mxu0 %v15602_v7 }
 0x61f   : > { %13926 = vmatpush3.bf16.msra.mxu0 %v15602_v7 }
 0x620   : > { %13927 = vmatprep.subr.bf16.mxu0 %v15603_v8 }
 0x623   : > { %13928 = vmatpush3.bf16.msra.mxu0 %v15603_v8 }
 0x624   : > { %13929 = vmatprep.subr.bf16.mxu0 %v15604_v63 }
 0x627   : > { %13930 = vmatpush3.bf16.msra.mxu0 %v15604_v63 }
 0x628   : > { %13935 = vmatprep.subr.bf16.mxu0 %v15605_v9 }
 0x62a   : > { %13932 = vmatmul.mubr.bf16.vlgmr.msra.gmra.mrb[4].mxu0 %v2955_v12 }
 0x62b   : > { %13936 = vmatpush3.bf16.msra.mxu0 %v15605_v9  ;;  %13951 = vmatprep.mubr.bf16.mxu0 %v3194_v54  ;;  %v15635_v54 = vld [vmem:[%s16572_s18 + $0x430] sm:$0xff]  }
 0x62c   : > { %13937 = vmatprep.subr.bf16.mxu0 %v15606_v13  ;;  %14007 = vmatprep.subr.bf16.mxu1 %v15635_v54 }
 0x62d   : > { %14008 = vmatpush3.bf16.msra.mxu1 %v15635_v54 }
 0x62f   : > { %13938 = vmatpush3.bf16.msra.mxu0 %v15606_v13 }
 0x630   : > { %13939 = vmatprep.subr.bf16.mxu0 %v15607_v14 }
 0x633   : > { %13940 = vmatpush3.bf16.msra.mxu0 %v15607_v14 }
 0x634   : > { %13941 = vmatprep.subr.bf16.mxu0 %v15608_v4 }
 0x637   : > { %13942 = vmatpush3.bf16.msra.mxu0 %v15608_v4 }
 0x638   : > { %13943 = vmatprep.subr.bf16.mxu0 %v15609_v15 }
 0x63b   : > { %13944 = vmatpush3.bf16.msra.mxu0 %v15609_v15 }
 0x63c   : > { %13945 = vmatprep.subr.bf16.mxu0 %v15610_v16 }
 0x63f   : > { %13946 = vmatpush3.bf16.msra.mxu0 %v15610_v16 }
 0x640   : > { %13947 = vmatprep.subr.bf16.mxu0 %v15611_v17 }
 0x643   : > { %13948 = vmatpush3.bf16.msra.mxu0 %v15611_v17 }
 0x644   : > { %13949 = vmatprep.subr.bf16.mxu0 %v15612_v18 }
 0x647   : > { %13950 = vmatpush3.bf16.msra.mxu0 %v15612_v18 }
 0x648   : > { %13955 = vmatprep.subr.bf16.mxu0 %v15613_v56 }
 0x64a   : > { %13952 = vmatmul.mubr.bf16.vlgmr.msra.gmra.mrb[4].mxu0 %v16826_v55  ;;  %v15636_v55 = vld [vmem:[%s16572_s18 + $0x438] sm:$0xff]  }
 0x64b   : > { %13956 = vmatpush3.bf16.msra.mxu0 %v15613_v56  ;;  %13971 = vmatprep.mubr.bf16.mxu0 %v3318_v22 }
 0x64c   : > { %13957 = vmatprep.subr.bf16.mxu0 %v15614_v21  ;;  %14009 = vmatprep.subr.bf16.mxu1 %v15636_v55 }
 0x64d   : > { %14010 = vmatpush3.bf16.msra.mxu1 %v15636_v55 }
 0x64e   : > { %14015 = vmatprep.subr.bf16.mxu1 %v16870_v57 }
 0x64f   : > { %13958 = vmatpush3.bf16.msra.mxu0 %v15614_v21 }
 0x650   : > { %13959 = vmatprep.subr.bf16.mxu0 %v15615_v23 }
 0x653   : > { %13960 = vmatpush3.bf16.msra.mxu0 %v15615_v23 }
 0x654   : > { %13961 = vmatprep.subr.bf16.mxu0 %v15616_v24 }
 0x657   : > { %13962 = vmatpush3.bf16.msra.mxu0 %v15616_v24 }
 0x658   : > { %13963 = vmatprep.subr.bf16.mxu0 %v15617_v25 }
 0x65b   : > { %13964 = vmatpush3.bf16.msra.mxu0 %v15617_v25  ;;  %v11478_v25 = vld [vmem:[%s16765_s10 + $0x3] sm:$0x1] }
 0x65c   : > { %13965 = vmatprep.subr.bf16.mxu0 %v15618_v26 }
 0x65f   : > { %13966 = vmatpush3.bf16.msra.mxu0 %v15618_v26 }
 0x660   : > { %13967 = vmatprep.subr.bf16.mxu0 %v15619_v27 }
 0x663   : > { %13968 = vmatpush3.bf16.msra.mxu0 %v15619_v27 }
 0x664   : > { %13969 = vmatprep.subr.bf16.mxu0 %v15620_v28 }
 0x667   : > { %13970 = vmatpush3.bf16.msra.mxu0 %v15620_v28  ;;  %v11479_v28 = vld [vmem:[%s16770_s16 + $0x3] sm:$0x1] }
 0x668   : > { %13975 = vmatprep.subr.bf16.mxu0 %v15621_v29 }
 0x66a   : > { %13972 = vmatmul.mubr.bf16.vlgmr.msra.gmra.mrb[4].mxu0 %v3319_v34 }
 0x66b   : > { %13976 = vmatpush3.bf16.msra.mxu0 %v15621_v29  ;;  %13991 = vmatprep.mubr.bf16.mxu0 %v3442_v36 }
 0x66c   : > { %13977 = vmatprep.subr.bf16.mxu0 %v15622_v35 }
 0x66f   : > { %13978 = vmatpush3.bf16.msra.mxu0 %v15622_v35 }
 0x670   : > { %13979 = vmatprep.subr.bf16.mxu0 %v15623_v37 }
 0x673   : > { %13980 = vmatpush3.bf16.msra.mxu0 %v15623_v37 }
 0x674   : > { %13981 = vmatprep.subr.bf16.mxu0 %v15624_v39 }
 0x677   : > { %13982 = vmatpush3.bf16.msra.mxu0 %v15624_v39 }
 0x678   : > { %13983 = vmatprep.subr.bf16.mxu0 %v15625_v40 }
 0x67b   : > { %13984 = vmatpush3.bf16.msra.mxu0 %v15625_v40 }
 0x67c   : > { %13985 = vmatprep.subr.bf16.mxu0 %v15626_v42 }
 0x67f   : > { %13986 = vmatpush3.bf16.msra.mxu0 %v15626_v42 }
 0x680   : > { %13987 = vmatprep.subr.bf16.mxu0 %v15627_v43 }
 0x683   : > { %13988 = vmatpush3.bf16.msra.mxu0 %v15627_v43 }
 0x684   : > { %13989 = vmatprep.subr.bf16.mxu0 %v15628_v44 }
 0x687   : > { %13990 = vmatpush3.bf16.msra.mxu0 %v15628_v44 }
 0x68a   : > { %13992 = vmatmul.mubr.bf16.vlgmr.msra.gmra.mrb[4].mxu0 %v3443_v47 }
 0x75d   : > { %v13993_v58 = vpop.f32.mrb[4].mxu0 }
 0x75e   : > { %v3543_v59 = vpop.f32.mrb[5].mxu0 }
 0x75f   : > { %v13994_v60 = vpop.f32.mrb[6].mxu0 }
 0x760   : > { %v3546_v61 = vpop.f32.mrb[7].mxu0 }
 0x761   : > { %v3567_v38 = vadd.f32 %v3546_v61, %v3543_v59 }
 0x763   : > { %v3568_v62 = vadd.f32 %v13993_v58, %v3567_v38  ;;  %v15640_v38 = vld [vmem:[%s16572_s18 + $0x3d8] sm:$0xff]  }
 0x765   : > { %v3569_v0 = vadd.f32 %v13994_v60, %v3568_v62  ;;  %v15641_v62 = vld [vmem:[%s16572_s18 + $0x3e0] sm:$0xff]  }
 0x767   : > { %v3570_v1 = vrot.slane %v3569_v0, 4 }
 0x769   : > { %v3571_v2 = vadd.f32 %v3570_v1, %v3569_v0  ;;  %v15642_v0 = vld [vmem:[%s16572_s18 + $0x3e8] sm:$0xff]   ;;  %v15643_v1 = vld [vmem:[%s16572_s18 + $0x3f0] sm:$0xff]  }
 0x76b   : > { %v3572_v3 = vrot.slane %v3571_v2, 2 }
 0x76d   : > { %v3573_v5 = vadd.f32 %v3572_v3, %v3571_v2  ;;  %v15645_v2 = vld [vmem:[%s16572_s18 + $0x440] sm:$0xff]  }
 0x76f   : > { %v3574_v6 = vrot.slane %v3573_v5, 1 }
 0x771   : > { %v3575_v7 = vadd.f32 %v3574_v6, %v3573_v5 }
 0x773   : > { %v3576_v8 = vmul.f32 0.03125, %v3575_v7  ;;  %v15646_v7 = vld [vmem:[%s16572_s18 + $0x448] sm:$0xff]  }
 0x775   : > { %v3577_v63 = vsub.f32 %v3543_v59, %v3576_v8  ;;  %v3578_v9 = vsub.f32 %v3546_v61, %v3576_v8  ;;  %v3579_v10 = vsub.f32 %v13993_v58, %v3576_v8  ;;  %v3580_v11 = vsub.f32 %v13994_v60, %v3576_v8 }
 0x777   : > { %v3581_v12 = vmul.f32 %v3577_v63, %v3577_v63  ;;  %v3582_v13 = vmul.f32 %v3578_v9, %v3578_v9  ;;  %v3583_v14 = vmul.f32 %v3579_v10, %v3579_v10  ;;  %v3584_v15 = vmul.f32 %v3580_v11, %v3580_v11  ;;  %v15648_v63 = vld [vmem:[%s16572_s18 + $0x458] sm:$0xff]   ;;  %v15649_v9 = vld [vmem:[%s16572_s18 + $0x460] sm:$0xff]   ;;  %v15650_v10 = vld [vmem:[%s16572_s18 + $0x468] sm:$0xff]  }
 0x778   : > { %v15651_v11 = vld [vmem:[%s16572_s18 + $0x470] sm:$0xff]  }
 0x779   : > { %v3585_v4 = vadd.f32 %v3582_v13, %v3581_v12  ;;  %v15652_v12 = vld [vmem:[%s16572_s18 + $0x478] sm:$0xff]   ;;  %v15653_v13 = vld [vmem:[%s16572_s18 + $0x480] sm:$0xff]  }
 0x77b   : > { %v3586_v16 = vadd.f32 %v3585_v4, %v3583_v14 }
 0x77d   : > { %v3587_v17 = vadd.f32 %v3586_v16, %v3584_v15  ;;  %v15654_v15 = vld [vmem:[%s16572_s18 + $0x488] sm:$0xff]  }
 0x77f   : > { %v3588_v18 = vrot.slane %v3587_v17, 4 }
 0x781   : > { %v3589_v56 = vadd.f32 %v3588_v18, %v3587_v17  ;;  %v15655_v17 = vld [vmem:[%s16572_s18 + $0x490] sm:$0xff]   ;;  %v15656_v18 = vld [vmem:[%s16572_s18 + $0x498] sm:$0xff]  }
 0x783   : > { %v3590_v19 = vrot.slane %v3589_v56, 2 }
 0x785   : > { %v3591_v20 = vadd.f32 %v3590_v19, %v3589_v56  ;;  %v15657_v56 = vld [vmem:[%s16572_s18 + $0x4a0] sm:$0xff]   ;;  %v15658_v19 = vld [vmem:[%s16572_s18 + $0x4a8] sm:$0xff]  }
 0x787   : > { %v3592_v21 = vrot.slane %v3591_v20, 1 }
 0x789   : > { %v3593_v22 = vadd.f32 %v3592_v21, %v3591_v20  ;;  %v15659_v20 = vld [vmem:[%s16572_s18 + $0x4b0] sm:$0xff]   ;;  %v15660_v21 = vld [vmem:[%s16572_s18 + $0x4b8] sm:$0xff]  }
 0x78b   : > { %v3594_v23 = vmul.f32 0.03125, %v3593_v22  ;;  %v15661_v22 = vld [vmem:[%s16572_s18 + $0x4c0] sm:$0xff]  }
 0x78d   : > { %v3595_v24 = vadd.f32 1e-05, %v3594_v23 }
 0x78f   : > { %15913 = vrsqrt.f32 %v3595_v24 }
 0x799   : > { %v15914_v26 = vpop.eup %15913 }
 0x79a   : > { %v3597_v27 = vmul.f32 %v15914_v26, %v11478_v25 }
 0x79c   : > { %v3601_v29 = vrot.slane %v3597_v27, %v16768_v41  ;;  %v3606_v30 = vmul.f32 %v3597_v27, %v3576_v8  ;;  %v15647_v8 = vld [vmem:[%s16572_s18 + $0x450] sm:$0xff]  }
 0x79e   : > { %v3602_v31 = vmul.f32 %v3601_v29, %v3543_v59  ;;  %v3603_v32 = vmul.f32 %v3601_v29, %v3546_v61  ;;  %v3604_v33 = vmul.f32 %v13993_v58, %v3601_v29  ;;  %v3605_v34 = vmul.f32 %v13994_v60, %v3601_v29  ;;  %v15638_v59 = vld [vmem:[%s16572_s18 + $0x3c8] sm:$0xff]   ;;  %v15639_v61 = vld [vmem:[%s16572_s18 + $0x3d0] sm:$0xff]  }
 0x79f   : > { %v3607_v35 = vsub.f32 %v11479_v28, %v3606_v30  ;;  %v15662_v28 = vld [vmem:[%s16572_s18 + $0x4c8] sm:$0xff]   ;;  %v15663_v30 = vld [vmem:[%s16572_s18 + $0x4d0] sm:$0xff]  }
 0x7a1   : > { %v3611_v36 = vrot.slane %v3607_v35, %v16768_v41  ;;  %v15668_v35 = vld [vmem:[%s16572_s18 + $0x4f8] sm:$0xff]  }
 0x7a3   : > { %v3612_v37 = vadd.f32 %v3611_v36, %v3602_v31  ;;  %v3613_v39 = vadd.f32 %v3611_v36, %v3603_v32  ;;  %v3614_v40 = vadd.f32 %v3611_v36, %v3604_v33  ;;  %v3615_v42 = vadd.f32 %v3611_v36, %v3605_v34  ;;  %v15664_v31 = vld [vmem:[%s16572_s18 + $0x4d8] sm:$0xff]   ;;  %v15665_v32 = vld [vmem:[%s16572_s18 + $0x4e0] sm:$0xff]   ;;  %v15666_v33 = vld [vmem:[%s16572_s18 + $0x4e8] sm:$0xff]  }
 0x7a4   : > { %v15667_v34 = vld [vmem:[%s16572_s18 + $0x4f0] sm:$0xff]  }
 0x7a5   : > { %v3616_v43 = vmax.f32 %v3612_v37, 0.0  ;;  %v3617_v44 = vmax.f32 %v3613_v39, 0.0  ;;  %v3618_v45 = vmax.f32 %v3614_v40, 0.0  ;;  %v3619_v46 = vmax.f32 %v3615_v42, 0.0  ;;  %v15669_v40 = vld [vmem:[%s16572_s18 + $0x540] sm:$0xff]   ;;  %v15670_v42 = vld [vmem:[%s16572_s18 + $0x548] sm:$0xff]  }
 0x7a6   : > { %14095 = vmatprep.subr.bf16.mxu0 %v15669_v40 }
 0x7a7   : > { %3620 = vst [vmem:[#allocation2 + $0x8] sm:$0xff] %v3616_v43  ;;  %3621 = vst [vmem:[#allocation2 + $0x10] sm:$0xff] %v3617_v44  ;;  %v3868_v47 = vpack.c.bf16 %v3617_v44, %v3616_v43  ;;  %v16877_v48 = vpack.c.bf16 %v3619_v46, %v3618_v45  ;;  %14096 = vmatpush3.bf16.msra.mxu0 %v15669_v40  ;;  %v15671_v43 = vld [vmem:[%s16572_s18 + $0x550] sm:$0xff]   ;;  %v15672_v44 = vld [vmem:[%s16572_s18 + $0x558] sm:$0xff]  }
 0x7a8   : > { %3622 = vst [vmem:[#allocation2 + $0x28] sm:$0xff] %v3618_v45  ;;  %3623 = vst [vmem:[#allocation2 + $0x30] sm:$0xff] %v3619_v46  ;;  %14097 = vmatprep.subr.bf16.mxu0 %v15670_v42  ;;  %v15673_v45 = vld [vmem:[%s16572_s18 + $0x560] sm:$0xff]   ;;  %v15674_v46 = vld [vmem:[%s16572_s18 + $0x568] sm:$0xff]  }
 0x7ab   : > { %14098 = vmatpush3.bf16.msra.mxu0 %v15670_v42 }
 0x7ac   : > { %14099 = vmatprep.subr.bf16.mxu0 %v15671_v43 }
 0x7ae   : > { %v3647_v49 = vld [vmem:[#allocation2 + $0x5] sm:$0xff]  ;;  %v3648_v50 = vld [vmem:[#allocation2 + $0xd] sm:$0xff]  ;;  %v4113_v26 = vld [vmem:[#allocation2 + $0x16] sm:$0xff] }
 0x7af   : > { %v3649_v51 = vld [vmem:[#allocation2 + $0x25] sm:$0xff]  ;;  %v3651_v52 = vpack.c.bf16 %v3648_v50, %v3647_v49  ;;  %v3650_v53 = vld [vmem:[#allocation2 + $0x2d] sm:$0xff]  ;;  %v4115_v37 = vld [vmem:[#allocation2 + $0x36] sm:$0xff]  ;;  %14100 = vmatpush3.bf16.msra.mxu0 %v15671_v43 }
 0x7b0   : > { %v3624_v54 = vld [vmem:[#allocation2 + $0x2] sm:$0xff]  ;;  %v3625_v55 = vld [vmem:[#allocation2 + $0xa] sm:$0xff]  ;;  %v3652_v58 = vpack.c.bf16 %v3650_v53, %v3649_v51  ;;  %v3989_v4 = vld [vmem:[#allocation2 + $0x13] sm:$0xff]  ;;  %14101 = vmatprep.subr.bf16.mxu0 %v15672_v44 }
 0x7b1   : > { %14011 = vmatprep.mubr.bf16.mxu1 %v3651_v52  ;;  %v3628_v60 = vpack.c.bf16 %v3625_v55, %v3624_v54  ;;  %v3626_v3 = vld [vmem:[#allocation2 + $0x22] sm:$0xff]  ;;  %v3627_v5 = vld [vmem:[#allocation2 + $0x2a] sm:$0xff]  ;;  %v3991_v24 = vld [vmem:[#allocation2 + $0x33] sm:$0xff] }
 0x7b2   : > { %14012 = vmatmul.mubr.bf16.vlgmr.msra.gmra.mrb[4].mxu1 %v3652_v58  ;;  %v3629_v6 = vpack.c.bf16 %v3627_v5, %v3626_v3  ;;  %v3988_v14 = vld [vmem:[#allocation2 + $0xb] sm:$0xff]  ;;  %v16921_v49 = vld [vmem:[%s16572_s18 + $0x500] sm:$0xff]  }
 0x7b3   : > { %14016 = vmatpush3.bf16.msra.mxu1 %v16870_v57  ;;  %14031 = vmatprep.mubr.bf16.mxu1 %v3628_v60  ;;  %v15644_v57 = vld [vmem:[%s16572_s18 + $0x3f8] sm:$0xff]   ;;  %v3992_v16 = vpack.c.bf16 %v3989_v4, %v3988_v14  ;;  %v3990_v23 = vld [vmem:[#allocation2 + $0x2b] sm:$0xff] }
 0x7b4   : > { %14017 = vmatprep.subr.bf16.mxu1 %v15638_v59  ;;  %v4112_v25 = vld [vmem:[#allocation2 + $0xe] sm:$0xff]  ;;  %v3993_v27 = vpack.c.bf16 %v3991_v24, %v3990_v23  ;;  %14102 = vmatpush3.bf16.msra.mxu0 %v15672_v44 }
 0x7b5   : > { %v4116_v29 = vpack.c.bf16 %v4113_v26, %v4112_v25  ;;  %v4114_v36 = vld [vmem:[#allocation2 + $0x2e] sm:$0xff]  ;;  %14103 = vmatprep.subr.bf16.mxu0 %v15673_v45 }
 0x7b6   : > { %v4117_v39 = vpack.c.bf16 %v4115_v37, %v4114_v36 }
 0x7b7   : > { %14018 = vmatpush3.bf16.msra.mxu1 %v15638_v59 }
 0x7b8   : > { %14019 = vmatprep.subr.bf16.mxu1 %v15639_v61  ;;  %14104 = vmatpush3.bf16.msra.mxu0 %v15673_v45 }
 0x7b9   : > { %14105 = vmatprep.subr.bf16.mxu0 %v15674_v46 }
 0x7bb   : > { %14020 = vmatpush3.bf16.msra.mxu1 %v15639_v61 }
 0x7bc   : > { %14021 = vmatprep.subr.bf16.mxu1 %v15640_v38  ;;  %14106 = vmatpush3.bf16.msra.mxu0 %v15674_v46 }
 0x7bf   : > { %14022 = vmatpush3.bf16.msra.mxu1 %v15640_v38 }
 0x7c0   : > { %14023 = vmatprep.subr.bf16.mxu1 %v15641_v62 }
 0x7c3   : > { %14024 = vmatpush3.bf16.msra.mxu1 %v15641_v62 }
 0x7c4   : > { %14025 = vmatprep.subr.bf16.mxu1 %v15642_v0 }
 0x7c7   : > { %14026 = vmatpush3.bf16.msra.mxu1 %v15642_v0 }
 0x7c8   : > { %14027 = vmatprep.subr.bf16.mxu1 %v15643_v1 }
 0x7cb   : > { %14028 = vmatpush3.bf16.msra.mxu1 %v15643_v1 }
 0x7cc   : > { %14029 = vmatprep.subr.bf16.mxu1 %v15644_v57 }
 0x7cf   : > { %14030 = vmatpush3.bf16.msra.mxu1 %v15644_v57 }
 0x7d0   : > { %14035 = vmatprep.subr.bf16.mxu1 %v15645_v2 }
 0x7d2   : > { %14032 = vmatmul.mubr.bf16.vlgmr.msra.gmra.mrb[4].mxu1 %v3629_v6 }
 0x7d3   : > { %14036 = vmatpush3.bf16.msra.mxu1 %v15645_v2  ;;  %14051 = vmatprep.mubr.bf16.mxu1 %v3868_v47  ;;  %v15675_v47 = vld [vmem:[%s16572_s18 + $0x570] sm:$0xff]  }
 0x7d4   : > { %14037 = vmatprep.subr.bf16.mxu1 %v15646_v7  ;;  %14107 = vmatprep.subr.bf16.mxu0 %v15675_v47 }
 0x7d5   : > { %14108 = vmatpush3.bf16.msra.mxu0 %v15675_v47 }
 0x7d7   : > { %14038 = vmatpush3.bf16.msra.mxu1 %v15646_v7 }
 0x7d8   : > { %14039 = vmatprep.subr.bf16.mxu1 %v15647_v8 }
 0x7db   : > { %14040 = vmatpush3.bf16.msra.mxu1 %v15647_v8 }
 0x7dc   : > { %14041 = vmatprep.subr.bf16.mxu1 %v15648_v63 }
 0x7df   : > { %14042 = vmatpush3.bf16.msra.mxu1 %v15648_v63 }
 0x7e0   : > { %14043 = vmatprep.subr.bf16.mxu1 %v15649_v9 }
 0x7e3   : > { %14044 = vmatpush3.bf16.msra.mxu1 %v15649_v9 }
 0x7e4   : > { %14045 = vmatprep.subr.bf16.mxu1 %v15650_v10 }
 0x7e7   : > { %14046 = vmatpush3.bf16.msra.mxu1 %v15650_v10 }
 0x7e8   : > { %14047 = vmatprep.subr.bf16.mxu1 %v15651_v11 }
 0x7eb   : > { %14048 = vmatpush3.bf16.msra.mxu1 %v15651_v11 }
 0x7ec   : > { %14049 = vmatprep.subr.bf16.mxu1 %v15652_v12 }
 0x7ef   : > { %14050 = vmatpush3.bf16.msra.mxu1 %v15652_v12 }
 0x7f0   : > { %14055 = vmatprep.subr.bf16.mxu1 %v15653_v13 }
 0x7f2   : > { %14052 = vmatmul.mubr.bf16.vlgmr.msra.gmra.mrb[4].mxu1 %v16877_v48  ;;  %v15676_v48 = vld [vmem:[%s16572_s18 + $0x578] sm:$0xff]  }
 0x7f3   : > { %14056 = vmatpush3.bf16.msra.mxu1 %v15653_v13  ;;  %14071 = vmatprep.mubr.bf16.mxu1 %v3992_v16 }
 0x7f4   : > { %14057 = vmatprep.subr.bf16.mxu1 %v15654_v15  ;;  %14109 = vmatprep.subr.bf16.mxu0 %v15676_v48 }
 0x7f5   : > { %14110 = vmatpush3.bf16.msra.mxu0 %v15676_v48 }
 0x7f6   : > { %14115 = vmatprep.subr.bf16.mxu0 %v16921_v49 }
 0x7f7   : > { %14058 = vmatpush3.bf16.msra.mxu1 %v15654_v15 }
 0x7f8   : > { %14059 = vmatprep.subr.bf16.mxu1 %v15655_v17 }
 0x7fb   : > { %14060 = vmatpush3.bf16.msra.mxu1 %v15655_v17 }
 0x7fc   : > { %14061 = vmatprep.subr.bf16.mxu1 %v15656_v18 }
 0x7ff   : > { %14062 = vmatpush3.bf16.msra.mxu1 %v15656_v18 }
 0x800   : > { %14063 = vmatprep.subr.bf16.mxu1 %v15657_v56 }
 0x803   : > { %14064 = vmatpush3.bf16.msra.mxu1 %v15657_v56  ;;  %v11600_v56 = vld [vmem:[%s16765_s10 + $0x4] sm:$0x1] }
 0x804   : > { %14065 = vmatprep.subr.bf16.mxu1 %v15658_v19 }
 0x807   : > { %14066 = vmatpush3.bf16.msra.mxu1 %v15658_v19 }
 0x808   : > { %14067 = vmatprep.subr.bf16.mxu1 %v15659_v20 }
 0x80b   : > { %14068 = vmatpush3.bf16.msra.mxu1 %v15659_v20 }
 0x80c   : > { %14069 = vmatprep.subr.bf16.mxu1 %v15660_v21 }
 0x80f   : > { %14070 = vmatpush3.bf16.msra.mxu1 %v15660_v21  ;;  %v11601_v21 = vld [vmem:[%s16770_s16 + $0x4] sm:$0x1] }
 0x810   : > { %14075 = vmatprep.subr.bf16.mxu1 %v15661_v22 }
 0x812   : > { %14072 = vmatmul.mubr.bf16.vlgmr.msra.gmra.mrb[4].mxu1 %v3993_v27 }
 0x813   : > { %14076 = vmatpush3.bf16.msra.mxu1 %v15661_v22  ;;  %14091 = vmatprep.mubr.bf16.mxu1 %v4116_v29 }
 0x814   : > { %14077 = vmatprep.subr.bf16.mxu1 %v15662_v28 }
 0x817   : > { %14078 = vmatpush3.bf16.msra.mxu1 %v15662_v28 }
 0x818   : > { %14079 = vmatprep.subr.bf16.mxu1 %v15663_v30 }
 0x81b   : > { %14080 = vmatpush3.bf16.msra.mxu1 %v15663_v30 }
 0x81c   : > { %14081 = vmatprep.subr.bf16.mxu1 %v15664_v31 }
 0x81f   : > { %14082 = vmatpush3.bf16.msra.mxu1 %v15664_v31 }
 0x820   : > { %14083 = vmatprep.subr.bf16.mxu1 %v15665_v32 }
 0x823   : > { %14084 = vmatpush3.bf16.msra.mxu1 %v15665_v32 }
 0x824   : > { %14085 = vmatprep.subr.bf16.mxu1 %v15666_v33 }
 0x827   : > { %14086 = vmatpush3.bf16.msra.mxu1 %v15666_v33 }
 0x828   : > { %14087 = vmatprep.subr.bf16.mxu1 %v15667_v34 }
 0x82b   : > { %14088 = vmatpush3.bf16.msra.mxu1 %v15667_v34 }
 0x82c   : > { %14089 = vmatprep.subr.bf16.mxu1 %v15668_v35 }
 0x82f   : > { %14090 = vmatpush3.bf16.msra.mxu1 %v15668_v35 }
 0x832   : > { %14092 = vmatmul.mubr.bf16.vlgmr.msra.gmra.mrb[4].mxu1 %v4117_v39 }
 0x905   : > { %v14093_v50 = vpop.f32.mrb[4].mxu1 }
 0x906   : > { %v4217_v51 = vpop.f32.mrb[5].mxu1 }
 0x907   : > { %v14094_v52 = vpop.f32.mrb[6].mxu1 }
 0x908   : > { %v4220_v53 = vpop.f32.mrb[7].mxu1 }
 0x909   : > { %v4241_v54 = vadd.f32 %v4220_v53, %v4217_v51 }
 0x90b   : > { %v4242_v55 = vadd.f32 %v14093_v50, %v4241_v54  ;;  %v15680_v54 = vld [vmem:[%s16572_s18 + $0x518] sm:$0xff]  }
 0x90d   : > { %v4243_v58 = vadd.f32 %v14094_v52, %v4242_v55  ;;  %v15681_v55 = vld [vmem:[%s16572_s18 + $0x520] sm:$0xff]  }
 0x90f   : > { %v4244_v59 = vrot.slane %v4243_v58, 4 }
 0x911   : > { %v4245_v60 = vadd.f32 %v4244_v59, %v4243_v58  ;;  %v15682_v58 = vld [vmem:[%s16572_s18 + $0x528] sm:$0xff]   ;;  %v15683_v59 = vld [vmem:[%s16572_s18 + $0x530] sm:$0xff]  }
 0x913   : > { %v4246_v61 = vrot.slane %v4245_v60, 2 }
 0x915   : > { %v4247_v38 = vadd.f32 %v4246_v61, %v4245_v60  ;;  %v15685_v60 = vld [vmem:[%s16572_s18 + $0x580] sm:$0xff]  }
 0x917   : > { %v4248_v62 = vrot.slane %v4247_v38, 1 }
 0x919   : > { %v4249_v0 = vadd.f32 %v4248_v62, %v4247_v38 }
 0x91b   : > { %v4250_v1 = vmul.f32 0.03125, %v4249_v0  ;;  %v15686_v0 = vld [vmem:[%s16572_s18 + $0x588] sm:$0xff]  }
 0x91d   : > { %v4251_v57 = vsub.f32 %v4217_v51, %v4250_v1  ;;  %v4252_v2 = vsub.f32 %v4220_v53, %v4250_v1  ;;  %v4253_v3 = vsub.f32 %v14093_v50, %v4250_v1  ;;  %v4254_v5 = vsub.f32 %v14094_v52, %v4250_v1 }
 0x91f   : > { %v4255_v6 = vmul.f32 %v4251_v57, %v4251_v57  ;;  %v4256_v7 = vmul.f32 %v4252_v2, %v4252_v2  ;;  %v4257_v8 = vmul.f32 %v4253_v3, %v4253_v3  ;;  %v4258_v9 = vmul.f32 %v4254_v5, %v4254_v5  ;;  %v15688_v57 = vld [vmem:[%s16572_s18 + $0x598] sm:$0xff]   ;;  %v15689_v2 = vld [vmem:[%s16572_s18 + $0x5a0] sm:$0xff]   ;;  %v15690_v3 = vld [vmem:[%s16572_s18 + $0x5a8] sm:$0xff]  }
 0x920   : > { %v15691_v5 = vld [vmem:[%s16572_s18 + $0x5b0] sm:$0xff]  }
 0x921   : > { %v4259_v63 = vadd.f32 %v4256_v7, %v4255_v6  ;;  %v15692_v6 = vld [vmem:[%s16572_s18 + $0x5b8] sm:$0xff]   ;;  %v15693_v7 = vld [vmem:[%s16572_s18 + $0x5c0] sm:$0xff]  }
 0x923   : > { %v4260_v10 = vadd.f32 %v4259_v63, %v4257_v8 }
 0x925   : > { %v4261_v11 = vadd.f32 %v4260_v10, %v4258_v9  ;;  %v15694_v9 = vld [vmem:[%s16572_s18 + $0x5c8] sm:$0xff]  }
 0x927   : > { %v4262_v12 = vrot.slane %v4261_v11, 4 }
 0x929   : > { %v4263_v13 = vadd.f32 %v4262_v12, %v4261_v11  ;;  %v15695_v11 = vld [vmem:[%s16572_s18 + $0x5d0] sm:$0xff]   ;;  %v15696_v12 = vld [vmem:[%s16572_s18 + $0x5d8] sm:$0xff]  }
 0x92b   : > { %v4264_v14 = vrot.slane %v4263_v13, 2 }
 0x92d   : > { %v4265_v4 = vadd.f32 %v4264_v14, %v4263_v13  ;;  %v15697_v13 = vld [vmem:[%s16572_s18 + $0x5e0] sm:$0xff]   ;;  %v15698_v14 = vld [vmem:[%s16572_s18 + $0x5e8] sm:$0xff]  }
 0x92f   : > { %v4266_v15 = vrot.slane %v4265_v4, 1 }
 0x931   : > { %v4267_v16 = vadd.f32 %v4266_v15, %v4265_v4  ;;  %v15699_v4 = vld [vmem:[%s16572_s18 + $0x5f0] sm:$0xff]   ;;  %v15700_v15 = vld [vmem:[%s16572_s18 + $0x5f8] sm:$0xff]  }
 0x933   : > { %v4268_v17 = vmul.f32 0.03125, %v4267_v16  ;;  %v15701_v16 = vld [vmem:[%s16572_s18 + $0x600] sm:$0xff]  }
 0x935   : > { %v4269_v18 = vadd.f32 1e-05, %v4268_v17 }
 0x937   : > { %15915 = vrsqrt.f32 %v4269_v18 }
 0x941   : > { %v15916_v19 = vpop.eup %15915 }
 0x942   : > { %v4271_v20 = vmul.f32 %v15916_v19, %v11600_v56 }
 0x944   : > { %v4275_v22 = vrot.slane %v4271_v20, %v16768_v41  ;;  %v4280_v23 = vmul.f32 %v4271_v20, %v4250_v1  ;;  %v15687_v1 = vld [vmem:[%s16572_s18 + $0x590] sm:$0xff]  }
 0x946   : > { %v4276_v24 = vmul.f32 %v4275_v22, %v4217_v51  ;;  %v4277_v25 = vmul.f32 %v4275_v22, %v4220_v53  ;;  %v4278_v26 = vmul.f32 %v14093_v50, %v4275_v22  ;;  %v4279_v27 = vmul.f32 %v14094_v52, %v4275_v22  ;;  %v15678_v51 = vld [vmem:[%s16572_s18 + $0x508] sm:$0xff]   ;;  %v15679_v53 = vld [vmem:[%s16572_s18 + $0x510] sm:$0xff]  }
 0x947   : > { %v4281_v28 = vsub.f32 %v11601_v21, %v4280_v23  ;;  %v15702_v21 = vld [vmem:[%s16572_s18 + $0x608] sm:$0xff]   ;;  %v15703_v23 = vld [vmem:[%s16572_s18 + $0x610] sm:$0xff]  }
 0x949   : > { %v4285_v29 = vrot.slane %v4281_v28, %v16768_v41  ;;  %v15708_v28 = vld [vmem:[%s16572_s18 + $0x638] sm:$0xff]  }
 0x94b   : > { %v4286_v30 = vadd.f32 %v4285_v29, %v4276_v24  ;;  %v4287_v31 = vadd.f32 %v4285_v29, %v4277_v25  ;;  %v4288_v32 = vadd.f32 %v4285_v29, %v4278_v26  ;;  %v4289_v33 = vadd.f32 %v4285_v29, %v4279_v27  ;;  %v15704_v24 = vld [vmem:[%s16572_s18 + $0x618] sm:$0xff]   ;;  %v15705_v25 = vld [vmem:[%s16572_s18 + $0x620] sm:$0xff]   ;;  %v15706_v26 = vld [vmem:[%s16572_s18 + $0x628] sm:$0xff]  }
 0x94c   : > { %v15707_v27 = vld [vmem:[%s16572_s18 + $0x630] sm:$0xff]  }
 0x94d   : > { %v4290_v34 = vmax.f32 %v4286_v30, 0.0  ;;  %v4291_v35 = vmax.f32 %v4287_v31, 0.0  ;;  %v4292_v36 = vmax.f32 %v4288_v32, 0.0  ;;  %v4293_v37 = vmax.f32 %v4289_v33, 0.0  ;;  %v15709_v32 = vld [vmem:[%s16572_s18 + $0x680] sm:$0xff]   ;;  %v15710_v33 = vld [vmem:[%s16572_s18 + $0x688] sm:$0xff]  }
 0x94e   : > { %14195 = vmatprep.subr.bf16.mxu1 %v15709_v32 }
 0x94f   : > { %4294 = vst [vmem:[#allocation2 + $0x8] sm:$0xff] %v4290_v34  ;;  %4295 = vst [vmem:[#allocation2 + $0x10] sm:$0xff] %v4291_v35  ;;  %v4542_v39 = vpack.c.bf16 %v4291_v35, %v4290_v34  ;;  %v16928_v40 = vpack.c.bf16 %v4293_v37, %v4292_v36  ;;  %14196 = vmatpush3.bf16.msra.mxu1 %v15709_v32  ;;  %v15711_v34 = vld [vmem:[%s16572_s18 + $0x690] sm:$0xff]   ;;  %v15712_v35 = vld [vmem:[%s16572_s18 + $0x698] sm:$0xff]  }
 0x950   : > { %4296 = vst [vmem:[#allocation2 + $0x28] sm:$0xff] %v4292_v36  ;;  %4297 = vst [vmem:[#allocation2 + $0x30] sm:$0xff] %v4293_v37  ;;  %14197 = vmatprep.subr.bf16.mxu1 %v15710_v33  ;;  %v15713_v36 = vld [vmem:[%s16572_s18 + $0x6a0] sm:$0xff]   ;;  %v15714_v37 = vld [vmem:[%s16572_s18 + $0x6a8] sm:$0xff]  }
 0x953   : > { %14198 = vmatpush3.bf16.msra.mxu1 %v15710_v33 }
 0x954   : > { %14199 = vmatprep.subr.bf16.mxu1 %v15711_v34 }
 0x956   : > { %v4321_v42 = vld [vmem:[#allocation2 + $0x5] sm:$0xff]  ;;  %v4322_v43 = vld [vmem:[#allocation2 + $0xd] sm:$0xff]  ;;  %v4787_v19 = vld [vmem:[#allocation2 + $0x16] sm:$0xff] }
 0x957   : > { %v4323_v44 = vld [vmem:[#allocation2 + $0x25] sm:$0xff]  ;;  %v4325_v45 = vpack.c.bf16 %v4322_v43, %v4321_v42  ;;  %v4324_v46 = vld [vmem:[#allocation2 + $0x2d] sm:$0xff]  ;;  %v4789_v30 = vld [vmem:[#allocation2 + $0x36] sm:$0xff]  ;;  %14200 = vmatpush3.bf16.msra.mxu1 %v15711_v34 }
 0x958   : > { %v4298_v47 = vld [vmem:[#allocation2 + $0x2] sm:$0xff]  ;;  %v4299_v48 = vld [vmem:[#allocation2 + $0xa] sm:$0xff]  ;;  %v4326_v50 = vpack.c.bf16 %v4324_v46, %v4323_v44  ;;  %v4663_v63 = vld [vmem:[#allocation2 + $0x13] sm:$0xff]  ;;  %14201 = vmatprep.subr.bf16.mxu1 %v15712_v35 }
 0x959   : > { %14111 = vmatprep.mubr.bf16.mxu0 %v4325_v45  ;;  %v4302_v52 = vpack.c.bf16 %v4299_v48, %v4298_v47  ;;  %v4300_v61 = vld [vmem:[#allocation2 + $0x22] sm:$0xff]  ;;  %v4301_v38 = vld [vmem:[#allocation2 + $0x2a] sm:$0xff]  ;;  %v4665_v18 = vld [vmem:[#allocation2 + $0x33] sm:$0xff] }
 0x95a   : > { %14112 = vmatmul.mubr.bf16.vlgmr.msra.gmra.mrb[8].mxu0 %v4326_v50  ;;  %v4303_v62 = vpack.c.bf16 %v4301_v38, %v4300_v61  ;;  %v4662_v8 = vld [vmem:[#allocation2 + $0xb] sm:$0xff]  ;;  %v16972_v42 = vld [vmem:[%s16572_s18 + $0x640] sm:$0xff]  }
 0x95b   : > { %14116 = vmatpush3.bf16.msra.mxu0 %v16921_v49  ;;  %14131 = vmatprep.mubr.bf16.mxu0 %v4302_v52  ;;  %v15684_v49 = vld [vmem:[%s16572_s18 + $0x538] sm:$0xff]   ;;  %v4666_v10 = vpack.c.bf16 %v4663_v63, %v4662_v8  ;;  %v4664_v17 = vld [vmem:[#allocation2 + $0x2b] sm:$0xff] }
 0x95c   : > { %14117 = vmatprep.subr.bf16.mxu0 %v15678_v51  ;;  %v4786_v56 = vld [vmem:[#allocation2 + $0xe] sm:$0xff]  ;;  %v4667_v20 = vpack.c.bf16 %v4665_v18, %v4664_v17  ;;  %14202 = vmatpush3.bf16.msra.mxu1 %v15712_v35 }
 0x95d   : > { %v4790_v22 = vpack.c.bf16 %v4787_v19, %v4786_v56  ;;  %v4788_v29 = vld [vmem:[#allocation2 + $0x2e] sm:$0xff]  ;;  %14203 = vmatprep.subr.bf16.mxu1 %v15713_v36 }
 0x95e   : > { %v4791_v31 = vpack.c.bf16 %v4789_v30, %v4788_v29 }
 0x95f   : > { %14118 = vmatpush3.bf16.msra.mxu0 %v15678_v51 }
 0x960   : > { %14119 = vmatprep.subr.bf16.mxu0 %v15679_v53  ;;  %14204 = vmatpush3.bf16.msra.mxu1 %v15713_v36 }
 0x961   : > { %14205 = vmatprep.subr.bf16.mxu1 %v15714_v37 }
 0x963   : > { %14120 = vmatpush3.bf16.msra.mxu0 %v15679_v53 }
 0x964   : > { %14121 = vmatprep.subr.bf16.mxu0 %v15680_v54  ;;  %14206 = vmatpush3.bf16.msra.mxu1 %v15714_v37 }
 0x967   : > { %14122 = vmatpush3.bf16.msra.mxu0 %v15680_v54 }
 0x968   : > { %14123 = vmatprep.subr.bf16.mxu0 %v15681_v55 }
 0x96b   : > { %14124 = vmatpush3.bf16.msra.mxu0 %v15681_v55 }
 0x96c   : > { %14125 = vmatprep.subr.bf16.mxu0 %v15682_v58 }
 0x96f   : > { %14126 = vmatpush3.bf16.msra.mxu0 %v15682_v58 }
 0x970   : > { %14127 = vmatprep.subr.bf16.mxu0 %v15683_v59 }
 0x973   : > { %14128 = vmatpush3.bf16.msra.mxu0 %v15683_v59 }
 0x974   : > { %14129 = vmatprep.subr.bf16.mxu0 %v15684_v49 }
 0x977   : > { %14130 = vmatpush3.bf16.msra.mxu0 %v15684_v49 }
 0x978   : > { %14135 = vmatprep.subr.bf16.mxu0 %v15685_v60 }
 0x97a   : > { %14132 = vmatmul.mubr.bf16.vlgmr.msra.gmra.mrb[8].mxu0 %v4303_v62 }
 0x97b   : > { %14136 = vmatpush3.bf16.msra.mxu0 %v15685_v60  ;;  %14151 = vmatprep.mubr.bf16.mxu0 %v4542_v39  ;;  %v15715_v39 = vld [vmem:[%s16572_s18 + $0x6b0] sm:$0xff]  }
 0x97c   : > { %14137 = vmatprep.subr.bf16.mxu0 %v15686_v0  ;;  %14207 = vmatprep.subr.bf16.mxu1 %v15715_v39 }
 0x97d   : > { %14208 = vmatpush3.bf16.msra.mxu1 %v15715_v39 }
 0x97f   : > { %14138 = vmatpush3.bf16.msra.mxu0 %v15686_v0 }
 0x980   : > { %14139 = vmatprep.subr.bf16.mxu0 %v15687_v1 }
 0x983   : > { %14140 = vmatpush3.bf16.msra.mxu0 %v15687_v1 }
 0x984   : > { %14141 = vmatprep.subr.bf16.mxu0 %v15688_v57 }
 0x987   : > { %14142 = vmatpush3.bf16.msra.mxu0 %v15688_v57 }
 0x988   : > { %14143 = vmatprep.subr.bf16.mxu0 %v15689_v2 }
 0x98b   : > { %14144 = vmatpush3.bf16.msra.mxu0 %v15689_v2 }
 0x98c   : > { %14145 = vmatprep.subr.bf16.mxu0 %v15690_v3 }
 0x98f   : > { %14146 = vmatpush3.bf16.msra.mxu0 %v15690_v3 }
 0x990   : > { %14147 = vmatprep.subr.bf16.mxu0 %v15691_v5 }
 0x993   : > { %14148 = vmatpush3.bf16.msra.mxu0 %v15691_v5 }
 0x994   : > { %14149 = vmatprep.subr.bf16.mxu0 %v15692_v6 }
 0x997   : > { %14150 = vmatpush3.bf16.msra.mxu0 %v15692_v6 }
 0x998   : > { %14155 = vmatprep.subr.bf16.mxu0 %v15693_v7 }
 0x99a   : > { %14152 = vmatmul.mubr.bf16.vlgmr.msra.gmra.mrb[8].mxu0 %v16928_v40  ;;  %v15716_v40 = vld [vmem:[%s16572_s18 + $0x6b8] sm:$0xff]  }
 0x99b   : > { %14156 = vmatpush3.bf16.msra.mxu0 %v15693_v7  ;;  %14171 = vmatprep.mubr.bf16.mxu0 %v4666_v10 }
 0x99c   : > { %14157 = vmatprep.subr.bf16.mxu0 %v15694_v9  ;;  %14209 = vmatprep.subr.bf16.mxu1 %v15716_v40 }
 0x99d   : > { %14210 = vmatpush3.bf16.msra.mxu1 %v15716_v40 }
 0x99e   : > { %14215 = vmatprep.subr.bf16.mxu1 %v16972_v42 }
 0x99f   : > { %14158 = vmatpush3.bf16.msra.mxu0 %v15694_v9 }
 0x9a0   : > { %14159 = vmatprep.subr.bf16.mxu0 %v15695_v11 }
 0x9a3   : > { %14160 = vmatpush3.bf16.msra.mxu0 %v15695_v11 }
 0x9a4   : > { %14161 = vmatprep.subr.bf16.mxu0 %v15696_v12 }
 0x9a7   : > { %14162 = vmatpush3.bf16.msra.mxu0 %v15696_v12 }
 0x9a8   : > { %14163 = vmatprep.subr.bf16.mxu0 %v15697_v13 }
 0x9ab   : > { %14164 = vmatpush3.bf16.msra.mxu0 %v15697_v13  ;;  %v11722_v13 = vld [vmem:[%s16765_s10 + $0x5] sm:$0x1] }
 0x9ac   : > { %14165 = vmatprep.subr.bf16.mxu0 %v15698_v14 }
 0x9af   : > { %14166 = vmatpush3.bf16.msra.mxu0 %v15698_v14 }
 0x9b0   : > { %14167 = vmatprep.subr.bf16.mxu0 %v15699_v4 }
 0x9b3   : > { %14168 = vmatpush3.bf16.msra.mxu0 %v15699_v4 }
 0x9b4   : > { %14169 = vmatprep.subr.bf16.mxu0 %v15700_v15 }
 0x9b7   : > { %14170 = vmatpush3.bf16.msra.mxu0 %v15700_v15  ;;  %v11723_v15 = vld [vmem:[%s16770_s16 + $0x5] sm:$0x1] }
 0x9b8   : > { %14175 = vmatprep.subr.bf16.mxu0 %v15701_v16 }
 0x9ba   : > { %14172 = vmatmul.mubr.bf16.vlgmr.msra.gmra.mrb[8].mxu0 %v4667_v20 }
 0x9bb   : > { %14176 = vmatpush3.bf16.msra.mxu0 %v15701_v16  ;;  %14191 = vmatprep.mubr.bf16.mxu0 %v4790_v22 }
 0x9bc   : > { %14177 = vmatprep.subr.bf16.mxu0 %v15702_v21 }
 0x9bf   : > { %14178 = vmatpush3.bf16.msra.mxu0 %v15702_v21 }
 0x9c0   : > { %14179 = vmatprep.subr.bf16.mxu0 %v15703_v23 }
 0x9c3   : > { %14180 = vmatpush3.bf16.msra.mxu0 %v15703_v23 }
 0x9c4   : > { %14181 = vmatprep.subr.bf16.mxu0 %v15704_v24 }
 0x9c7   : > { %14182 = vmatpush3.bf16.msra.mxu0 %v15704_v24 }
 0x9c8   : > { %14183 = vmatprep.subr.bf16.mxu0 %v15705_v25 }
 0x9cb   : > { %14184 = vmatpush3.bf16.msra.mxu0 %v15705_v25 }
 0x9cc   : > { %14185 = vmatprep.subr.bf16.mxu0 %v15706_v26 }
 0x9cf   : > { %14186 = vmatpush3.bf16.msra.mxu0 %v15706_v26 }
 0x9d0   : > { %14187 = vmatprep.subr.bf16.mxu0 %v15707_v27 }
 0x9d3   : > { %14188 = vmatpush3.bf16.msra.mxu0 %v15707_v27 }
 0x9d4   : > { %14189 = vmatprep.subr.bf16.mxu0 %v15708_v28 }
 0x9d7   : > { %14190 = vmatpush3.bf16.msra.mxu0 %v15708_v28 }
 0x9da   : > { %14192 = vmatmul.mubr.bf16.vlgmr.msra.gmra.mrb[8].mxu0 %v4791_v31 }
 0xaad   : > { %v14193_v43 = vpop.f32.mrb[8].mxu0 }
 0xaae   : > { %v4891_v44 = vpop.f32.mrb[9].mxu0 }
 0xaaf   : > { %v14194_v45 = vpop.f32.mrb[10].mxu0 }
 0xab0   : > { %v4894_v46 = vpop.f32.mrb[11].mxu0 }
 0xab1   : > { %v4915_v47 = vadd.f32 %v4894_v46, %v4891_v44 }
 0xab3   : > { %v4916_v48 = vadd.f32 %v14193_v43, %v4915_v47  ;;  %v15720_v47 = vld [vmem:[%s16572_s18 + $0x658] sm:$0xff]  }
 0xab5   : > { %v4917_v50 = vadd.f32 %v14194_v45, %v4916_v48  ;;  %v15721_v48 = vld [vmem:[%s16572_s18 + $0x660] sm:$0xff]  }
 0xab7   : > { %v4918_v51 = vrot.slane %v4917_v50, 4 }
 0xab9   : > { %v4919_v52 = vadd.f32 %v4918_v51, %v4917_v50  ;;  %v15722_v50 = vld [vmem:[%s16572_s18 + $0x668] sm:$0xff]   ;;  %v15723_v51 = vld [vmem:[%s16572_s18 + $0x670] sm:$0xff]  }
 0xabb   : > { %v4920_v53 = vrot.slane %v4919_v52, 2 }
 0xabd   : > { %v4921_v54 = vadd.f32 %v4920_v53, %v4919_v52  ;;  %v15725_v52 = vld [vmem:[%s16572_s18 + $0x6c0] sm:$0xff]  }
 0xabf   : > { %v4922_v55 = vrot.slane %v4921_v54, 1 }
 0xac1   : > { %v4923_v58 = vadd.f32 %v4922_v55, %v4921_v54 }
 0xac3   : > { %v4924_v59 = vmul.f32 0.03125, %v4923_v58  ;;  %v15726_v58 = vld [vmem:[%s16572_s18 + $0x6c8] sm:$0xff]  }
 0xac5   : > { %v4925_v49 = vsub.f32 %v4891_v44, %v4924_v59  ;;  %v4926_v60 = vsub.f32 %v4894_v46, %v4924_v59  ;;  %v4927_v61 = vsub.f32 %v14193_v43, %v4924_v59  ;;  %v4928_v38 = vsub.f32 %v14194_v45, %v4924_v59 }
 0xac7   : > { %v4929_v62 = vmul.f32 %v4925_v49, %v4925_v49  ;;  %v4930_v0 = vmul.f32 %v4926_v60, %v4926_v60  ;;  %v4931_v1 = vmul.f32 %v4927_v61, %v4927_v61  ;;  %v4932_v2 = vmul.f32 %v4928_v38, %v4928_v38  ;;  %v15728_v49 = vld [vmem:[%s16572_s18 + $0x6d8] sm:$0xff]   ;;  %v15729_v60 = vld [vmem:[%s16572_s18 + $0x6e0] sm:$0xff]   ;;  %v15730_v61 = vld [vmem:[%s16572_s18 + $0x6e8] sm:$0xff]  }
 0xac8   : > { %v15731_v38 = vld [vmem:[%s16572_s18 + $0x6f0] sm:$0xff]  }
 0xac9   : > { %v4933_v57 = vadd.f32 %v4930_v0, %v4929_v62  ;;  %v15732_v62 = vld [vmem:[%s16572_s18 + $0x6f8] sm:$0xff]   ;;  %v15733_v0 = vld [vmem:[%s16572_s18 + $0x700] sm:$0xff]  }
 0xacb   : > { %v4934_v3 = vadd.f32 %v4933_v57, %v4931_v1 }
 0xacd   : > { %v4935_v5 = vadd.f32 %v4934_v3, %v4932_v2  ;;  %v15734_v2 = vld [vmem:[%s16572_s18 + $0x708] sm:$0xff]  }
 0xacf   : > { %v4936_v6 = vrot.slane %v4935_v5, 4 }
 0xad1   : > { %v4937_v7 = vadd.f32 %v4936_v6, %v4935_v5  ;;  %v15735_v5 = vld [vmem:[%s16572_s18 + $0x710] sm:$0xff]   ;;  %v15736_v6 = vld [vmem:[%s16572_s18 + $0x718] sm:$0xff]  }
 0xad3   : > { %v4938_v8 = vrot.slane %v4937_v7, 2 }
 0xad5   : > { %v4939_v63 = vadd.f32 %v4938_v8, %v4937_v7  ;;  %v15737_v7 = vld [vmem:[%s16572_s18 + $0x720] sm:$0xff]   ;;  %v15738_v8 = vld [vmem:[%s16572_s18 + $0x728] sm:$0xff]  }
 0xad7   : > { %v4940_v9 = vrot.slane %v4939_v63, 1 }
 0xad9   : > { %v4941_v10 = vadd.f32 %v4940_v9, %v4939_v63  ;;  %v15739_v63 = vld [vmem:[%s16572_s18 + $0x730] sm:$0xff]   ;;  %v15740_v9 = vld [vmem:[%s16572_s18 + $0x738] sm:$0xff]  }
 0xadb   : > { %v4942_v11 = vmul.f32 0.03125, %v4941_v10  ;;  %v15741_v10 = vld [vmem:[%s16572_s18 + $0x740] sm:$0xff]  }
 0xadd   : > { %v4943_v12 = vadd.f32 1e-05, %v4942_v11 }
 0xadf   : > { %15917 = vrsqrt.f32 %v4943_v12 }
 0xae9   : > { %v15918_v14 = vpop.eup %15917 }
 0xaea   : > { %v4945_v4 = vmul.f32 %v15918_v14, %v11722_v13 }
 0xaec   : > { %v4949_v16 = vrot.slane %v4945_v4, %v16768_v41  ;;  %v4954_v17 = vmul.f32 %v4945_v4, %v4924_v59  ;;  %v15727_v59 = vld [vmem:[%s16572_s18 + $0x6d0] sm:$0xff]  }
 0xaee   : > { %v4950_v18 = vmul.f32 %v4949_v16, %v4891_v44  ;;  %v4951_v56 = vmul.f32 %v4949_v16, %v4894_v46  ;;  %v4952_v19 = vmul.f32 %v14193_v43, %v4949_v16  ;;  %v4953_v20 = vmul.f32 %v14194_v45, %v4949_v16  ;;  %v15718_v44 = vld [vmem:[%s16572_s18 + $0x648] sm:$0xff]   ;;  %v15719_v46 = vld [vmem:[%s16572_s18 + $0x650] sm:$0xff]  }
 0xaef   : > { %v4955_v21 = vsub.f32 %v11723_v15, %v4954_v17  ;;  %v15742_v15 = vld [vmem:[%s16572_s18 + $0x748] sm:$0xff]   ;;  %v15743_v17 = vld [vmem:[%s16572_s18 + $0x750] sm:$0xff]  }
 0xaf1   : > { %v4959_v22 = vrot.slane %v4955_v21, %v16768_v41  ;;  %v15748_v21 = vld [vmem:[%s16572_s18 + $0x778] sm:$0xff]  }
 0xaf3   : > { %v4960_v23 = vadd.f32 %v4959_v22, %v4950_v18  ;;  %v4961_v24 = vadd.f32 %v4959_v22, %v4951_v56  ;;  %v4962_v25 = vadd.f32 %v4959_v22, %v4952_v19  ;;  %v4963_v26 = vadd.f32 %v4959_v22, %v4953_v20  ;;  %v15744_v18 = vld [vmem:[%s16572_s18 + $0x758] sm:$0xff]   ;;  %v15745_v56 = vld [vmem:[%s16572_s18 + $0x760] sm:$0xff]   ;;  %v15746_v19 = vld [vmem:[%s16572_s18 + $0x768] sm:$0xff]  }
 0xaf4   : > { %v15747_v20 = vld [vmem:[%s16572_s18 + $0x770] sm:$0xff]  }
 0xaf5   : > { %v4964_v27 = vmax.f32 %v4960_v23, 0.0  ;;  %v4965_v28 = vmax.f32 %v4961_v24, 0.0  ;;  %v4966_v29 = vmax.f32 %v4962_v25, 0.0  ;;  %v4967_v30 = vmax.f32 %v4963_v26, 0.0  ;;  %v15749_v25 = vld [vmem:[%s16572_s18 + $0x7c0] sm:$0xff]   ;;  %v15750_v26 = vld [vmem:[%s16572_s18 + $0x7c8] sm:$0xff]  }
 0xaf6   : > { %14295 = vmatprep.subr.bf16.mxu0 %v15749_v25 }
 0xaf7   : > { %4968 = vst [vmem:[#allocation2 + $0x8] sm:$0xff] %v4964_v27  ;;  %4969 = vst [vmem:[#allocation2 + $0x10] sm:$0xff] %v4965_v28  ;;  %v5216_v31 = vpack.c.bf16 %v4965_v28, %v4964_v27  ;;  %v16979_v32 = vpack.c.bf16 %v4967_v30, %v4966_v29  ;;  %14296 = vmatpush3.bf16.msra.mxu0 %v15749_v25  ;;  %v15751_v27 = vld [vmem:[%s16572_s18 + $0x7d0] sm:$0xff]   ;;  %v15752_v28 = vld [vmem:[%s16572_s18 + $0x7d8] sm:$0xff]  }
 0xaf8   : > { %4970 = vst [vmem:[#allocation2 + $0x28] sm:$0xff] %v4966_v29  ;;  %4971 = vst [vmem:[#allocation2 + $0x30] sm:$0xff] %v4967_v30  ;;  %14297 = vmatprep.subr.bf16.mxu0 %v15750_v26  ;;  %v15753_v29 = vld [vmem:[%s16572_s18 + $0x7e0] sm:$0xff]   ;;  %v15754_v30 = vld [vmem:[%s16572_s18 + $0x7e8] sm:$0xff]  }
 0xafb   : > { %14298 = vmatpush3.bf16.msra.mxu0 %v15750_v26 }
 0xafc   : > { %14299 = vmatprep.subr.bf16.mxu0 %v15751_v27 }
 0xafe   : > { %v4995_v33 = vld [vmem:[#allocation2 + $0x5] sm:$0xff]  ;;  %v4996_v34 = vld [vmem:[#allocation2 + $0xd] sm:$0xff]  ;;  %v5461_v14 = vld [vmem:[#allocation2 + $0x16] sm:$0xff] }
 0xaff   : > { %v4997_v35 = vld [vmem:[#allocation2 + $0x25] sm:$0xff]  ;;  %v4999_v36 = vpack.c.bf16 %v4996_v34, %v4995_v33  ;;  %v4998_v37 = vld [vmem:[#allocation2 + $0x2d] sm:$0xff]  ;;  %v5463_v23 = vld [vmem:[#allocation2 + $0x36] sm:$0xff]  ;;  %14300 = vmatpush3.bf16.msra.mxu0 %v15751_v27 }
 0xb00   : > { %v4972_v39 = vld [vmem:[#allocation2 + $0x2] sm:$0xff]  ;;  %v4973_v40 = vld [vmem:[#allocation2 + $0xa] sm:$0xff]  ;;  %v5000_v43 = vpack.c.bf16 %v4998_v37, %v4997_v35  ;;  %v5337_v57 = vld [vmem:[#allocation2 + $0x13] sm:$0xff]  ;;  %14301 = vmatprep.subr.bf16.mxu0 %v15752_v28 }
 0xb01   : > { %14211 = vmatprep.mubr.bf16.mxu1 %v4999_v36  ;;  %v4976_v45 = vpack.c.bf16 %v4973_v40, %v4972_v39  ;;  %v4974_v53 = vld [vmem:[#allocation2 + $0x22] sm:$0xff]  ;;  %v4975_v54 = vld [vmem:[#allocation2 + $0x2a] sm:$0xff]  ;;  %v5339_v12 = vld [vmem:[#allocation2 + $0x33] sm:$0xff] }
 0xb02   : > { %14212 = vmatmul.mubr.bf16.vlgmr.msra.gmra.mrb[8].mxu1 %v5000_v43  ;;  %v4977_v55 = vpack.c.bf16 %v4975_v54, %v4974_v53  ;;  %v5336_v1 = vld [vmem:[#allocation2 + $0xb] sm:$0xff]  ;;  %v17023_v33 = vld [vmem:[%s16572_s18 + $0x780] sm:$0xff]  }
 0xb03   : > { %14216 = vmatpush3.bf16.msra.mxu1 %v16972_v42  ;;  %14231 = vmatprep.mubr.bf16.mxu1 %v4976_v45  ;;  %v15724_v42 = vld [vmem:[%s16572_s18 + $0x678] sm:$0xff]   ;;  %v5340_v3 = vpack.c.bf16 %v5337_v57, %v5336_v1  ;;  %v5338_v11 = vld [vmem:[#allocation2 + $0x2b] sm:$0xff] }
 0xb04   : > { %14217 = vmatprep.subr.bf16.mxu1 %v15718_v44  ;;  %v5460_v13 = vld [vmem:[#allocation2 + $0xe] sm:$0xff]  ;;  %v5341_v4 = vpack.c.bf16 %v5339_v12, %v5338_v11  ;;  %14302 = vmatpush3.bf16.msra.mxu0 %v15752_v28 }
 0xb05   : > { %v5464_v16 = vpack.c.bf16 %v5461_v14, %v5460_v13  ;;  %v5462_v22 = vld [vmem:[#allocation2 + $0x2e] sm:$0xff]  ;;  %14303 = vmatprep.subr.bf16.mxu0 %v15753_v29 }
 0xb06   : > { %v5465_v24 = vpack.c.bf16 %v5463_v23, %v5462_v22 }
 0xb07   : > { %14218 = vmatpush3.bf16.msra.mxu1 %v15718_v44 }
 0xb08   : > { %14219 = vmatprep.subr.bf16.mxu1 %v15719_v46  ;;  %14304 = vmatpush3.bf16.msra.mxu0 %v15753_v29 }
 0xb09   : > { %14305 = vmatprep.subr.bf16.mxu0 %v15754_v30 }
 0xb0b   : > { %14220 = vmatpush3.bf16.msra.mxu1 %v15719_v46 }
 0xb0c   : > { %14221 = vmatprep.subr.bf16.mxu1 %v15720_v47  ;;  %14306 = vmatpush3.bf16.msra.mxu0 %v15754_v30 }
 0xb0f   : > { %14222 = vmatpush3.bf16.msra.mxu1 %v15720_v47 }
 0xb10   : > { %14223 = vmatprep.subr.bf16.mxu1 %v15721_v48 }
 0xb13   : > { %14224 = vmatpush3.bf16.msra.mxu1 %v15721_v48 }
 0xb14   : > { %14225 = vmatprep.subr.bf16.mxu1 %v15722_v50 }
 0xb17   : > { %14226 = vmatpush3.bf16.msra.mxu1 %v15722_v50 }
 0xb18   : > { %14227 = vmatprep.subr.bf16.mxu1 %v15723_v51 }
 0xb1b   : > { %14228 = vmatpush3.bf16.msra.mxu1 %v15723_v51 }
 0xb1c   : > { %14229 = vmatprep.subr.bf16.mxu1 %v15724_v42 }
 0xb1f   : > { %14230 = vmatpush3.bf16.msra.mxu1 %v15724_v42 }
 0xb20   : > { %14235 = vmatprep.subr.bf16.mxu1 %v15725_v52 }
 0xb22   : > { %14232 = vmatmul.mubr.bf16.vlgmr.msra.gmra.mrb[8].mxu1 %v4977_v55 }
 0xb23   : > { %14236 = vmatpush3.bf16.msra.mxu1 %v15725_v52  ;;  %14251 = vmatprep.mubr.bf16.mxu1 %v5216_v31  ;;  %v15755_v31 = vld [vmem:[%s16572_s18 + $0x7f0] sm:$0xff]  }
 0xb24   : > { %14237 = vmatprep.subr.bf16.mxu1 %v15726_v58  ;;  %14307 = vmatprep.subr.bf16.mxu0 %v15755_v31 }
 0xb25   : > { %14308 = vmatpush3.bf16.msra.mxu0 %v15755_v31 }
 0xb27   : > { %14238 = vmatpush3.bf16.msra.mxu1 %v15726_v58 }
 0xb28   : > { %14239 = vmatprep.subr.bf16.mxu1 %v15727_v59 }
 0xb2b   : > { %14240 = vmatpush3.bf16.msra.mxu1 %v15727_v59 }
 0xb2c   : > { %14241 = vmatprep.subr.bf16.mxu1 %v15728_v49 }
 0xb2f   : > { %14242 = vmatpush3.bf16.msra.mxu1 %v15728_v49 }
 0xb30   : > { %14243 = vmatprep.subr.bf16.mxu1 %v15729_v60 }
 0xb33   : > { %14244 = vmatpush3.bf16.msra.mxu1 %v15729_v60 }
 0xb34   : > { %14245 = vmatprep.subr.bf16.mxu1 %v15730_v61 }
 0xb37   : > { %14246 = vmatpush3.bf16.msra.mxu1 %v15730_v61 }
 0xb38   : > { %14247 = vmatprep.subr.bf16.mxu1 %v15731_v38 }
 0xb3b   : > { %14248 = vmatpush3.bf16.msra.mxu1 %v15731_v38 }
 0xb3c   : > { %14249 = vmatprep.subr.bf16.mxu1 %v15732_v62 }
 0xb3f   : > { %14250 = vmatpush3.bf16.msra.mxu1 %v15732_v62 }
 0xb40   : > { %14255 = vmatprep.subr.bf16.mxu1 %v15733_v0 }
 0xb42   : > { %14252 = vmatmul.mubr.bf16.vlgmr.msra.gmra.mrb[8].mxu1 %v16979_v32  ;;  %v15756_v32 = vld [vmem:[%s16572_s18 + $0x7f8] sm:$0xff]  }
 0xb43   : > { %14256 = vmatpush3.bf16.msra.mxu1 %v15733_v0  ;;  %14271 = vmatprep.mubr.bf16.mxu1 %v5340_v3 }
 0xb44   : > { %14257 = vmatprep.subr.bf16.mxu1 %v15734_v2  ;;  %14309 = vmatprep.subr.bf16.mxu0 %v15756_v32 }
 0xb45   : > { %14310 = vmatpush3.bf16.msra.mxu0 %v15756_v32 }
 0xb46   : > { %14315 = vmatprep.subr.bf16.mxu0 %v17023_v33 }
 0xb47   : > { %14258 = vmatpush3.bf16.msra.mxu1 %v15734_v2 }
 0xb48   : > { %14259 = vmatprep.subr.bf16.mxu1 %v15735_v5 }
 0xb4b   : > { %14260 = vmatpush3.bf16.msra.mxu1 %v15735_v5 }
 0xb4c   : > { %14261 = vmatprep.subr.bf16.mxu1 %v15736_v6 }
 0xb4f   : > { %14262 = vmatpush3.bf16.msra.mxu1 %v15736_v6 }
 0xb50   : > { %14263 = vmatprep.subr.bf16.mxu1 %v15737_v7 }
 0xb53   : > { %14264 = vmatpush3.bf16.msra.mxu1 %v15737_v7  ;;  %v11844_v7 = vld [vmem:[%s16765_s10 + $0x6] sm:$0x1] }
 0xb54   : > { %14265 = vmatprep.subr.bf16.mxu1 %v15738_v8 }
 0xb57   : > { %14266 = vmatpush3.bf16.msra.mxu1 %v15738_v8 }
 0xb58   : > { %14267 = vmatprep.subr.bf16.mxu1 %v15739_v63 }
 0xb5b   : > { %14268 = vmatpush3.bf16.msra.mxu1 %v15739_v63 }
 0xb5c   : > { %14269 = vmatprep.subr.bf16.mxu1 %v15740_v9 }
 0xb5f   : > { %14270 = vmatpush3.bf16.msra.mxu1 %v15740_v9  ;;  %v11845_v9 = vld [vmem:[%s16770_s16 + $0x6] sm:$0x1] }
 0xb60   : > { %14275 = vmatprep.subr.bf16.mxu1 %v15741_v10 }
 0xb62   : > { %14272 = vmatmul.mubr.bf16.vlgmr.msra.gmra.mrb[8].mxu1 %v5341_v4 }
 0xb63   : > { %14276 = vmatpush3.bf16.msra.mxu1 %v15741_v10  ;;  %14291 = vmatprep.mubr.bf16.mxu1 %v5464_v16 }
 0xb64   : > { %14277 = vmatprep.subr.bf16.mxu1 %v15742_v15 }
 0xb67   : > { %14278 = vmatpush3.bf16.msra.mxu1 %v15742_v15 }
 0xb68   : > { %14279 = vmatprep.subr.bf16.mxu1 %v15743_v17 }
 0xb6b   : > { %14280 = vmatpush3.bf16.msra.mxu1 %v15743_v17 }
 0xb6c   : > { %14281 = vmatprep.subr.bf16.mxu1 %v15744_v18 }
 0xb6f   : > { %14282 = vmatpush3.bf16.msra.mxu1 %v15744_v18 }
 0xb70   : > { %14283 = vmatprep.subr.bf16.mxu1 %v15745_v56 }
 0xb73   : > { %14284 = vmatpush3.bf16.msra.mxu1 %v15745_v56 }
 0xb74   : > { %14285 = vmatprep.subr.bf16.mxu1 %v15746_v19 }
 0xb77   : > { %14286 = vmatpush3.bf16.msra.mxu1 %v15746_v19 }
 0xb78   : > { %14287 = vmatprep.subr.bf16.mxu1 %v15747_v20 }
 0xb7b   : > { %14288 = vmatpush3.bf16.msra.mxu1 %v15747_v20 }
 0xb7c   : > { %14289 = vmatprep.subr.bf16.mxu1 %v15748_v21 }
 0xb7f   : > { %14290 = vmatpush3.bf16.msra.mxu1 %v15748_v21 }
 0xb82   : > { %14292 = vmatmul.mubr.bf16.vlgmr.msra.gmra.mrb[8].mxu1 %v5465_v24 }
 0xc55   : > { %v14293_v34 = vpop.f32.mrb[8].mxu1 }
 0xc56   : > { %v5565_v35 = vpop.f32.mrb[9].mxu1 }
 0xc57   : > { %v14294_v36 = vpop.f32.mrb[10].mxu1 }
 0xc58   : > { %v5568_v37 = vpop.f32.mrb[11].mxu1 }
 0xc59   : > { %v5589_v39 = vadd.f32 %v5568_v37, %v5565_v35 }
 0xc5b   : > { %v5590_v40 = vadd.f32 %v14293_v34, %v5589_v39  ;;  %v15760_v39 = vld [vmem:[%s16572_s18 + $0x798] sm:$0xff]  }
 0xc5d   : > { %v5591_v43 = vadd.f32 %v14294_v36, %v5590_v40  ;;  %v15761_v40 = vld [vmem:[%s16572_s18 + $0x7a0] sm:$0xff]  }
 0xc5f   : > { %v5592_v44 = vrot.slane %v5591_v43, 4 }
 0xc61   : > { %v5593_v45 = vadd.f32 %v5592_v44, %v5591_v43  ;;  %v15762_v43 = vld [vmem:[%s16572_s18 + $0x7a8] sm:$0xff]   ;;  %v15763_v44 = vld [vmem:[%s16572_s18 + $0x7b0] sm:$0xff]  }
 0xc63   : > { %v5594_v46 = vrot.slane %v5593_v45, 2 }
 0xc65   : > { %v5595_v47 = vadd.f32 %v5594_v46, %v5593_v45  ;;  %v15765_v45 = vld [vmem:[%s16572_s18 + $0x800] sm:$0xff]  }
 0xc67   : > { %v5596_v48 = vrot.slane %v5595_v47, 1 }
 0xc69   : > { %v5597_v50 = vadd.f32 %v5596_v48, %v5595_v47 }
 0xc6b   : > { %v5598_v51 = vmul.f32 0.03125, %v5597_v50  ;;  %v15766_v50 = vld [vmem:[%s16572_s18 + $0x808] sm:$0xff]  }
 0xc6d   : > { %v5599_v42 = vsub.f32 %v5565_v35, %v5598_v51  ;;  %v5600_v52 = vsub.f32 %v5568_v37, %v5598_v51  ;;  %v5601_v53 = vsub.f32 %v14293_v34, %v5598_v51  ;;  %v5602_v54 = vsub.f32 %v14294_v36, %v5598_v51 }
 0xc6f   : > { %v5603_v55 = vmul.f32 %v5599_v42, %v5599_v42  ;;  %v5604_v58 = vmul.f32 %v5600_v52, %v5600_v52  ;;  %v5605_v59 = vmul.f32 %v5601_v53, %v5601_v53  ;;  %v5606_v60 = vmul.f32 %v5602_v54, %v5602_v54  ;;  %v15768_v42 = vld [vmem:[%s16572_s18 + $0x818] sm:$0xff]   ;;  %v15769_v52 = vld [vmem:[%s16572_s18 + $0x820] sm:$0xff]   ;;  %v15770_v53 = vld [vmem:[%s16572_s18 + $0x828] sm:$0xff]  }
 0xc70   : > { %v15771_v54 = vld [vmem:[%s16572_s18 + $0x830] sm:$0xff]  }
 0xc71   : > { %v5607_v49 = vadd.f32 %v5604_v58, %v5603_v55  ;;  %v15772_v55 = vld [vmem:[%s16572_s18 + $0x838] sm:$0xff]   ;;  %v15773_v58 = vld [vmem:[%s16572_s18 + $0x840] sm:$0xff]  }
 0xc73   : > { %v5608_v61 = vadd.f32 %v5607_v49, %v5605_v59 }
 0xc75   : > { %v5609_v38 = vadd.f32 %v5608_v61, %v5606_v60  ;;  %v15774_v60 = vld [vmem:[%s16572_s18 + $0x848] sm:$0xff]  }
 0xc77   : > { %v5610_v62 = vrot.slane %v5609_v38, 4 }
 0xc79   : > { %v5611_v0 = vadd.f32 %v5610_v62, %v5609_v38  ;;  %v15775_v38 = vld [vmem:[%s16572_s18 + $0x850] sm:$0xff]   ;;  %v15776_v62 = vld [vmem:[%s16572_s18 + $0x858] sm:$0xff]  }
 0xc7b   : > { %v5612_v1 = vrot.slane %v5611_v0, 2 }
 0xc7d   : > { %v5613_v57 = vadd.f32 %v5612_v1, %v5611_v0  ;;  %v15777_v0 = vld [vmem:[%s16572_s18 + $0x860] sm:$0xff]   ;;  %v15778_v1 = vld [vmem:[%s16572_s18 + $0x868] sm:$0xff]  }
 0xc7f   : > { %v5614_v2 = vrot.slane %v5613_v57, 1 }
 0xc81   : > { %v5615_v3 = vadd.f32 %v5614_v2, %v5613_v57  ;;  %v15779_v57 = vld [vmem:[%s16572_s18 + $0x870] sm:$0xff]   ;;  %v15780_v2 = vld [vmem:[%s16572_s18 + $0x878] sm:$0xff]  }
 0xc83   : > { %v5616_v5 = vmul.f32 0.03125, %v5615_v3  ;;  %v15781_v3 = vld [vmem:[%s16572_s18 + $0x880] sm:$0xff]  }
 0xc85   : > { %v5617_v6 = vadd.f32 1e-05, %v5616_v5 }
 0xc87   : > { %15919 = vrsqrt.f32 %v5617_v6 }
 0xc91   : > { %v15920_v8 = vpop.eup %15919 }
 0xc92   : > { %v5619_v63 = vmul.f32 %v15920_v8, %v11844_v7 }
 0xc94   : > { %v5623_v10 = vrot.slane %v5619_v63, %v16768_v41  ;;  %v5628_v11 = vmul.f32 %v5619_v63, %v5598_v51  ;;  %v15767_v51 = vld [vmem:[%s16572_s18 + $0x810] sm:$0xff]  }
 0xc96   : > { %v5624_v12 = vmul.f32 %v5623_v10, %v5565_v35  ;;  %v5625_v13 = vmul.f32 %v5623_v10, %v5568_v37  ;;  %v5626_v14 = vmul.f32 %v14293_v34, %v5623_v10  ;;  %v5627_v4 = vmul.f32 %v14294_v36, %v5623_v10  ;;  %v15758_v35 = vld [vmem:[%s16572_s18 + $0x788] sm:$0xff]   ;;  %v15759_v37 = vld [vmem:[%s16572_s18 + $0x790] sm:$0xff]  }
 0xc97   : > { %v5629_v15 = vsub.f32 %v11845_v9, %v5628_v11  ;;  %v15782_v9 = vld [vmem:[%s16572_s18 + $0x888] sm:$0xff]   ;;  %v15783_v11 = vld [vmem:[%s16572_s18 + $0x890] sm:$0xff]  }
 0xc99   : > { %v5633_v16 = vrot.slane %v5629_v15, %v16768_v41  ;;  %v15788_v15 = vld [vmem:[%s16572_s18 + $0x8b8] sm:$0xff]  }
 0xc9b   : > { %v5634_v17 = vadd.f32 %v5633_v16, %v5624_v12  ;;  %v5635_v18 = vadd.f32 %v5633_v16, %v5625_v13  ;;  %v5636_v56 = vadd.f32 %v5633_v16, %v5626_v14  ;;  %v5637_v19 = vadd.f32 %v5633_v16, %v5627_v4  ;;  %v15784_v12 = vld [vmem:[%s16572_s18 + $0x898] sm:$0xff]   ;;  %v15785_v13 = vld [vmem:[%s16572_s18 + $0x8a0] sm:$0xff]   ;;  %v15786_v14 = vld [vmem:[%s16572_s18 + $0x8a8] sm:$0xff]  }
 0xc9c   : > { %v15787_v4 = vld [vmem:[%s16572_s18 + $0x8b0] sm:$0xff]  }
 0xc9d   : > { %v5638_v20 = vmax.f32 %v5634_v17, 0.0  ;;  %v5639_v21 = vmax.f32 %v5635_v18, 0.0  ;;  %v5640_v22 = vmax.f32 %v5636_v56, 0.0  ;;  %v5641_v23 = vmax.f32 %v5637_v19, 0.0  ;;  %v15789_v56 = vld [vmem:[%s16572_s18 + $0x900] sm:$0xff]   ;;  %v15790_v19 = vld [vmem:[%s16572_s18 + $0x908] sm:$0xff]  }
 0xc9e   : > { %14395 = vmatprep.subr.bf16.mxu1 %v15789_v56 }
 0xc9f   : > { %5642 = vst [vmem:[#allocation2 + $0x8] sm:$0xff] %v5638_v20  ;;  %5643 = vst [vmem:[#allocation2 + $0x10] sm:$0xff] %v5639_v21  ;;  %v5890_v24 = vpack.c.bf16 %v5639_v21, %v5638_v20  ;;  %v17030_v25 = vpack.c.bf16 %v5641_v23, %v5640_v22  ;;  %14396 = vmatpush3.bf16.msra.mxu1 %v15789_v56  ;;  %v15791_v20 = vld [vmem:[%s16572_s18 + $0x910] sm:$0xff]   ;;  %v15792_v21 = vld [vmem:[%s16572_s18 + $0x918] sm:$0xff]  }
 0xca0   : > { %5644 = vst [vmem:[#allocation2 + $0x28] sm:$0xff] %v5640_v22  ;;  %5645 = vst [vmem:[#allocation2 + $0x30] sm:$0xff] %v5641_v23  ;;  %14397 = vmatprep.subr.bf16.mxu1 %v15790_v19  ;;  %v15793_v22 = vld [vmem:[%s16572_s18 + $0x920] sm:$0xff]   ;;  %v15794_v23 = vld [vmem:[%s16572_s18 + $0x928] sm:$0xff]  }
 0xca3   : > { %14398 = vmatpush3.bf16.msra.mxu1 %v15790_v19 }
 0xca4   : > { %14399 = vmatprep.subr.bf16.mxu1 %v15791_v20 }
 0xca6   : > { %v5669_v26 = vld [vmem:[#allocation2 + $0x5] sm:$0xff]  ;;  %v5670_v27 = vld [vmem:[#allocation2 + $0xd] sm:$0xff]  ;;  %v6135_v8 = vld [vmem:[#allocation2 + $0x16] sm:$0xff] }
 0xca7   : > { %v5671_v28 = vld [vmem:[#allocation2 + $0x25] sm:$0xff]  ;;  %v5673_v29 = vpack.c.bf16 %v5670_v27, %v5669_v26  ;;  %v5672_v30 = vld [vmem:[#allocation2 + $0x2d] sm:$0xff]  ;;  %v6137_v17 = vld [vmem:[#allocation2 + $0x36] sm:$0xff]  ;;  %14400 = vmatpush3.bf16.msra.mxu1 %v15791_v20 }
 0xca8   : > { %v5646_v31 = vld [vmem:[#allocation2 + $0x2] sm:$0xff]  ;;  %v5647_v32 = vld [vmem:[#allocation2 + $0xa] sm:$0xff]  ;;  %v5674_v34 = vpack.c.bf16 %v5672_v30, %v5671_v28  ;;  %v6011_v49 = vld [vmem:[#allocation2 + $0x13] sm:$0xff]  ;;  %14401 = vmatprep.subr.bf16.mxu1 %v15792_v21 }
 0xca9   : > { %14311 = vmatprep.mubr.bf16.mxu0 %v5673_v29  ;;  %v5650_v36 = vpack.c.bf16 %v5647_v32, %v5646_v31  ;;  %v5648_v46 = vld [vmem:[#allocation2 + $0x22] sm:$0xff]  ;;  %v5649_v47 = vld [vmem:[#allocation2 + $0x2a] sm:$0xff]  ;;  %v6013_v6 = vld [vmem:[#allocation2 + $0x33] sm:$0xff] }
 0xcaa   : > { %14312 = vmatmul.mubr.bf16.vlgmr.msra.gmra.mrb[12].mxu0 %v5674_v34  ;;  %v5651_v48 = vpack.c.bf16 %v5649_v47, %v5648_v46  ;;  %v6010_v59 = vld [vmem:[#allocation2 + $0xb] sm:$0xff]  ;;  %v17074_v26 = vld [vmem:[%s16572_s18 + $0x8c0] sm:$0xff]  }
 0xcab   : > { %14316 = vmatpush3.bf16.msra.mxu0 %v17023_v33  ;;  %14331 = vmatprep.mubr.bf16.mxu0 %v5650_v36  ;;  %v15764_v33 = vld [vmem:[%s16572_s18 + $0x7b8] sm:$0xff]   ;;  %v6014_v61 = vpack.c.bf16 %v6011_v49, %v6010_v59  ;;  %v6012_v5 = vld [vmem:[#allocation2 + $0x2b] sm:$0xff] }
 0xcac   : > { %14317 = vmatprep.subr.bf16.mxu0 %v15758_v35  ;;  %v6134_v7 = vld [vmem:[#allocation2 + $0xe] sm:$0xff]  ;;  %v6015_v63 = vpack.c.bf16 %v6013_v6, %v6012_v5  ;;  %14402 = vmatpush3.bf16.msra.mxu1 %v15792_v21 }
 0xcad   : > { %v6138_v10 = vpack.c.bf16 %v6135_v8, %v6134_v7  ;;  %v6136_v16 = vld [vmem:[#allocation2 + $0x2e] sm:$0xff]  ;;  %14403 = vmatprep.subr.bf16.mxu1 %v15793_v22 }
 0xcae   : > { %v6139_v18 = vpack.c.bf16 %v6137_v17, %v6136_v16 }
 0xcaf   : > { %14318 = vmatpush3.bf16.msra.mxu0 %v15758_v35 }
 0xcb0   : > { %14319 = vmatprep.subr.bf16.mxu0 %v15759_v37  ;;  %14404 = vmatpush3.bf16.msra.mxu1 %v15793_v22 }
 0xcb1   : > { %14405 = vmatprep.subr.bf16.mxu1 %v15794_v23 }
 0xcb3   : > { %14320 = vmatpush3.bf16.msra.mxu0 %v15759_v37 }
 0xcb4   : > { %14321 = vmatprep.subr.bf16.mxu0 %v15760_v39  ;;  %14406 = vmatpush3.bf16.msra.mxu1 %v15794_v23 }
 0xcb7   : > { %14322 = vmatpush3.bf16.msra.mxu0 %v15760_v39 }
 0xcb8   : > { %14323 = vmatprep.subr.bf16.mxu0 %v15761_v40 }
 0xcbb   : > { %14324 = vmatpush3.bf16.msra.mxu0 %v15761_v40 }
 0xcbc   : > { %14325 = vmatprep.subr.bf16.mxu0 %v15762_v43 }
 0xcbf   : > { %14326 = vmatpush3.bf16.msra.mxu0 %v15762_v43 }
 0xcc0   : > { %14327 = vmatprep.subr.bf16.mxu0 %v15763_v44 }
 0xcc3   : > { %14328 = vmatpush3.bf16.msra.mxu0 %v15763_v44 }
 0xcc4   : > { %14329 = vmatprep.subr.bf16.mxu0 %v15764_v33 }
 0xcc7   : > { %14330 = vmatpush3.bf16.msra.mxu0 %v15764_v33 }
 0xcc8   : > { %14335 = vmatprep.subr.bf16.mxu0 %v15765_v45 }
 0xcca   : > { %14332 = vmatmul.mubr.bf16.vlgmr.msra.gmra.mrb[12].mxu0 %v5651_v48 }
 0xccb   : > { %14336 = vmatpush3.bf16.msra.mxu0 %v15765_v45  ;;  %14351 = vmatprep.mubr.bf16.mxu0 %v5890_v24  ;;  %v15795_v24 = vld [vmem:[%s16572_s18 + $0x930] sm:$0xff]  }
 0xccc   : > { %14337 = vmatprep.subr.bf16.mxu0 %v15766_v50  ;;  %14407 = vmatprep.subr.bf16.mxu1 %v15795_v24 }
 0xccd   : > { %14408 = vmatpush3.bf16.msra.mxu1 %v15795_v24 }
 0xccf   : > { %14338 = vmatpush3.bf16.msra.mxu0 %v15766_v50 }
 0xcd0   : > { %14339 = vmatprep.subr.bf16.mxu0 %v15767_v51 }
 0xcd3   : > { %14340 = vmatpush3.bf16.msra.mxu0 %v15767_v51 }
 0xcd4   : > { %14341 = vmatprep.subr.bf16.mxu0 %v15768_v42 }
 0xcd7   : > { %14342 = vmatpush3.bf16.msra.mxu0 %v15768_v42 }
 0xcd8   : > { %14343 = vmatprep.subr.bf16.mxu0 %v15769_v52 }
 0xcdb   : > { %14344 = vmatpush3.bf16.msra.mxu0 %v15769_v52 }
 0xcdc   : > { %14345 = vmatprep.subr.bf16.mxu0 %v15770_v53 }
 0xcdf   : > { %14346 = vmatpush3.bf16.msra.mxu0 %v15770_v53 }
 0xce0   : > { %14347 = vmatprep.subr.bf16.mxu0 %v15771_v54 }
 0xce3   : > { %14348 = vmatpush3.bf16.msra.mxu0 %v15771_v54 }
 0xce4   : > { %14349 = vmatprep.subr.bf16.mxu0 %v15772_v55 }
 0xce7   : > { %14350 = vmatpush3.bf16.msra.mxu0 %v15772_v55 }
 0xce8   : > { %14355 = vmatprep.subr.bf16.mxu0 %v15773_v58 }
 0xcea   : > { %14352 = vmatmul.mubr.bf16.vlgmr.msra.gmra.mrb[12].mxu0 %v17030_v25  ;;  %v15796_v25 = vld [vmem:[%s16572_s18 + $0x938] sm:$0xff]  }
 0xceb   : > { %14356 = vmatpush3.bf16.msra.mxu0 %v15773_v58  ;;  %14371 = vmatprep.mubr.bf16.mxu0 %v6014_v61 }
 0xcec   : > { %14357 = vmatprep.subr.bf16.mxu0 %v15774_v60  ;;  %14409 = vmatprep.subr.bf16.mxu1 %v15796_v25 }
 0xced   : > { %14410 = vmatpush3.bf16.msra.mxu1 %v15796_v25 }
 0xcee   : > { %14415 = vmatprep.subr.bf16.mxu1 %v17074_v26 }
 0xcef   : > { %14358 = vmatpush3.bf16.msra.mxu0 %v15774_v60 }
 0xcf0   : > { %14359 = vmatprep.subr.bf16.mxu0 %v15775_v38 }
 0xcf3   : > { %14360 = vmatpush3.bf16.msra.mxu0 %v15775_v38 }
 0xcf4   : > { %14361 = vmatprep.subr.bf16.mxu0 %v15776_v62 }
 0xcf7   : > { %14362 = vmatpush3.bf16.msra.mxu0 %v15776_v62 }
 0xcf8   : > { %14363 = vmatprep.subr.bf16.mxu0 %v15777_v0 }
 0xcfb   : > { %14364 = vmatpush3.bf16.msra.mxu0 %v15777_v0  ;;  %v11966_v0 = vld [vmem:[%s16765_s10 + $0x7] sm:$0x1] }
 0xcfc   : > { %14365 = vmatprep.subr.bf16.mxu0 %v15778_v1 }
 0xcff   : > { %14366 = vmatpush3.bf16.msra.mxu0 %v15778_v1 }
 0xd00   : > { %14367 = vmatprep.subr.bf16.mxu0 %v15779_v57 }
 0xd03   : > { %14368 = vmatpush3.bf16.msra.mxu0 %v15779_v57 }
 0xd04   : > { %14369 = vmatprep.subr.bf16.mxu0 %v15780_v2 }
 0xd07   : > { %14370 = vmatpush3.bf16.msra.mxu0 %v15780_v2  ;;  %v11967_v2 = vld [vmem:[%s16770_s16 + $0x7] sm:$0x1] }
 0xd08   : > { %14375 = vmatprep.subr.bf16.mxu0 %v15781_v3 }
 0xd0a   : > { %14372 = vmatmul.mubr.bf16.vlgmr.msra.gmra.mrb[12].mxu0 %v6015_v63 }
 0xd0b   : > { %14376 = vmatpush3.bf16.msra.mxu0 %v15781_v3  ;;  %14391 = vmatprep.mubr.bf16.mxu0 %v6138_v10 }
 0xd0c   : > { %14377 = vmatprep.subr.bf16.mxu0 %v15782_v9 }
 0xd0f   : > { %14378 = vmatpush3.bf16.msra.mxu0 %v15782_v9 }
 0xd10   : > { %14379 = vmatprep.subr.bf16.mxu0 %v15783_v11 }
 0xd13   : > { %14380 = vmatpush3.bf16.msra.mxu0 %v15783_v11 }
 0xd14   : > { %14381 = vmatprep.subr.bf16.mxu0 %v15784_v12 }
 0xd17   : > { %14382 = vmatpush3.bf16.msra.mxu0 %v15784_v12 }
 0xd18   : > { %14383 = vmatprep.subr.bf16.mxu0 %v15785_v13 }
 0xd1b   : > { %14384 = vmatpush3.bf16.msra.mxu0 %v15785_v13 }
 0xd1c   : > { %14385 = vmatprep.subr.bf16.mxu0 %v15786_v14 }
 0xd1f   : > { %14386 = vmatpush3.bf16.msra.mxu0 %v15786_v14 }
 0xd20   : > { %14387 = vmatprep.subr.bf16.mxu0 %v15787_v4 }
 0xd23   : > { %14388 = vmatpush3.bf16.msra.mxu0 %v15787_v4 }
 0xd24   : > { %14389 = vmatprep.subr.bf16.mxu0 %v15788_v15 }
 0xd27   : > { %14390 = vmatpush3.bf16.msra.mxu0 %v15788_v15 }
 0xd2a   : > { %14392 = vmatmul.mubr.bf16.vlgmr.msra.gmra.mrb[12].mxu0 %v6139_v18 }
 0xdfd   : > { %v14393_v27 = vpop.f32.mrb[12].mxu0 }
 0xdfe   : > { %v6239_v28 = vpop.f32.mrb[13].mxu0 }
 0xdff   : > { %v14394_v29 = vpop.f32.mrb[14].mxu0 }
 0xe00   : > { %v6242_v30 = vpop.f32.mrb[15].mxu0 }
 0xe01   : > { %v6263_v31 = vadd.f32 %v6242_v30, %v6239_v28 }
 0xe03   : > { %v6264_v32 = vadd.f32 %v14393_v27, %v6263_v31  ;;  %v15800_v31 = vld [vmem:[%s16572_s18 + $0x8d8] sm:$0xff]  }
 0xe05   : > { %v6265_v34 = vadd.f32 %v14394_v29, %v6264_v32  ;;  %v15801_v32 = vld [vmem:[%s16572_s18 + $0x8e0] sm:$0xff]  }
 0xe07   : > { %v6266_v35 = vrot.slane %v6265_v34, 4 }
 0xe09   : > { %v6267_v36 = vadd.f32 %v6266_v35, %v6265_v34  ;;  %v15802_v34 = vld [vmem:[%s16572_s18 + $0x8e8] sm:$0xff]   ;;  %v15803_v35 = vld [vmem:[%s16572_s18 + $0x8f0] sm:$0xff]  }
 0xe0b   : > { %v6268_v37 = vrot.slane %v6267_v36, 2 }
 0xe0d   : > { %v6269_v39 = vadd.f32 %v6268_v37, %v6267_v36  ;;  %v15805_v36 = vld [vmem:[%s16572_s18 + $0x940] sm:$0xff]  }
 0xe0f   : > { %v6270_v40 = vrot.slane %v6269_v39, 1 }
 0xe11   : > { %v6271_v43 = vadd.f32 %v6270_v40, %v6269_v39 }
 0xe13   : > { %v6272_v44 = vmul.f32 0.03125, %v6271_v43  ;;  %v15806_v43 = vld [vmem:[%s16572_s18 + $0x948] sm:$0xff]  }
 0xe15   : > { %v6273_v33 = vsub.f32 %v6239_v28, %v6272_v44  ;;  %v6274_v45 = vsub.f32 %v6242_v30, %v6272_v44  ;;  %v6275_v46 = vsub.f32 %v14393_v27, %v6272_v44  ;;  %v6276_v47 = vsub.f32 %v14394_v29, %v6272_v44 }
 0xe17   : > { %v6277_v48 = vmul.f32 %v6273_v33, %v6273_v33  ;;  %v6278_v50 = vmul.f32 %v6274_v45, %v6274_v45  ;;  %v6279_v51 = vmul.f32 %v6275_v46, %v6275_v46  ;;  %v6280_v52 = vmul.f32 %v6276_v47, %v6276_v47  ;;  %v15808_v33 = vld [vmem:[%s16572_s18 + $0x958] sm:$0xff]   ;;  %v15809_v45 = vld [vmem:[%s16572_s18 + $0x960] sm:$0xff]   ;;  %v15810_v46 = vld [vmem:[%s16572_s18 + $0x968] sm:$0xff]  }
 0xe18   : > { %v15811_v47 = vld [vmem:[%s16572_s18 + $0x970] sm:$0xff]  }
 0xe19   : > { %v6281_v42 = vadd.f32 %v6278_v50, %v6277_v48  ;;  %v15812_v48 = vld [vmem:[%s16572_s18 + $0x978] sm:$0xff]   ;;  %v15813_v50 = vld [vmem:[%s16572_s18 + $0x980] sm:$0xff]  }
 0xe1b   : > { %v6282_v53 = vadd.f32 %v6281_v42, %v6279_v51 }
 0xe1d   : > { %v6283_v54 = vadd.f32 %v6282_v53, %v6280_v52  ;;  %v15814_v52 = vld [vmem:[%s16572_s18 + $0x988] sm:$0xff]  }
 0xe1f   : > { %v6284_v55 = vrot.slane %v6283_v54, 4 }
 0xe21   : > { %v6285_v58 = vadd.f32 %v6284_v55, %v6283_v54  ;;  %v15815_v54 = vld [vmem:[%s16572_s18 + $0x990] sm:$0xff]   ;;  %v15816_v55 = vld [vmem:[%s16572_s18 + $0x998] sm:$0xff]  }
 0xe23   : > { %v6286_v59 = vrot.slane %v6285_v58, 2 }
 0xe25   : > { %v6287_v49 = vadd.f32 %v6286_v59, %v6285_v58  ;;  %v15817_v58 = vld [vmem:[%s16572_s18 + $0x9a0] sm:$0xff]   ;;  %v15818_v59 = vld [vmem:[%s16572_s18 + $0x9a8] sm:$0xff]  }
 0xe27   : > { %v6288_v60 = vrot.slane %v6287_v49, 1 }
 0xe29   : > { %v6289_v61 = vadd.f32 %v6288_v60, %v6287_v49  ;;  %v15819_v49 = vld [vmem:[%s16572_s18 + $0x9b0] sm:$0xff]   ;;  %v15820_v60 = vld [vmem:[%s16572_s18 + $0x9b8] sm:$0xff]  }
 0xe2b   : > { %v6290_v38 = vmul.f32 0.03125, %v6289_v61  ;;  %v15821_v61 = vld [vmem:[%s16572_s18 + $0x9c0] sm:$0xff]  }
 0xe2d   : > { %v6291_v62 = vadd.f32 1e-05, %v6290_v38 }
 0xe2f   : > { %15921 = vrsqrt.f32 %v6291_v62 }
 0xe39   : > { %v15922_v1 = vpop.eup %15921 }
 0xe3a   : > { %v6293_v57 = vmul.f32 %v15922_v1, %v11966_v0 }
 0xe3c   : > { %v6297_v3 = vrot.slane %v6293_v57, %v16768_v41  ;;  %v6302_v5 = vmul.f32 %v6293_v57, %v6272_v44  ;;  %v15807_v44 = vld [vmem:[%s16572_s18 + $0x950] sm:$0xff]  }
 0xe3e   : > { %v6298_v6 = vmul.f32 %v6297_v3, %v6239_v28  ;;  %v6299_v7 = vmul.f32 %v6297_v3, %v6242_v30  ;;  %v6300_v8 = vmul.f32 %v14393_v27, %v6297_v3  ;;  %v6301_v63 = vmul.f32 %v14394_v29, %v6297_v3  ;;  %v15798_v28 = vld [vmem:[%s16572_s18 + $0x8c8] sm:$0xff]   ;;  %v15799_v30 = vld [vmem:[%s16572_s18 + $0x8d0] sm:$0xff]  }
 0xe3f   : > { %v6303_v9 = vsub.f32 %v11967_v2, %v6302_v5  ;;  %v15822_v2 = vld [vmem:[%s16572_s18 + $0x9c8] sm:$0xff]   ;;  %v15823_v5 = vld [vmem:[%s16572_s18 + $0x9d0] sm:$0xff]  }
 0xe41   : > { %v6307_v10 = vrot.slane %v6303_v9, %v16768_v41  ;;  %v15828_v9 = vld [vmem:[%s16572_s18 + $0x9f8] sm:$0xff]  }
 0xe43   : > { %v6308_v11 = vadd.f32 %v6307_v10, %v6298_v6  ;;  %v6309_v12 = vadd.f32 %v6307_v10, %v6299_v7  ;;  %v6310_v13 = vadd.f32 %v6307_v10, %v6300_v8  ;;  %v6311_v14 = vadd.f32 %v6307_v10, %v6301_v63  ;;  %v15824_v6 = vld [vmem:[%s16572_s18 + $0x9d8] sm:$0xff]   ;;  %v15825_v7 = vld [vmem:[%s16572_s18 + $0x9e0] sm:$0xff]   ;;  %v15826_v8 = vld [vmem:[%s16572_s18 + $0x9e8] sm:$0xff]  }
 0xe44   : > { %v15827_v63 = vld [vmem:[%s16572_s18 + $0x9f0] sm:$0xff]  }
 0xe45   : > { %v6312_v4 = vmax.f32 %v6308_v11, 0.0  ;;  %v6313_v15 = vmax.f32 %v6309_v12, 0.0  ;;  %v6314_v16 = vmax.f32 %v6310_v13, 0.0  ;;  %v6315_v17 = vmax.f32 %v6311_v14, 0.0  ;;  %v15829_v13 = vld [vmem:[%s16572_s18 + $0xa40] sm:$0xff]   ;;  %v15830_v14 = vld [vmem:[%s16572_s18 + $0xa48] sm:$0xff]  }
 0xe46   : > { %14495 = vmatprep.subr.bf16.mxu0 %v15829_v13 }
 0xe47   : > { %6316 = vst [vmem:[#allocation2 + $0x8] sm:$0xff] %v6312_v4  ;;  %6317 = vst [vmem:[#allocation2 + $0x10] sm:$0xff] %v6313_v15  ;;  %v6564_v18 = vpack.c.bf16 %v6313_v15, %v6312_v4  ;;  %v17081_v56 = vpack.c.bf16 %v6315_v17, %v6314_v16  ;;  %14496 = vmatpush3.bf16.msra.mxu0 %v15829_v13  ;;  %v15831_v4 = vld [vmem:[%s16572_s18 + $0xa50] sm:$0xff]   ;;  %v15832_v15 = vld [vmem:[%s16572_s18 + $0xa58] sm:$0xff]  }
 0xe48   : > { %6318 = vst [vmem:[#allocation2 + $0x28] sm:$0xff] %v6314_v16  ;;  %6319 = vst [vmem:[#allocation2 + $0x30] sm:$0xff] %v6315_v17  ;;  %14497 = vmatprep.subr.bf16.mxu0 %v15830_v14  ;;  %v15833_v16 = vld [vmem:[%s16572_s18 + $0xa60] sm:$0xff]   ;;  %v15834_v17 = vld [vmem:[%s16572_s18 + $0xa68] sm:$0xff]  }
 0xe4b   : > { %14498 = vmatpush3.bf16.msra.mxu0 %v15830_v14 }
 0xe4c   : > { %14499 = vmatprep.subr.bf16.mxu0 %v15831_v4 }
 0xe4e   : > { %v6343_v19 = vld [vmem:[#allocation2 + $0x5] sm:$0xff]  ;;  %v6344_v20 = vld [vmem:[#allocation2 + $0xd] sm:$0xff]  ;;  %v6809_v1 = vld [vmem:[#allocation2 + $0x16] sm:$0xff] }
 0xe4f   : > { %v6345_v21 = vld [vmem:[#allocation2 + $0x25] sm:$0xff]  ;;  %v6347_v22 = vpack.c.bf16 %v6344_v20, %v6343_v19  ;;  %v6346_v23 = vld [vmem:[#allocation2 + $0x2d] sm:$0xff]  ;;  %v6811_v11 = vld [vmem:[#allocation2 + $0x36] sm:$0xff]  ;;  %14500 = vmatpush3.bf16.msra.mxu0 %v15831_v4 }
 0xe50   : > { %v6320_v24 = vld [vmem:[#allocation2 + $0x2] sm:$0xff]  ;;  %v6321_v25 = vld [vmem:[#allocation2 + $0xa] sm:$0xff]  ;;  %v6348_v27 = vpack.c.bf16 %v6346_v23, %v6345_v21  ;;  %v6685_v42 = vld [vmem:[#allocation2 + $0x13] sm:$0xff]  ;;  %14501 = vmatprep.subr.bf16.mxu0 %v15832_v15 }
 0xe51   : > { %14411 = vmatprep.mubr.bf16.mxu1 %v6347_v22  ;;  %v6324_v29 = vpack.c.bf16 %v6321_v25, %v6320_v24  ;;  %v6322_v37 = vld [vmem:[#allocation2 + $0x22] sm:$0xff]  ;;  %v6323_v39 = vld [vmem:[#allocation2 + $0x2a] sm:$0xff]  ;;  %v6687_v62 = vld [vmem:[#allocation2 + $0x33] sm:$0xff] }
 0xe52   : > { %14412 = vmatmul.mubr.bf16.vlgmr.msra.gmra.mrb[12].mxu1 %v6348_v27  ;;  %v6325_v40 = vpack.c.bf16 %v6323_v39, %v6322_v37  ;;  %v6684_v51 = vld [vmem:[#allocation2 + $0xb] sm:$0xff]  ;;  %v17125_v19 = vld [vmem:[%s16572_s18 + $0xa00] sm:$0xff]  }
 0xe53   : > { %14416 = vmatpush3.bf16.msra.mxu1 %v17074_v26  ;;  %14431 = vmatprep.mubr.bf16.mxu1 %v6324_v29  ;;  %v15804_v26 = vld [vmem:[%s16572_s18 + $0x8f8] sm:$0xff]   ;;  %v6688_v53 = vpack.c.bf16 %v6685_v42, %v6684_v51  ;;  %v6686_v38 = vld [vmem:[#allocation2 + $0x2b] sm:$0xff] }
 0xe54   : > { %14417 = vmatprep.subr.bf16.mxu1 %v15798_v28  ;;  %v6808_v0 = vld [vmem:[#allocation2 + $0xe] sm:$0xff]  ;;  %v6689_v57 = vpack.c.bf16 %v6687_v62, %v6686_v38  ;;  %14502 = vmatpush3.bf16.msra.mxu0 %v15832_v15 }
 0xe55   : > { %v6812_v3 = vpack.c.bf16 %v6809_v1, %v6808_v0  ;;  %v6810_v10 = vld [vmem:[#allocation2 + $0x2e] sm:$0xff]  ;;  %14503 = vmatprep.subr.bf16.mxu0 %v15833_v16 }
 0xe56   : > { %v6813_v12 = vpack.c.bf16 %v6811_v11, %v6810_v10 }
 0xe57   : > { %14418 = vmatpush3.bf16.msra.mxu1 %v15798_v28 }
 0xe58   : > { %14419 = vmatprep.subr.bf16.mxu1 %v15799_v30  ;;  %14504 = vmatpush3.bf16.msra.mxu0 %v15833_v16 }
 0xe59   : > { %14505 = vmatprep.subr.bf16.mxu0 %v15834_v17 }
 0xe5b   : > { %14420 = vmatpush3.bf16.msra.mxu1 %v15799_v30 }
 0xe5c   : > { %14421 = vmatprep.subr.bf16.mxu1 %v15800_v31  ;;  %14506 = vmatpush3.bf16.msra.mxu0 %v15834_v17 }
 0xe5f   : > { %14422 = vmatpush3.bf16.msra.mxu1 %v15800_v31 }
 0xe60   : > { %14423 = vmatprep.subr.bf16.mxu1 %v15801_v32 }
 0xe63   : > { %14424 = vmatpush3.bf16.msra.mxu1 %v15801_v32 }
 0xe64   : > { %14425 = vmatprep.subr.bf16.mxu1 %v15802_v34 }
 0xe67   : > { %14426 = vmatpush3.bf16.msra.mxu1 %v15802_v34 }
 0xe68   : > { %14427 = vmatprep.subr.bf16.mxu1 %v15803_v35 }
 0xe6b   : > { %14428 = vmatpush3.bf16.msra.mxu1 %v15803_v35 }
 0xe6c   : > { %14429 = vmatprep.subr.bf16.mxu1 %v15804_v26 }
 0xe6f   : > { %14430 = vmatpush3.bf16.msra.mxu1 %v15804_v26 }
 0xe70   : > { %14435 = vmatprep.subr.bf16.mxu1 %v15805_v36 }
 0xe72   : > { %14432 = vmatmul.mubr.bf16.vlgmr.msra.gmra.mrb[12].mxu1 %v6325_v40 }
 0xe73   : > { %14436 = vmatpush3.bf16.msra.mxu1 %v15805_v36  ;;  %14451 = vmatprep.mubr.bf16.mxu1 %v6564_v18  ;;  %v15835_v18 = vld [vmem:[%s16572_s18 + $0xa70] sm:$0xff]  }
 0xe74   : > { %14437 = vmatprep.subr.bf16.mxu1 %v15806_v43  ;;  %14507 = vmatprep.subr.bf16.mxu0 %v15835_v18 }
 0xe75   : > { %14508 = vmatpush3.bf16.msra.mxu0 %v15835_v18 }
 0xe77   : > { %14438 = vmatpush3.bf16.msra.mxu1 %v15806_v43 }
 0xe78   : > { %14439 = vmatprep.subr.bf16.mxu1 %v15807_v44 }
 0xe7b   : > { %14440 = vmatpush3.bf16.msra.mxu1 %v15807_v44 }
 0xe7c   : > { %14441 = vmatprep.subr.bf16.mxu1 %v15808_v33 }
 0xe7f   : > { %14442 = vmatpush3.bf16.msra.mxu1 %v15808_v33 }
 0xe80   : > { %14443 = vmatprep.subr.bf16.mxu1 %v15809_v45 }
 0xe83   : > { %14444 = vmatpush3.bf16.msra.mxu1 %v15809_v45 }
 0xe84   : > { %14445 = vmatprep.subr.bf16.mxu1 %v15810_v46 }
 0xe87   : > { %14446 = vmatpush3.bf16.msra.mxu1 %v15810_v46 }
 0xe88   : > { %14447 = vmatprep.subr.bf16.mxu1 %v15811_v47 }
 0xe8b   : > { %14448 = vmatpush3.bf16.msra.mxu1 %v15811_v47 }
 0xe8c   : > { %14449 = vmatprep.subr.bf16.mxu1 %v15812_v48 }
 0xe8f   : > { %14450 = vmatpush3.bf16.msra.mxu1 %v15812_v48 }
 0xe90   : > { %14455 = vmatprep.subr.bf16.mxu1 %v15813_v50 }
 0xe92   : > { %14452 = vmatmul.mubr.bf16.vlgmr.msra.gmra.mrb[12].mxu1 %v17081_v56  ;;  %v15836_v56 = vld [vmem:[%s16572_s18 + $0xa78] sm:$0xff]  }
 0xe93   : > { %14456 = vmatpush3.bf16.msra.mxu1 %v15813_v50  ;;  %14471 = vmatprep.mubr.bf16.mxu1 %v6688_v53 }
 0xe94   : > { %14457 = vmatprep.subr.bf16.mxu1 %v15814_v52  ;;  %14509 = vmatprep.subr.bf16.mxu0 %v15836_v56 }
 0xe95   : > { %14510 = vmatpush3.bf16.msra.mxu0 %v15836_v56 }
 0xe96   : > { %14515 = vmatprep.subr.bf16.mxu0 %v17125_v19 }
 0xe97   : > { %14458 = vmatpush3.bf16.msra.mxu1 %v15814_v52 }
 0xe98   : > { %14459 = vmatprep.subr.bf16.mxu1 %v15815_v54 }
 0xe9b   : > { %14460 = vmatpush3.bf16.msra.mxu1 %v15815_v54 }
 0xe9c   : > { %14461 = vmatprep.subr.bf16.mxu1 %v15816_v55 }
 0xe9f   : > { %14462 = vmatpush3.bf16.msra.mxu1 %v15816_v55 }
 0xea0   : > { %14463 = vmatprep.subr.bf16.mxu1 %v15817_v58 }
 0xea3   : > { %14464 = vmatpush3.bf16.msra.mxu1 %v15817_v58  ;;  %v12088_v58 = vld [vmem:[%s16765_s10 + $0x8] sm:$0x1] }
 0xea4   : > { %14465 = vmatprep.subr.bf16.mxu1 %v15818_v59 }
 0xea7   : > { %14466 = vmatpush3.bf16.msra.mxu1 %v15818_v59 }
 0xea8   : > { %14467 = vmatprep.subr.bf16.mxu1 %v15819_v49 }
 0xeab   : > { %14468 = vmatpush3.bf16.msra.mxu1 %v15819_v49 }
 0xeac   : > { %14469 = vmatprep.subr.bf16.mxu1 %v15820_v60 }
 0xeaf   : > { %14470 = vmatpush3.bf16.msra.mxu1 %v15820_v60  ;;  %v12089_v60 = vld [vmem:[%s16770_s16 + $0x8] sm:$0x1] }
 0xeb0   : > { %14475 = vmatprep.subr.bf16.mxu1 %v15821_v61 }
 0xeb2   : > { %14472 = vmatmul.mubr.bf16.vlgmr.msra.gmra.mrb[12].mxu1 %v6689_v57 }
 0xeb3   : > { %14476 = vmatpush3.bf16.msra.mxu1 %v15821_v61  ;;  %14491 = vmatprep.mubr.bf16.mxu1 %v6812_v3 }
 0xeb4   : > { %14477 = vmatprep.subr.bf16.mxu1 %v15822_v2 }
 0xeb7   : > { %14478 = vmatpush3.bf16.msra.mxu1 %v15822_v2 }
 0xeb8   : > { %14479 = vmatprep.subr.bf16.mxu1 %v15823_v5 }
 0xebb   : > { %14480 = vmatpush3.bf16.msra.mxu1 %v15823_v5 }
 0xebc   : > { %14481 = vmatprep.subr.bf16.mxu1 %v15824_v6 }
 0xebf   : > { %14482 = vmatpush3.bf16.msra.mxu1 %v15824_v6 }
 0xec0   : > { %14483 = vmatprep.subr.bf16.mxu1 %v15825_v7 }
 0xec3   : > { %14484 = vmatpush3.bf16.msra.mxu1 %v15825_v7 }
 0xec4   : > { %14485 = vmatprep.subr.bf16.mxu1 %v15826_v8 }
 0xec7   : > { %14486 = vmatpush3.bf16.msra.mxu1 %v15826_v8 }
 0xec8   : > { %14487 = vmatprep.subr.bf16.mxu1 %v15827_v63 }
 0xecb   : > { %14488 = vmatpush3.bf16.msra.mxu1 %v15827_v63 }
 0xecc   : > { %14489 = vmatprep.subr.bf16.mxu1 %v15828_v9 }
 0xecf   : > { %14490 = vmatpush3.bf16.msra.mxu1 %v15828_v9 }
 0xed2   : > { %14492 = vmatmul.mubr.bf16.vlgmr.msra.gmra.mrb[12].mxu1 %v6813_v12 }
 0xfa5   : > { %v14493_v20 = vpop.f32.mrb[12].mxu1 }
 0xfa6   : > { %v6913_v21 = vpop.f32.mrb[13].mxu1 }
 0xfa7   : > { %v14494_v22 = vpop.f32.mrb[14].mxu1 }
 0xfa8   : > { %v6916_v23 = vpop.f32.mrb[15].mxu1 }
 0xfa9   : > { %v6937_v24 = vadd.f32 %v6916_v23, %v6913_v21 }
 0xfab   : > { %v6938_v25 = vadd.f32 %v14493_v20, %v6937_v24  ;;  %v15840_v24 = vld [vmem:[%s16572_s18 + $0xa18] sm:$0xff]  }
 0xfad   : > { %v6939_v27 = vadd.f32 %v14494_v22, %v6938_v25  ;;  %v15841_v25 = vld [vmem:[%s16572_s18 + $0xa20] sm:$0xff]  }
 0xfaf   : > { %v6940_v28 = vrot.slane %v6939_v27, 4 }
 0xfb1   : > { %v6941_v29 = vadd.f32 %v6940_v28, %v6939_v27  ;;  %v15842_v27 = vld [vmem:[%s16572_s18 + $0xa28] sm:$0xff]   ;;  %v15843_v28 = vld [vmem:[%s16572_s18 + $0xa30] sm:$0xff]  }
 0xfb3   : > { %v6942_v30 = vrot.slane %v6941_v29, 2 }
 0xfb5   : > { %v6943_v31 = vadd.f32 %v6942_v30, %v6941_v29  ;;  %v15845_v29 = vld [vmem:[%s16572_s18 + $0xa80] sm:$0xff]  }
 0xfb7   : > { %v6944_v32 = vrot.slane %v6943_v31, 1 }
 0xfb9   : > { %v6945_v34 = vadd.f32 %v6944_v32, %v6943_v31 }
 0xfbb   : > { %v6946_v35 = vmul.f32 0.03125, %v6945_v34  ;;  %v15846_v34 = vld [vmem:[%s16572_s18 + $0xa88] sm:$0xff]  }
 0xfbd   : > { %v6947_v26 = vsub.f32 %v6913_v21, %v6946_v35  ;;  %v6948_v36 = vsub.f32 %v6916_v23, %v6946_v35  ;;  %v6949_v37 = vsub.f32 %v14493_v20, %v6946_v35  ;;  %v6950_v39 = vsub.f32 %v14494_v22, %v6946_v35 }
 0xfbf   : > { %v6951_v40 = vmul.f32 %v6947_v26, %v6947_v26  ;;  %v6952_v43 = vmul.f32 %v6948_v36, %v6948_v36  ;;  %v6953_v44 = vmul.f32 %v6949_v37, %v6949_v37  ;;  %v6954_v45 = vmul.f32 %v6950_v39, %v6950_v39  ;;  %v15848_v26 = vld [vmem:[%s16572_s18 + $0xa98] sm:$0xff]   ;;  %v15849_v36 = vld [vmem:[%s16572_s18 + $0xaa0] sm:$0xff]   ;;  %v15850_v37 = vld [vmem:[%s16572_s18 + $0xaa8] sm:$0xff]  }
 0xfc0   : > { %v15851_v39 = vld [vmem:[%s16572_s18 + $0xab0] sm:$0xff]  }
 0xfc1   : > { %v6955_v33 = vadd.f32 %v6952_v43, %v6951_v40  ;;  %v15852_v40 = vld [vmem:[%s16572_s18 + $0xab8] sm:$0xff]   ;;  %v15853_v43 = vld [vmem:[%s16572_s18 + $0xac0] sm:$0xff]  }
 0xfc3   : > { %v6956_v46 = vadd.f32 %v6955_v33, %v6953_v44 }
 0xfc5   : > { %v6957_v47 = vadd.f32 %v6956_v46, %v6954_v45  ;;  %v15854_v45 = vld [vmem:[%s16572_s18 + $0xac8] sm:$0xff]  }
 0xfc7   : > { %v6958_v48 = vrot.slane %v6957_v47, 4 }
 0xfc9   : > { %v6959_v50 = vadd.f32 %v6958_v48, %v6957_v47  ;;  %v15855_v47 = vld [vmem:[%s16572_s18 + $0xad0] sm:$0xff]   ;;  %v15856_v48 = vld [vmem:[%s16572_s18 + $0xad8] sm:$0xff]  }
 0xfcb   : > { %v6960_v51 = vrot.slane %v6959_v50, 2 }
 0xfcd   : > { %v6961_v42 = vadd.f32 %v6960_v51, %v6959_v50  ;;  %v15857_v50 = vld [vmem:[%s16572_s18 + $0xae0] sm:$0xff]   ;;  %v15858_v51 = vld [vmem:[%s16572_s18 + $0xae8] sm:$0xff]  }
 0xfcf   : > { %v6962_v52 = vrot.slane %v6961_v42, 1 }
 0xfd1   : > { %v6963_v53 = vadd.f32 %v6962_v52, %v6961_v42  ;;  %v15859_v42 = vld [vmem:[%s16572_s18 + $0xaf0] sm:$0xff]   ;;  %v15860_v52 = vld [vmem:[%s16572_s18 + $0xaf8] sm:$0xff]  }
 0xfd3   : > { %v6964_v54 = vmul.f32 0.03125, %v6963_v53  ;;  %v15861_v53 = vld [vmem:[%s16572_s18 + $0xb00] sm:$0xff]  }
 0xfd5   : > { %v6965_v55 = vadd.f32 1e-05, %v6964_v54 }
 0xfd7   : > { %15923 = vrsqrt.f32 %v6965_v55 }
 0xfe1   : > { %v15924_v59 = vpop.eup %15923 }
 0xfe2   : > { %v6967_v49 = vmul.f32 %v15924_v59, %v12088_v58 }
 0xfe4   : > { %v6971_v61 = vrot.slane %v6967_v49, %v16768_v41  ;;  %v6976_v38 = vmul.f32 %v6967_v49, %v6946_v35  ;;  %v15847_v35 = vld [vmem:[%s16572_s18 + $0xa90] sm:$0xff]  }
 0xfe6   : > { %v6972_v62 = vmul.f32 %v6971_v61, %v6913_v21  ;;  %v6973_v0 = vmul.f32 %v6971_v61, %v6916_v23  ;;  %v6974_v1 = vmul.f32 %v14493_v20, %v6971_v61  ;;  %v6975_v57 = vmul.f32 %v14494_v22, %v6971_v61  ;;  %v15838_v21 = vld [vmem:[%s16572_s18 + $0xa08] sm:$0xff]   ;;  %v15839_v23 = vld [vmem:[%s16572_s18 + $0xa10] sm:$0xff]  }
 0xfe7   : > { %v6977_v2 = vsub.f32 %v12089_v60, %v6976_v38  ;;  %v15862_v60 = vld [vmem:[%s16572_s18 + $0xb08] sm:$0xff]   ;;  %v15863_v38 = vld [vmem:[%s16572_s18 + $0xb10] sm:$0xff]  }
 0xfe9   : > { %v6981_v3 = vrot.slane %v6977_v2, %v16768_v41  ;;  %v15868_v2 = vld [vmem:[%s16572_s18 + $0xb38] sm:$0xff]  }
 0xfeb   : > { %v6982_v5 = vadd.f32 %v6981_v3, %v6972_v62  ;;  %v6983_v6 = vadd.f32 %v6981_v3, %v6973_v0  ;;  %v6984_v7 = vadd.f32 %v6981_v3, %v6974_v1  ;;  %v6985_v8 = vadd.f32 %v6981_v3, %v6975_v57  ;;  %v15864_v62 = vld [vmem:[%s16572_s18 + $0xb18] sm:$0xff]   ;;  %v15865_v0 = vld [vmem:[%s16572_s18 + $0xb20] sm:$0xff]   ;;  %v15866_v1 = vld [vmem:[%s16572_s18 + $0xb28] sm:$0xff]  }
 0xfec   : > { %v15867_v57 = vld [vmem:[%s16572_s18 + $0xb30] sm:$0xff]  }
 0xfed   : > { %v6986_v63 = vmax.f32 %v6982_v5, 0.0  ;;  %v6987_v9 = vmax.f32 %v6983_v6, 0.0  ;;  %v6988_v10 = vmax.f32 %v6984_v7, 0.0  ;;  %v6989_v11 = vmax.f32 %v6985_v8, 0.0  ;;  %v15869_v7 = vld [vmem:[%s16572_s18 + $0xb80] sm:$0xff]   ;;  %v15870_v8 = vld [vmem:[%s16572_s18 + $0xb88] sm:$0xff]  }
 0xfee   : > { %14595 = vmatprep.subr.bf16.mxu1 %v15869_v7 }
 0xfef   : > { %6990 = vst [vmem:[#allocation2 + $0x8] sm:$0xff] %v6986_v63  ;;  %6991 = vst [vmem:[#allocation2 + $0x10] sm:$0xff] %v6987_v9  ;;  %v7238_v12 = vpack.c.bf16 %v6987_v9, %v6986_v63  ;;  %v17132_v13 = vpack.c.bf16 %v6989_v11, %v6988_v10  ;;  %14596 = vmatpush3.bf16.msra.mxu1 %v15869_v7  ;;  %v15871_v63 = vld [vmem:[%s16572_s18 + $0xb90] sm:$0xff]   ;;  %v15872_v9 = vld [vmem:[%s16572_s18 + $0xb98] sm:$0xff]  }
 0xff0   : > { %6992 = vst [vmem:[#allocation2 + $0x28] sm:$0xff] %v6988_v10  ;;  %6993 = vst [vmem:[#allocation2 + $0x30] sm:$0xff] %v6989_v11  ;;  %14597 = vmatprep.subr.bf16.mxu1 %v15870_v8  ;;  %v15873_v10 = vld [vmem:[%s16572_s18 + $0xba0] sm:$0xff]   ;;  %v15874_v11 = vld [vmem:[%s16572_s18 + $0xba8] sm:$0xff]  }
 0xff3   : > { %14598 = vmatpush3.bf16.msra.mxu1 %v15870_v8 }
 0xff4   : > { %14599 = vmatprep.subr.bf16.mxu1 %v15871_v63 }
 0xff6   : > { %v7017_v14 = vld [vmem:[#allocation2 + $0x5] sm:$0xff]  ;;  %v7018_v4 = vld [vmem:[#allocation2 + $0xd] sm:$0xff]  ;;  %v7483_v59 = vld [vmem:[#allocation2 + $0x16] sm:$0xff] }
 0xff7   : > { %v7019_v15 = vld [vmem:[#allocation2 + $0x25] sm:$0xff]  ;;  %v7021_v16 = vpack.c.bf16 %v7018_v4, %v7017_v14  ;;  %v7020_v17 = vld [vmem:[#allocation2 + $0x2d] sm:$0xff]  ;;  %v7485_v5 = vld [vmem:[#allocation2 + $0x36] sm:$0xff]  ;;  %14600 = vmatpush3.bf16.msra.mxu1 %v15871_v63 }
 0xff8   : > { %v6994_v18 = vld [vmem:[#allocation2 + $0x2] sm:$0xff]  ;;  %v6995_v56 = vld [vmem:[#allocation2 + $0xa] sm:$0xff]  ;;  %v7022_v20 = vpack.c.bf16 %v7020_v17, %v7019_v15  ;;  %v7359_v33 = vld [vmem:[#allocation2 + $0x13] sm:$0xff]  ;;  %14601 = vmatprep.subr.bf16.mxu1 %v15872_v9 }
 0xff9   : > { %14511 = vmatprep.mubr.bf16.mxu0 %v7021_v16  ;;  %v6998_v22 = vpack.c.bf16 %v6995_v56, %v6994_v18  ;;  %v6996_v30 = vld [vmem:[#allocation2 + $0x22] sm:$0xff]  ;;  %v6997_v31 = vld [vmem:[#allocation2 + $0x2a] sm:$0xff]  ;;  %v7361_v55 = vld [vmem:[#allocation2 + $0x33] sm:$0xff] }
 0xffa   : > { %14512 = vmatmul.mubr.bf16.vlgmr.msra.gmra.mrb[16].mxu0 %v7022_v20  ;;  %v6999_v32 = vpack.c.bf16 %v6997_v31, %v6996_v30  ;;  %v7358_v44 = vld [vmem:[#allocation2 + $0xb] sm:$0xff]  ;;  %v17176_v14 = vld [vmem:[%s16572_s18 + $0xb40] sm:$0xff]  }
 0xffb   : > { %14516 = vmatpush3.bf16.msra.mxu0 %v17125_v19  ;;  %14531 = vmatprep.mubr.bf16.mxu0 %v6998_v22  ;;  %v15844_v19 = vld [vmem:[%s16572_s18 + $0xa38] sm:$0xff]   ;;  %v7362_v46 = vpack.c.bf16 %v7359_v33, %v7358_v44  ;;  %v7360_v54 = vld [vmem:[#allocation2 + $0x2b] sm:$0xff] }
 0xffc   : > { %14517 = vmatprep.subr.bf16.mxu0 %v15838_v21  ;;  %v7482_v58 = vld [vmem:[#allocation2 + $0xe] sm:$0xff]  ;;  %v7363_v49 = vpack.c.bf16 %v7361_v55, %v7360_v54  ;;  %14602 = vmatpush3.bf16.msra.mxu1 %v15872_v9 }
 0xffd   : > { %v7486_v61 = vpack.c.bf16 %v7483_v59, %v7482_v58  ;;  %v7484_v3 = vld [vmem:[#allocation2 + $0x2e] sm:$0xff]  ;;  %14603 = vmatprep.subr.bf16.mxu1 %v15873_v10 }
 0xffe   : > { %v7487_v6 = vpack.c.bf16 %v7485_v5, %v7484_v3 }
 0xfff   : > { %14518 = vmatpush3.bf16.msra.mxu0 %v15838_v21 }
0x1000   : > { %14519 = vmatprep.subr.bf16.mxu0 %v15839_v23  ;;  %14604 = vmatpush3.bf16.msra.mxu1 %v15873_v10 }
0x1001   : > { %14605 = vmatprep.subr.bf16.mxu1 %v15874_v11 }
0x1003   : > { %14520 = vmatpush3.bf16.msra.mxu0 %v15839_v23 }
0x1004   : > { %14521 = vmatprep.subr.bf16.mxu0 %v15840_v24  ;;  %14606 = vmatpush3.bf16.msra.mxu1 %v15874_v11 }
0x1007   : > { %14522 = vmatpush3.bf16.msra.mxu0 %v15840_v24 }
0x1008   : > { %14523 = vmatprep.subr.bf16.mxu0 %v15841_v25 }
0x100b   : > { %14524 = vmatpush3.bf16.msra.mxu0 %v15841_v25 }
0x100c   : > { %14525 = vmatprep.subr.bf16.mxu0 %v15842_v27 }
0x100f   : > { %14526 = vmatpush3.bf16.msra.mxu0 %v15842_v27 }
0x1010   : > { %14527 = vmatprep.subr.bf16.mxu0 %v15843_v28 }
0x1013   : > { %14528 = vmatpush3.bf16.msra.mxu0 %v15843_v28 }
0x1014   : > { %14529 = vmatprep.subr.bf16.mxu0 %v15844_v19 }
0x1017   : > { %14530 = vmatpush3.bf16.msra.mxu0 %v15844_v19 }
0x1018   : > { %14535 = vmatprep.subr.bf16.mxu0 %v15845_v29 }
0x101a   : > { %14532 = vmatmul.mubr.bf16.vlgmr.msra.gmra.mrb[16].mxu0 %v6999_v32 }
0x101b   : > { %14536 = vmatpush3.bf16.msra.mxu0 %v15845_v29  ;;  %14551 = vmatprep.mubr.bf16.mxu0 %v7238_v12  ;;  %v15875_v12 = vld [vmem:[%s16572_s18 + $0xbb0] sm:$0xff]  }
0x101c   : > { %14537 = vmatprep.subr.bf16.mxu0 %v15846_v34  ;;  %14607 = vmatprep.subr.bf16.mxu1 %v15875_v12 }
0x101d   : > { %14608 = vmatpush3.bf16.msra.mxu1 %v15875_v12 }
0x101f   : > { %14538 = vmatpush3.bf16.msra.mxu0 %v15846_v34 }
0x1020   : > { %14539 = vmatprep.subr.bf16.mxu0 %v15847_v35 }
0x1023   : > { %14540 = vmatpush3.bf16.msra.mxu0 %v15847_v35 }
0x1024   : > { %14541 = vmatprep.subr.bf16.mxu0 %v15848_v26 }
0x1027   : > { %14542 = vmatpush3.bf16.msra.mxu0 %v15848_v26 }
0x1028   : > { %14543 = vmatprep.subr.bf16.mxu0 %v15849_v36 }
0x102b   : > { %14544 = vmatpush3.bf16.msra.mxu0 %v15849_v36 }
0x102c   : > { %14545 = vmatprep.subr.bf16.mxu0 %v15850_v37 }
0x102f   : > { %14546 = vmatpush3.bf16.msra.mxu0 %v15850_v37 }
0x1030   : > { %14547 = vmatprep.subr.bf16.mxu0 %v15851_v39 }
0x1033   : > { %14548 = vmatpush3.bf16.msra.mxu0 %v15851_v39 }
0x1034   : > { %14549 = vmatprep.subr.bf16.mxu0 %v15852_v40 }
0x1037   : > { %14550 = vmatpush3.bf16.msra.mxu0 %v15852_v40 }
0x1038   : > { %14555 = vmatprep.subr.bf16.mxu0 %v15853_v43 }
0x103a   : > { %14552 = vmatmul.mubr.bf16.vlgmr.msra.gmra.mrb[16].mxu0 %v17132_v13  ;;  %v15876_v13 = vld [vmem:[%s16572_s18 + $0xbb8] sm:$0xff]  }
0x103b   : > { %14556 = vmatpush3.bf16.msra.mxu0 %v15853_v43  ;;  %14571 = vmatprep.mubr.bf16.mxu0 %v7362_v46 }
0x103c   : > { %14557 = vmatprep.subr.bf16.mxu0 %v15854_v45  ;;  %14609 = vmatprep.subr.bf16.mxu1 %v15876_v13 }
0x103d   : > { %14610 = vmatpush3.bf16.msra.mxu1 %v15876_v13 }
0x103e   : > { %14615 = vmatprep.subr.bf16.mxu1 %v17176_v14 }
0x103f   : > { %14558 = vmatpush3.bf16.msra.mxu0 %v15854_v45 }
0x1040   : > { %14559 = vmatprep.subr.bf16.mxu0 %v15855_v47 }
0x1043   : > { %14560 = vmatpush3.bf16.msra.mxu0 %v15855_v47 }
0x1044   : > { %14561 = vmatprep.subr.bf16.mxu0 %v15856_v48 }
0x1047   : > { %14562 = vmatpush3.bf16.msra.mxu0 %v15856_v48 }
0x1048   : > { %14563 = vmatprep.subr.bf16.mxu0 %v15857_v50 }
0x104b   : > { %14564 = vmatpush3.bf16.msra.mxu0 %v15857_v50  ;;  %v12210_v50 = vld [vmem:[%s16765_s10 + $0x9] sm:$0x1] }
0x104c   : > { %14565 = vmatprep.subr.bf16.mxu0 %v15858_v51 }
0x104f   : > { %14566 = vmatpush3.bf16.msra.mxu0 %v15858_v51 }
0x1050   : > { %14567 = vmatprep.subr.bf16.mxu0 %v15859_v42 }
0x1053   : > { %14568 = vmatpush3.bf16.msra.mxu0 %v15859_v42 }
0x1054   : > { %14569 = vmatprep.subr.bf16.mxu0 %v15860_v52 }
0x1057   : > { %14570 = vmatpush3.bf16.msra.mxu0 %v15860_v52  ;;  %v12211_v52 = vld [vmem:[%s16770_s16 + $0x9] sm:$0x1] }
0x1058   : > { %14575 = vmatprep.subr.bf16.mxu0 %v15861_v53 }
0x105a   : > { %14572 = vmatmul.mubr.bf16.vlgmr.msra.gmra.mrb[16].mxu0 %v7363_v49 }
0x105b   : > { %14576 = vmatpush3.bf16.msra.mxu0 %v15861_v53  ;;  %14591 = vmatprep.mubr.bf16.mxu0 %v7486_v61 }
0x105c   : > { %14577 = vmatprep.subr.bf16.mxu0 %v15862_v60 }
0x105f   : > { %14578 = vmatpush3.bf16.msra.mxu0 %v15862_v60 }
0x1060   : > { %14579 = vmatprep.subr.bf16.mxu0 %v15863_v38 }
0x1063   : > { %14580 = vmatpush3.bf16.msra.mxu0 %v15863_v38 }
0x1064   : > { %14581 = vmatprep.subr.bf16.mxu0 %v15864_v62 }
0x1067   : > { %14582 = vmatpush3.bf16.msra.mxu0 %v15864_v62 }
0x1068   : > { %14583 = vmatprep.subr.bf16.mxu0 %v15865_v0 }
0x106b   : > { %14584 = vmatpush3.bf16.msra.mxu0 %v15865_v0 }
0x106c   : > { %14585 = vmatprep.subr.bf16.mxu0 %v15866_v1 }
0x106f   : > { %14586 = vmatpush3.bf16.msra.mxu0 %v15866_v1 }
0x1070   : > { %14587 = vmatprep.subr.bf16.mxu0 %v15867_v57 }
0x1073   : > { %14588 = vmatpush3.bf16.msra.mxu0 %v15867_v57 }
0x1074   : > { %14589 = vmatprep.subr.bf16.mxu0 %v15868_v2 }
0x1077   : > { %14590 = vmatpush3.bf16.msra.mxu0 %v15868_v2 }
0x107a   : > { %14592 = vmatmul.mubr.bf16.vlgmr.msra.gmra.mrb[16].mxu0 %v7487_v6 }
0x114d   : > { %v14593_v4 = vpop.f32.mrb[16].mxu0 }
0x114e   : > { %v7587_v15 = vpop.f32.mrb[17].mxu0 }
0x114f   : > { %v14594_v16 = vpop.f32.mrb[18].mxu0 }
0x1150   : > { %v7590_v17 = vpop.f32.mrb[19].mxu0 }
0x1151   : > { %v7611_v18 = vadd.f32 %v7590_v17, %v7587_v15 }
0x1153   : > { %v7612_v56 = vadd.f32 %v14593_v4, %v7611_v18  ;;  %v15880_v18 = vld [vmem:[%s16572_s18 + $0xb58] sm:$0xff]  }
0x1155   : > { %v7613_v20 = vadd.f32 %v14594_v16, %v7612_v56  ;;  %v15881_v56 = vld [vmem:[%s16572_s18 + $0xb60] sm:$0xff]  }
0x1157   : > { %v7614_v21 = vrot.slane %v7613_v20, 4 }
0x1159   : > { %v7615_v22 = vadd.f32 %v7614_v21, %v7613_v20  ;;  %v15882_v20 = vld [vmem:[%s16572_s18 + $0xb68] sm:$0xff]   ;;  %v15883_v21 = vld [vmem:[%s16572_s18 + $0xb70] sm:$0xff]  }
0x115b   : > { %v7616_v23 = vrot.slane %v7615_v22, 2 }
0x115d   : > { %v7617_v24 = vadd.f32 %v7616_v23, %v7615_v22  ;;  %v15885_v22 = vld [vmem:[%s16572_s18 + $0xbc0] sm:$0xff]  }
0x115f   : > { %v7618_v25 = vrot.slane %v7617_v24, 1 }
0x1161   : > { %v7619_v27 = vadd.f32 %v7618_v25, %v7617_v24 }
0x1163   : > { %v7620_v28 = vmul.f32 0.03125, %v7619_v27  ;;  %v15886_v27 = vld [vmem:[%s16572_s18 + $0xbc8] sm:$0xff]  }
0x1165   : > { %v7621_v19 = vsub.f32 %v7587_v15, %v7620_v28  ;;  %v7622_v29 = vsub.f32 %v7590_v17, %v7620_v28  ;;  %v7623_v30 = vsub.f32 %v14593_v4, %v7620_v28  ;;  %v7624_v31 = vsub.f32 %v14594_v16, %v7620_v28 }
0x1167   : > { %v7625_v32 = vmul.f32 %v7621_v19, %v7621_v19  ;;  %v7626_v34 = vmul.f32 %v7622_v29, %v7622_v29  ;;  %v7627_v35 = vmul.f32 %v7623_v30, %v7623_v30  ;;  %v7628_v36 = vmul.f32 %v7624_v31, %v7624_v31  ;;  %v15888_v19 = vld [vmem:[%s16572_s18 + $0xbd8] sm:$0xff]   ;;  %v15889_v29 = vld [vmem:[%s16572_s18 + $0xbe0] sm:$0xff]   ;;  %v15890_v30 = vld [vmem:[%s16572_s18 + $0xbe8] sm:$0xff]  }
0x1168   : > { %v15891_v31 = vld [vmem:[%s16572_s18 + $0xbf0] sm:$0xff]  }
0x1169   : > { %v7629_v26 = vadd.f32 %v7626_v34, %v7625_v32  ;;  %v15892_v32 = vld [vmem:[%s16572_s18 + $0xbf8] sm:$0xff]   ;;  %v15893_v34 = vld [vmem:[%s16572_s18 + $0xc00] sm:$0xff]  }
0x116b   : > { %v7630_v37 = vadd.f32 %v7629_v26, %v7627_v35 }
0x116d   : > { %v7631_v39 = vadd.f32 %v7630_v37, %v7628_v36  ;;  %v15894_v36 = vld [vmem:[%s16572_s18 + $0xc08] sm:$0xff]  }
0x116f   : > { %v7632_v40 = vrot.slane %v7631_v39, 4 }
0x1171   : > { %v7633_v43 = vadd.f32 %v7632_v40, %v7631_v39  ;;  %v15895_v39 = vld [vmem:[%s16572_s18 + $0xc10] sm:$0xff]   ;;  %v15896_v40 = vld [vmem:[%s16572_s18 + $0xc18] sm:$0xff]  }
0x1173   : > { %v7634_v44 = vrot.slane %v7633_v43, 2 }
0x1175   : > { %v7635_v33 = vadd.f32 %v7634_v44, %v7633_v43  ;;  %v15897_v43 = vld [vmem:[%s16572_s18 + $0xc20] sm:$0xff]   ;;  %v15898_v44 = vld [vmem:[%s16572_s18 + $0xc28] sm:$0xff]  }
0x1177   : > { %v7636_v45 = vrot.slane %v7635_v33, 1 }
0x1179   : > { %v7637_v46 = vadd.f32 %v7636_v45, %v7635_v33  ;;  %v15899_v33 = vld [vmem:[%s16572_s18 + $0xc30] sm:$0xff]   ;;  %v15900_v45 = vld [vmem:[%s16572_s18 + $0xc38] sm:$0xff]  }
0x117b   : > { %v7638_v47 = vmul.f32 0.03125, %v7637_v46  ;;  %v15901_v46 = vld [vmem:[%s16572_s18 + $0xc40] sm:$0xff]  }
0x117d   : > { %v7639_v48 = vadd.f32 1e-05, %v7638_v47 }
0x117f   : > { %15925 = vrsqrt.f32 %v7639_v48 }
0x1189   : > { %v15926_v51 = vpop.eup %15925 }
0x118a   : > { %v7641_v42 = vmul.f32 %v15926_v51, %v12210_v50 }
0x118c   : > { %v7645_v53 = vrot.slane %v7641_v42, %v16768_v41  ;;  %v7650_v54 = vmul.f32 %v7641_v42, %v7620_v28  ;;  %v15887_v28 = vld [vmem:[%s16572_s18 + $0xbd0] sm:$0xff]  }
0x118e   : > { %v7646_v55 = vmul.f32 %v7645_v53, %v7587_v15  ;;  %v7647_v58 = vmul.f32 %v7645_v53, %v7590_v17  ;;  %v7648_v59 = vmul.f32 %v14593_v4, %v7645_v53  ;;  %v7649_v49 = vmul.f32 %v14594_v16, %v7645_v53  ;;  %v15878_v15 = vld [vmem:[%s16572_s18 + $0xb48] sm:$0xff]   ;;  %v15879_v17 = vld [vmem:[%s16572_s18 + $0xb50] sm:$0xff]  }
0x118f   : > { %v7651_v60 = vsub.f32 %v12211_v52, %v7650_v54  ;;  %v15902_v52 = vld [vmem:[%s16572_s18 + $0xc48] sm:$0xff]   ;;  %v15903_v54 = vld [vmem:[%s16572_s18 + $0xc50] sm:$0xff]  }
0x1191   : > { %v7655_v61 = vrot.slane %v7651_v60, %v16768_v41  ;;  %v15908_v60 = vld [vmem:[%s16572_s18 + $0xc78] sm:$0xff]  }
0x1193   : > { %v7656_v38 = vadd.f32 %v7655_v61, %v7646_v55  ;;  %v7657_v62 = vadd.f32 %v7655_v61, %v7647_v58  ;;  %v7658_v0 = vadd.f32 %v7655_v61, %v7648_v59  ;;  %v7659_v1 = vadd.f32 %v7655_v61, %v7649_v49  ;;  %v15904_v55 = vld [vmem:[%s16572_s18 + $0xc58] sm:$0xff]   ;;  %v15905_v58 = vld [vmem:[%s16572_s18 + $0xc60] sm:$0xff]   ;;  %v15906_v59 = vld [vmem:[%s16572_s18 + $0xc68] sm:$0xff]  }
0x1194   : > { %v15907_v49 = vld [vmem:[%s16572_s18 + $0xc70] sm:$0xff]  }
0x1195   : > { %v7660_v57 = vmax.f32 %v7656_v38, 0.0  ;;  %v7661_v2 = vmax.f32 %v7657_v62, 0.0  ;;  %v7662_v3 = vmax.f32 %v7658_v0, 0.0  ;;  %v7663_v5 = vmax.f32 %v7659_v1, 0.0 }
0x1197   : > { %7664 = vst [vmem:[#allocation2 + $0x8] sm:$0xff] %v7660_v57  ;;  %7665 = vst [vmem:[#allocation2 + $0x10] sm:$0xff] %v7661_v2  ;;  %v7912_v6 = vpack.c.bf16 %v7661_v2, %v7660_v57  ;;  %v17183_v7 = vpack.c.bf16 %v7663_v5, %v7662_v3 }
0x1198   : > { %7666 = vst [vmem:[#allocation2 + $0x28] sm:$0xff] %v7662_v3  ;;  %7667 = vst [vmem:[#allocation2 + $0x30] sm:$0xff] %v7663_v5 }
0x119e   : > { %v7691_v8 = vld [vmem:[#allocation2 + $0x5] sm:$0xff]  ;;  %v7692_v63 = vld [vmem:[#allocation2 + $0xd] sm:$0xff]  ;;  %v8157_v51 = vld [vmem:[#allocation2 + $0x16] sm:$0xff] }
0x119f   : > { %v7693_v9 = vld [vmem:[#allocation2 + $0x25] sm:$0xff]  ;;  %v7695_v10 = vpack.c.bf16 %v7692_v63, %v7691_v8  ;;  %v7694_v11 = vld [vmem:[#allocation2 + $0x2d] sm:$0xff]  ;;  %v8159_v38 = vld [vmem:[#allocation2 + $0x36] sm:$0xff] }
0x11a0   : > { %v7668_v12 = vld [vmem:[#allocation2 + $0x2] sm:$0xff]  ;;  %v7669_v13 = vld [vmem:[#allocation2 + $0xa] sm:$0xff]  ;;  %v7696_v4 = vpack.c.bf16 %v7694_v11, %v7693_v9  ;;  %v8033_v26 = vld [vmem:[#allocation2 + $0x13] sm:$0xff] }
0x11a1   : > { %14611 = vmatprep.mubr.bf16.mxu1 %v7695_v10  ;;  %v7672_v16 = vpack.c.bf16 %v7669_v13, %v7668_v12  ;;  %v7670_v23 = vld [vmem:[#allocation2 + $0x22] sm:$0xff]  ;;  %v7671_v24 = vld [vmem:[#allocation2 + $0x2a] sm:$0xff]  ;;  %v8035_v48 = vld [vmem:[#allocation2 + $0x33] sm:$0xff] }
0x11a2   : > { %14612 = vmatmul.mubr.bf16.vlgmr.msra.gmra.mrb[16].mxu1 %v7696_v4  ;;  %v7673_v25 = vpack.c.bf16 %v7671_v24, %v7670_v23  ;;  %v8032_v35 = vld [vmem:[#allocation2 + $0xb] sm:$0xff] }
0x11a3   : > { %14616 = vmatpush3.bf16.msra.mxu1 %v17176_v14  ;;  %14631 = vmatprep.mubr.bf16.mxu1 %v7672_v16  ;;  %v15884_v14 = vld [vmem:[%s16572_s18 + $0xb78] sm:$0xff]   ;;  %v8036_v37 = vpack.c.bf16 %v8033_v26, %v8032_v35  ;;  %v8034_v47 = vld [vmem:[#allocation2 + $0x2b] sm:$0xff]  ;;  %v12333_v35 = vld [vmem:[%s16770_s16 + $0xa] sm:$0x1] }
0x11a4   : > { %14617 = vmatprep.subr.bf16.mxu1 %v15878_v15  ;;  %v8156_v50 = vld [vmem:[#allocation2 + $0xe] sm:$0xff]  ;;  %v8037_v42 = vpack.c.bf16 %v8035_v48, %v8034_v47 }
0x11a5   : > { %v8160_v53 = vpack.c.bf16 %v8157_v51, %v8156_v50  ;;  %v8158_v61 = vld [vmem:[#allocation2 + $0x2e] sm:$0xff] }
0x11a6   : > { %v8161_v62 = vpack.c.bf16 %v8159_v38, %v8158_v61 }
0x11a7   : > { %14618 = vmatpush3.bf16.msra.mxu1 %v15878_v15 }
0x11a8   : > { %14619 = vmatprep.subr.bf16.mxu1 %v15879_v17 }
0x11ab   : > { %14620 = vmatpush3.bf16.msra.mxu1 %v15879_v17 }
0x11ac   : > { %14621 = vmatprep.subr.bf16.mxu1 %v15880_v18 }
0x11af   : > { %14622 = vmatpush3.bf16.msra.mxu1 %v15880_v18 }
0x11b0   : > { %14623 = vmatprep.subr.bf16.mxu1 %v15881_v56 }
0x11b3   : > { %14624 = vmatpush3.bf16.msra.mxu1 %v15881_v56 }
0x11b4   : > { %14625 = vmatprep.subr.bf16.mxu1 %v15882_v20 }
0x11b7   : > { %14626 = vmatpush3.bf16.msra.mxu1 %v15882_v20 }
0x11b8   : > { %14627 = vmatprep.subr.bf16.mxu1 %v15883_v21 }
0x11bb   : > { %14628 = vmatpush3.bf16.msra.mxu1 %v15883_v21 }
0x11bc   : > { %14629 = vmatprep.subr.bf16.mxu1 %v15884_v14 }
0x11bf   : > { %14630 = vmatpush3.bf16.msra.mxu1 %v15884_v14 }
0x11c0   : > { %14635 = vmatprep.subr.bf16.mxu1 %v15885_v22 }
0x11c2   : > { %14632 = vmatmul.mubr.bf16.vlgmr.msra.gmra.mrb[16].mxu1 %v7673_v25 }
0x11c3   : > { %14636 = vmatpush3.bf16.msra.mxu1 %v15885_v22  ;;  %14651 = vmatprep.mubr.bf16.mxu1 %v7912_v6 }
0x11c4   : > { %14637 = vmatprep.subr.bf16.mxu1 %v15886_v27 }
0x11c7   : > { %14638 = vmatpush3.bf16.msra.mxu1 %v15886_v27 }
0x11c8   : > { %14639 = vmatprep.subr.bf16.mxu1 %v15887_v28 }
0x11cb   : > { %14640 = vmatpush3.bf16.msra.mxu1 %v15887_v28 }
0x11cc   : > { %14641 = vmatprep.subr.bf16.mxu1 %v15888_v19 }
0x11cf   : > { %14642 = vmatpush3.bf16.msra.mxu1 %v15888_v19 }
0x11d0   : > { %14643 = vmatprep.subr.bf16.mxu1 %v15889_v29 }
0x11d3   : > { %14644 = vmatpush3.bf16.msra.mxu1 %v15889_v29 }
0x11d4   : > { %14645 = vmatprep.subr.bf16.mxu1 %v15890_v30 }
0x11d7   : > { %14646 = vmatpush3.bf16.msra.mxu1 %v15890_v30 }
0x11d8   : > { %14647 = vmatprep.subr.bf16.mxu1 %v15891_v31 }
0x11db   : > { %14648 = vmatpush3.bf16.msra.mxu1 %v15891_v31  ;;  %v12332_v31 = vld [vmem:[%s16765_s10 + $0xa] sm:$0x1] }
0x11dc   : > { %14649 = vmatprep.subr.bf16.mxu1 %v15892_v32 }
0x11df   : > { %14650 = vmatpush3.bf16.msra.mxu1 %v15892_v32 }
0x11e0   : > { %14655 = vmatprep.subr.bf16.mxu1 %v15893_v34 }
0x11e2   : > { %14652 = vmatmul.mubr.bf16.vlgmr.msra.gmra.mrb[16].mxu1 %v17183_v7 }
0x11e3   : > { %14656 = vmatpush3.bf16.msra.mxu1 %v15893_v34  ;;  %14671 = vmatprep.mubr.bf16.mxu1 %v8036_v37 }
0x11e4   : > { %14657 = vmatprep.subr.bf16.mxu1 %v15894_v36 }
0x11e7   : > { %14658 = vmatpush3.bf16.msra.mxu1 %v15894_v36 }
0x11e8   : > { %14659 = vmatprep.subr.bf16.mxu1 %v15895_v39 }
0x11eb   : > { %14660 = vmatpush3.bf16.msra.mxu1 %v15895_v39 }
0x11ec   : > { %14661 = vmatprep.subr.bf16.mxu1 %v15896_v40 }
0x11ef   : > { %14662 = vmatpush3.bf16.msra.mxu1 %v15896_v40 }
0x11f0   : > { %14663 = vmatprep.subr.bf16.mxu1 %v15897_v43 }
0x11f3   : > { %14664 = vmatpush3.bf16.msra.mxu1 %v15897_v43 }
0x11f4   : > { %14665 = vmatprep.subr.bf16.mxu1 %v15898_v44 }
0x11f7   : > { %14666 = vmatpush3.bf16.msra.mxu1 %v15898_v44 }
0x11f8   : > { %14667 = vmatprep.subr.bf16.mxu1 %v15899_v33 }
0x11fb   : > { %14668 = vmatpush3.bf16.msra.mxu1 %v15899_v33 }
0x11fc   : > { %14669 = vmatprep.subr.bf16.mxu1 %v15900_v45 }
0x11ff   : > { %14670 = vmatpush3.bf16.msra.mxu1 %v15900_v45 }
0x1200   : > { %14675 = vmatprep.subr.bf16.mxu1 %v15901_v46 }
0x1202   : > { %14672 = vmatmul.mubr.bf16.vlgmr.msra.gmra.mrb[16].mxu1 %v8037_v42 }
0x1203   : > { %14676 = vmatpush3.bf16.msra.mxu1 %v15901_v46  ;;  %14691 = vmatprep.mubr.bf16.mxu1 %v8160_v53 }
0x1204   : > { %14677 = vmatprep.subr.bf16.mxu1 %v15902_v52 }
0x1207   : > { %14678 = vmatpush3.bf16.msra.mxu1 %v15902_v52 }
0x1208   : > { %14679 = vmatprep.subr.bf16.mxu1 %v15903_v54 }
0x120b   : > { %14680 = vmatpush3.bf16.msra.mxu1 %v15903_v54 }
0x120c   : > { %14681 = vmatprep.subr.bf16.mxu1 %v15904_v55 }
0x120f   : > { %14682 = vmatpush3.bf16.msra.mxu1 %v15904_v55 }
0x1210   : > { %14683 = vmatprep.subr.bf16.mxu1 %v15905_v58 }
0x1213   : > { %14684 = vmatpush3.bf16.msra.mxu1 %v15905_v58 }
0x1214   : > { %14685 = vmatprep.subr.bf16.mxu1 %v15906_v59 }
0x1217   : > { %14686 = vmatpush3.bf16.msra.mxu1 %v15906_v59 }
0x1218   : > { %14687 = vmatprep.subr.bf16.mxu1 %v15907_v49 }
0x121b   : > { %14688 = vmatpush3.bf16.msra.mxu1 %v15907_v49 }
0x121c   : > { %14689 = vmatprep.subr.bf16.mxu1 %v15908_v60 }
0x121f   : > { %14690 = vmatpush3.bf16.msra.mxu1 %v15908_v60 }
0x1222   : > { %14692 = vmatmul.mubr.bf16.vlgmr.msra.gmra.mrb[16].mxu1 %v8161_v62 }
0x12f5   : > { %v14693_v0 = vpop.f32.mrb[16].mxu1 }
0x12f6   : > { %v8261_v1 = vpop.f32.mrb[17].mxu1 }
0x12f7   : > { %v14694_v57 = vpop.f32.mrb[18].mxu1 }
0x12f8   : > { %v8264_v2 = vpop.f32.mrb[19].mxu1 }
0x12f9   : > { %v8285_v3 = vadd.f32 %v8264_v2, %v8261_v1 }
0x12fb   : > { %v8286_v5 = vadd.f32 %v14693_v0, %v8285_v3 }
0x12fd   : > { %v8287_v6 = vadd.f32 %v14694_v57, %v8286_v5 }
0x12ff   : > { %v8288_v7 = vrot.slane %v8287_v6, 4 }
0x1301   : > { %v8289_v8 = vadd.f32 %v8288_v7, %v8287_v6 }
0x1303   : > { %v8290_v63 = vrot.slane %v8289_v8, 2 }
0x1305   : > { %v8291_v9 = vadd.f32 %v8290_v63, %v8289_v8 }
0x1307   : > { %v8292_v10 = vrot.slane %v8291_v9, 1 }
0x1309   : > { %v8293_v11 = vadd.f32 %v8292_v10, %v8291_v9 }
0x130b   : > { %v8294_v12 = vmul.f32 0.03125, %v8293_v11 }
0x130d   : > { %v8295_v13 = vsub.f32 %v8261_v1, %v8294_v12  ;;  %v8296_v4 = vsub.f32 %v8264_v2, %v8294_v12  ;;  %v8297_v15 = vsub.f32 %v14693_v0, %v8294_v12  ;;  %v8298_v16 = vsub.f32 %v14694_v57, %v8294_v12 }
0x130f   : > { %v8299_v17 = vmul.f32 %v8295_v13, %v8295_v13  ;;  %v8300_v18 = vmul.f32 %v8296_v4, %v8296_v4  ;;  %v8301_v56 = vmul.f32 %v8297_v15, %v8297_v15  ;;  %v8302_v21 = vmul.f32 %v8298_v16, %v8298_v16 }
0x1311   : > { %v8303_v20 = vadd.f32 %v8300_v18, %v8299_v17 }
0x1313   : > { %v8304_v14 = vadd.f32 %v8303_v20, %v8301_v56 }
0x1315   : > { %v8305_v22 = vadd.f32 %v8304_v14, %v8302_v21 }
0x1317   : > { %v8306_v23 = vrot.slane %v8305_v22, 4 }
0x1319   : > { %v8307_v24 = vadd.f32 %v8306_v23, %v8305_v22 }
0x131b   : > { %v8308_v25 = vrot.slane %v8307_v24, 2 }
0x131d   : > { %v8309_v27 = vadd.f32 %v8308_v25, %v8307_v24 }
0x131f   : > { %v8310_v28 = vrot.slane %v8309_v27, 1 }
0x1321   : > { %v8311_v19 = vadd.f32 %v8310_v28, %v8309_v27 }
0x1323   : > { %v8312_v29 = vmul.f32 0.03125, %v8311_v19 }
0x1325   : > { %v8313_v30 = vadd.f32 1e-05, %v8312_v29 }
0x1327   : > { %15927 = vrsqrt.f32 %v8313_v30 }
0x1331   : > { %v15928_v32 = vpop.eup %15927 }
0x1332   : > { %v8315_v34 = vmul.f32 %v15928_v32, %v12332_v31 }
0x1334   : > { %v8319_v26 = vrot.slane %v8315_v34, %v16768_v41  ;;  %v8324_v36 = vmul.f32 %v8315_v34, %v8294_v12 }
0x1336   : > { %v8320_v37 = vmul.f32 %v8319_v26, %v8261_v1  ;;  %v8321_v39 = vmul.f32 %v8319_v26, %v8264_v2  ;;  %v8322_v40 = vmul.f32 %v14693_v0, %v8319_v26  ;;  %v8323_v43 = vmul.f32 %v14694_v57, %v8319_v26 }
0x1337   : > { %v8325_v44 = vsub.f32 %v12333_v35, %v8324_v36 }
0x1339   : > { %v8329_v33 = vrot.slane %v8325_v44, %v16768_v41 }
0x133b   : > { %v8330_v45 = vadd.f32 %v8329_v33, %v8320_v37  ;;  %v8331_v46 = vadd.f32 %v8329_v33, %v8321_v39  ;;  %v8332_v47 = vadd.f32 %v8329_v33, %v8322_v40  ;;  %v8333_v48 = vadd.f32 %v8329_v33, %v8323_v43 }
0x133d   : > { %v8334_v50 = vmax.f32 %v8330_v45, 0.0  ;;  %v8335_v51 = vmax.f32 %v8331_v46, 0.0  ;;  %v8336_v42 = vmax.f32 %v8332_v47, 0.0  ;;  %v8337_v52 = vmax.f32 %v8333_v48, 0.0 }
0x133f   : > { %8338 = vst [vmem:[#allocation2 + $0x8] sm:$0xff] %v8334_v50  ;;  %8339 = vst [vmem:[#allocation2 + $0x10] sm:$0xff] %v8335_v51 }
0x1340   : > { %8340 = vst [vmem:[#allocation2 + $0x28] sm:$0xff] %v8336_v42  ;;  %8341 = vst [vmem:[#allocation2 + $0x30] sm:$0xff] %v8337_v52 }
0x1341 PF: > { %p12334_p9 = scmp.ne.s32.totalorder %s16362_s25, 5 }
0x1342   : > { %v15929_v41 = vld [vmem:[%s16564_s7 + $0x40] sm:$0xff] (!%p12334_p9)   ;;  %v15931_v54 = vld [vmem:[%s16564_s7 + $0x48] sm:$0xff] (!%p12334_p9)   ;;  %v15933_v58 = vld [vmem:[%s16564_s7 + $0x50] sm:$0xff] (!%p12334_p9)  }
0x1343   : > { %8345 = sbr.rel (%p12334_p9) target bundleno = 5426 (0x1532), region = 98  ;;  %v15930_v53 = vld [vmem:[%s16564_s7 + $0x100] sm:$0xff] (!%p12334_p9)   ;;  %14695 = vmatprep.subr.bf16.mxu1 (!%p12334_p9), %v15929_v41  ;;  %v15932_v55 = vld [vmem:[%s16564_s7 + $0x108] sm:$0xff] (!%p12334_p9)   ;;  %v15934_v59 = vld [vmem:[%s16564_s7 + $0x110] sm:$0xff] (!%p12334_p9)  }
0x1344   : > { %14775 = vmatprep.subr.bf16.mxu0 (!%p12334_p9), %v15930_v53  ;;  %14696 = vmatpush3.bf16.msra.mxu1 (!%p12334_p9), %v15929_v41  ;;  %v15935_v49 = vld [vmem:[%s16564_s7 + $0x58] sm:$0xff] (!%p12334_p9)   ;;  %v15937_v61 = vld [vmem:[%s16564_s7 + $0x60] sm:$0xff] (!%p12334_p9)   ;;  %v15939_v62 = vld [vmem:[%s16564_s7 + $0x68] sm:$0xff] (!%p12334_p9)  }
0x1345   : > { %14776 = vmatpush3.bf16.msra.mxu0 (!%p12334_p9), %v15930_v53  ;;  %14697 = vmatprep.subr.bf16.mxu1 (!%p12334_p9), %v15931_v54  ;;  %v15936_v60 = vld [vmem:[%s16564_s7 + $0x118] sm:$0xff] (!%p12334_p9)   ;;  %v15938_v38 = vld [vmem:[%s16564_s7 + $0x120] sm:$0xff] (!%p12334_p9)   ;;  %v15940_v57 = vld [vmem:[%s16564_s7 + $0x128] sm:$0xff] (!%p12334_p9)  }
0x1346   : > { %14777 = vmatprep.subr.bf16.mxu0 (!%p12334_p9), %v15932_v55  ;;  %v8368_v0 = vld [vmem:[#allocation2 + $0x5] sm:$0xff] (!%p12334_p9)  ;;  %v8369_v1 = vld [vmem:[#allocation2 + $0xd] sm:$0xff] (!%p12334_p9)  ;;  %v15943_v63 = vld [vmem:[%s16564_s7 + $0x78] sm:$0xff] (!%p12334_p9)  }
0x1347   : > { %v8372_v2 = vpack.c.bf16 (!%p12334_p9), %v8369_v1, %v8368_v0  ;;  %v8833_v3 = vld [vmem:[#allocation2 + $0x8] sm:$0xff] (!%p12334_p9)  ;;  %v8834_v5 = vld [vmem:[#allocation2 + $0x10] sm:$0xff] (!%p12334_p9)  ;;  %v15944_v9 = vld [vmem:[%s16564_s7 + $0x138] sm:$0xff] (!%p12334_p9)  }
0x1348   : > { %14698 = vmatpush3.bf16.msra.mxu1 (!%p12334_p9), %v15931_v54  ;;  %v8837_v6 = vpack.c.bf16 (!%p12334_p9), %v8834_v5, %v8833_v3  ;;  %v15941_v7 = vld [vmem:[%s16564_s7 + $0x70] sm:$0xff] (!%p12334_p9)   ;;  %v8370_v10 = vld [vmem:[#allocation2 + $0x25] sm:$0xff] (!%p12334_p9)  ;;  %v15951_v28 = vld [vmem:[%s16564_s7 + $0x18] sm:$0xff] (!%p12334_p9)  }
0x1349   : > { %14778 = vmatpush3.bf16.msra.mxu0 (!%p12334_p9), %v15932_v55  ;;  %14699 = vmatprep.subr.bf16.mxu1 (!%p12334_p9), %v15933_v58  ;;  %v15942_v8 = vld [vmem:[%s16564_s7 + $0x130] sm:$0xff] (!%p12334_p9)   ;;  %v15945_v11 = vld [vmem:[%s16564_s7] sm:$0xff] (!%p12334_p9)   ;;  %v8835_v13 = vld [vmem:[#allocation2 + $0x28] sm:$0xff] (!%p12334_p9) }
0x134a   : > { %14779 = vmatprep.subr.bf16.mxu0 %v15934_v59  ;;  %14711 = vmatprep.mubr.bf16.mxu1 %v8372_v2  ;;  %v8371_v12 = vld [vmem:[#allocation2 + $0x2d] sm:$0xff]  ;;  %v15946_v15 = vld [vmem:[%s16564_s7 + $0x140] sm:$0xff]   ;;  %v15952_v19 = vld [vmem:[%s16564_s7 + $0x158] sm:$0xff]  }
0x134b   : > { %14791 = vmatprep.mubr.bf16.mxu0 %v8837_v6  ;;  %v8836_v4 = vld [vmem:[#allocation2 + $0x30] sm:$0xff]  ;;  %v8373_v16 = vpack.c.bf16 %v8371_v12, %v8370_v10  ;;  %v15947_v18 = vld [vmem:[%s16564_s7 + $0x8] sm:$0xff]   ;;  %v15953_v29 = vld [vmem:[%s16564_s7 + $0x20] sm:$0xff]  }
0x134c   : > { %14700 = vmatpush3.bf16.msra.mxu1 %v15933_v58  ;;  %v8838_v17 = vpack.c.bf16 %v8836_v4, %v8835_v13  ;;  %v15948_v56 = vld [vmem:[%s16564_s7 + $0x148] sm:$0xff]   ;;  %v15949_v14 = vld [vmem:[%s16564_s7 + $0x10] sm:$0xff]   ;;  %v15954_v30 = vld [vmem:[%s16564_s7 + $0x160] sm:$0xff]  }
0x134d   : > { %14780 = vmatpush3.bf16.msra.mxu0 %v15934_v59  ;;  %14701 = vmatprep.subr.bf16.mxu1 %v15935_v49  ;;  %v8346_v20 = vld [vmem:[#allocation2 + $0x4] sm:$0xff]  ;;  %v17243_v21 = vld [vmem:[#allocation2 + $0xc] sm:$0xff]  ;;  %v15959_v26 = vld [vmem:[%s16564_s7 + $0x38] sm:$0xff]  }
0x134e   : > { %14781 = vmatprep.subr.bf16.mxu0 %v15936_v60  ;;  %v8350_v22 = vpack.c.bf16 %v17243_v21, %v8346_v20  ;;  %v8957_v23 = vld [vmem:[#allocation2 + $0x9] sm:$0xff]  ;;  %v8958_v24 = vld [vmem:[#allocation2 + $0x11] sm:$0xff]  ;;  %v15961_v40 = vld [vmem:[%s16564_s7 + $0x80] sm:$0xff]  }
0x134f   : > { %v15950_v25 = vld [vmem:[%s16564_s7 + $0x150] sm:$0xff]   ;;  %v8961_v27 = vpack.c.bf16 %v8958_v24, %v8957_v23  ;;  %v15955_v31 = vld [vmem:[%s16564_s7 + $0x28] sm:$0xff]   ;;  %v15960_v36 = vld [vmem:[%s16564_s7 + $0x178] sm:$0xff]  }
0x1350   : > { %14702 = vmatpush3.bf16.msra.mxu1 %v15935_v49  ;;  %v15956_v32 = vld [vmem:[%s16564_s7 + $0x168] sm:$0xff]   ;;  %v15957_v34 = vld [vmem:[%s16564_s7 + $0x30] sm:$0xff]   ;;  %v15962_v44 = vld [vmem:[%s16564_s7 + $0x180] sm:$0xff]  }
0x1351   : > { %14782 = vmatpush3.bf16.msra.mxu0 %v15936_v60  ;;  %14703 = vmatprep.subr.bf16.mxu1 %v15937_v61  ;;  %v15958_v35 = vld [vmem:[%s16564_s7 + $0x170] sm:$0xff]   ;;  %v8348_v37 = vld [vmem:[#allocation2 + $0x24] sm:$0xff]  ;;  %v15967_v58 = vld [vmem:[%s16564_s7 + $0x98] sm:$0xff]  }
0x1352   : > { %14783 = vmatprep.subr.bf16.mxu0 %v15938_v38  ;;  %v17258_v39 = vld [vmem:[#allocation2 + $0x2c] sm:$0xff]  ;;  %v15968_v59 = vld [vmem:[%s16564_s7 + $0x198] sm:$0xff]   ;;  %v15969_v49 = vld [vmem:[%s16564_s7 + $0xa0] sm:$0xff]  }
0x1353   : > { %v8959_v43 = vld [vmem:[#allocation2 + $0x29] sm:$0xff]  ;;  %v8960_v33 = vld [vmem:[#allocation2 + $0x31] sm:$0xff]  ;;  %v8351_v47 = vpack.c.bf16 %v17258_v39, %v8348_v37  ;;  %v15970_v60 = vld [vmem:[%s16564_s7 + $0x1a0] sm:$0xff]  }
0x1354   : > { %14704 = vmatpush3.bf16.msra.mxu1 %v15937_v61  ;;  %v8585_v45 = vld [vmem:[#allocation2 + $0x6] sm:$0xff]  ;;  %v8586_v46 = vld [vmem:[#allocation2 + $0xe] sm:$0xff]  ;;  %v8962_v50 = vpack.c.bf16 %v8960_v33, %v8959_v43  ;;  %v15975_v1 = vld [vmem:[%s16564_s7 + $0xb8] sm:$0xff]  }
0x1355   : > { %14784 = vmatpush3.bf16.msra.mxu0 %v15938_v38  ;;  %14705 = vmatprep.subr.bf16.mxu1 %v15939_v62  ;;  %v9081_v48 = vld [vmem:[#allocation2 + $0xa] sm:$0xff]  ;;  %v9082_v51 = vld [vmem:[#allocation2 + $0x12] sm:$0xff]  ;;  %v8589_v41 = vpack.c.bf16 %v8586_v46, %v8585_v45  ;;  %v15977_v5 = vld [vmem:[%s16564_s7 + $0xc0] sm:$0xff]  }
0x1356   : > { %14785 = vmatprep.subr.bf16.mxu0 %v15940_v57  ;;  %v15963_v42 = vld [vmem:[%s16564_s7 + $0x88] sm:$0xff]   ;;  %v9085_v53 = vpack.c.bf16 %v9082_v51, %v9081_v48  ;;  %v15965_v54 = vld [vmem:[%s16564_s7 + $0x90] sm:$0xff]   ;;  %v15983_v20 = vld [vmem:[%s16564_s7 + $0xd8] sm:$0xff]  }
0x1357   : > { %v15964_v52 = vld [vmem:[%s16564_s7 + $0x188] sm:$0xff]   ;;  %v15966_v55 = vld [vmem:[%s16564_s7 + $0x190] sm:$0xff]   ;;  %v15986_v23 = vld [vmem:[%s16564_s7 + $0x1e0] sm:$0xff]  }
0x1358   : > { %14706 = vmatpush3.bf16.msra.mxu1 %v15939_v62  ;;  %v15971_v61 = vld [vmem:[%s16564_s7 + $0xa8] sm:$0xff]   ;;  %v15973_v62 = vld [vmem:[%s16564_s7 + $0xb0] sm:$0xff]   ;;  %v15996_v33 = vld [vmem:[%s16564_s7 + $0x218] sm:$0xff]  }
0x1359   : > { %14786 = vmatpush3.bf16.msra.mxu0 %v15940_v57  ;;  %14707 = vmatprep.subr.bf16.mxu1 %v15941_v7  ;;  %v15972_v38 = vld [vmem:[%s16564_s7 + $0x1a8] sm:$0xff]   ;;  %v15974_v0 = vld [vmem:[%s16564_s7 + $0x1b0] sm:$0xff]   ;;  %v15976_v57 = vld [vmem:[%s16564_s7 + $0x1b8] sm:$0xff]  }
0x135a   : > { %14787 = vmatprep.subr.bf16.mxu0 %v15942_v8  ;;  %v8587_v2 = vld [vmem:[#allocation2 + $0x26] sm:$0xff]  ;;  %v8588_v3 = vld [vmem:[#allocation2 + $0x2e] sm:$0xff] }
0x135b   : > { %v9083_v6 = vld [vmem:[#allocation2 + $0x2a] sm:$0xff]  ;;  %v9206_v13 = vld [vmem:[#allocation2 + $0x13] sm:$0xff]  ;;  %v15997_v45 = vld [vmem:[%s16564_s7 + $0x220] sm:$0xff]  }
0x135c   : > { %14708 = vmatpush3.bf16.msra.mxu1 %v15941_v7  ;;  %v9084_v7 = vld [vmem:[#allocation2 + $0x32] sm:$0xff]  ;;  %v15979_v4 = vld [vmem:[%s16564_s7 + $0xc8] sm:$0xff]  }
0x135d   : > { %14788 = vmatpush3.bf16.msra.mxu0 %v15942_v8  ;;  %14709 = vmatprep.subr.bf16.mxu1 %v15943_v63  ;;  %v15978_v8 = vld [vmem:[%s16564_s7 + $0x1c0] sm:$0xff]   ;;  %v8710_v10 = vld [vmem:[#allocation2 + $0xf] sm:$0xff] }
0x135e   : > { %14789 = vmatprep.subr.bf16.mxu0 %v15944_v9  ;;  %v9205_v12 = vld [vmem:[#allocation2 + $0xb] sm:$0xff]  ;;  %v9332_v48 = vld [vmem:[#allocation2 + $0x34] sm:$0xff] }
0x135f   : > { %v15987_v24 = vld [vmem:[%s16564_s7 + $0xe8] sm:$0xff]   ;;  %v15999_v46 = vld [vmem:[%s16564_s7 + $0x230] sm:$0xff]  }
0x1360   : > { %14710 = vmatpush3.bf16.msra.mxu1 %v15943_v63  ;;  %v8590_v63 = vpack.c.bf16 %v8588_v3, %v8587_v2  ;;  %v15994_v43 = vld [vmem:[%s16564_s7 + $0x208] sm:$0xff]  }
0x1361   : > { %14790 = vmatpush3.bf16.msra.mxu0 %v15944_v9  ;;  %14715 = vmatprep.subr.bf16.mxu1 %v15945_v11  ;;  %v8709_v9 = vld [vmem:[#allocation2 + $0x7] sm:$0xff] }
0x1362   : > { %14795 = vmatprep.subr.bf16.mxu0 %v15946_v15 }
0x1363   : > { %14712 = vmatmul.mubr.bf16.vlgmr.msra.gmra.mrb[0].mxu1 %v8373_v16  ;;  %v8713_v16 = vpack.c.bf16 %v8710_v10, %v8709_v9 }
0x1364   : > { %14716 = vmatpush3.bf16.msra.mxu1 %v15945_v11  ;;  %14792 = vmatmul.mubr.bf16.vlgmr.msra.gmra.mrb[0].mxu0 %v8838_v17  ;;  %v9086_v11 = vpack.c.bf16 %v9084_v7, %v9083_v6  ;;  %v9209_v17 = vpack.c.bf16 %v9206_v13, %v9205_v12 }
0x1365   : > { %14796 = vmatpush3.bf16.msra.mxu0 %v15946_v15  ;;  %14717 = vmatprep.subr.bf16.mxu1 %v15947_v18  ;;  %v15980_v15 = vld [vmem:[%s16564_s7 + $0x1c8] sm:$0xff]  }
0x1366   : > { %14797 = vmatprep.subr.bf16.mxu0 %v15948_v56  ;;  %14731 = vmatprep.mubr.bf16.mxu1 %v8350_v22  ;;  %v15985_v22 = vld [vmem:[%s16564_s7 + $0xe0] sm:$0xff]  }
0x1367   : > { %14811 = vmatprep.mubr.bf16.mxu0 %v8961_v27  ;;  %v15989_v27 = vld [vmem:[%s16564_s7 + $0xf0] sm:$0xff]  }
0x1368   : > { %14718 = vmatpush3.bf16.msra.mxu1 %v15947_v18  ;;  %v15981_v18 = vld [vmem:[%s16564_s7 + $0xd0] sm:$0xff]  }
0x1369   : > { %14798 = vmatpush3.bf16.msra.mxu0 %v15948_v56  ;;  %14719 = vmatprep.subr.bf16.mxu1 %v15949_v14  ;;  %v15982_v56 = vld [vmem:[%s16564_s7 + $0x1d0] sm:$0xff]  }
0x136a   : > { %14799 = vmatprep.subr.bf16.mxu0 %v15950_v25 }
0x136c   : > { %14720 = vmatpush3.bf16.msra.mxu1 %v15949_v14  ;;  %v15984_v14 = vld [vmem:[%s16564_s7 + $0x1d8] sm:$0xff]  }
0x136d   : > { %14800 = vmatpush3.bf16.msra.mxu0 %v15950_v25  ;;  %14721 = vmatprep.subr.bf16.mxu1 %v15951_v28  ;;  %v15988_v25 = vld [vmem:[%s16564_s7 + $0x1e8] sm:$0xff]  }
0x136e   : > { %14801 = vmatprep.subr.bf16.mxu0 %v15952_v19 }
0x1370   : > { %14722 = vmatpush3.bf16.msra.mxu1 %v15951_v28  ;;  %v15990_v28 = vld [vmem:[%s16564_s7 + $0x1f0] sm:$0xff]  }
0x1371   : > { %14802 = vmatpush3.bf16.msra.mxu0 %v15952_v19  ;;  %14723 = vmatprep.subr.bf16.mxu1 %v15953_v29  ;;  %v15991_v19 = vld [vmem:[%s16564_s7 + $0xf8] sm:$0xff]  }
0x1372   : > { %14803 = vmatprep.subr.bf16.mxu0 %v15954_v30 }
0x1374   : > { %14724 = vmatpush3.bf16.msra.mxu1 %v15953_v29  ;;  %v15992_v29 = vld [vmem:[%s16564_s7 + $0x1f8] sm:$0xff]  }
0x1375   : > { %14804 = vmatpush3.bf16.msra.mxu0 %v15954_v30  ;;  %14725 = vmatprep.subr.bf16.mxu1 %v15955_v31  ;;  %v8711_v30 = vld [vmem:[#allocation2 + $0x27] sm:$0xff] }
0x1376   : > { %14805 = vmatprep.subr.bf16.mxu0 %v15956_v32 }
0x1378   : > { %14726 = vmatpush3.bf16.msra.mxu1 %v15955_v31  ;;  %v8712_v31 = vld [vmem:[#allocation2 + $0x2f] sm:$0xff] }
0x1379   : > { %14806 = vmatpush3.bf16.msra.mxu0 %v15956_v32  ;;  %14727 = vmatprep.subr.bf16.mxu1 %v15957_v34  ;;  %v9207_v32 = vld [vmem:[#allocation2 + $0x2b] sm:$0xff] }
0x137a   : > { %14807 = vmatprep.subr.bf16.mxu0 %v15958_v35 }
0x137c   : > { %14728 = vmatpush3.bf16.msra.mxu1 %v15957_v34  ;;  %v9208_v34 = vld [vmem:[#allocation2 + $0x33] sm:$0xff] }
0x137d   : > { %14808 = vmatpush3.bf16.msra.mxu0 %v15958_v35  ;;  %14729 = vmatprep.subr.bf16.mxu1 %v15959_v26  ;;  %v15993_v35 = vld [vmem:[%s16564_s7 + $0x200] sm:$0xff]   ;;  %v9210_v37 = vpack.c.bf16 %v9208_v34, %v9207_v32 }
0x137e   : > { %14809 = vmatprep.subr.bf16.mxu0 %v15960_v36 }
0x1380   : > { %14730 = vmatpush3.bf16.msra.mxu1 %v15959_v26  ;;  %v9330_v26 = vld [vmem:[#allocation2 + $0x14] sm:$0xff] }
0x1381   : > { %14810 = vmatpush3.bf16.msra.mxu0 %v15960_v36  ;;  %14735 = vmatprep.subr.bf16.mxu1 %v15961_v40  ;;  %v8714_v36 = vpack.c.bf16 %v8712_v31, %v8711_v30  ;;  %v9454_v31 = vld [vmem:[#allocation9 + $0x29] sm:$0x1] }
0x1382   : > { %14815 = vmatprep.subr.bf16.mxu0 %v15962_v44 }
0x1383   : > { %14732 = vmatmul.mubr.bf16.vlgmr.msra.gmra.mrb[0].mxu1 %v8351_v47  ;;  %v16000_v47 = vld [vmem:[%s16564_s7 + $0x238] sm:$0xff]  }
0x1384   : > { %14736 = vmatpush3.bf16.msra.mxu1 %v15961_v40  ;;  %14812 = vmatmul.mubr.bf16.vlgmr.msra.gmra.mrb[0].mxu0 %v8962_v50  ;;  %v9333_v40 = vpack.c.bf16 %v9330_v26, %v17243_v21  ;;  %v15998_v21 = vld [vmem:[%s16564_s7 + $0x228] sm:$0xff]   ;;  %v9334_v50 = vpack.c.bf16 %v9332_v48, %v17258_v39 }
0x1385   : > { %14816 = vmatpush3.bf16.msra.mxu0 %v15962_v44  ;;  %14737 = vmatprep.subr.bf16.mxu1 %v15963_v42  ;;  %v15995_v44 = vld [vmem:[%s16564_s7 + $0x210] sm:$0xff]  }
0x1386   : > { %14817 = vmatprep.subr.bf16.mxu0 %v15964_v52  ;;  %14751 = vmatprep.mubr.bf16.mxu1 %v8589_v41 }
0x1387   : > { %14831 = vmatprep.mubr.bf16.mxu0 %v9085_v53 }
0x1388   : > { %14738 = vmatpush3.bf16.msra.mxu1 %v15963_v42 }
0x1389   : > { %14818 = vmatpush3.bf16.msra.mxu0 %v15964_v52  ;;  %14739 = vmatprep.subr.bf16.mxu1 %v15965_v54 }
0x138a   : > { %14819 = vmatprep.subr.bf16.mxu0 %v15966_v55 }
0x138c   : > { %14740 = vmatpush3.bf16.msra.mxu1 %v15965_v54 }
0x138d   : > { %14820 = vmatpush3.bf16.msra.mxu0 %v15966_v55  ;;  %14741 = vmatprep.subr.bf16.mxu1 %v15967_v58 }
0x138e   : > { %14821 = vmatprep.subr.bf16.mxu0 %v15968_v59 }
0x1390   : > { %14742 = vmatpush3.bf16.msra.mxu1 %v15967_v58 }
0x1391   : > { %14822 = vmatpush3.bf16.msra.mxu0 %v15968_v59  ;;  %14743 = vmatprep.subr.bf16.mxu1 %v15969_v49 }
0x1392   : > { %14823 = vmatprep.subr.bf16.mxu0 %v15970_v60 }
0x1394   : > { %14744 = vmatpush3.bf16.msra.mxu1 %v15969_v49 }
0x1395   : > { %14824 = vmatpush3.bf16.msra.mxu0 %v15970_v60  ;;  %14745 = vmatprep.subr.bf16.mxu1 %v15971_v61 }
0x1396   : > { %14825 = vmatprep.subr.bf16.mxu0 %v15972_v38 }
0x1398   : > { %14746 = vmatpush3.bf16.msra.mxu1 %v15971_v61 }
0x1399   : > { %14826 = vmatpush3.bf16.msra.mxu0 %v15972_v38  ;;  %14747 = vmatprep.subr.bf16.mxu1 %v15973_v62 }
0x139a   : > { %14827 = vmatprep.subr.bf16.mxu0 %v15974_v0 }
0x139c   : > { %14748 = vmatpush3.bf16.msra.mxu1 %v15973_v62 }
0x139d   : > { %14828 = vmatpush3.bf16.msra.mxu0 %v15974_v0  ;;  %14749 = vmatprep.subr.bf16.mxu1 %v15975_v1 }
0x139e   : > { %14829 = vmatprep.subr.bf16.mxu0 %v15976_v57 }
0x13a0   : > { %14750 = vmatpush3.bf16.msra.mxu1 %v15975_v1 }
0x13a1   : > { %14830 = vmatpush3.bf16.msra.mxu0 %v15976_v57  ;;  %14755 = vmatprep.subr.bf16.mxu1 %v15977_v5 }
0x13a2   : > { %14835 = vmatprep.subr.bf16.mxu0 %v15978_v8 }
0x13a3   : > { %14752 = vmatmul.mubr.bf16.vlgmr.msra.gmra.mrb[0].mxu1 %v8590_v63 }
0x13a4   : > { %14756 = vmatpush3.bf16.msra.mxu1 %v15977_v5  ;;  %14832 = vmatmul.mubr.bf16.vlgmr.msra.gmra.mrb[0].mxu0 %v9086_v11 }
0x13a5   : > { %14836 = vmatpush3.bf16.msra.mxu0 %v15978_v8  ;;  %14757 = vmatprep.subr.bf16.mxu1 %v15979_v4 }
0x13a6   : > { %14837 = vmatprep.subr.bf16.mxu0 %v15980_v15  ;;  %14771 = vmatprep.mubr.bf16.mxu1 %v8713_v16 }
0x13a7   : > { %14851 = vmatprep.mubr.bf16.mxu0 %v9209_v17 }
0x13a8   : > { %14758 = vmatpush3.bf16.msra.mxu1 %v15979_v4 }
0x13a9   : > { %14838 = vmatpush3.bf16.msra.mxu0 %v15980_v15  ;;  %14759 = vmatprep.subr.bf16.mxu1 %v15981_v18 }
0x13aa   : > { %14839 = vmatprep.subr.bf16.mxu0 %v15982_v56 }
0x13ac   : > { %14760 = vmatpush3.bf16.msra.mxu1 %v15981_v18 }
0x13ad   : > { %14840 = vmatpush3.bf16.msra.mxu0 %v15982_v56  ;;  %14761 = vmatprep.subr.bf16.mxu1 %v15983_v20 }
0x13ae   : > { %14841 = vmatprep.subr.bf16.mxu0 %v15984_v14 }
0x13b0   : > { %14762 = vmatpush3.bf16.msra.mxu1 %v15983_v20 }
0x13b1   : > { %14842 = vmatpush3.bf16.msra.mxu0 %v15984_v14  ;;  %14763 = vmatprep.subr.bf16.mxu1 %v15985_v22 }
0x13b2   : > { %14843 = vmatprep.subr.bf16.mxu0 %v15986_v23 }
0x13b4   : > { %14764 = vmatpush3.bf16.msra.mxu1 %v15985_v22 }
0x13b5   : > { %14844 = vmatpush3.bf16.msra.mxu0 %v15986_v23  ;;  %14765 = vmatprep.subr.bf16.mxu1 %v15987_v24 }
0x13b6   : > { %14845 = vmatprep.subr.bf16.mxu0 %v15988_v25 }
0x13b8   : > { %14766 = vmatpush3.bf16.msra.mxu1 %v15987_v24 }
0x13b9   : > { %14846 = vmatpush3.bf16.msra.mxu0 %v15988_v25  ;;  %14767 = vmatprep.subr.bf16.mxu1 %v15989_v27  ;;  %v9486_v25 = vlaneseq }
0x13ba   : > { %14847 = vmatprep.subr.bf16.mxu0 %v15990_v28 }
0x13bc   : > { %14768 = vmatpush3.bf16.msra.mxu1 %v15989_v27  ;;  %v9487_v27 = vshrl.u32 %v9486_v25, 7 }
0x13bd   : > { %14848 = vmatpush3.bf16.msra.mxu0 %v15990_v28  ;;  %14769 = vmatprep.subr.bf16.mxu1 %v15991_v19  ;;  %v9453_v28 = vld [vmem:[#allocation8 + $0x29] sm:$0x1] }
0x13be   : > { %14849 = vmatprep.subr.bf16.mxu0 %v15992_v29 }
0x13c0   : > { %14770 = vmatpush3.bf16.msra.mxu1 %v15991_v19  ;;  %v9488_v19 = vsub.s32 0, %v9487_v27 }
0x13c1   : > { %14850 = vmatpush3.bf16.msra.mxu0 %v15992_v29 }
0x13c2   : > { %14855 = vmatprep.subr.bf16.mxu0 %v15993_v35 }
0x13c3   : > { %14772 = vmatmul.mubr.bf16.vlgmr.msra.gmra.mrb[0].mxu1 %v8714_v36 }
0x13c4   : > { %14852 = vmatmul.mubr.bf16.vlgmr.msra.gmra.mrb[0].mxu0 %v9210_v37 }
0x13c5   : > { %14856 = vmatpush3.bf16.msra.mxu0 %v15993_v35  ;;  %14871 = vmatprep.mubr.bf16.mxu0 %v9333_v40 }
0x13c6   : > { %14857 = vmatprep.subr.bf16.mxu0 %v15994_v43 }
0x13c9   : > { %14858 = vmatpush3.bf16.msra.mxu0 %v15994_v43 }
0x13ca   : > { %14859 = vmatprep.subr.bf16.mxu0 %v15995_v44 }
0x13cd   : > { %14860 = vmatpush3.bf16.msra.mxu0 %v15995_v44 }
0x13ce   : > { %14861 = vmatprep.subr.bf16.mxu0 %v15996_v33 }
0x13d1   : > { %14862 = vmatpush3.bf16.msra.mxu0 %v15996_v33 }
0x13d2   : > { %14863 = vmatprep.subr.bf16.mxu0 %v15997_v45 }
0x13d5   : > { %14864 = vmatpush3.bf16.msra.mxu0 %v15997_v45 }
0x13d6   : > { %14865 = vmatprep.subr.bf16.mxu0 %v15998_v21 }
0x13d9   : > { %14866 = vmatpush3.bf16.msra.mxu0 %v15998_v21 }
0x13da   : > { %14867 = vmatprep.subr.bf16.mxu0 %v15999_v46 }
0x13dd   : > { %14868 = vmatpush3.bf16.msra.mxu0 %v15999_v46 }
0x13de   : > { %14869 = vmatprep.subr.bf16.mxu0 %v16000_v47 }
0x13e1   : > { %14870 = vmatpush3.bf16.msra.mxu0 %v16000_v47 }
0x13e4   : > { %14872 = vmatmul.mubr.bf16.vlgmr.msra.gmra.mrb[0].mxu0 %v9334_v50 }
0x1496   : > { %v14773_v51 = vpop.f32.mrb[0].mxu1 }
0x1497   : > { %v8814_v42 = vpop.f32.mrb[1].mxu1 }
0x1498   : > { %v14774_v52 = vpop.f32.mrb[2].mxu1 }
0x1499   : > { %v8817_v41 = vpop.f32.mrb[3].mxu1 }
0x14b7   : > { %v14873_v53 = vpop.f32.mrb[0].mxu0 }
0x14b8   : > { %v15247_v54 = vadd.f32 %v14873_v53, %v14773_v51  ;;  %v9434_v55 = vpop.f32.mrb[1].mxu0 }
0x14b9   : > { %v15248_v58 = vadd.f32 %v9434_v55, %v8814_v42  ;;  %v14874_v59 = vpop.f32.mrb[2].mxu0 }
0x14ba   : > { %v15249_v49 = vadd.f32 %v14874_v59, %v14774_v52  ;;  %v9437_v60 = vpop.f32.mrb[3].mxu0 }
0x14bb   : > { %v15250_v61 = vadd.f32 %v9437_v60, %v8817_v41 }
0x14bd   : > { %v9455_v38 = vadd.f32 %v15250_v61, %v15248_v58 }
0x14bf   : > { %v9456_v62 = vadd.f32 %v15247_v54, %v9455_v38 }
0x14c1   : > { %v9457_v0 = vadd.f32 %v15249_v49, %v9456_v62 }
0x14c3   : > { %v9458_v1 = vrot.slane %v9457_v0, 4 }
0x14c5   : > { %v9459_v57 = vadd.f32 %v9458_v1, %v9457_v0 }
0x14c7   : > { %v9460_v39 = vrot.slane %v9459_v57, 2 }
0x14c9   : > { %v9461_v2 = vadd.f32 %v9460_v39, %v9459_v57 }
0x14cb   : > { %v9462_v3 = vrot.slane %v9461_v2, 1 }
0x14cd   : > { %v9463_v5 = vadd.f32 %v9462_v3, %v9461_v2 }
0x14cf   : > { %v9464_v6 = vmul.f32 0.03125, %v9463_v5 }
0x14d1   : > { %v9465_v7 = vsub.f32 %v15248_v58, %v9464_v6  ;;  %v9466_v8 = vsub.f32 %v15250_v61, %v9464_v6  ;;  %v9467_v63 = vsub.f32 %v15247_v54, %v9464_v6  ;;  %v9468_v9 = vsub.f32 %v15249_v49, %v9464_v6 }
0x14d3   : > { %v9469_v10 = vmul.f32 %v9465_v7, %v9465_v7  ;;  %v9470_v11 = vmul.f32 %v9466_v8, %v9466_v8  ;;  %v9471_v12 = vmul.f32 %v9467_v63, %v9467_v63  ;;  %v9472_v4 = vmul.f32 %v9468_v9, %v9468_v9 }
0x14d5   : > { %v9473_v13 = vadd.f32 %v9470_v11, %v9469_v10 }
0x14d7   : > { %v9474_v15 = vadd.f32 %v9473_v13, %v9471_v12 }
0x14d9   : > { %v9475_v16 = vadd.f32 %v9474_v15, %v9472_v4 }
0x14db   : > { %v9476_v17 = vrot.slane %v9475_v16, 4 }
0x14dd   : > { %v9477_v18 = vadd.f32 %v9476_v17, %v9475_v16 }
0x14df   : > { %v9478_v56 = vrot.slane %v9477_v18, 2 }
0x14e1   : > { %v9479_v20 = vadd.f32 %v9478_v56, %v9477_v18 }
0x14e3   : > { %v9480_v14 = vrot.slane %v9479_v20, 1 }
0x14e5   : > { %v9481_v22 = vadd.f32 %v9480_v14, %v9479_v20 }
0x14e7   : > { %v9482_v23 = vmul.f32 0.03125, %v9481_v22 }
0x14e9   : > { %v9483_v24 = vadd.f32 1e-05, %v9482_v23 }
0x14eb   : > { %16001 = vrsqrt.f32 %v9483_v24 }
0x14f5   : > { %v16002_v29 = vpop.eup %16001 }
0x14f6   : > { %v9485_v30 = vmul.f32 %v16002_v29, %v9453_v28 }
0x14f8   : > { %v9489_v32 = vrot.slane %v9485_v30, %v9488_v19  ;;  %v9494_v34 = vmul.f32 %v9485_v30, %v9464_v6 }
0x14fa   : > { %v9490_v35 = vmul.f32 %v15248_v58, %v9489_v32  ;;  %v9491_v26 = vmul.f32 %v15250_v61, %v9489_v32  ;;  %v9492_v36 = vmul.f32 %v15247_v54, %v9489_v32  ;;  %v9493_v37 = vmul.f32 %v15249_v49, %v9489_v32 }
0x14fb   : > { %v9495_v40 = vsub.f32 %v9454_v31, %v9494_v34 }
0x14fd   : > { %v9499_v43 = vrot.slane %v9495_v40, %v9488_v19 }
0x14ff   : > { %v17303_v44 = vadd.f32 %v9499_v43, %v9490_v35  ;;  %v17305_v33 = vadd.f32 %v9499_v43, %v9491_v26  ;;  %v17307_v45 = vadd.f32 %v9499_v43, %v9492_v36  ;;  %v17309_v21 = vadd.f32 %v9499_v43, %v9493_v37 }
0x1501   : > { %v9508_v46 = vmin.f32 %v17303_v44, 20.0  ;;  %v9509_v47 = vmin.f32 %v17305_v33, 20.0  ;;  %v9510_v48 = vmin.f32 %v17307_v45, 20.0  ;;  %v9511_v50 = vmin.f32 %v17309_v21, 20.0 }
0x1502   : > { %vm9504_vm8 = vcmp.gt.f32.partialorder %v17303_v44, 20.0  ;;  %vm9505_vm9 = vcmp.gt.f32.partialorder %v17305_v33, 20.0  ;;  %vm9506_vm10 = vcmp.gt.f32.partialorder %v17307_v45, 20.0  ;;  %vm9507_vm15 = vcmp.gt.f32.partialorder %v17309_v21, 20.0 }
0x1503   : > { %v9512_v51 = vmul.f32 1.442695, %v9508_v46  ;;  %v9514_v42 = vmul.f32 1.442695, %v9509_v47  ;;  %v9516_v52 = vmul.f32 1.442695, %v9510_v48 }
0x1504   : > { %v9518_v41 = vmul.f32 1.442695, %v9511_v50 }
0x1505   : > { %16003 = vpow2.f32 %v9512_v51 }
0x1506   : > { %16005 = vpow2.f32 %v9514_v42 }
0x1507   : > { %16007 = vpow2.f32 %v9516_v52 }
0x1508   : > { %16009 = vpow2.f32 %v9518_v41 }
0x150f   : > { %v16004_v53 = vpop.eup %16003 }
0x1510   : > { %v16006_v54 = vpop.eup %16005  ;;  %v9520_v55 = vadd.f32 1.0, %v16004_v53  ;;  %v9523_v38 = vmul.f32 -0.5, %v16004_v53  ;;  %v9526_v39 = vand.u32 2147483647, %v16004_v53 }
0x1511   : > { %v16008_v58 = vpop.eup %16007  ;;  %v9529_v59 = vadd.f32 1.0, %v16006_v54  ;;  %v9532_v62 = vmul.f32 -0.5, %v16006_v54  ;;  %v9535_v3 = vand.u32 2147483647, %v16006_v54 }
0x1512   : > { %v16010_v49 = vpop.eup %16009  ;;  %16011 = vlog2.f32 %v9520_v55  ;;  %v9538_v60 = vadd.f32 1.0, %v16008_v58  ;;  %v9541_v0 = vmul.f32 -0.5, %v16008_v58  ;;  %v9524_v57 = vadd.f32 1.0, %v9523_v38 }
0x1513   : > { %16013 = vlog2.f32 %v9529_v59  ;;  %v9547_v61 = vadd.f32 1.0, %v16010_v49  ;;  %v9550_v1 = vmul.f32 -0.5, %v16010_v49  ;;  %v9533_v2 = vadd.f32 1.0, %v9532_v62 }
0x1514   : > { %16015 = vlog2.f32 %v9538_v60  ;;  %v9542_v5 = vadd.f32 1.0, %v9541_v0  ;;  %v9544_v7 = vand.u32 2147483647, %v16008_v58  ;;  %v9525_v10 = vmul.f32 %v16004_v53, %v9524_v57 }
0x1515   : > { %16017 = vlog2.f32 %v9547_v61  ;;  %v9551_v8 = vadd.f32 1.0, %v9550_v1  ;;  %vm9527_vm11 = vcmp.lt.f32.partialorder %v9526_v39, 0.0004427343  ;;  %v9534_v13 = vmul.f32 %v16006_v54, %v9533_v2 }
0x1516   : > { %v9553_v4 = vand.u32 2147483647, %v16010_v49  ;;  %vm9536_vm12 = vcmp.lt.f32.partialorder %v9535_v3, 0.0004427343  ;;  %v9543_v17 = vmul.f32 %v16008_v58, %v9542_v5  ;;  %vm9545_vm13 = vcmp.lt.f32.partialorder %v9544_v7, 0.0004427343 }
0x1517   : > { %v9552_v20 = vmul.f32 %v16010_v49, %v9551_v8 }
0x1518   : > { %vm9554_vm14 = vcmp.lt.f32.partialorder %v9553_v4, 0.0004427343 }
0x151c   : > { %v16012_v6 = vpop.eup %16011 }
0x151d   : > { %v16014_v63 = vpop.eup %16013  ;;  %v9522_v9 = vmul.f32 0.6931472, %v16012_v6 }
0x151e   : > { %v16016_v11 = vpop.eup %16015  ;;  %v9531_v12 = vmul.f32 0.6931472, %v16014_v63 }
0x151f   : > { %v9528_v15 = vsel %vm9527_vm11, %v9525_v10, %v9522_v9  ;;  %v9540_v16 = vmul.f32 0.6931472, %v16016_v11  ;;  %v16018_v18 = vpop.eup %16017 }
0x1520   : > { %v9537_v56 = vsel %vm9536_vm12, %v9534_v13, %v9531_v12  ;;  %v9556_v14 = vsel %vm9504_vm8, %v17303_v44, %v9528_v15  ;;  %v9549_v23 = vmul.f32 0.6931472, %v16018_v18 }
0x1521   : > { %v9546_v22 = vsel %vm9545_vm13, %v9543_v17, %v9540_v16  ;;  %v9557_v24 = vsel %vm9505_vm9, %v17305_v33, %v9537_v56  ;;  %16019 = vtanh.f32 %v9556_v14 }
0x1522   : > { %v9558_v25 = vsel %vm9506_vm10, %v17307_v45, %v9546_v22  ;;  %16021 = vtanh.f32 %v9557_v24  ;;  %v9555_v27 = vsel %vm9554_vm14, %v9552_v20, %v9549_v23 }
0x1523   : > { %16023 = vtanh.f32 %v9558_v25  ;;  %v9559_v28 = vsel %vm9507_vm15, %v17309_v21, %v9555_v27 }
0x1524   : > { %16025 = vtanh.f32 %v9559_v28 }
0x152b   : > { %v16020_v19 = vpop.eup %16019 }
0x152c   : > { %v16022_v29 = vpop.eup %16021  ;;  %v9564_v30 = vmul.f32 %v16020_v19, %v17303_v44 }
0x152d   : > { %v16024_v31 = vpop.eup %16023  ;;  %v9565_v32 = vmul.f32 %v16022_v29, %v17305_v33 }
0x152e   : > { %v9566_v34 = vmul.f32 %v16024_v31, %v17307_v45  ;;  %9568 = vst [vmem:[#allocation2 + $0x8] sm:$0xff] %v9564_v30  ;;  %v16026_v35 = vpop.eup %16025 }
0x152f   : > { %9569 = vst [vmem:[#allocation2 + $0x10] sm:$0xff] %v9565_v32  ;;  %v9567_v26 = vmul.f32 %v16026_v35, %v17309_v21 }
0x1530   : > { %9570 = vst [vmem:[#allocation2 + $0x28] sm:$0xff] %v9566_v34 }
0x1531   : > { %9571 = vst [vmem:[#allocation2 + $0x30] sm:$0xff] %v9567_v26 }
0x1532 PF: > { %p12535_p1 = scmp.ne.s32.totalorder %s16362_s25, 6 }
0x1533   : > { %v16027_v36 = vld [vmem:[%s16564_s7 + $0x40] sm:$0xff] (!%p12535_p1)   ;;  %v16029_v40 = vld [vmem:[%s16564_s7 + $0x48] sm:$0xff] (!%p12535_p1)   ;;  %v16031_v44 = vld [vmem:[%s16564_s7 + $0x50] sm:$0xff] (!%p12535_p1)  }
0x1534   : > { %9575 = sbr.rel (%p12535_p1) target bundleno = 5878 (0x16f6), region = 102  ;;  %v16028_v37 = vld [vmem:[%s16564_s7 + $0x100] sm:$0xff] (!%p12535_p1)   ;;  %14875 = vmatprep.subr.bf16.mxu1 (!%p12535_p1), %v16027_v36  ;;  %v16030_v43 = vld [vmem:[%s16564_s7 + $0x108] sm:$0xff] (!%p12535_p1)   ;;  %v16032_v33 = vld [vmem:[%s16564_s7 + $0x110] sm:$0xff] (!%p12535_p1)  }
0x1535   : > { %14955 = vmatprep.subr.bf16.mxu0 (!%p12535_p1), %v16028_v37  ;;  %14876 = vmatpush3.bf16.msra.mxu1 (!%p12535_p1), %v16027_v36  ;;  %v16033_v45 = vld [vmem:[%s16564_s7 + $0x58] sm:$0xff] (!%p12535_p1)   ;;  %v16035_v46 = vld [vmem:[%s16564_s7 + $0x60] sm:$0xff] (!%p12535_p1)   ;;  %v16037_v48 = vld [vmem:[%s16564_s7 + $0x68] sm:$0xff] (!%p12535_p1)  }
0x1536   : > { %14956 = vmatpush3.bf16.msra.mxu0 (!%p12535_p1), %v16028_v37  ;;  %14877 = vmatprep.subr.bf16.mxu1 (!%p12535_p1), %v16029_v40  ;;  %v16034_v21 = vld [vmem:[%s16564_s7 + $0x118] sm:$0xff] (!%p12535_p1)   ;;  %v16036_v47 = vld [vmem:[%s16564_s7 + $0x120] sm:$0xff] (!%p12535_p1)   ;;  %v9599_v51 = vld [vmem:[#allocation2 + $0xd] sm:$0xff] (!%p12535_p1) }
0x1537   : > { %14957 = vmatprep.subr.bf16.mxu0 (!%p12535_p1), %v16030_v43  ;;  %v9598_v50 = vld [vmem:[#allocation2 + $0x5] sm:$0xff] (!%p12535_p1)  ;;  %v10064_v53 = vld [vmem:[#allocation2 + $0x10] sm:$0xff] (!%p12535_p1)  ;;  %v16041_v59 = vld [vmem:[%s16564_s7 + $0x78] sm:$0xff] (!%p12535_p1)  }
0x1538   : > { %v16038_v42 = vld [vmem:[%s16564_s7 + $0x128] sm:$0xff] (!%p12535_p1)   ;;  %v9602_v52 = vpack.c.bf16 (!%p12535_p1), %v9599_v51, %v9598_v50  ;;  %v16039_v55 = vld [vmem:[%s16564_s7 + $0x70] sm:$0xff] (!%p12535_p1)   ;;  %v16042_v49 = vld [vmem:[%s16564_s7 + $0x138] sm:$0xff] (!%p12535_p1)  }
0x1539   : > { %14878 = vmatpush3.bf16.msra.mxu1 (!%p12535_p1), %v16029_v40  ;;  %v10063_v41 = vld [vmem:[#allocation2 + $0x8] sm:$0xff] (!%p12535_p1)  ;;  %v16040_v58 = vld [vmem:[%s16564_s7 + $0x130] sm:$0xff] (!%p12535_p1)   ;;  %v16043_v61 = vld [vmem:[%s16564_s7] sm:$0xff] (!%p12535_p1)  }
0x153a   : > { %14958 = vmatpush3.bf16.msra.mxu0 (!%p12535_p1), %v16030_v43  ;;  %14879 = vmatprep.subr.bf16.mxu1 (!%p12535_p1), %v16031_v44  ;;  %v10067_v54 = vpack.c.bf16 (!%p12535_p1), %v10064_v53, %v10063_v41  ;;  %v9600_v60 = vld [vmem:[#allocation2 + $0x25] sm:$0xff] (!%p12535_p1)  ;;  %v9601_v38 = vld [vmem:[#allocation2 + $0x2d] sm:$0xff] (!%p12535_p1)  ;;  %v16049_v12 = vld [vmem:[%s16564_s7 + $0x18] sm:$0xff] (!%p12535_p1)  }
0x153b   : > { %14959 = vmatprep.subr.bf16.mxu0 %v16032_v33  ;;  %14891 = vmatprep.mubr.bf16.mxu1 %v9602_v52  ;;  %v10065_v62 = vld [vmem:[#allocation2 + $0x28] sm:$0xff]  ;;  %v10066_v0 = vld [vmem:[#allocation2 + $0x30] sm:$0xff]  ;;  %v16044_v1 = vld [vmem:[%s16564_s7 + $0x140] sm:$0xff]   ;;  %v9603_v57 = vpack.c.bf16 %v9601_v38, %v9600_v60 }
0x153c   : > { %14971 = vmatprep.mubr.bf16.mxu0 %v10067_v54  ;;  %v10068_v39 = vpack.c.bf16 %v10066_v0, %v10065_v62  ;;  %v16045_v2 = vld [vmem:[%s16564_s7 + $0x8] sm:$0xff]   ;;  %v16047_v7 = vld [vmem:[%s16564_s7 + $0x10] sm:$0xff]   ;;  %v16050_v13 = vld [vmem:[%s16564_s7 + $0x158] sm:$0xff]  }
0x153d   : > { %14880 = vmatpush3.bf16.msra.mxu1 %v16031_v44  ;;  %v16046_v3 = vld [vmem:[%s16564_s7 + $0x148] sm:$0xff]   ;;  %v10188_v9 = vld [vmem:[#allocation2 + $0x11] sm:$0xff]  ;;  %v16051_v4 = vld [vmem:[%s16564_s7 + $0x20] sm:$0xff]  }
0x153e   : > { %14960 = vmatpush3.bf16.msra.mxu0 %v16032_v33  ;;  %14881 = vmatprep.subr.bf16.mxu1 %v16033_v45  ;;  %v9576_v5 = vld [vmem:[#allocation2 + $0x4] sm:$0xff]  ;;  %v17354_v6 = vld [vmem:[#allocation2 + $0xc] sm:$0xff]  ;;  %v16057_v20 = vld [vmem:[%s16564_s7 + $0x38] sm:$0xff]  }
0x153f   : > { %14961 = vmatprep.subr.bf16.mxu0 %v16034_v21  ;;  %v9580_v8 = vpack.c.bf16 %v17354_v6, %v9576_v5  ;;  %v10187_v63 = vld [vmem:[#allocation2 + $0x9] sm:$0xff]  ;;  %v16052_v15 = vld [vmem:[%s16564_s7 + $0x160] sm:$0xff]   ;;  %v16058_v14 = vld [vmem:[%s16564_s7 + $0x178] sm:$0xff]  }
0x1540   : > { %v16048_v10 = vld [vmem:[%s16564_s7 + $0x150] sm:$0xff]   ;;  %v10191_v11 = vpack.c.bf16 %v10188_v9, %v10187_v63  ;;  %v16053_v16 = vld [vmem:[%s16564_s7 + $0x28] sm:$0xff]   ;;  %v16059_v24 = vld [vmem:[%s16564_s7 + $0x80] sm:$0xff]  }
0x1541   : > { %14882 = vmatpush3.bf16.msra.mxu1 %v16033_v45  ;;  %v16054_v17 = vld [vmem:[%s16564_s7 + $0x168] sm:$0xff]   ;;  %v16055_v18 = vld [vmem:[%s16564_s7 + $0x30] sm:$0xff]   ;;  %v16060_v27 = vld [vmem:[%s16564_s7 + $0x180] sm:$0xff]  }
0x1542   : > { %14962 = vmatpush3.bf16.msra.mxu0 %v16034_v21  ;;  %14883 = vmatprep.subr.bf16.mxu1 %v16035_v46  ;;  %v16056_v56 = vld [vmem:[%s16564_s7 + $0x170] sm:$0xff]   ;;  %v9578_v22 = vld [vmem:[#allocation2 + $0x24] sm:$0xff]  ;;  %v16065_v44 = vld [vmem:[%s16564_s7 + $0x98] sm:$0xff]  }
0x1543   : > { %14963 = vmatprep.subr.bf16.mxu0 %v16036_v47  ;;  %v17369_v23 = vld [vmem:[#allocation2 + $0x2c] sm:$0xff]  ;;  %v16066_v33 = vld [vmem:[%s16564_s7 + $0x198] sm:$0xff]   ;;  %v16067_v45 = vld [vmem:[%s16564_s7 + $0xa0] sm:$0xff]  }
0x1544   : > { %v10189_v25 = vld [vmem:[#allocation2 + $0x29] sm:$0xff]  ;;  %v10190_v28 = vld [vmem:[#allocation2 + $0x31] sm:$0xff]  ;;  %v9581_v30 = vpack.c.bf16 %v17369_v23, %v9578_v22  ;;  %v16068_v21 = vld [vmem:[%s16564_s7 + $0x1a0] sm:$0xff]  }
0x1545   : > { %14884 = vmatpush3.bf16.msra.mxu1 %v16035_v46  ;;  %v9815_v19 = vld [vmem:[#allocation2 + $0x6] sm:$0xff]  ;;  %v9816_v29 = vld [vmem:[#allocation2 + $0xe] sm:$0xff]  ;;  %v10192_v32 = vpack.c.bf16 %v10190_v28, %v10189_v25  ;;  %v16073_v51 = vld [vmem:[%s16564_s7 + $0xb8] sm:$0xff]  }
0x1546   : > { %14964 = vmatpush3.bf16.msra.mxu0 %v16036_v47  ;;  %14885 = vmatprep.subr.bf16.mxu1 %v16037_v48  ;;  %v10311_v31 = vld [vmem:[#allocation2 + $0xa] sm:$0xff]  ;;  %v10312_v34 = vld [vmem:[#allocation2 + $0x12] sm:$0xff]  ;;  %v9819_v36 = vpack.c.bf16 %v9816_v29, %v9815_v19  ;;  %v16075_v53 = vld [vmem:[%s16564_s7 + $0xc0] sm:$0xff]  }
0x1547   : > { %14965 = vmatprep.subr.bf16.mxu0 %v16038_v42  ;;  %v16061_v35 = vld [vmem:[%s16564_s7 + $0x88] sm:$0xff]   ;;  %v10315_v37 = vpack.c.bf16 %v10312_v34, %v10311_v31  ;;  %v16063_v40 = vld [vmem:[%s16564_s7 + $0x90] sm:$0xff]   ;;  %v16081_v5 = vld [vmem:[%s16564_s7 + $0xd8] sm:$0xff]  }
0x1548   : > { %v16062_v26 = vld [vmem:[%s16564_s7 + $0x188] sm:$0xff]   ;;  %v16064_v43 = vld [vmem:[%s16564_s7 + $0x190] sm:$0xff]   ;;  %v16084_v63 = vld [vmem:[%s16564_s7 + $0x1e0] sm:$0xff]  }
0x1549   : > { %14886 = vmatpush3.bf16.msra.mxu1 %v16037_v48  ;;  %v16069_v46 = vld [vmem:[%s16564_s7 + $0xa8] sm:$0xff]   ;;  %v16071_v48 = vld [vmem:[%s16564_s7 + $0xb0] sm:$0xff]   ;;  %v16094_v28 = vld [vmem:[%s16564_s7 + $0x218] sm:$0xff]  }
0x154a   : > { %14966 = vmatpush3.bf16.msra.mxu0 %v16038_v42  ;;  %14887 = vmatprep.subr.bf16.mxu1 %v16039_v55  ;;  %v16070_v47 = vld [vmem:[%s16564_s7 + $0x1a8] sm:$0xff]   ;;  %v16072_v50 = vld [vmem:[%s16564_s7 + $0x1b0] sm:$0xff]   ;;  %v16074_v42 = vld [vmem:[%s16564_s7 + $0x1b8] sm:$0xff]  }
0x154b   : > { %14967 = vmatprep.subr.bf16.mxu0 %v16040_v58  ;;  %v9817_v52 = vld [vmem:[#allocation2 + $0x26] sm:$0xff]  ;;  %v9818_v41 = vld [vmem:[#allocation2 + $0x2e] sm:$0xff] }
0x154c   : > { %v10313_v54 = vld [vmem:[#allocation2 + $0x2a] sm:$0xff]  ;;  %v10436_v62 = vld [vmem:[#allocation2 + $0x13] sm:$0xff]  ;;  %v16095_v19 = vld [vmem:[%s16564_s7 + $0x220] sm:$0xff]  }
0x154d   : > { %14888 = vmatpush3.bf16.msra.mxu1 %v16039_v55  ;;  %v10314_v55 = vld [vmem:[#allocation2 + $0x32] sm:$0xff]  ;;  %v16077_v0 = vld [vmem:[%s16564_s7 + $0xc8] sm:$0xff]  }
0x154e   : > { %14968 = vmatpush3.bf16.msra.mxu0 %v16040_v58  ;;  %14889 = vmatprep.subr.bf16.mxu1 %v16041_v59  ;;  %v16076_v58 = vld [vmem:[%s16564_s7 + $0x1c0] sm:$0xff]   ;;  %v9940_v60 = vld [vmem:[#allocation2 + $0xf] sm:$0xff] }
0x154f   : > { %14969 = vmatprep.subr.bf16.mxu0 %v16042_v49  ;;  %v10435_v38 = vld [vmem:[#allocation2 + $0xb] sm:$0xff]  ;;  %v10562_v31 = vld [vmem:[#allocation2 + $0x34] sm:$0xff] }
0x1550   : > { %v16085_v9 = vld [vmem:[%s16564_s7 + $0xe8] sm:$0xff]   ;;  %v16097_v29 = vld [vmem:[%s16564_s7 + $0x230] sm:$0xff]  }
0x1551   : > { %14890 = vmatpush3.bf16.msra.mxu1 %v16041_v59  ;;  %v9820_v59 = vpack.c.bf16 %v9818_v41, %v9817_v52  ;;  %v16092_v25 = vld [vmem:[%s16564_s7 + $0x208] sm:$0xff]  }
0x1552   : > { %14970 = vmatpush3.bf16.msra.mxu0 %v16042_v49  ;;  %14895 = vmatprep.subr.bf16.mxu1 %v16043_v61  ;;  %v9939_v49 = vld [vmem:[#allocation2 + $0x7] sm:$0xff] }
0x1553   : > { %14975 = vmatprep.subr.bf16.mxu0 %v16044_v1 }
0x1554   : > { %14892 = vmatmul.mubr.bf16.vlgmr.msra.gmra.mrb[0].mxu1 %v9603_v57  ;;  %v9943_v57 = vpack.c.bf16 %v9940_v60, %v9939_v49 }
0x1555   : > { %14896 = vmatpush3.bf16.msra.mxu1 %v16043_v61  ;;  %14972 = vmatmul.mubr.bf16.vlgmr.msra.gmra.mrb[0].mxu0 %v10068_v39  ;;  %v10316_v61 = vpack.c.bf16 %v10314_v55, %v10313_v54  ;;  %v10439_v39 = vpack.c.bf16 %v10436_v62, %v10435_v38 }
0x1556   : > { %14976 = vmatpush3.bf16.msra.mxu0 %v16044_v1  ;;  %14897 = vmatprep.subr.bf16.mxu1 %v16045_v2  ;;  %v16078_v1 = vld [vmem:[%s16564_s7 + $0x1c8] sm:$0xff]  }
0x1557   : > { %14977 = vmatprep.subr.bf16.mxu0 %v16046_v3  ;;  %14911 = vmatprep.mubr.bf16.mxu1 %v9580_v8  ;;  %v16083_v8 = vld [vmem:[%s16564_s7 + $0xe0] sm:$0xff]  }
0x1558   : > { %14991 = vmatprep.mubr.bf16.mxu0 %v10191_v11  ;;  %v16087_v11 = vld [vmem:[%s16564_s7 + $0xf0] sm:$0xff]  }
0x1559   : > { %14898 = vmatpush3.bf16.msra.mxu1 %v16045_v2  ;;  %v16079_v2 = vld [vmem:[%s16564_s7 + $0xd0] sm:$0xff]  }
0x155a   : > { %14978 = vmatpush3.bf16.msra.mxu0 %v16046_v3  ;;  %14899 = vmatprep.subr.bf16.mxu1 %v16047_v7  ;;  %v16080_v3 = vld [vmem:[%s16564_s7 + $0x1d0] sm:$0xff]  }
0x155b   : > { %14979 = vmatprep.subr.bf16.mxu0 %v16048_v10 }
0x155d   : > { %14900 = vmatpush3.bf16.msra.mxu1 %v16047_v7  ;;  %v16082_v7 = vld [vmem:[%s16564_s7 + $0x1d8] sm:$0xff]  }
0x155e   : > { %14980 = vmatpush3.bf16.msra.mxu0 %v16048_v10  ;;  %14901 = vmatprep.subr.bf16.mxu1 %v16049_v12  ;;  %v16086_v10 = vld [vmem:[%s16564_s7 + $0x1e8] sm:$0xff]  }
0x155f   : > { %14981 = vmatprep.subr.bf16.mxu0 %v16050_v13 }
0x1561   : > { %14902 = vmatpush3.bf16.msra.mxu1 %v16049_v12  ;;  %v16088_v12 = vld [vmem:[%s16564_s7 + $0x1f0] sm:$0xff]  }
0x1562   : > { %14982 = vmatpush3.bf16.msra.mxu0 %v16050_v13  ;;  %14903 = vmatprep.subr.bf16.mxu1 %v16051_v4  ;;  %v16089_v13 = vld [vmem:[%s16564_s7 + $0xf8] sm:$0xff]  }
0x1563   : > { %14983 = vmatprep.subr.bf16.mxu0 %v16052_v15 }
0x1565   : > { %14904 = vmatpush3.bf16.msra.mxu1 %v16051_v4  ;;  %v16090_v4 = vld [vmem:[%s16564_s7 + $0x1f8] sm:$0xff]  }
0x1566   : > { %14984 = vmatpush3.bf16.msra.mxu0 %v16052_v15  ;;  %14905 = vmatprep.subr.bf16.mxu1 %v16053_v16  ;;  %v9941_v15 = vld [vmem:[#allocation2 + $0x27] sm:$0xff] }
0x1567   : > { %14985 = vmatprep.subr.bf16.mxu0 %v16054_v17 }
0x1569   : > { %14906 = vmatpush3.bf16.msra.mxu1 %v16053_v16  ;;  %v9942_v16 = vld [vmem:[#allocation2 + $0x2f] sm:$0xff] }
0x156a   : > { %14986 = vmatpush3.bf16.msra.mxu0 %v16054_v17  ;;  %14907 = vmatprep.subr.bf16.mxu1 %v16055_v18  ;;  %v10437_v17 = vld [vmem:[#allocation2 + $0x2b] sm:$0xff] }
0x156b   : > { %14987 = vmatprep.subr.bf16.mxu0 %v16056_v56 }
0x156d   : > { %14908 = vmatpush3.bf16.msra.mxu1 %v16055_v18  ;;  %v10438_v18 = vld [vmem:[#allocation2 + $0x33] sm:$0xff] }
0x156e   : > { %14988 = vmatpush3.bf16.msra.mxu0 %v16056_v56  ;;  %14909 = vmatprep.subr.bf16.mxu1 %v16057_v20  ;;  %v16091_v56 = vld [vmem:[%s16564_s7 + $0x200] sm:$0xff]   ;;  %v10440_v22 = vpack.c.bf16 %v10438_v18, %v10437_v17 }
0x156f   : > { %14989 = vmatprep.subr.bf16.mxu0 %v16058_v14 }
0x1571   : > { %14910 = vmatpush3.bf16.msra.mxu1 %v16057_v20  ;;  %v10560_v20 = vld [vmem:[#allocation2 + $0x14] sm:$0xff] }
0x1572   : > { %14990 = vmatpush3.bf16.msra.mxu0 %v16058_v14  ;;  %14915 = vmatprep.subr.bf16.mxu1 %v16059_v24  ;;  %v9944_v14 = vpack.c.bf16 %v9942_v16, %v9941_v15  ;;  %v10684_v16 = vld [vmem:[#allocation9 + $0x2a] sm:$0x1] }
0x1573   : > { %14995 = vmatprep.subr.bf16.mxu0 %v16060_v27 }
0x1574   : > { %14912 = vmatmul.mubr.bf16.vlgmr.msra.gmra.mrb[0].mxu1 %v9581_v30  ;;  %v16098_v30 = vld [vmem:[%s16564_s7 + $0x238] sm:$0xff]  }
0x1575   : > { %14916 = vmatpush3.bf16.msra.mxu1 %v16059_v24  ;;  %14992 = vmatmul.mubr.bf16.vlgmr.msra.gmra.mrb[0].mxu0 %v10192_v32  ;;  %v10563_v24 = vpack.c.bf16 %v10560_v20, %v17354_v6  ;;  %v16096_v6 = vld [vmem:[%s16564_s7 + $0x228] sm:$0xff]   ;;  %v10564_v32 = vpack.c.bf16 %v10562_v31, %v17369_v23 }
0x1576   : > { %14996 = vmatpush3.bf16.msra.mxu0 %v16060_v27  ;;  %14917 = vmatprep.subr.bf16.mxu1 %v16061_v35  ;;  %v16093_v27 = vld [vmem:[%s16564_s7 + $0x210] sm:$0xff]  }
0x1577   : > { %14997 = vmatprep.subr.bf16.mxu0 %v16062_v26  ;;  %14931 = vmatprep.mubr.bf16.mxu1 %v9819_v36 }
0x1578   : > { %15011 = vmatprep.mubr.bf16.mxu0 %v10315_v37 }
0x1579   : > { %14918 = vmatpush3.bf16.msra.mxu1 %v16061_v35 }
0x157a   : > { %14998 = vmatpush3.bf16.msra.mxu0 %v16062_v26  ;;  %14919 = vmatprep.subr.bf16.mxu1 %v16063_v40 }
0x157b   : > { %14999 = vmatprep.subr.bf16.mxu0 %v16064_v43 }
0x157d   : > { %14920 = vmatpush3.bf16.msra.mxu1 %v16063_v40 }
0x157e   : > { %15000 = vmatpush3.bf16.msra.mxu0 %v16064_v43  ;;  %14921 = vmatprep.subr.bf16.mxu1 %v16065_v44 }
0x157f   : > { %15001 = vmatprep.subr.bf16.mxu0 %v16066_v33 }
0x1581   : > { %14922 = vmatpush3.bf16.msra.mxu1 %v16065_v44 }
0x1582   : > { %15002 = vmatpush3.bf16.msra.mxu0 %v16066_v33  ;;  %14923 = vmatprep.subr.bf16.mxu1 %v16067_v45 }
0x1583   : > { %15003 = vmatprep.subr.bf16.mxu0 %v16068_v21 }
0x1585   : > { %14924 = vmatpush3.bf16.msra.mxu1 %v16067_v45 }
0x1586   : > { %15004 = vmatpush3.bf16.msra.mxu0 %v16068_v21  ;;  %14925 = vmatprep.subr.bf16.mxu1 %v16069_v46 }
0x1587   : > { %15005 = vmatprep.subr.bf16.mxu0 %v16070_v47 }
0x1589   : > { %14926 = vmatpush3.bf16.msra.mxu1 %v16069_v46 }
0x158a   : > { %15006 = vmatpush3.bf16.msra.mxu0 %v16070_v47  ;;  %14927 = vmatprep.subr.bf16.mxu1 %v16071_v48 }
0x158b   : > { %15007 = vmatprep.subr.bf16.mxu0 %v16072_v50 }
0x158d   : > { %14928 = vmatpush3.bf16.msra.mxu1 %v16071_v48 }
0x158e   : > { %15008 = vmatpush3.bf16.msra.mxu0 %v16072_v50  ;;  %14929 = vmatprep.subr.bf16.mxu1 %v16073_v51 }
0x158f   : > { %15009 = vmatprep.subr.bf16.mxu0 %v16074_v42 }
0x1591   : > { %14930 = vmatpush3.bf16.msra.mxu1 %v16073_v51 }
0x1592   : > { %15010 = vmatpush3.bf16.msra.mxu0 %v16074_v42  ;;  %14935 = vmatprep.subr.bf16.mxu1 %v16075_v53 }
0x1593   : > { %15015 = vmatprep.subr.bf16.mxu0 %v16076_v58 }
0x1594   : > { %14932 = vmatmul.mubr.bf16.vlgmr.msra.gmra.mrb[0].mxu1 %v9820_v59 }
0x1595   : > { %14936 = vmatpush3.bf16.msra.mxu1 %v16075_v53  ;;  %15012 = vmatmul.mubr.bf16.vlgmr.msra.gmra.mrb[0].mxu0 %v10316_v61 }
0x1596   : > { %15016 = vmatpush3.bf16.msra.mxu0 %v16076_v58  ;;  %14937 = vmatprep.subr.bf16.mxu1 %v16077_v0 }
0x1597   : > { %15017 = vmatprep.subr.bf16.mxu0 %v16078_v1  ;;  %14951 = vmatprep.mubr.bf16.mxu1 %v9943_v57 }
0x1598   : > { %15031 = vmatprep.mubr.bf16.mxu0 %v10439_v39 }
0x1599   : > { %14938 = vmatpush3.bf16.msra.mxu1 %v16077_v0 }
0x159a   : > { %15018 = vmatpush3.bf16.msra.mxu0 %v16078_v1  ;;  %14939 = vmatprep.subr.bf16.mxu1 %v16079_v2 }
0x159b   : > { %15019 = vmatprep.subr.bf16.mxu0 %v16080_v3 }
0x159d   : > { %14940 = vmatpush3.bf16.msra.mxu1 %v16079_v2 }
0x159e   : > { %15020 = vmatpush3.bf16.msra.mxu0 %v16080_v3  ;;  %14941 = vmatprep.subr.bf16.mxu1 %v16081_v5 }
0x159f   : > { %15021 = vmatprep.subr.bf16.mxu0 %v16082_v7 }
0x15a1   : > { %14942 = vmatpush3.bf16.msra.mxu1 %v16081_v5 }
0x15a2   : > { %15022 = vmatpush3.bf16.msra.mxu0 %v16082_v7  ;;  %14943 = vmatprep.subr.bf16.mxu1 %v16083_v8 }
0x15a3   : > { %15023 = vmatprep.subr.bf16.mxu0 %v16084_v63 }
0x15a5   : > { %14944 = vmatpush3.bf16.msra.mxu1 %v16083_v8 }
0x15a6   : > { %15024 = vmatpush3.bf16.msra.mxu0 %v16084_v63  ;;  %14945 = vmatprep.subr.bf16.mxu1 %v16085_v9 }
0x15a7   : > { %15025 = vmatprep.subr.bf16.mxu0 %v16086_v10 }
0x15a9   : > { %14946 = vmatpush3.bf16.msra.mxu1 %v16085_v9 }
0x15aa   : > { %15026 = vmatpush3.bf16.msra.mxu0 %v16086_v10  ;;  %14947 = vmatprep.subr.bf16.mxu1 %v16087_v11  ;;  %v10716_v10 = vlaneseq }
0x15ab   : > { %15027 = vmatprep.subr.bf16.mxu0 %v16088_v12 }
0x15ad   : > { %14948 = vmatpush3.bf16.msra.mxu1 %v16087_v11  ;;  %v10717_v11 = vshrl.u32 %v10716_v10, 7 }
0x15ae   : > { %15028 = vmatpush3.bf16.msra.mxu0 %v16088_v12  ;;  %14949 = vmatprep.subr.bf16.mxu1 %v16089_v13  ;;  %v10683_v12 = vld [vmem:[#allocation8 + $0x2a] sm:$0x1] }
0x15af   : > { %15029 = vmatprep.subr.bf16.mxu0 %v16090_v4 }
0x15b1   : > { %14950 = vmatpush3.bf16.msra.mxu1 %v16089_v13  ;;  %v10718_v13 = vsub.s32 0, %v10717_v11 }
0x15b2   : > { %15030 = vmatpush3.bf16.msra.mxu0 %v16090_v4 }
0x15b3   : > { %15035 = vmatprep.subr.bf16.mxu0 %v16091_v56 }
0x15b4   : > { %14952 = vmatmul.mubr.bf16.vlgmr.msra.gmra.mrb[0].mxu1 %v9944_v14 }
0x15b5   : > { %15032 = vmatmul.mubr.bf16.vlgmr.msra.gmra.mrb[0].mxu0 %v10440_v22 }
0x15b6   : > { %15036 = vmatpush3.bf16.msra.mxu0 %v16091_v56  ;;  %15051 = vmatprep.mubr.bf16.mxu0 %v10563_v24 }
0x15b7   : > { %15037 = vmatprep.subr.bf16.mxu0 %v16092_v25 }
0x15ba   : > { %15038 = vmatpush3.bf16.msra.mxu0 %v16092_v25 }
0x15bb   : > { %15039 = vmatprep.subr.bf16.mxu0 %v16093_v27 }
0x15be   : > { %15040 = vmatpush3.bf16.msra.mxu0 %v16093_v27 }
0x15bf   : > { %15041 = vmatprep.subr.bf16.mxu0 %v16094_v28 }
0x15c2   : > { %15042 = vmatpush3.bf16.msra.mxu0 %v16094_v28 }
0x15c3   : > { %15043 = vmatprep.subr.bf16.mxu0 %v16095_v19 }
0x15c6   : > { %15044 = vmatpush3.bf16.msra.mxu0 %v16095_v19 }
0x15c7   : > { %15045 = vmatprep.subr.bf16.mxu0 %v16096_v6 }
0x15ca   : > { %15046 = vmatpush3.bf16.msra.mxu0 %v16096_v6 }
0x15cb   : > { %15047 = vmatprep.subr.bf16.mxu0 %v16097_v29 }
0x15ce   : > { %15048 = vmatpush3.bf16.msra.mxu0 %v16097_v29 }
0x15cf   : > { %15049 = vmatprep.subr.bf16.mxu0 %v16098_v30 }
0x15d2   : > { %15050 = vmatpush3.bf16.msra.mxu0 %v16098_v30 }
0x15d5   : > { %15052 = vmatmul.mubr.bf16.vlgmr.msra.gmra.mrb[0].mxu0 %v10564_v32 }
0x1687   : > { %v14953_v34 = vpop.f32.mrb[0].mxu1 }
0x1688   : > { %v10044_v35 = vpop.f32.mrb[1].mxu1 }
0x1689   : > { %v14954_v26 = vpop.f32.mrb[2].mxu1 }
0x168a   : > { %v10047_v36 = vpop.f32.mrb[3].mxu1 }
0x16a8   : > { %v15053_v37 = vpop.f32.mrb[0].mxu0 }
0x16a9   : > { %v15279_v40 = vadd.f32 %v15053_v37, %v14953_v34  ;;  %v10664_v43 = vpop.f32.mrb[1].mxu0 }
0x16aa   : > { %v15280_v44 = vadd.f32 %v10664_v43, %v10044_v35  ;;  %v15054_v33 = vpop.f32.mrb[2].mxu0 }
0x16ab   : > { %v15281_v45 = vadd.f32 %v15054_v33, %v14954_v26  ;;  %v10667_v21 = vpop.f32.mrb[3].mxu0 }
0x16ac   : > { %v15282_v46 = vadd.f32 %v10667_v21, %v10047_v36 }
0x16ae   : > { %v10685_v47 = vadd.f32 %v15282_v46, %v15280_v44 }
0x16b0   : > { %v10686_v48 = vadd.f32 %v15279_v40, %v10685_v47 }
0x16b2   : > { %v10687_v50 = vadd.f32 %v15281_v45, %v10686_v48 }
0x16b4   : > { %v10688_v51 = vrot.slane %v10687_v50, 4 }
0x16b6   : > { %v10689_v42 = vadd.f32 %v10688_v51, %v10687_v50 }
0x16b8   : > { %v10690_v23 = vrot.slane %v10689_v42, 2 }
0x16ba   : > { %v10691_v52 = vadd.f32 %v10690_v23, %v10689_v42 }
0x16bc   : > { %v10692_v41 = vrot.slane %v10691_v52, 1 }
0x16be   : > { %v10693_v53 = vadd.f32 %v10692_v41, %v10691_v52 }
0x16c0   : > { %v10694_v54 = vmul.f32 0.03125, %v10693_v53 }
0x16c2   : > { %v10695_v55 = vsub.f32 %v15280_v44, %v10694_v54  ;;  %v10696_v58 = vsub.f32 %v15282_v46, %v10694_v54  ;;  %v10697_v59 = vsub.f32 %v15279_v40, %v10694_v54  ;;  %v10698_v49 = vsub.f32 %v15281_v45, %v10694_v54 }
0x16c4   : > { %v10699_v60 = vmul.f32 %v10695_v55, %v10695_v55  ;;  %v10700_v61 = vmul.f32 %v10696_v58, %v10696_v58  ;;  %v10701_v38 = vmul.f32 %v10697_v59, %v10697_v59  ;;  %v10702_v0 = vmul.f32 %v10698_v49, %v10698_v49 }
0x16c6   : > { %v10703_v62 = vadd.f32 %v10700_v61, %v10699_v60 }
0x16c8   : > { %v10704_v1 = vadd.f32 %v10703_v62, %v10701_v38 }
0x16ca   : > { %v10705_v57 = vadd.f32 %v10704_v1, %v10702_v0 }
0x16cc   : > { %v10706_v39 = vrot.slane %v10705_v57, 4 }
0x16ce   : > { %v10707_v2 = vadd.f32 %v10706_v39, %v10705_v57 }
0x16d0   : > { %v10708_v3 = vrot.slane %v10707_v2, 2 }
0x16d2   : > { %v10709_v5 = vadd.f32 %v10708_v3, %v10707_v2 }
0x16d4   : > { %v10710_v7 = vrot.slane %v10709_v5, 1 }
0x16d6   : > { %v10711_v8 = vadd.f32 %v10710_v7, %v10709_v5 }
0x16d8   : > { %v10712_v63 = vmul.f32 0.03125, %v10711_v8 }
0x16da   : > { %v10713_v9 = vadd.f32 1e-05, %v10712_v63 }
0x16dc   : > { %16099 = vrsqrt.f32 %v10713_v9 }
0x16e6   : > { %v16100_v4 = vpop.eup %16099 }
0x16e7   : > { %v10715_v15 = vmul.f32 %v16100_v4, %v10683_v12 }
0x16e9   : > { %v10719_v17 = vrot.slane %v10715_v15, %v10718_v13  ;;  %v10724_v18 = vmul.f32 %v10715_v15, %v10694_v54 }
0x16eb   : > { %v10720_v56 = vmul.f32 %v15280_v44, %v10719_v17  ;;  %v10721_v20 = vmul.f32 %v15282_v46, %v10719_v17  ;;  %v10722_v14 = vmul.f32 %v15279_v40, %v10719_v17  ;;  %v10723_v22 = vmul.f32 %v15281_v45, %v10719_v17 }
0x16ec   : > { %v10725_v24 = vsub.f32 %v10684_v16, %v10724_v18 }
0x16ee   : > { %v10729_v25 = vrot.slane %v10725_v24, %v10718_v13 }
0x16f0   : > { %v10730_v27 = vadd.f32 %v10729_v25, %v10720_v56  ;;  %v10731_v28 = vadd.f32 %v10729_v25, %v10721_v20  ;;  %v10732_v19 = vadd.f32 %v10729_v25, %v10722_v14  ;;  %v10733_v6 = vadd.f32 %v10729_v25, %v10723_v22 }
0x16f2   : > { %v10734_v29 = vmax.f32 %v10730_v27, 0.0  ;;  %v10735_v30 = vmax.f32 %v10731_v28, 0.0  ;;  %v10736_v31 = vmax.f32 %v10732_v19, 0.0  ;;  %v10737_v32 = vmax.f32 %v10733_v6, 0.0 }
0x16f4   : > { %10738 = vst [vmem:[%s17453_s5] sm:$0xff] %v10734_v29  ;;  %10739 = vst [vmem:[%s17453_s5 + $0x8] sm:$0xff] %v10735_v30 }
0x16f5   : > { %10740 = vst [vmem:[%s17453_s5 + $0x10] sm:$0xff] %v10736_v31  ;;  %10741 = vst [vmem:[%s17453_s5 + $0x18] sm:$0xff] %v10737_v32 }
0x16f6 PF: > { %s17478_s27 = smov %s16437_s21  ;;  %p19_p6 = scmp.ge.s32.totalorder %s16437_s21, 9  }
0x16f7   : > { %s17479_s18 = smov %s16269_s19  ;;  %s17480_s19 = smov %s16273_s20 }
0x16f8   : > { %s17481_s20 = smov %s16521_s29  ;;  %s17482_s21 = smov %s16281_s22 }
0x16f9   : > { %s17483_s22 = smov %s16285_s23  ;;  %s17484_s23 = smov %s16453_s8 }
0x16fa   : > { %s17485_s24 = smov %s17478_s27  ;;  %21 = sbr.rel (!%p19_p6) target bundleno = 8 (0x8), region = 245 }
0x1701   :  { %10753 = vsyncpa [#allocation5], 1 }
0x1702   :  { %10755 = vsyncpa [#allocation5 + $0x1], 1 }
0x1703   :  { %10756 = vsyncpa [#allocation7], 1 }
0x1704   :  { %10758 = vsyncpa [#allocation7 + $0x1], 1 }
0x1705   :  { %10759 = vsyncpa [#allocation10], 1 }
0x1706   :  { %10760 = vsyncmov [#allocation3] }
0x1709   :  { %s10761_s17 = vpop.sfrf %10760 }
0x170a   :  { %p12738_p3 = scmp.ne.s32.totalorder %s10761_s17, 0 }
0x170c   :  { %10765 = shalt.err (%p12738_p3)  }

</bundles_post_ra>
